<compile_context>
chip_gen: v7x
topology: tpu7x:2x2x1
jax: 0.10.0
libtpu: 0.0.40
codegen_flags: <defaults>
</compile_context>

<pallas_src>
import functools
import math

import jax
import jax.numpy as jnp
from jax.experimental import pallas as pl
from jax.experimental.pallas import tpu as pltpu

EPS = 1e-5  # BatchNorm1d default eps


# ----------------------------------------------------------------------------
# Kernel A: fused per-point projections
#   h   = ReLU(x @ Wfc1_folded + bfc1)                (fc1 + BN1 + ReLU)
#   qkv = h @ Wqkv_folded + bqkv                      (q|k|v in one matmul)
#   ReLU on the q,k columns only (v has no activation) -> (tn, 3C) slab
# ----------------------------------------------------------------------------
def _proj_kernel(feat_ref, w1_ref, b1_ref, wqkv_ref, bqkv_ref, out_ref):
    c = feat_ref.shape[-1]
    x = feat_ref[...]
    h = jnp.dot(x, w1_ref[...], preferred_element_type=jnp.float32) + b1_ref[...]
    h = jnp.maximum(h, 0.0)
    r = jnp.dot(h, wqkv_ref[...], preferred_element_type=jnp.float32) + bqkv_ref[...]
    col = jax.lax.broadcasted_iota(jnp.int32, r.shape, 1)
    out_ref[...] = jnp.where(col < 2 * c, jnp.maximum(r, 0.0), r)


# ----------------------------------------------------------------------------
# Kernel B: grouped vector attention + BN2 + fc3/BN3 + residual + ReLU
#   All BN affines and the group->lane expansion of the weight-encoding MLP
#   are pre-folded into the parameter tensors (see prepare_block_params).
# ----------------------------------------------------------------------------
def _attn_kernel(idn_ref, q_ref, kvg_ref, pos_ref, mask_ref,
                 wp1_ref, bp1_ref, wp2_ref, bp2_ref,
                 ww1_ref, bw1_ref, ww2_ref, bw2_ref,
                 bn2s_ref, bn2b_ref, wfc3_ref, bfc3_ref,
                 out_ref):
    tn, k, c2 = kvg_ref.shape
    c = c2 // 2

    # --- positional-encoding bias MLP: 3 broadcast FMAs -> ReLU -> (C,C) matmul
    pos = pos_ref[...]                       # (tn, K, 3)
    wp1 = wp1_ref[...]                       # (3, C)   (BN folded in)
    peb = (pos[:, :, 0:1] * wp1[0:1, :][None]
           + pos[:, :, 1:2] * wp1[1:2, :][None]
           + pos[:, :, 2:3] * wp1[2:3, :][None]
           + bp1_ref[...][None])             # (tn, K, C)
    peb = jnp.maximum(peb, 0.0)
    peb = jnp.dot(peb.reshape(tn * k, c), wp2_ref[...],
                  preferred_element_type=jnp.float32) + bp2_ref[...]
    peb = peb.reshape(tn, k, c)

    # --- relation / value (grouped key|value arrive as one lane-dense block)
    kvg = kvg_ref[...]                       # (tn, K, 2C)
    keyg = kvg[:, :, :c]
    valg = kvg[:, :, c:]
    q = q_ref[...]                           # (tn, C)
    rel = keyg - q[:, None, :] + peb
    val = valg + peb

    # --- weight encoding, lane-expanded (each group weight repeated I times):
    #     relu(rel @ Ww1_exp + b) @ Ww2_exp + b  -> (tn, K, C), identical value
    #     on all lanes of a group.
    w1 = jnp.dot(rel.reshape(tn * k, c), ww1_ref[...],
                 preferred_element_type=jnp.float32) + bw1_ref[...]
    w1 = jnp.maximum(w1, 0.0)
    w = jnp.dot(w1, ww2_ref[...], preferred_element_type=jnp.float32) + bw2_ref[...]
    w = w.reshape(tn, k, c)

    # --- softmax over the neighbour axis (torch dim=1), per lane
    wmax = jnp.max(w, axis=1, keepdims=True)
    e = jnp.exp(w - wmax)
    denom = jnp.sum(e, axis=1, keepdims=True)
    w = e * pl.reciprocal(denom, approx=True)
    w = w * mask_ref[...][:, :, None]        # mask invalid neighbours post-softmax

    # --- grouped aggregation == single elementwise mul + one sublane reduction
    attn = jnp.sum(val * w, axis=1)          # (tn, C)

    # --- BN2 -> ReLU -> fc3 (BN3 folded) -> residual -> ReLU
    f = jnp.maximum(attn * bn2s_ref[...] + bn2b_ref[...], 0.0)
    f = jnp.dot(f, wfc3_ref[...], preferred_element_type=jnp.float32) + bfc3_ref[...]
    out_ref[...] = jnp.maximum(idn_ref[...] + f, 0.0)


# ----------------------------------------------------------------------------
# pallas_call wrappers
# ----------------------------------------------------------------------------
def _const(i):
    return (0, 0)


def run_proj(feat, p, tn, vmem_limit_bytes=None):
    n, c = feat.shape
    c3 = p['w_qkv'].shape[1]
    row = lambda i: (i, 0)
    params = [p['w_fc1'], p['b_fc1'], p['w_qkv'], p['b_qkv']]
    in_specs = [pl.BlockSpec((tn, c), row)] + \
               [pl.BlockSpec(w.shape, _const) for w in params]
    return pl.pallas_call(
        _proj_kernel,
        grid=(n // tn,),
        in_specs=in_specs,
        out_specs=pl.BlockSpec((tn, c3), row),
        out_shape=jax.ShapeDtypeStruct((n, c3), jnp.float32),
        compiler_params=pltpu.CompilerParams(
            dimension_semantics=("parallel",),
            vmem_limit_bytes=vmem_limit_bytes),
    )(feat, *params)


def run_attn(identity, q, kvg, pos, mask, p, tn, vmem_limit_bytes=None):
    n, c = identity.shape
    k = kvg.shape[1]
    row2 = lambda i: (i, 0)
    row3 = lambda i: (i, 0, 0)
    params = [p['w_p1'], p['b_p1'], p['w_p2'], p['b_p2'],
              p['w_w1'], p['b_w1'], p['w_w2'], p['b_w2'],
              p['bn2_s'], p['bn2_b'], p['w_fc3'], p['b_fc3']]
    in_specs = [pl.BlockSpec((tn, c), row2),            # identity
                pl.BlockSpec((tn, c), row2),            # query
                pl.BlockSpec((tn, k, 2 * c), row3),     # grouped key|value
                pl.BlockSpec((tn, k, 3), row3),         # relative xyz
                pl.BlockSpec((tn, k), row2)] + \
               [pl.BlockSpec(w.shape, _const) for w in params]
    return pl.pallas_call(
        _attn_kernel,
        grid=(n // tn,),
        in_specs=in_specs,
        out_specs=pl.BlockSpec((tn, c), row2),
        out_shape=jax.ShapeDtypeStruct((n, c), jnp.float32),
        compiler_params=pltpu.CompilerParams(
            dimension_semantics=("parallel",),
            vmem_limit_bytes=vmem_limit_bytes),
    )(identity, q, kvg, pos, mask, *params)


# ----------------------------------------------------------------------------
# Plain-JAX glue: KNN query (pointops.knn_query) and grouping (pointops.grouping)
# ----------------------------------------------------------------------------
def knn_query(k, coord, offset):
    """Brute-force KNN within each batch segment (cumulative `offset`).
    Segments with fewer than k points get -1 padding (matches pointops)."""
    n = coord.shape[0]
    seg = jnp.searchsorted(offset, jnp.arange(n), side='right')
    d2 = jnp.sum((coord[:, None, :] - coord[None, :, :]) ** 2, axis=-1)
    same = seg[:, None] == seg[None, :]
    d2 = jnp.where(same, d2, jnp.inf)
    neg, idx = jax.lax.top_k(-d2, k)
    idx = jnp.where(jnp.isfinite(neg), idx, -1)
    return idx.astype(jnp.int32)


def group_rows(idx, x):
    """Gather neighbour rows of x:[N,C] -> [N,K,C]; zero rows for idx == -1."""
    safe = jnp.maximum(idx, 0)
    return x[safe] * (idx >= 0).astype(x.dtype)[..., None]


def group_pos(idx, coord):
    safe = jnp.maximum(idx, 0)
    g = coord[safe] - coord[:, None, :]                 # relative xyz
    return g * (idx >= 0).astype(coord.dtype)[..., None]


def pad_rows(x, n_pad):
    if n_pad == 0:
        return x
    return jnp.pad(x, [(0, n_pad)] + [(0, 0)] * (x.ndim - 1))


# ----------------------------------------------------------------------------
# Parameter init (raw, PyTorch-layout) and eval-mode folding / fusion
# ----------------------------------------------------------------------------
def init_bn(key, c):
    k1, k2, k3, k4 = jax.random.split(key, 4)
    gamma = 1.0 + 0.1 * jax.random.normal(k1, (c,), jnp.float32)
    beta = 0.05 * jax.random.normal(k2, (c,), jnp.float32)
    mean = 0.05 * jax.random.normal(k3, (c,), jnp.float32)
    var = 1.0 + 0.1 * jnp.abs(jax.random.normal(k4, (c,), jnp.float32))
    scale = gamma / jnp.sqrt(var + EPS)
    shift = beta - mean * scale
    return scale.reshape(1, c), shift.reshape(1, c)


def init_linear(key, fin, fout, bias=True):
    k1, k2 = jax.random.split(key)
    w = jax.random.normal(k1, (fin, fout), jnp.float32) / math.sqrt(fin)
    b = 0.02 * jax.random.normal(k2, (1, fout), jnp.float32) if bias else None
    return w, b


def init_block_params_raw(key, c, g):
    ks = jax.random.split(key, 16)
    r = {}
    r['wfc1'], _ = init_linear(ks[0], c, c, bias=False)
    r['bn1'] = init_bn(ks[1], c)
    r['wq'], r['bq'] = init_linear(ks[2], c, c)
    r['bnq'] = init_bn(ks[3], c)
    r['wk'], r['bk'] = init_linear(ks[4], c, c)
    r['bnk'] = init_bn(ks[5], c)
    r['wv'], r['bv'] = init_linear(ks[6], c, c)
    r['wp1'], r['bp1'] = init_linear(ks[7], 3, c)
    r['bnp'] = init_bn(ks[8], c)
    r['wp2'], r['bp2'] = init_linear(ks[9], c, c)
    r['ww1'], r['bw1'] = init_linear(ks[10], c, g)
    r['bnw'] = init_bn(ks[11], g)
    r['ww2'], r['bw2'] = init_linear(ks[12], g, g)
    r['bn2'] = init_bn(ks[13], c)
    r['wfc3'], _ = init_linear(ks[14], c, c, bias=False)
    r['bn3'] = init_bn(ks[15], c)
    return r


def prepare_block_params(r, groups):
    """Fold eval-mode BN into the preceding linears, fuse q/k/v, and expand the
    (C->G->G) weight-encoding MLP to lane-dense (C->C->C) with repeated group
    columns, so the kernels do no per-channel affines and no lane-sparse math."""
    c = r['wfc1'].shape[0]
    i = c // groups
    s1, t1 = r['bn1']
    sq, tq = r['bnq']
    sk, tk = r['bnk']
    proj = {
        'w_fc1': r['wfc1'] * s1,
        'b_fc1': t1,
        'w_qkv': jnp.concatenate([r['wq'] * sq, r['wk'] * sk, r['wv']], axis=1),
        'b_qkv': jnp.concatenate([r['bq'] * sq + tq, r['bk'] * sk + tk, r['bv']],
                                 axis=1),
    }
    sp, tp = r['bnp']
    sw, tw = r['bnw']
    attn = {
        'w_p1': r['wp1'] * sp,
        'b_p1': r['bp1'] * sp + tp,
        'w_p2': r['wp2'],
        'b_p2': r['bp2'],
        # lane-expanded weight encoding (each group column repeated i times)
        'w_w1': jnp.repeat(r['ww1'] * sw, i, axis=1),             # (C, C)
        'b_w1': jnp.repeat(r['bw1'] * sw + tw, i, axis=1),        # (1, C)
        'w_w2': jnp.repeat(jnp.repeat(r['ww2'], i, axis=0), i, axis=1) / i,
        'b_w2': jnp.repeat(r['bw2'], i, axis=1),                  # (1, C)
        'bn2_s': r['bn2'][0], 'bn2_b': r['bn2'][1],
        'w_fc3': r['wfc3'] * r['bn3'][0],
        'b_fc3': r['bn3'][1],
    }
    return {'proj': proj, 'attn': attn}


# ----------------------------------------------------------------------------
# Tile-size selection (VMEM-budget based; amortize ~0.35us per grid step)
# ----------------------------------------------------------------------------
def choose_tn(n, k, c, target=256, vmem_budget_bytes=8 << 20):
    # Dominant per-row f32 VMEM in the attention kernel: double-buffered
    # (K,2C)+(K,3)+(K,) input blocks plus ~4 (K,C) intermediates + row vectors.
    # On v6e the budget (and vmem_limit_bytes) can be raised; on v7x keep
    # roughly half of a v6e setting (64 MiB physical VMEM per TensorCore).
    per_row = 4 * (2 * k * (2 * c + 4) + 4 * k * c + 8 * c)
    tn = min(target, max(8, vmem_budget_bytes // max(per_row, 1)))
    tn = min(tn, ((n + 7) // 8) * 8)
    return max(8, (tn // 8) * 8)


# ----------------------------------------------------------------------------
# BlockSequence forward
# ----------------------------------------------------------------------------
def block_sequence_forward(coord, feat, offset, block_params, *,
                           neighbours, tn, vmem_limit_bytes=None):
    n, c = feat.shape
    ref_idx = knn_query(neighbours, coord, offset)
    mask = (ref_idx >= 0).astype(jnp.float32)        # torch.sign(ref_idx + 1)
    pos = group_pos(ref_idx, coord)

    # Pad the point dimension to a multiple of tn (padded rows are masked out
    # of every neighbourhood and sliced off at the end).
    n_pad = pl.cdiv(n, tn) * tn - n
    feat_p = pad_rows(feat, n_pad)
    pos_p = pad_rows(pos, n_pad)
    mask_p = pad_rows(mask, n_pad)
    idx_p = pad_rows(ref_idx, n_pad)

    for bp in block_params:
        identity = feat_p
        qkv = run_proj(feat_p, bp['proj'], tn, vmem_limit_bytes)   # (Np, 3C)
        q = qkv[:, :c]
        kv = qkv[:, c:]                                            # key|value
        kvg = group_rows(idx_p, kv)                                # (Np, K, 2C)
        feat_p = run_attn(identity, q, kvg, pos_p, mask_p, bp['attn'],
                          tn, vmem_limit_bytes)
    return coord, feat_p[:n], offset


if __name__ == "__main__":
    N, C, G, NEIGH, DEPTH = 70, 32, 4, 8, 2   # N deliberately not a tile multiple

    key = jax.random.PRNGKey(0)
    kc, kf, kp = jax.random.split(key, 3)
    coord = jax.random.normal(kc, (N, 3), jnp.float32)
    feat = jax.random.normal(kf, (N, C), jnp.float32)
    offset = jnp.array([N // 2, N], dtype=jnp.int32)   # 2 point clouds

    raw = [init_block_params_raw(jax.random.fold_in(kp, i), C, G)
           for i in range(DEPTH)]
    block_params = [prepare_block_params(r, G) for r in raw]

    TN = choose_tn(N, NEIGH, C)

    fwd = jax.jit(block_sequence_forward,
                  static_argnames=("neighbours", "tn", "vmem_limit_bytes"))
    _, out_feat, _ = fwd(coord, feat, offset, block_params,
                         neighbours=NEIGH, tn=TN)
    out_feat = jax.block_until_ready(out_feat)

    assert out_feat.shape == (N, C)
    assert bool(jnp.all(jnp.isfinite(out_feat)))
    print("KERNEL_OK")
</pallas_src>

<mosaic_0001>
module attributes {stable_mosaic.version = 11 : i64} {
  func.func @_proj_kernel(%arg0: i32, %arg1: memref<72x32xf32, #tpu.memory_space<vmem>>, %arg2: memref<32x32xf32, #tpu.memory_space<vmem>>, %arg3: memref<1x32xf32, #tpu.memory_space<vmem>>, %arg4: memref<32x96xf32, #tpu.memory_space<vmem>>, %arg5: memref<1x96xf32, #tpu.memory_space<vmem>>, %arg6: memref<72x96xf32, #tpu.memory_space<vmem>>) attributes {dimension_semantics = [#tpu.dimension_semantics<parallel>], iteration_bounds = array<i64: 1>, scalar_prefetch = 0 : i64, scratch_operands = 0 : i64, tpu.core_type = #tpu.core_type<tc>, window_params = [{transform_indices = @transform_0, window_bounds = array<i64: 72, 32>}, {pipeline_mode = #tpu.pipeline_mode<synchronous>, transform_indices = @transform_1, window_bounds = array<i64: 32, 32>}, {pipeline_mode = #tpu.pipeline_mode<synchronous>, transform_indices = @transform_2, window_bounds = array<i64: 1, 32>}, {pipeline_mode = #tpu.pipeline_mode<synchronous>, transform_indices = @transform_3, window_bounds = array<i64: 32, 96>}, {pipeline_mode = #tpu.pipeline_mode<synchronous>, transform_indices = @transform_4, window_bounds = array<i64: 1, 96>}, {transform_indices = @transform_5, window_bounds = array<i64: 72, 96>}]} {
    %c0 = arith.constant 0 : index
    %c0_0 = arith.constant 0 : index
    %0 = vector.load %arg1[%c0, %c0_0] : memref<72x32xf32, #tpu.memory_space<vmem>>, vector<72x32xf32>
    %c0_1 = arith.constant 0 : index
    %c0_2 = arith.constant 0 : index
    %1 = vector.load %arg2[%c0_1, %c0_2] : memref<32x32xf32, #tpu.memory_space<vmem>>, vector<32x32xf32>
    %cst = arith.constant dense<0.000000e+00> : vector<72x32xf32>
    %2 = tpu.matmul %0, %1, %cst {dimension_numbers = #tpu.dot_dimension_numbers<[1], [0], [0], [1], [0, 0, 1, 1], [], []>} : vector<72x32xf32>, vector<32x32xf32>, vector<72x32xf32> -> vector<72x32xf32>
    %c0_3 = arith.constant 0 : index
    %c0_4 = arith.constant 0 : index
    %3 = vector.load %arg3[%c0_3, %c0_4] : memref<1x32xf32, #tpu.memory_space<vmem>>, vector<1x32xf32>
    %4 = vector.broadcast %3 : vector<1x32xf32> to vector<72x32xf32>
    %5 = arith.addf %2, %4 : vector<72x32xf32>
    %cst_5 = arith.constant 0.000000e+00 : f32
    %6 = vector.broadcast %cst_5 : f32 to vector<72x32xf32>
    %7 = arith.maximumf %5, %6 : vector<72x32xf32>
    %c0_6 = arith.constant 0 : index
    %c0_7 = arith.constant 0 : index
    %8 = vector.load %arg4[%c0_6, %c0_7] : memref<32x96xf32, #tpu.memory_space<vmem>>, vector<32x96xf32>
    %cst_8 = arith.constant dense<0.000000e+00> : vector<72x96xf32>
    %9 = tpu.matmul %7, %8, %cst_8 {dimension_numbers = #tpu.dot_dimension_numbers<[1], [0], [0], [1], [0, 0, 1, 1], [], []>} : vector<72x32xf32>, vector<32x96xf32>, vector<72x96xf32> -> vector<72x96xf32>
    %c0_9 = arith.constant 0 : index
    %c0_10 = arith.constant 0 : index
    %10 = vector.load %arg5[%c0_9, %c0_10] : memref<1x96xf32, #tpu.memory_space<vmem>>, vector<1x96xf32>
    %11 = vector.broadcast %10 : vector<1x96xf32> to vector<72x96xf32>
    %12 = arith.addf %9, %11 : vector<72x96xf32>
    %13 = tpu.iota {dimensions = array<i32: 1>} : vector<72x96xi32>
    %c64_i32 = arith.constant 64 : i32
    %14 = vector.broadcast %c64_i32 : i32 to vector<72x96xi32>
    %15 = arith.cmpi slt, %13, %14 : vector<72x96xi32>
    %cst_11 = arith.constant 0.000000e+00 : f32
    %16 = vector.broadcast %cst_11 : f32 to vector<72x96xf32>
    %17 = arith.maximumf %12, %16 : vector<72x96xf32>
    %18 = arith.select %15, %17, %12 : vector<72x96xi1>, vector<72x96xf32>
    %c0_12 = arith.constant 0 : index
    %c0_13 = arith.constant 0 : index
    %19 = vector.load %arg6[%c0_12, %c0_13] : memref<72x96xf32, #tpu.memory_space<vmem>>, vector<72x96xf32>
    tpu.vector_store %arg6[%c0_12, %c0_13], %18 {strides = array<i32>} : memref<72x96xf32, #tpu.memory_space<vmem>>, vector<72x96xf32>,
    return
  }
  func.func @transform_0(%arg0: i32) -> (i32, i32) {
    %c0_i32 = arith.constant 0 : i32
    %c0_i32_0 = arith.constant 0 : i32
    return %arg0, %c0_i32 : i32, i32
  }
  func.func @transform_1(%arg0: i32) -> (i32, i32) {
    %c0_i32 = arith.constant 0 : i32
    %c0_i32_0 = arith.constant 0 : i32
    %c0_i32_1 = arith.constant 0 : i32
    return %c0_i32, %c0_i32_0 : i32, i32
  }
  func.func @transform_2(%arg0: i32) -> (i32, i32) {
    %c0_i32 = arith.constant 0 : i32
    %c0_i32_0 = arith.constant 0 : i32
    %c0_i32_1 = arith.constant 0 : i32
    return %c0_i32, %c0_i32_0 : i32, i32
  }
  func.func @transform_3(%arg0: i32) -> (i32, i32) {
    %c0_i32 = arith.constant 0 : i32
    %c0_i32_0 = arith.constant 0 : i32
    %c0_i32_1 = arith.constant 0 : i32
    return %c0_i32, %c0_i32_0 : i32, i32
  }
  func.func @transform_4(%arg0: i32) -> (i32, i32) {
    %c0_i32 = arith.constant 0 : i32
    %c0_i32_0 = arith.constant 0 : i32
    %c0_i32_1 = arith.constant 0 : i32
    return %c0_i32, %c0_i32_0 : i32, i32
  }
  func.func @transform_5(%arg0: i32) -> (i32, i32) {
    %c0_i32 = arith.constant 0 : i32
    %c0_i32_0 = arith.constant 0 : i32
    return %arg0, %c0_i32 : i32, i32
  }
}

module attributes {stable_mosaic.version = 11 : i64} {
  func.func @_attn_kernel(%arg0: i32, %arg1: memref<72x32xf32, #tpu.memory_space<vmem>>, %arg2: memref<72x32xf32, #tpu.memory_space<vmem>>, %arg3: memref<72x8x64xf32, #tpu.memory_space<vmem>>, %arg4: memref<72x8x3xf32, #tpu.memory_space<vmem>>, %arg5: memref<72x8xf32, #tpu.memory_space<vmem>>, %arg6: memref<3x32xf32, #tpu.memory_space<vmem>>, %arg7: memref<1x32xf32, #tpu.memory_space<vmem>>, %arg8: memref<32x32xf32, #tpu.memory_space<vmem>>, %arg9: memref<1x32xf32, #tpu.memory_space<vmem>>, %arg10: memref<32x32xf32, #tpu.memory_space<vmem>>, %arg11: memref<1x32xf32, #tpu.memory_space<vmem>>, %arg12: memref<32x32xf32, #tpu.memory_space<vmem>>, %arg13: memref<1x32xf32, #tpu.memory_space<vmem>>, %arg14: memref<1x32xf32, #tpu.memory_space<vmem>>, %arg15: memref<1x32xf32, #tpu.memory_space<vmem>>, %arg16: memref<32x32xf32, #tpu.memory_space<vmem>>, %arg17: memref<1x32xf32, #tpu.memory_space<vmem>>, %arg18: memref<72x32xf32, #tpu.memory_space<vmem>>) attributes {dimension_semantics = [#tpu.dimension_semantics<parallel>], iteration_bounds = array<i64: 1>, scalar_prefetch = 0 : i64, scratch_operands = 0 : i64, tpu.core_type = #tpu.core_type<tc>, window_params = [{transform_indices = @transform_0, window_bounds = array<i64: 72, 32>}, {transform_indices = @transform_1, window_bounds = array<i64: 72, 32>}, {transform_indices = @transform_2, window_bounds = array<i64: 72, 8, 64>}, {transform_indices = @transform_3, window_bounds = array<i64: 72, 8, 3>}, {transform_indices = @transform_4, window_bounds = array<i64: 72, 8>}, {pipeline_mode = #tpu.pipeline_mode<synchronous>, transform_indices = @transform_5, window_bounds = array<i64: 3, 32>}, {pipeline_mode = #tpu.pipeline_mode<synchronous>, transform_indices = @transform_6, window_bounds = array<i64: 1, 32>}, {pipeline_mode = #tpu.pipeline_mode<synchronous>, transform_indices = @transform_7, window_bounds = array<i64: 32, 32>}, {pipeline_mode = #tpu.pipeline_mode<synchronous>, transform_indices = @transform_8, window_bounds = array<i64: 1, 32>}, {pipeline_mode = #tpu.pipeline_mode<synchronous>, transform_indices = @transform_9, window_bounds = array<i64: 32, 32>}, {pipeline_mode = #tpu.pipeline_mode<synchronous>, transform_indices = @transform_10, window_bounds = array<i64: 1, 32>}, {pipeline_mode = #tpu.pipeline_mode<synchronous>, transform_indices = @transform_11, window_bounds = array<i64: 32, 32>}, {pipeline_mode = #tpu.pipeline_mode<synchronous>, transform_indices = @transform_12, window_bounds = array<i64: 1, 32>}, {pipeline_mode = #tpu.pipeline_mode<synchronous>, transform_indices = @transform_13, window_bounds = array<i64: 1, 32>}, {pipeline_mode = #tpu.pipeline_mode<synchronous>, transform_indices = @transform_14, window_bounds = array<i64: 1, 32>}, {pipeline_mode = #tpu.pipeline_mode<synchronous>, transform_indices = @transform_15, window_bounds = array<i64: 32, 32>}, {pipeline_mode = #tpu.pipeline_mode<synchronous>, transform_indices = @transform_16, window_bounds = array<i64: 1, 32>}, {transform_indices = @transform_17, window_bounds = array<i64: 72, 32>}]} {
    %c0 = arith.constant 0 : index
    %c0_0 = arith.constant 0 : index
    %c0_1 = arith.constant 0 : index
    %0 = vector.load %arg4[%c0, %c0_0, %c0_1] : memref<72x8x3xf32, #tpu.memory_space<vmem>>, vector<72x8x3xf32>
    %c0_2 = arith.constant 0 : index
    %c0_3 = arith.constant 0 : index
    %1 = vector.load %arg6[%c0_2, %c0_3] : memref<3x32xf32, #tpu.memory_space<vmem>>, vector<3x32xf32>
    %2 = vector.extract_strided_slice %0 {offsets = [0, 0, 0], sizes = [72, 8, 1], strides = [1, 1, 1]} : vector<72x8x3xf32> to vector<72x8x1xf32>
    %3 = vector.extract_strided_slice %1 {offsets = [0, 0], sizes = [1, 32], strides = [1, 1]} : vector<3x32xf32> to vector<1x32xf32>
    %4 = vector.shape_cast %3 : vector<1x32xf32> to vector<1x1x32xf32>
    %5 = vector.broadcast %2 : vector<72x8x1xf32> to vector<72x8x32xf32>
    %6 = vector.broadcast %4 : vector<1x1x32xf32> to vector<72x8x32xf32>
    %7 = arith.mulf %5, %6 : vector<72x8x32xf32>
    %8 = vector.extract_strided_slice %0 {offsets = [0, 0, 1], sizes = [72, 8, 1], strides = [1, 1, 1]} : vector<72x8x3xf32> to vector<72x8x1xf32>
    %9 = vector.extract_strided_slice %1 {offsets = [1, 0], sizes = [1, 32], strides = [1, 1]} : vector<3x32xf32> to vector<1x32xf32>
    %10 = vector.shape_cast %9 : vector<1x32xf32> to vector<1x1x32xf32>
    %11 = vector.broadcast %8 : vector<72x8x1xf32> to vector<72x8x32xf32>
    %12 = vector.broadcast %10 : vector<1x1x32xf32> to vector<72x8x32xf32>
    %13 = arith.mulf %11, %12 : vector<72x8x32xf32>
    %14 = arith.addf %7, %13 : vector<72x8x32xf32>
    %15 = vector.extract_strided_slice %0 {offsets = [0, 0, 2], sizes = [72, 8, 1], strides = [1, 1, 1]} : vector<72x8x3xf32> to vector<72x8x1xf32>
    %16 = vector.extract_strided_slice %1 {offsets = [2, 0], sizes = [1, 32], strides = [1, 1]} : vector<3x32xf32> to vector<1x32xf32>
    %17 = vector.shape_cast %16 : vector<1x32xf32> to vector<1x1x32xf32>
    %18 = vector.broadcast %15 : vector<72x8x1xf32> to vector<72x8x32xf32>
    %19 = vector.broadcast %17 : vector<1x1x32xf32> to vector<72x8x32xf32>
    %20 = arith.mulf %18, %19 : vector<72x8x32xf32>
    %21 = arith.addf %14, %20 : vector<72x8x32xf32>
    %c0_4 = arith.constant 0 : index
    %c0_5 = arith.constant 0 : index
    %22 = vector.load %arg7[%c0_4, %c0_5] : memref<1x32xf32, #tpu.memory_space<vmem>>, vector<1x32xf32>
    %23 = vector.shape_cast %22 : vector<1x32xf32> to vector<1x1x32xf32>
    %24 = vector.broadcast %23 : vector<1x1x32xf32> to vector<72x8x32xf32>
    %25 = arith.addf %21, %24 : vector<72x8x32xf32>
    %cst = arith.constant 0.000000e+00 : f32
    %26 = vector.broadcast %cst : f32 to vector<72x8x32xf32>
    %27 = arith.maximumf %25, %26 : vector<72x8x32xf32>
    %28 = vector.shape_cast %27 : vector<72x8x32xf32> to vector<576x32xf32>
    %c0_6 = arith.constant 0 : index
    %c0_7 = arith.constant 0 : index
    %29 = vector.load %arg8[%c0_6, %c0_7] : memref<32x32xf32, #tpu.memory_space<vmem>>, vector<32x32xf32>
    %cst_8 = arith.constant dense<0.000000e+00> : vector<576x32xf32>
    %30 = tpu.matmul %28, %29, %cst_8 {dimension_numbers = #tpu.dot_dimension_numbers<[1], [0], [0], [1], [0, 0, 1, 1], [], []>} : vector<576x32xf32>, vector<32x32xf32>, vector<576x32xf32> -> vector<576x32xf32>
    %c0_9 = arith.constant 0 : index
    %c0_10 = arith.constant 0 : index
    %31 = vector.load %arg9[%c0_9, %c0_10] : memref<1x32xf32, #tpu.memory_space<vmem>>, vector<1x32xf32>
    %32 = vector.broadcast %31 : vector<1x32xf32> to vector<576x32xf32>
    %33 = arith.addf %30, %32 : vector<576x32xf32>
    %34 = vector.shape_cast %33 : vector<576x32xf32> to vector<72x8x32xf32>
    %c0_11 = arith.constant 0 : index
    %c0_12 = arith.constant 0 : index
    %c0_13 = arith.constant 0 : index
    %35 = vector.load %arg3[%c0_11, %c0_12, %c0_13] : memref<72x8x64xf32, #tpu.memory_space<vmem>>, vector<72x8x64xf32>
    %36 = vector.extract_strided_slice %35 {offsets = [0, 0, 0], sizes = [72, 8, 32], strides = [1, 1, 1]} : vector<72x8x64xf32> to vector<72x8x32xf32>
    %37 = vector.extract_strided_slice %35 {offsets = [0, 0, 32], sizes = [72, 8, 32], strides = [1, 1, 1]} : vector<72x8x64xf32> to vector<72x8x32xf32>
    %c0_14 = arith.constant 0 : index
    %c0_15 = arith.constant 0 : index
    %38 = vector.load %arg2[%c0_14, %c0_15] : memref<72x32xf32, #tpu.memory_space<vmem>>, vector<72x32xf32>
    %39 = vector.shape_cast %38 : vector<72x32xf32> to vector<72x1x32xf32>
    %40 = vector.broadcast %39 : vector<72x1x32xf32> to vector<72x8x32xf32>
    %41 = arith.subf %36, %40 : vector<72x8x32xf32>
    %42 = arith.addf %41, %34 : vector<72x8x32xf32>
    %43 = arith.addf %37, %34 : vector<72x8x32xf32>
    %44 = vector.shape_cast %42 : vector<72x8x32xf32> to vector<576x32xf32>
    %c0_16 = arith.constant 0 : index
    %c0_17 = arith.constant 0 : index
    %45 = vector.load %arg10[%c0_16, %c0_17] : memref<32x32xf32, #tpu.memory_space<vmem>>, vector<32x32xf32>
    %cst_18 = arith.constant dense<0.000000e+00> : vector<576x32xf32>
    %46 = tpu.matmul %44, %45, %cst_18 {dimension_numbers = #tpu.dot_dimension_numbers<[1], [0], [0], [1], [0, 0, 1, 1], [], []>} : vector<576x32xf32>, vector<32x32xf32>, vector<576x32xf32> -> vector<576x32xf32>
    %c0_19 = arith.constant 0 : index
    %c0_20 = arith.constant 0 : index
    %47 = vector.load %arg11[%c0_19, %c0_20] : memref<1x32xf32, #tpu.memory_space<vmem>>, vector<1x32xf32>
    %48 = vector.broadcast %47 : vector<1x32xf32> to vector<576x32xf32>
    %49 = arith.addf %46, %48 : vector<576x32xf32>
    %cst_21 = arith.constant 0.000000e+00 : f32
    %50 = vector.broadcast %cst_21 : f32 to vector<576x32xf32>
    %51 = arith.maximumf %49, %50 : vector<576x32xf32>
    %c0_22 = arith.constant 0 : index
    %c0_23 = arith.constant 0 : index
    %52 = vector.load %arg12[%c0_22, %c0_23] : memref<32x32xf32, #tpu.memory_space<vmem>>, vector<32x32xf32>
    %cst_24 = arith.constant dense<0.000000e+00> : vector<576x32xf32>
    %53 = tpu.matmul %51, %52, %cst_24 {dimension_numbers = #tpu.dot_dimension_numbers<[1], [0], [0], [1], [0, 0, 1, 1], [], []>} : vector<576x32xf32>, vector<32x32xf32>, vector<576x32xf32> -> vector<576x32xf32>
    %c0_25 = arith.constant 0 : index
    %c0_26 = arith.constant 0 : index
    %54 = vector.load %arg13[%c0_25, %c0_26] : memref<1x32xf32, #tpu.memory_space<vmem>>, vector<1x32xf32>
    %55 = vector.broadcast %54 : vector<1x32xf32> to vector<576x32xf32>
    %56 = arith.addf %53, %55 : vector<576x32xf32>
    %57 = vector.shape_cast %56 : vector<576x32xf32> to vector<72x8x32xf32>
    %cst_27 = arith.constant dense<0xFF800000> : vector<72x32xf32>
    %58 = vector.multi_reduction <maximumf>, %57, %cst_27 [1] : vector<72x8x32xf32> to vector<72x32xf32>
    %59 = vector.shape_cast %58 : vector<72x32xf32> to vector<72x1x32xf32>
    %60 = vector.broadcast %59 : vector<72x1x32xf32> to vector<72x8x32xf32>
    %61 = arith.subf %57, %60 : vector<72x8x32xf32>
    %62 = math.exp %61 : vector<72x8x32xf32>
    %cst_28 = arith.constant dense<0.000000e+00> : vector<72x32xf32>
    %63 = vector.multi_reduction <add>, %62, %cst_28 [1] : vector<72x8x32xf32> to vector<72x32xf32>
    %64 = vector.shape_cast %63 : vector<72x32xf32> to vector<72x1x32xf32>
    %65 = tpu.reciprocal %64 {approx = true} : vector<72x1x32xf32> -> vector<72x1x32xf32>
    %66 = vector.broadcast %65 : vector<72x1x32xf32> to vector<72x8x32xf32>
    %67 = arith.mulf %62, %66 : vector<72x8x32xf32>
    %c0_29 = arith.constant 0 : index
    %c0_30 = arith.constant 0 : index
    %68 = vector.load %arg5[%c0_29, %c0_30] : memref<72x8xf32, #tpu.memory_space<vmem>>, vector<72x8xf32>
    %69 = vector.shape_cast %68 : vector<72x8xf32> to vector<72x8x1xf32>
    %70 = vector.broadcast %69 : vector<72x8x1xf32> to vector<72x8x32xf32>
    %71 = arith.mulf %67, %70 : vector<72x8x32xf32>
    %72 = arith.mulf %43, %71 : vector<72x8x32xf32>
    %cst_31 = arith.constant dense<0.000000e+00> : vector<72x32xf32>
    %73 = vector.multi_reduction <add>, %72, %cst_31 [1] : vector<72x8x32xf32> to vector<72x32xf32>
    %c0_32 = arith.constant 0 : index
    %c0_33 = arith.constant 0 : index
    %74 = vector.load %arg14[%c0_32, %c0_33] : memref<1x32xf32, #tpu.memory_space<vmem>>, vector<1x32xf32>
    %75 = vector.broadcast %74 : vector<1x32xf32> to vector<72x32xf32>
    %76 = arith.mulf %73, %75 : vector<72x32xf32>
    %c0_34 = arith.constant 0 : index
    %c0_35 = arith.constant 0 : index
    %77 = vector.load %arg15[%c0_34, %c0_35] : memref<1x32xf32, #tpu.memory_space<vmem>>, vector<1x32xf32>
    %78 = vector.broadcast %77 : vector<1x32xf32> to vector<72x32xf32>
    %79 = arith.addf %76, %78 : vector<72x32xf32>
    %cst_36 = arith.constant 0.000000e+00 : f32
    %80 = vector.broadcast %cst_36 : f32 to vector<72x32xf32>
    %81 = arith.maximumf %79, %80 : vector<72x32xf32>
    %c0_37 = arith.constant 0 : index
    %c0_38 = arith.constant 0 : index
    %82 = vector.load %arg16[%c0_37, %c0_38] : memref<32x32xf32, #tpu.memory_space<vmem>>, vector<32x32xf32>
    %cst_39 = arith.constant dense<0.000000e+00> : vector<72x32xf32>
    %83 = tpu.matmul %81, %82, %cst_39 {dimension_numbers = #tpu.dot_dimension_numbers<[1], [0], [0], [1], [0, 0, 1, 1], [], []>} : vector<72x32xf32>, vector<32x32xf32>, vector<72x32xf32> -> vector<72x32xf32>
    %c0_40 = arith.constant 0 : index
    %c0_41 = arith.constant 0 : index
    %84 = vector.load %arg17[%c0_40, %c0_41] : memref<1x32xf32, #tpu.memory_space<vmem>>, vector<1x32xf32>
    %85 = vector.broadcast %84 : vector<1x32xf32> to vector<72x32xf32>
    %86 = arith.addf %83, %85 : vector<72x32xf32>
    %c0_42 = arith.constant 0 : index
    %c0_43 = arith.constant 0 : index
    %87 = vector.load %arg1[%c0_42, %c0_43] : memref<72x32xf32, #tpu.memory_space<vmem>>, vector<72x32xf32>
    %88 = arith.addf %87, %86 : vector<72x32xf32>
    %cst_44 = arith.constant 0.000000e+00 : f32
    %89 = vector.broadcast %cst_44 : f32 to vector<72x32xf32>
    %90 = arith.maximumf %88, %89 : vector<72x32xf32>
    %c0_45 = arith.constant 0 : index
    %c0_46 = arith.constant 0 : index
    %91 = vector.load %arg18[%c0_45, %c0_46] : memref<72x32xf32, #tpu.memory_space<vmem>>, vector<72x32xf32>
    tpu.vector_store %arg18[%c0_45, %c0_46], %90 {strides = array<i32>} : memref<72x32xf32, #tpu.memory_space<vmem>>, vector<72x32xf32>,
    return
  }
  func.func @transform_0(%arg0: i32) -> (i32, i32) {
    %c0_i32 = arith.constant 0 : i32
    %c0_i32_0 = arith.constant 0 : i32
    return %arg0, %c0_i32 : i32, i32
  }
  func.func @transform_1(%arg0: i32) -> (i32, i32) {
    %c0_i32 = arith.constant 0 : i32
    %c0_i32_0 = arith.constant 0 : i32
    return %arg0, %c0_i32 : i32, i32
  }
  func.func @transform_2(%arg0: i32) -> (i32, i32, i32) {
    %c0_i32 = arith.constant 0 : i32
    %c0_i32_0 = arith.constant 0 : i32
    %c0_i32_1 = arith.constant 0 : i32
    return %arg0, %c0_i32, %c0_i32_0 : i32, i32, i32
  }
  func.func @transform_3(%arg0: i32) -> (i32, i32, i32) {
    %c0_i32 = arith.constant 0 : i32
    %c0_i32_0 = arith.constant 0 : i32
    %c0_i32_1 = arith.constant 0 : i32
    return %arg0, %c0_i32, %c0_i32_0 : i32, i32, i32
  }
  func.func @transform_4(%arg0: i32) -> (i32, i32) {
    %c0_i32 = arith.constant 0 : i32
    %c0_i32_0 = arith.constant 0 : i32
    return %arg0, %c0_i32 : i32, i32
  }
  func.func @transform_5(%arg0: i32) -> (i32, i32) {
    %c0_i32 = arith.constant 0 : i32
    %c0_i32_0 = arith.constant 0 : i32
    %c0_i32_1 = arith.constant 0 : i32
    return %c0_i32, %c0_i32_0 : i32, i32
  }
  func.func @transform_6(%arg0: i32) -> (i32, i32) {
    %c0_i32 = arith.constant 0 : i32
    %c0_i32_0 = arith.constant 0 : i32
    %c0_i32_1 = arith.constant 0 : i32
    return %c0_i32, %c0_i32_0 : i32, i32
  }
  func.func @transform_7(%arg0: i32) -> (i32, i32) {
    %c0_i32 = arith.constant 0 : i32
    %c0_i32_0 = arith.constant 0 : i32
    %c0_i32_1 = arith.constant 0 : i32
    return %c0_i32, %c0_i32_0 : i32, i32
  }
  func.func @transform_8(%arg0: i32) -> (i32, i32) {
    %c0_i32 = arith.constant 0 : i32
    %c0_i32_0 = arith.constant 0 : i32
    %c0_i32_1 = arith.constant 0 : i32
    return %c0_i32, %c0_i32_0 : i32, i32
  }
  func.func @transform_9(%arg0: i32) -> (i32, i32) {
    %c0_i32 = arith.constant 0 : i32
    %c0_i32_0 = arith.constant 0 : i32
    %c0_i32_1 = arith.constant 0 : i32
    return %c0_i32, %c0_i32_0 : i32, i32
  }
  func.func @transform_10(%arg0: i32) -> (i32, i32) {
    %c0_i32 = arith.constant 0 : i32
    %c0_i32_0 = arith.constant 0 : i32
    %c0_i32_1 = arith.constant 0 : i32
    return %c0_i32, %c0_i32_0 : i32, i32
  }
  func.func @transform_11(%arg0: i32) -> (i32, i32) {
    %c0_i32 = arith.constant 0 : i32
    %c0_i32_0 = arith.constant 0 : i32
    %c0_i32_1 = arith.constant 0 : i32
    return %c0_i32, %c0_i32_0 : i32, i32
  }
  func.func @transform_12(%arg0: i32) -> (i32, i32) {
    %c0_i32 = arith.constant 0 : i32
    %c0_i32_0 = arith.constant 0 : i32
    %c0_i32_1 = arith.constant 0 : i32
    return %c0_i32, %c0_i32_0 : i32, i32
  }
  func.func @transform_13(%arg0: i32) -> (i32, i32) {
    %c0_i32 = arith.constant 0 : i32
    %c0_i32_0 = arith.constant 0 : i32
    %c0_i32_1 = arith.constant 0 : i32
    return %c0_i32, %c0_i32_0 : i32, i32
  }
  func.func @transform_14(%arg0: i32) -> (i32, i32) {
    %c0_i32 = arith.constant 0 : i32
    %c0_i32_0 = arith.constant 0 : i32
    %c0_i32_1 = arith.constant 0 : i32
    return %c0_i32, %c0_i32_0 : i32, i32
  }
  func.func @transform_15(%arg0: i32) -> (i32, i32) {
    %c0_i32 = arith.constant 0 : i32
    %c0_i32_0 = arith.constant 0 : i32
    %c0_i32_1 = arith.constant 0 : i32
    return %c0_i32, %c0_i32_0 : i32, i32
  }
  func.func @transform_16(%arg0: i32) -> (i32, i32) {
    %c0_i32 = arith.constant 0 : i32
    %c0_i32_0 = arith.constant 0 : i32
    %c0_i32_1 = arith.constant 0 : i32
    return %c0_i32, %c0_i32_0 : i32, i32
  }
  func.func @transform_17(%arg0: i32) -> (i32, i32) {
    %c0_i32 = arith.constant 0 : i32
    %c0_i32_0 = arith.constant 0 : i32
    return %arg0, %c0_i32 : i32, i32
  }
}

</mosaic_0001>

<bundles_post_ra>
// kernel: custom-call
= control target key start
LH: loop header
LB: loop body
LE: loop exit
PB: predicated region body
PF: predicated region fallthrough
CT: control target
= control target key end

     0   :  { %s6_s0 = inlined_call_operand.vmem [shape: u32[70], index: 0, kind: output, shape index: {}]  }

// kernel: block_sequence_forward.4
= control target key start
LH: loop header
LB: loop body
LE: loop exit
PB: predicated region body
PF: predicated region fallthrough
CT: control target
= control target key end

     0   :  { %v501_v0 = vmov 0.0|0.0   ;;  %vm502_vm0 = vmmov 0   ;;  %v503_v4 = vmov 0.0   ;;  %vm40_vm1 = vcmask 261120   ;;  %s690_s1 = inlined_call_operand.vmem [shape: f32[32,32], index: 1, kind: input, shape index: {}]   ;;  %s691_s3 = inlined_call_operand.vmem [shape: f32[32,96], index: 3, kind: input, shape index: {}]   ;;  %s692_s0 = inlined_call_operand.vmem [shape: f32[72,32], index: 0, kind: input, shape index: {}]   ;;  %s693_s2 = inlined_call_operand.vmem [shape: f32[1,32], index: 2, kind: input, shape index: {}]   ;;  %s694_s4 = inlined_call_operand.vmem [shape: f32[1,96], index: 4, kind: input, shape index: {}]   ;;  %s695_s5 = inlined_call_operand.vmem [shape: f32[72,96], index: 5, kind: output, shape index: {}]  }
   0x1   :  { %486 = vmatprep.subr.bf16.mxu0 %v501_v0  ;;  %v29_v1 = vld [vmem:[%s690_s1] sm:$0xff]  ;;  %v30_v2 = vld [vmem:[%s690_s1 + $0x8] sm:$0xff]  ;;  %v31_v3 = vld [vmem:[%s690_s1 + $0x10] sm:$0xff]  ;;  %424 = vmatprep.mubr.msk.f32.mxu0 %vm502_vm0, %v503_v4  ;;  %v335_v60 = vlaneseq  ;;  %vm356_vm3 = vcmask 785408  }
   0x2   :  { %v487_v5 = vpack.c.bf16 %v30_v2, %v29_v1  ;;  %v32_v6 = vld [vmem:[%s690_s1 + $0x18] sm:$0xff]  ;;  %492 = vmatprep.subr.bf16.mxu1 %v501_v0  ;;  %459 = vmatprep.mubr.msk.f32.mxu1 %vm502_vm0, %v503_v4  ;;  %v187_v8 = vld [vmem:[%s691_s3] sm:$0xff]  ;;  %v188_v9 = vld [vmem:[%s691_s3 + $0x8] sm:$0xff] }
   0x3   :  { %v490_v7 = vpack.c.bf16 %v32_v6, %v31_v3  ;;  %v493_v10 = vpack.c.bf16 %v188_v9, %v187_v8  ;;  %v20_v11 = vld [vmem:[%s692_s0] sm:$0xff]  ;;  %v21_v12 = vld [vmem:[%s692_s0 + $0x8] sm:$0xff]  ;;  %v22_v13 = vld [vmem:[%s692_s0 + $0x10] sm:$0xff]  ;;  %v336_v62 = vand.u32 127, %v335_v60 }
   0x4   :  { %488 = vmatpush3.bf16.msra.mxu0 %v487_v5  ;;  %v23_v14 = vld [vmem:[%s692_s0 + $0x18] sm:$0xff]  ;;  %v24_v15 = vld [vmem:[%s692_s0 + $0x20] sm:$0xff]  ;;  %v25_v16 = vld [vmem:[%s692_s0 + $0x28] sm:$0xff] }
   0x5   :  { %489 = vmatprep.subr.bf16.mxu0 %v501_v0  ;;  %494 = vmatpush3.bf16.msra.mxu1 %v493_v10  ;;  %v26_v17 = vld [vmem:[%s692_s0 + $0x30] sm:$0xff]  ;;  %v27_v18 = vld [vmem:[%s692_s0 + $0x38] sm:$0xff]  ;;  %v28_v19 = vld [vmem:[%s692_s0 + $0x40] sm:$0xff]  ;;  %vm337_vm2 = vcmp.lt.s32.totalorder %v336_v62, 64 }
   0x6   :  { %495 = vmatprep.subr.bf16.mxu1 %v501_v0  ;;  %v189_v20 = vld [vmem:[%s691_s3 + $0x10] sm:$0xff]  ;;  %v190_v21 = vld [vmem:[%s691_s3 + $0x18] sm:$0xff]  ;;  %v370_v23 = vld [vmem:[%s693_s2] ss:$0 sm:$0xff] }
   0x7   :  { %v496_v22 = vpack.c.bf16 %v190_v21, %v189_v20  ;;  %v380_v61 = vld [vmem:[%s694_s4] ss:$0 sm:$0xff] }
   0x8   :  { %491 = vmatpush3.bf16.msra.mxu0 %v490_v7 }
   0x9   :  { %497 = vmatpush3.bf16.msra.mxu1 %v496_v22 }
   0xb   :  { %425 = vmatmul.mubr.msk.f32.vlgmr.msra.gmra.mrb[0].mxu0 %vm40_vm1, %v20_v11 }
   0xc   :  { %427 = vmatprep.mubr.msk.f32.mxu0 %vm502_vm0, %v503_v4 }
   0xf   :  { %428 = vmatmul.mubr.msk.f32.gmra.mrb[2].mxu0 %vm40_vm1, %v21_v12 }
  0x10   :  { %430 = vmatprep.mubr.msk.f32.mxu0 %vm502_vm0, %v503_v4 }
  0x13   :  { %431 = vmatmul.mubr.msk.f32.gmra.mrb[4].mxu0 %vm40_vm1, %v22_v13 }
  0x14   :  { %433 = vmatprep.mubr.msk.f32.mxu0 %vm502_vm0, %v503_v4 }
  0x17   :  { %434 = vmatmul.mubr.msk.f32.gmra.mrb[6].mxu0 %vm40_vm1, %v23_v14 }
  0x18   :  { %436 = vmatprep.mubr.msk.f32.mxu0 %vm502_vm0, %v503_v4 }
  0x1b   :  { %437 = vmatmul.mubr.msk.f32.gmra.mrb[8].mxu0 %vm40_vm1, %v24_v15 }
  0x1c   :  { %439 = vmatprep.mubr.msk.f32.mxu0 %vm502_vm0, %v503_v4 }
  0x1f   :  { %440 = vmatmul.mubr.msk.f32.gmra.mrb[10].mxu0 %vm40_vm1, %v25_v16 }
  0x20   :  { %442 = vmatprep.mubr.msk.f32.mxu0 %vm502_vm0, %v503_v4 }
  0x23   :  { %443 = vmatmul.mubr.msk.f32.gmra.mrb[12].mxu0 %vm40_vm1, %v26_v17 }
  0x24   :  { %445 = vmatprep.mubr.msk.f32.mxu0 %vm502_vm0, %v503_v4 }
  0x27   :  { %446 = vmatmul.mubr.msk.f32.gmra.mrb[14].mxu0 %vm40_vm1, %v27_v18 }
  0x28   :  { %448 = vmatprep.mubr.msk.f32.mxu0 %vm502_vm0, %v503_v4 }
  0x2b   :  { %449 = vmatmul.mubr.msk.f32.gmra.mrb[16].mxu0 %vm40_vm1, %v28_v19 }
  0xde   :  { %v134_v24 = vpop.f32.mrb[0].mxu0 }
  0xdf   :  { %v135_v25 = vadd.f32 %v370_v23, %v134_v24  ;;  %v426_v26 = vpop.f32.mrb[1].mxu0 }
  0xe1   :  { %v178_v27 = vmax.f32 %v135_v25, 0.0 }
  0xe2   :  { %v139_v28 = vpop.f32.mrb[2].mxu0 }
  0xe3   :  { %v140_v29 = vadd.f32 %v370_v23, %v139_v28  ;;  %v429_v30 = vpop.f32.mrb[3].mxu0  ;;  %460 = vmatmul.mubr.msk.f32.vlgmr.msra.gmra.mrb[0].mxu1 %vm40_vm1, %v178_v27 }
  0xe4   :  { %462 = vmatprep.mubr.msk.f32.mxu1 %vm502_vm0, %v503_v4 }
  0xe5   :  { %v179_v31 = vmax.f32 %v140_v29, 0.0 }
  0xe6   :  { %v144_v32 = vpop.f32.mrb[4].mxu0 }
  0xe7   :  { %v145_v33 = vadd.f32 %v370_v23, %v144_v32  ;;  %v432_v34 = vpop.f32.mrb[5].mxu0  ;;  %463 = vmatmul.mubr.msk.f32.gmra.mrb[2].mxu1 %vm40_vm1, %v179_v31 }
  0xe8   :  { %465 = vmatprep.mubr.msk.f32.mxu1 %vm502_vm0, %v503_v4 }
  0xe9   :  { %v180_v35 = vmax.f32 %v145_v33, 0.0 }
  0xea   :  { %v149_v36 = vpop.f32.mrb[6].mxu0 }
  0xeb   :  { %v150_v37 = vadd.f32 %v370_v23, %v149_v36  ;;  %v435_v38 = vpop.f32.mrb[7].mxu0  ;;  %466 = vmatmul.mubr.msk.f32.gmra.mrb[4].mxu1 %vm40_vm1, %v180_v35 }
  0xec   :  { %468 = vmatprep.mubr.msk.f32.mxu1 %vm502_vm0, %v503_v4 }
  0xed   :  { %v181_v39 = vmax.f32 %v150_v37, 0.0 }
  0xee   :  { %v154_v40 = vpop.f32.mrb[8].mxu0 }
  0xef   :  { %v155_v41 = vadd.f32 %v370_v23, %v154_v40  ;;  %v438_v42 = vpop.f32.mrb[9].mxu0  ;;  %469 = vmatmul.mubr.msk.f32.gmra.mrb[6].mxu1 %vm40_vm1, %v181_v39 }
  0xf0   :  { %471 = vmatprep.mubr.msk.f32.mxu1 %vm502_vm0, %v503_v4 }
  0xf1   :  { %v182_v43 = vmax.f32 %v155_v41, 0.0 }
  0xf2   :  { %v159_v44 = vpop.f32.mrb[10].mxu0 }
  0xf3   :  { %v160_v45 = vadd.f32 %v370_v23, %v159_v44  ;;  %v441_v46 = vpop.f32.mrb[11].mxu0  ;;  %472 = vmatmul.mubr.msk.f32.gmra.mrb[8].mxu1 %vm40_vm1, %v182_v43 }
  0xf4   :  { %474 = vmatprep.mubr.msk.f32.mxu1 %vm502_vm0, %v503_v4 }
  0xf5   :  { %v183_v47 = vmax.f32 %v160_v45, 0.0 }
  0xf6   :  { %v164_v48 = vpop.f32.mrb[12].mxu0 }
  0xf7   :  { %v165_v49 = vadd.f32 %v370_v23, %v164_v48  ;;  %v444_v50 = vpop.f32.mrb[13].mxu0  ;;  %475 = vmatmul.mubr.msk.f32.gmra.mrb[10].mxu1 %vm40_vm1, %v183_v47 }
  0xf8   :  { %477 = vmatprep.mubr.msk.f32.mxu1 %vm502_vm0, %v503_v4 }
  0xf9   :  { %v184_v51 = vmax.f32 %v165_v49, 0.0 }
  0xfa   :  { %v169_v52 = vpop.f32.mrb[14].mxu0 }
  0xfb   :  { %v170_v53 = vadd.f32 %v370_v23, %v169_v52  ;;  %v447_v54 = vpop.f32.mrb[15].mxu0  ;;  %478 = vmatmul.mubr.msk.f32.gmra.mrb[12].mxu1 %vm40_vm1, %v184_v51 }
  0xfc   :  { %480 = vmatprep.mubr.msk.f32.mxu1 %vm502_vm0, %v503_v4 }
  0xfd   :  { %v185_v55 = vmax.f32 %v170_v53, 0.0 }
  0xfe   :  { %v174_v56 = vpop.f32.mrb[16].mxu0 }
  0xff   :  { %v175_v57 = vadd.f32 %v370_v23, %v174_v56  ;;  %v450_v58 = vpop.f32.mrb[17].mxu0  ;;  %481 = vmatmul.mubr.msk.f32.gmra.mrb[14].mxu1 %vm40_vm1, %v185_v55 }
 0x100   :  { %483 = vmatprep.mubr.msk.f32.mxu1 %vm502_vm0, %v503_v4 }
 0x101   :  { %v186_v59 = vmax.f32 %v175_v57, 0.0 }
 0x103   :  { %484 = vmatmul.mubr.msk.f32.gmra.mrb[16].mxu1 %vm40_vm1, %v186_v59 }
 0x1b6   :  { %v291_v63 = vpop.f32.mrb[0].mxu1 }
 0x1b7   :  { %v292_v0 = vadd.f32 %v380_v61, %v291_v63  ;;  %v461_v1 = vpop.f32.mrb[1].mxu1 }
 0x1b9   :  { %v338_v2 = vmax.f32 %v292_v0, 0.0 }
 0x1ba   :  { %v296_v3 = vpop.f32.mrb[2].mxu1 }
 0x1bb   :  { %v347_v5 = vsel %vm337_vm2, %v338_v2, %v292_v0  ;;  %v297_v6 = vadd.f32 %v380_v61, %v296_v3  ;;  %v464_v4 = vpop.f32.mrb[3].mxu1 }
 0x1bc   :  { %357 = vst.msk [vmem:[%s695_s5] sm:$0xff] %vm356_vm3, %v347_v5 }
 0x1bd   :  { %v339_v7 = vmax.f32 %v297_v6, 0.0 }
 0x1be   :  { %v301_v8 = vpop.f32.mrb[4].mxu1 }
 0x1bf   :  { %v348_v9 = vsel %vm337_vm2, %v339_v7, %v297_v6  ;;  %v302_v10 = vadd.f32 %v380_v61, %v301_v8  ;;  %v467_v11 = vpop.f32.mrb[5].mxu1 }
 0x1c0   :  { %358 = vst.msk [vmem:[%s695_s5 + $0x8] sm:$0xff] %vm356_vm3, %v348_v9 }
 0x1c1   :  { %v340_v12 = vmax.f32 %v302_v10, 0.0 }
 0x1c2   :  { %v306_v13 = vpop.f32.mrb[6].mxu1 }
 0x1c3   :  { %v349_v14 = vsel %vm337_vm2, %v340_v12, %v302_v10  ;;  %v307_v15 = vadd.f32 %v380_v61, %v306_v13  ;;  %v470_v16 = vpop.f32.mrb[7].mxu1 }
 0x1c4   :  { %359 = vst.msk [vmem:[%s695_s5 + $0x10] sm:$0xff] %vm356_vm3, %v349_v14 }
 0x1c5   :  { %v341_v17 = vmax.f32 %v307_v15, 0.0 }
 0x1c6   :  { %v311_v18 = vpop.f32.mrb[8].mxu1 }
 0x1c7   :  { %v350_v19 = vsel %vm337_vm2, %v341_v17, %v307_v15  ;;  %v312_v20 = vadd.f32 %v380_v61, %v311_v18  ;;  %v473_v21 = vpop.f32.mrb[9].mxu1 }
 0x1c8   :  { %360 = vst.msk [vmem:[%s695_s5 + $0x18] sm:$0xff] %vm356_vm3, %v350_v19 }
 0x1c9   :  { %v342_v22 = vmax.f32 %v312_v20, 0.0 }
 0x1ca   :  { %v316_v23 = vpop.f32.mrb[10].mxu1 }
 0x1cb   :  { %v351_v24 = vsel %vm337_vm2, %v342_v22, %v312_v20  ;;  %v317_v25 = vadd.f32 %v380_v61, %v316_v23  ;;  %v476_v26 = vpop.f32.mrb[11].mxu1 }
 0x1cc   :  { %361 = vst.msk [vmem:[%s695_s5 + $0x20] sm:$0xff] %vm356_vm3, %v351_v24 }
 0x1cd   :  { %v343_v27 = vmax.f32 %v317_v25, 0.0 }
 0x1ce   :  { %v321_v28 = vpop.f32.mrb[12].mxu1 }
 0x1cf   :  { %v352_v29 = vsel %vm337_vm2, %v343_v27, %v317_v25  ;;  %v322_v30 = vadd.f32 %v380_v61, %v321_v28  ;;  %v479_v31 = vpop.f32.mrb[13].mxu1 }
 0x1d0   :  { %362 = vst.msk [vmem:[%s695_s5 + $0x28] sm:$0xff] %vm356_vm3, %v352_v29 }
 0x1d1   :  { %v344_v32 = vmax.f32 %v322_v30, 0.0 }
 0x1d2   :  { %v326_v33 = vpop.f32.mrb[14].mxu1 }
 0x1d3   :  { %v353_v34 = vsel %vm337_vm2, %v344_v32, %v322_v30  ;;  %v327_v35 = vadd.f32 %v380_v61, %v326_v33  ;;  %v482_v36 = vpop.f32.mrb[15].mxu1 }
 0x1d4   :  { %363 = vst.msk [vmem:[%s695_s5 + $0x30] sm:$0xff] %vm356_vm3, %v353_v34 }
 0x1d5   :  { %v345_v37 = vmax.f32 %v327_v35, 0.0 }
 0x1d6   :  { %v331_v38 = vpop.f32.mrb[16].mxu1 }
 0x1d7   :  { %v354_v39 = vsel %vm337_vm2, %v345_v37, %v327_v35  ;;  %v332_v40 = vadd.f32 %v380_v61, %v331_v38  ;;  %v485_v41 = vpop.f32.mrb[17].mxu1 }
 0x1d8   :  { %364 = vst.msk [vmem:[%s695_s5 + $0x38] sm:$0xff] %vm356_vm3, %v354_v39 }
 0x1d9   :  { %v346_v42 = vmax.f32 %v332_v40, 0.0 }
 0x1db   :  { %v355_v43 = vsel %vm337_vm2, %v346_v42, %v332_v40 }
 0x1dc   :  { %365 = vst.msk [vmem:[%s695_s5 + $0x40] sm:$0xff] %vm356_vm3, %v355_v43 }

// kernel: block_sequence_forward.5
= control target key start
LH: loop header
LB: loop body
LE: loop exit
PB: predicated region body
PF: predicated region fallthrough
CT: control target
= control target key end

     0   :  { %v15193_v0 = vmov 1   ;;  %v15191_v1 = vmov 0   ;;  %v15189_v9 = vmov 2   ;;  %v489_v52 = vlaneseq  ;;  %s9878_s19 = smov 32   ;;  %s15169_s3 = inlined_call_operand.vmem [shape: f32[72,8,3], index: 3, kind: input, shape index: {}]   ;;  %s15170_s7 = inlined_call_operand.vmem [shape: f32[32,32], index: 7, kind: input, shape index: {}]   ;;  %s15171_s5 = inlined_call_operand.vmem [shape: f32[3,32], index: 5, kind: input, shape index: {}]   ;;  %s15172_s6 = inlined_call_operand.vmem [shape: f32[1,32], index: 6, kind: input, shape index: {}]   ;;  %s15173_s4 = inlined_call_operand.vmem [shape: f32[72,8], index: 4, kind: input, shape index: {}]   ;;  %s15174_s8 = inlined_call_operand.vmem [shape: f32[1,32], index: 8, kind: input, shape index: {}]   ;;  %s15175_s9 = inlined_call_operand.vmem [shape: f32[32,32], index: 9, kind: input, shape index: {}]   ;;  %s15176_s13 = inlined_call_operand.vmem [shape: f32[1,32], index: 13, kind: input, shape index: {}]   ;;  %s15177_s1 = inlined_call_operand.vmem [shape: f32[72,32], index: 1, kind: input, shape index: {}]   ;;  %s15178_s2 = inlined_call_operand.vmem [shape: f32[72,8,64], index: 2, kind: input, shape index: {}]   ;;  %s15179_s11 = inlined_call_operand.vmem [shape: f32[32,32], index: 11, kind: input, shape index: {}]   ;;  %s15180_s14 = inlined_call_operand.vmem [shape: f32[1,32], index: 14, kind: input, shape index: {}]   ;;  %s15181_s10 = inlined_call_operand.vmem [shape: f32[1,32], index: 10, kind: input, shape index: {}]   ;;  %s15182_s12 = inlined_call_operand.vmem [shape: f32[1,32], index: 12, kind: input, shape index: {}]   ;;  %s15183_s15 = inlined_call_operand.vmem [shape: f32[32,32], index: 15, kind: input, shape index: {}]   ;;  %s15184_s16 = inlined_call_operand.vmem [shape: f32[1,32], index: 16, kind: input, shape index: {}]   ;;  %s15185_s0 = inlined_call_operand.vmem [shape: f32[72,32], index: 0, kind: input, shape index: {}]   ;;  %s15186_s17 = inlined_call_operand.vmem [shape: f32[72,32], index: 17, kind: output, shape index: {}]  }
   0x1   :  { %15254 = sst [smem:[#allocation167_spill]] %s15169_s3  ;;  %9367 = vset.pattern.permute.xlu0 %v15193_v0  ;;  %9365 = vset.pattern.permute.xlu1 %v15191_v1  ;;  %vm1599_vm0 = vcmask 261120   ;;  %vm7325_vm1 = vcmask 523520   ;;  %vm8148_vm2 = vcmask 1041409   ;;  %vm8151_vm3 = vcmask 1042434  }
   0x2   :  { %15255 = sst [smem:[#allocation168_spill]] %s15170_s7  ;;  %s15256_s26 = sld [smem:[#allocation167_spill]]  ;;  %v10214_v56 = vshrl.u32 %v489_v52, 7  ;;  %vm8154_vm4 = vcmask 1043459   ;;  %vm8157_vm5 = vcmask 1044484   ;;  %vm8160_vm6 = vcmask 1045509  }
   0x3   :  { %s15257_s27 = sld [smem:[#allocation168_spill]]  ;;  %vm8163_vm7 = vcmask 1046534   ;;  %vm8166_vm8 = vcmask 1047559   ;;  %vm9882_vm9 = vmmov 0  }
   0x4   :  { %v10222_v60 = vsub.s32 1, %v10214_v56  ;;  %v10227_v61 = vsub.s32 0, %v10214_v56  ;;  %v10230_v62 = vsub.s32 2, %v10214_v56 }
   0x8   :  { %v58_v2 = vld [vmem:[%s15256_s26 + $0x10] sm:$0xff]  ;;  %v57_v3 = vld [vmem:[%s15256_s26 + $0x8] sm:$0xff]  ;;  %v59_v4 = vld [vmem:[%s15256_s26 + $0x18] sm:$0xff] }
   0x9   :  { %141 = vperm.xlu1 %9365, %v58_v2   ;;  %570 = vperm.xlu0 %9367, %v57_v3   ;;  %v61_v5 = vld [vmem:[%s15256_s26 + $0x28] sm:$0xff]  ;;  %v63_v6 = vld [vmem:[%s15256_s26 + $0x38] sm:$0xff]  ;;  %v62_v7 = vld [vmem:[%s15256_s26 + $0x30] sm:$0xff] }
   0xa   :  { %v56_v8 = vld [vmem:[%s15256_s26] sm:$0xff]  ;;  %v1589_v11 = vld [vmem:[%s15257_s27 + $0x8] sm:$0xff]  ;;  %v1590_v14 = vld [vmem:[%s15257_s27 + $0x10] sm:$0xff] }
   0xb   :  { %v1588_v10 = vld [vmem:[%s15257_s27] sm:$0xff]  ;;  %v1591_v15 = vld [vmem:[%s15257_s27 + $0x18] sm:$0xff]  ;;  %v10025_v18 = vld [vmem:[%s15256_s26 + $0x48] sm:$0xff] }
   0xc   :  { %v9322_v12 = vpack.c.bf16 %v1589_v11, %v1588_v10  ;;  %v60_v13 = vld [vmem:[%s15256_s26 + $0x20] sm:$0xff]  ;;  %v9326_v16 = vpack.c.bf16 %v1591_v15, %v1590_v14  ;;  %v10032_v19 = vld [vmem:[%s15256_s26 + $0x58] sm:$0xff]  ;;  %v10038_v20 = vld [vmem:[%s15256_s26 + $0x68] sm:$0xff] }
   0xd   :  { %146 = vperm.xlu1 %9365, %v59_v4   ;;  %574 = vperm.xlu0 %9367, %v58_v2   ;;  %v64_v17 = vld [vmem:[%s15256_s26 + $0x40] sm:$0xff]  ;;  %v10045_v21 = vld [vmem:[%s15256_s26 + $0x78] sm:$0xff]  ;;  %v10052_v22 = vld [vmem:[%s15256_s26 + $0x88] sm:$0xff] }
   0xe   :  { %9323 = vmatprep.subr.bf16.mxu0 %v9322_v12  ;;  %9352 = vmatprep.subr.bf16.mxu1 %v9322_v12  ;;  %v10058_v23 = vld [vmem:[%s15256_s26 + $0x98] sm:$0xff]  ;;  %v10065_v24 = vld [vmem:[%s15256_s26 + $0xa8] sm:$0xff]  ;;  %v66_v27 = vld [vmem:[%s15256_s26 + $0x50] sm:$0xff] }
   0xf   :  { %9325 = vmatpush3.bf16.msra.mxu0 %v9322_v12  ;;  %9354 = vmatpush3.bf16.msra.mxu1 %v9322_v12  ;;  %v10072_v25 = vld [vmem:[%s15256_s26 + $0xb8] sm:$0xff]  ;;  %v10079_v26 = vld [vmem:[%s15256_s26 + $0xc8] sm:$0xff]  ;;  %v68_v33 = vld [vmem:[%s15256_s26 + $0x60] sm:$0xff] }
  0x10   :  { %9327 = vmatprep.subr.bf16.mxu0 %v9326_v16  ;;  %9353 = vmatprep.subr.bf16.mxu1 %v9326_v16  ;;  %v10089_v28 = vld [vmem:[%s15256_s26 + $0xd8] sm:$0xff]  ;;  %v10096_v29 = vld [vmem:[%s15256_s26 + $0xe8] sm:$0xff]  ;;  %v70_v38 = vld [vmem:[%s15256_s26 + $0x70] sm:$0xff] }
  0x11   :  { %156 = vperm.xlu1 %9365, %v61_v5   ;;  %586 = vperm.xlu0 %9367, %v61_v5   ;;  %v10102_v30 = vld [vmem:[%s15256_s26 + $0xf8] sm:$0xff]  ;;  %v10109_v31 = vld [vmem:[%s15256_s26 + $0x108] sm:$0xff]  ;;  %v72_v48 = vld [vmem:[%s15256_s26 + $0x80] sm:$0xff] }
  0x12   :  { %v10116_v32 = vld [vmem:[%s15256_s26 + $0x118] sm:$0xff]  ;;  %v10126_v34 = vld [vmem:[%s15256_s26 + $0x128] sm:$0xff]  ;;  %v74_v10 = vld [vmem:[%s15256_s26 + $0x90] sm:$0xff] }
  0x13   :  { %9329 = vmatpush3.bf16.msra.mxu0 %v9326_v16  ;;  %9355 = vmatpush3.bf16.msra.mxu1 %v9326_v16  ;;  %v10133_v35 = vld [vmem:[%s15256_s26 + $0x138] sm:$0xff]  ;;  %v10140_v36 = vld [vmem:[%s15256_s26 + $0x148] sm:$0xff] }
  0x14   :  { %v10147_v37 = vld [vmem:[%s15256_s26 + $0x158] sm:$0xff]  ;;  %v10156_v39 = vld [vmem:[%s15256_s26 + $0x168] sm:$0xff] }
  0x15   :  { %166 = vperm.xlu1 %9365, %v63_v6   ;;  %590 = vperm.xlu0 %9367, %v62_v7   ;;  %v10163_v40 = vld [vmem:[%s15256_s26 + $0x178] sm:$0xff]  ;;  %v10170_v41 = vld [vmem:[%s15256_s26 + $0x188] sm:$0xff] }
  0x16   :  { %v10177_v44 = vld [vmem:[%s15256_s26 + $0x198] sm:$0xff]  ;;  %v10186_v47 = vld [vmem:[%s15256_s26 + $0x1a8] sm:$0xff] }
  0x17   :  { %v10200_v51 = vld [vmem:[%s15256_s26 + $0x1b8] sm:$0xff]  ;;  %v10210_v55 = vld [vmem:[%s15256_s26 + $0x1c8] sm:$0xff] }
  0x18   :  { %v10219_v57 = vld [vmem:[%s15256_s26 + $0x1d8] sm:$0xff]  ;;  %v10235_v63 = vld [vmem:[%s15256_s26 + $0x1e8] sm:$0xff] }
  0x19   :  { %9366 = vset.pattern.permute.xlu1 %v15193_v0  ;;  %9373 = vset.pattern.permute.xlu0 %v15189_v9 }
  0x1a   :  { %1010 = vperm.xlu0 %9373, %v58_v2   ;;  %566 = vperm.xlu1 %9366, %v56_v8   ;;  %v128_v2 = vld [vmem:[%s15171_s5] sm:$0x7] }
  0x1e   :  { %1026 = vperm.xlu0 %9373, %v62_v7   ;;  %9368 = vset.pattern.permute.xlu1 %v15189_v9 }
  0x1f   :  { %1002 = vperm.xlu1 %9368, %v56_v8  }
  0x22   :  { %9375 = vset.pattern.permute.xlu0 %v15191_v1 }
  0x23   :  { %131 = vperm.xlu0 %9375, %v56_v8   ;;  %1006 = vperm.xlu1 %9368, %v57_v3   ;;  %v10256_v8 = vld [vmem:[%s15256_s26 + $0x1f8] sm:$0xff] }
  0x27   :  { %136 = vperm.xlu0 %9375, %v57_v3   ;;  %9369 = vset.pattern.permute.xlu1 %v15193_v0 }
  0x28   :  { %578 = vperm.xlu1 %9369, %v59_v4  }
  0x2b   :  { %151 = vperm.xlu0 %9375, %v60_v13  }
  0x2c   :  { %9370 = vset.pattern.permute.xlu1 %v15189_v9 }
  0x2d   :  { %1014 = vperm.xlu1 %9370, %v59_v4   ;;  %v10243_v4 = vrot.slane %v128_v2, %v10222_v60 }
  0x2f   :  { %161 = vperm.xlu0 %9375, %v62_v7   ;;  %v10251_v7 = vrot.slane %v128_v2, %v10230_v62 }
  0x31   :  { %9371 = vset.pattern.permute.xlu1 %v15193_v0 }
  0x32   :  { %582 = vperm.xlu1 %9371, %v60_v13  }
  0x33   :  { %171 = vperm.xlu0 %9375, %v64_v17  }
  0x36   :  { %9372 = vset.pattern.permute.xlu1 %v15189_v9 }
  0x37   :  { %176 = vperm.xlu0 %9375, %v10025_v18   ;;  %1018 = vperm.xlu1 %9372, %v60_v13  }
  0x3b   :  { %186 = vperm.xlu0 %9375, %v10032_v19   ;;  %1022 = vperm.xlu1 %9372, %v61_v5  }
  0x3f   :  { %196 = vperm.xlu0 %9375, %v10038_v20   ;;  %9374 = vset.pattern.permute.xlu1 %v15193_v0 }
  0x40   :  { %594 = vperm.xlu1 %9374, %v63_v6  }
  0x43   :  { %206 = vperm.xlu0 %9375, %v10045_v21  }
  0x44   :  { %9376 = vset.pattern.permute.xlu1 %v15189_v9 }
  0x45   :  { %1030 = vperm.xlu1 %9376, %v63_v6   ;;  %v10248_v6 = vrot.slane %v128_v2, %v10227_v61 }
  0x47   :  { %216 = vperm.xlu0 %9375, %v10052_v22  }
  0x49   :  { %9377 = vset.pattern.permute.xlu1 %v15193_v0 }
  0x4a   :  { %598 = vperm.xlu1 %9377, %v64_v17  }
  0x4b   :  { %226 = vperm.xlu0 %9375, %v10058_v23  }
  0x4e   :  { %602 = vperm.xlu1 %9377, %v10025_v18  }
  0x4f   :  { %236 = vperm.xlu0 %9375, %v10065_v24  }
  0x52   :  { %9378 = vset.pattern.permute.xlu1 %v15189_v9 }
  0x53   :  { %246 = vperm.xlu0 %9375, %v10072_v25   ;;  %1034 = vperm.xlu1 %9378, %v64_v17  }
  0x57   :  { %256 = vperm.xlu0 %9375, %v10079_v26   ;;  %9379 = vset.pattern.permute.xlu1 %v15191_v1 }
  0x58   :  { %181 = vperm.xlu1 %9379, %v66_v27  }
  0x5b   :  { %266 = vperm.xlu0 %9375, %v10089_v28  }
  0x5c   :  { %9380 = vset.pattern.permute.xlu1 %v15193_v0 }
  0x5d   :  { %606 = vperm.xlu1 %9380, %v66_v27  }
  0x5f   :  { %276 = vperm.xlu0 %9375, %v10096_v29  }
  0x61   :  { %610 = vperm.xlu1 %9380, %v10032_v19  }
  0x63   :  { %286 = vperm.xlu0 %9375, %v10102_v30  }
  0x65   :  { %9381 = vset.pattern.permute.xlu1 %v15189_v9 }
  0x66   :  { %1042 = vperm.xlu1 %9381, %v66_v27   ;;  %v10271_v27 = vld [vmem:[%s15256_s26 + $0x208] sm:$0xff] }
  0x67   :  { %296 = vperm.xlu0 %9375, %v10109_v31  }
  0x6a   :  { %9382 = vset.pattern.permute.xlu1 %v15191_v1 }
  0x6b   :  { %306 = vperm.xlu0 %9375, %v10116_v32   ;;  %191 = vperm.xlu1 %9382, %v68_v33  }
  0x6f   :  { %316 = vperm.xlu0 %9375, %v10126_v34   ;;  %9383 = vset.pattern.permute.xlu1 %v15193_v0 }
  0x70   :  { %614 = vperm.xlu1 %9383, %v68_v33  }
  0x73   :  { %326 = vperm.xlu0 %9375, %v10133_v35  }
  0x74   :  { %618 = vperm.xlu1 %9383, %v10038_v20  }
  0x77   :  { %336 = vperm.xlu0 %9375, %v10140_v36  }
  0x78   :  { %9384 = vset.pattern.permute.xlu1 %v15189_v9 }
  0x79   :  { %1050 = vperm.xlu1 %9384, %v68_v33  }
  0x7b   :  { %346 = vperm.xlu0 %9375, %v10147_v37  }
  0x7d   :  { %9385 = vset.pattern.permute.xlu1 %v15191_v1 }
  0x7e   :  { %201 = vperm.xlu1 %9385, %v70_v38  }
  0x7f   :  { %356 = vperm.xlu0 %9375, %v10156_v39  }
  0x82   :  { %9386 = vset.pattern.permute.xlu1 %v15193_v0 }
  0x83   :  { %366 = vperm.xlu0 %9375, %v10163_v40   ;;  %622 = vperm.xlu1 %9386, %v70_v38  }
  0x87   :  { %376 = vperm.xlu0 %9375, %v10170_v41   ;;  %626 = vperm.xlu1 %9386, %v10045_v21  }
  0x88   :  { %v142_v42 = vpop.permute.xlu1 %141  ;;  %v571_v43 = vpop.permute.xlu0 %570 }
  0x89   :  { %v495_v16 = vmul.f32 %v10248_v6, %v142_v42  ;;  %v858_v33 = vmul.f32 %v10243_v4, %v571_v43  ;;  %v10286_v43 = vld [vmem:[%s15256_s26 + $0x218] sm:$0xff] }
  0x8b   :  { %386 = vperm.xlu0 %9375, %v10177_v44   ;;  %9387 = vset.pattern.permute.xlu1 %v15189_v9 }
  0x8c   :  { %v10181_v45 = vpop.permute.xlu1 %146  ;;  %v575_v46 = vpop.permute.xlu0 %574  ;;  %1058 = vperm.xlu1 %9387, %v70_v38  }
  0x8d   :  { %v859_v11 = vmul.f32 %v10243_v4, %v575_v46 }
  0x8f   :  { %396 = vperm.xlu0 %9375, %v10186_v47  }
  0x90   :  { %v10192_v49 = vpop.permute.xlu1 %156  ;;  %v10194_v50 = vpop.permute.xlu0 %586  ;;  %9388 = vset.pattern.permute.xlu1 %v15191_v1 }
  0x91   :  { %211 = vperm.xlu1 %9388, %v72_v48  }
  0x93   :  { %406 = vperm.xlu0 %9375, %v10200_v51  }
  0x94   :  { %v10203_v53 = vpop.permute.xlu1 %166  ;;  %v10205_v54 = vpop.permute.xlu0 %590 }
  0x95   :  { %9389 = vset.pattern.permute.xlu1 %v15193_v0 }
  0x96   :  { %630 = vperm.xlu1 %9389, %v72_v48  }
  0x97   :  { %416 = vperm.xlu0 %9375, %v10210_v55  }
  0x99   :  { %v1011_v58 = vpop.permute.xlu0 %1010  ;;  %v567_v59 = vpop.permute.xlu1 %566 }
  0x9a   :  { %634 = vperm.xlu1 %9389, %v10052_v22   ;;  %v857_v14 = vmul.f32 %v10243_v4, %v567_v59  ;;  %v1295_v17 = vmul.f32 %v10251_v7, %v1011_v58  ;;  %v10280_v58 = vld [vmem:[%s15172_s6] ss:$0 sm:$0xff] }
  0x9b   :  { %426 = vperm.xlu0 %9375, %v10219_v57  }
  0x9d   :  { %v10240_v3 = vpop.permute.xlu0 %1026 }
  0x9e   :  { %9390 = vset.pattern.permute.xlu1 %v15189_v9  ;;  %v1003_v5 = vpop.permute.xlu1 %1002 }
  0x9f   :  { %436 = vperm.xlu0 %9375, %v10235_v63   ;;  %1066 = vperm.xlu1 %9390, %v72_v48   ;;  %v1293_v38 = vmul.f32 %v10251_v7, %v1003_v5  ;;  %v931_v48 = vadd.f32 %v859_v11, %v495_v16 }
  0xa2   :  { %v132_v12 = vpop.permute.xlu0 %131  ;;  %v1007_v13 = vpop.permute.xlu1 %1006 }
  0xa3   :  { %v493_v15 = vmul.f32 %v10248_v6, %v132_v12  ;;  %446 = vperm.xlu0 %9375, %v10256_v8   ;;  %9391 = vset.pattern.permute.xlu1 %v15191_v1  ;;  %v1367_v12 = vadd.f32 %v1295_v17, %v931_v48  ;;  %v1294_v5 = vmul.f32 %v10251_v7, %v1007_v13  ;;  %v10298_v13 = vld [vmem:[%s15256_s26 + $0x228] sm:$0xff] }
  0xa4   :  { %221 = vperm.xlu1 %9391, %v74_v10   ;;  %v496_v17 = vmul.f32 %v10248_v6, %v10181_v45 }
  0xa5   :  { %v929_v46 = vadd.f32 %v857_v14, %v493_v15  ;;  %v1446_v48 = vadd.f32 %v10280_v58, %v1367_v12 }
  0xa6   :  { %v137_v52 = vpop.permute.xlu0 %136 }
  0xa7   :  { %v494_v59 = vmul.f32 %v10248_v6, %v137_v52  ;;  %456 = vperm.xlu0 %9375, %v10271_v27   ;;  %v579_v42 = vpop.permute.xlu1 %578  ;;  %v1365_v2 = vadd.f32 %v1293_v38, %v929_v46 }
  0xa8   :  { %9392 = vset.pattern.permute.xlu1 %v15193_v0  ;;  %v860_v14 = vmul.f32 %v10243_v4, %v579_v42 }
  0xa9   :  { %v930_v11 = vadd.f32 %v858_v33, %v494_v59  ;;  %638 = vperm.xlu1 %9392, %v74_v10   ;;  %v1444_v15 = vadd.f32 %v10280_v58, %v1365_v2 }
  0xaa   :  { %v152_v16 = vpop.permute.xlu0 %151  ;;  %v932_v59 = vadd.f32 %v860_v14, %v496_v17  ;;  %v863_v14 = vmul.f32 %v10243_v4, %v10205_v54  ;;  %v76_v54 = vld [vmem:[%s15256_s26 + $0xa0] sm:$0xff] }
  0xab   :  { %v1366_v38 = vadd.f32 %v1294_v5, %v930_v11  ;;  %466 = vperm.xlu0 %9375, %v10286_v43   ;;  %v1516_v46 = vmax.f32 %v1444_v15, 0.0  ;;  %v1518_v5 = vmax.f32 %v1446_v48, 0.0  ;;  %v10308_v11 = vld [vmem:[%s15256_s26 + $0x238] sm:$0xff]  ;;  %v497_v48 = vmul.f32 %v10248_v6, %v152_v16 }
  0xac   :  { %v1015_v52 = vpop.permute.xlu1 %1014 }
  0xad   :  { %v1445_v33 = vadd.f32 %v10280_v58, %v1366_v38  ;;  %v1296_v42 = vmul.f32 %v10251_v7, %v1015_v52  ;;  %642 = vperm.xlu1 %9392, %v10058_v23   ;;  %8947 = vmatprep.mubr.msk.f32.mxu0 %vm1599_vm0, %v1516_v46 }
  0xae   :  { %v162_v45 = vpop.permute.xlu0 %161 }
  0xaf   :  { %v1368_v2 = vadd.f32 %v1296_v42, %v932_v59  ;;  %476 = vperm.xlu0 %9375, %v10298_v13   ;;  %v1517_v12 = vmax.f32 %v1445_v33, 0.0  ;;  %v499_v17 = vmul.f32 %v10248_v6, %v162_v45  ;;  %v1299_v59 = vmul.f32 %v10251_v7, %v10240_v3 }
  0xb1   :  { %v1447_v15 = vadd.f32 %v10280_v58, %v1368_v2  ;;  %9393 = vset.pattern.permute.xlu1 %v15189_v9  ;;  %8948 = vmatmul.mubr.msk.f32.vlgmr.msra.gmra.mrb[0].mxu0 %vm1599_vm0, %v1517_v12  ;;  %v583_v38 = vpop.permute.xlu1 %582  ;;  %v935_v42 = vadd.f32 %v863_v14, %v499_v17  ;;  %v862_v2 = vmul.f32 %v10243_v4, %v10194_v50 }
  0xb2   :  { %1074 = vperm.xlu1 %9393, %v74_v10   ;;  %8950 = vmatprep.mubr.msk.f32.mxu0 %vm1599_vm0, %v1518_v5  ;;  %v10317_v46 = vpop.permute.xlu0 %171  ;;  %v861_v33 = vmul.f32 %v10243_v4, %v583_v38  ;;  %v498_v10 = vmul.f32 %v10248_v6, %v10192_v49 }
  0xb3   :  { %v1519_v52 = vmax.f32 %v1447_v15, 0.0  ;;  %486 = vperm.xlu0 %9375, %v10308_v11   ;;  %v1371_v3 = vadd.f32 %v1299_v59, %v935_v42 }
  0xb4   :  { %v933_v12 = vadd.f32 %v861_v33, %v497_v48  ;;  %v934_v17 = vadd.f32 %v862_v2, %v498_v10 }
  0xb5   :  { %8951 = vmatmul.mubr.msk.f32.gmra.mrb[2].mxu0 %vm1599_vm0, %v1519_v52  ;;  %v1450_v50 = vadd.f32 %v10280_v58, %v1371_v3 }
  0xb6   :  { %9394 = vset.pattern.permute.xlu1 %v15191_v1  ;;  %v1019_v16 = vpop.permute.xlu1 %1018  ;;  %v10331_v45 = vpop.permute.xlu0 %176 }
  0xb7   :  { %v1297_v5 = vmul.f32 %v10251_v7, %v1019_v16  ;;  %9471 = vset.pattern.permute.xlu0 %v15189_v9  ;;  %231 = vperm.xlu1 %9394, %v76_v54  }
  0xb8   :  { %1038 = vperm.xlu0 %9471, %v10025_v18  }
  0xb9   :  { %v1369_v14 = vadd.f32 %v1297_v5, %v933_v12  ;;  %v500_v12 = vmul.f32 %v10248_v6, %v10203_v53  ;;  %v78_v53 = vld [vmem:[%s15256_s26 + $0xb0] sm:$0xff] }
  0xba   :  { %v1023_v15 = vpop.permute.xlu1 %1022  ;;  %v10338_v49 = vpop.permute.xlu0 %186 }
  0xbb   :  { %v1448_v38 = vadd.f32 %v10280_v58, %v1369_v14  ;;  %v1298_v52 = vmul.f32 %v10251_v7, %v1023_v15  ;;  %9395 = vset.pattern.permute.xlu1 %v15193_v0 }
  0xbc   :  { %1046 = vperm.xlu0 %9471, %v10032_v19   ;;  %646 = vperm.xlu1 %9395, %v76_v54   ;;  %v1522_v19 = vmax.f32 %v1450_v50, 0.0 }
  0xbd   :  { %v1520_v48 = vmax.f32 %v1448_v38, 0.0  ;;  %v1370_v33 = vadd.f32 %v1298_v52, %v934_v17 }
  0xbe   :  { %v10345_v18 = vpop.permute.xlu0 %196 }
  0xbf   :  { %v1449_v59 = vadd.f32 %v10280_v58, %v1370_v33  ;;  %8953 = vmatprep.mubr.msk.f32.mxu0 %vm1599_vm0, %v1520_v48  ;;  %v595_v42 = vpop.permute.xlu1 %594 }
  0xc0   :  { %1054 = vperm.xlu0 %9471, %v10038_v20   ;;  %650 = vperm.xlu1 %9395, %v10065_v24   ;;  %v864_v16 = vmul.f32 %v10243_v4, %v595_v42 }
  0xc1   :  { %v1521_v10 = vmax.f32 %v1449_v59, 0.0 }
  0xc2   :  { %v10352_v2 = vpop.permute.xlu0 %206  ;;  %v936_v3 = vadd.f32 %v864_v16, %v500_v12 }
  0xc3   :  { %8954 = vmatmul.mubr.msk.f32.gmra.mrb[4].mxu0 %vm1599_vm0, %v1521_v10 }
  0xc4   :  { %1062 = vperm.xlu0 %9471, %v10045_v21   ;;  %9396 = vset.pattern.permute.xlu1 %v15189_v9  ;;  %v1031_v5 = vpop.permute.xlu1 %1030 }
  0xc5   :  { %v1300_v20 = vmul.f32 %v10251_v7, %v1031_v5  ;;  %1082 = vperm.xlu1 %9396, %v76_v54   ;;  %8956 = vmatprep.mubr.msk.f32.mxu0 %vm1599_vm0, %v1522_v19  ;;  %v80_v5 = vld [vmem:[%s15256_s26 + $0xc0] sm:$0xff] }
  0xc6   :  { %v10361_v14 = vpop.permute.xlu0 %216 }
  0xc7   :  { %v1372_v15 = vadd.f32 %v1300_v20, %v936_v3 }
  0xc8   :  { %1070 = vperm.xlu0 %9471, %v10052_v22   ;;  %v501_v22 = vmul.f32 %v10248_v6, %v10317_v46 }
  0xc9   :  { %v1451_v21 = vadd.f32 %v10280_v58, %v1372_v15  ;;  %9397 = vset.pattern.permute.xlu1 %v15191_v1  ;;  %v599_v17 = vpop.permute.xlu1 %598 }
  0xca   :  { %241 = vperm.xlu1 %9397, %v78_v53   ;;  %v10369_v38 = vpop.permute.xlu0 %226  ;;  %v865_v48 = vmul.f32 %v10243_v4, %v599_v17 }
  0xcb   :  { %v1523_v54 = vmax.f32 %v1451_v21, 0.0 }
  0xcc   :  { %1078 = vperm.xlu0 %9471, %v10058_v23   ;;  %v937_v23 = vadd.f32 %v865_v48, %v501_v22  ;;  %v82_v22 = vld [vmem:[%s15256_s26 + $0xd0] sm:$0xff] }
  0xcd   :  { %8957 = vmatmul.mubr.msk.f32.gmra.mrb[6].mxu0 %vm1599_vm0, %v1523_v54  ;;  %v10373_v52 = vpop.permute.xlu1 %602 }
  0xce   :  { %9398 = vset.pattern.permute.xlu1 %v15193_v0  ;;  %v10376_v50 = vpop.permute.xlu0 %236 }
  0xcf   :  { %654 = vperm.xlu1 %9398, %v78_v53  }
  0xd0   :  { %1086 = vperm.xlu0 %9471, %v10065_v24  }
  0xd2   :  { %v1035_v33 = vpop.permute.xlu1 %1034  ;;  %v10382_v59 = vpop.permute.xlu0 %246 }
  0xd3   :  { %v1301_v42 = vmul.f32 %v10251_v7, %v1035_v33  ;;  %658 = vperm.xlu1 %9398, %v10072_v25  }
  0xd4   :  { %1094 = vperm.xlu0 %9471, %v10072_v25  }
  0xd5   :  { %v1373_v10 = vadd.f32 %v1301_v42, %v937_v23 }
  0xd6   :  { %v10387_v16 = vpop.permute.xlu0 %256 }
  0xd7   :  { %v1452_v46 = vadd.f32 %v10280_v58, %v1373_v10  ;;  %9399 = vset.pattern.permute.xlu1 %v15189_v9  ;;  %v10391_v19 = vpop.permute.xlu1 %181 }
  0xd8   :  { %1102 = vperm.xlu0 %9471, %v10079_v26   ;;  %1090 = vperm.xlu1 %9399, %v78_v53  }
  0xd9   :  { %v1524_v24 = vmax.f32 %v1452_v46, 0.0 }
  0xda   :  { %v10394_v12 = vpop.permute.xlu0 %266 }
  0xdb   :  { %8959 = vmatprep.mubr.msk.f32.mxu0 %vm1599_vm0, %v1524_v24 }
  0xdc   :  { %1110 = vperm.xlu0 %9471, %v10089_v28   ;;  %9400 = vset.pattern.permute.xlu1 %v15191_v1  ;;  %v10402_v25 = vpop.permute.xlu1 %606 }
  0xdd   :  { %251 = vperm.xlu1 %9400, %v80_v5  }
  0xde   :  { %v10404_v3 = vpop.permute.xlu0 %276 }
  0xe0   :  { %1118 = vperm.xlu0 %9471, %v10096_v29   ;;  %v10407_v20 = vpop.permute.xlu1 %610 }
  0xe1   :  { %9401 = vset.pattern.permute.xlu1 %v15193_v0 }
  0xe2   :  { %662 = vperm.xlu1 %9401, %v80_v5   ;;  %v10410_v15 = vpop.permute.xlu0 %286 }
  0xe4   :  { %1126 = vperm.xlu0 %9471, %v10102_v30  }
  0xe5   :  { %v10413_v53 = vpop.permute.xlu1 %1042 }
  0xe6   :  { %666 = vperm.xlu1 %9401, %v10079_v26   ;;  %v10416_v21 = vpop.permute.xlu0 %296 }
  0xe8   :  { %1134 = vperm.xlu0 %9471, %v10109_v31  }
  0xea   :  { %9402 = vset.pattern.permute.xlu1 %v15189_v9  ;;  %v10420_v17 = vpop.permute.xlu1 %191  ;;  %v10422_v54 = vpop.permute.xlu0 %306 }
  0xeb   :  { %1098 = vperm.xlu1 %9402, %v80_v5  }
  0xec   :  { %1142 = vperm.xlu0 %9471, %v10116_v32  }
  0xee   :  { %v10428_v48 = vpop.permute.xlu0 %316 }
  0xef   :  { %9403 = vset.pattern.permute.xlu1 %v15191_v1  ;;  %v10431_v26 = vpop.permute.xlu1 %614 }
  0xf0   :  { %1150 = vperm.xlu0 %9471, %v10126_v34   ;;  %261 = vperm.xlu1 %9403, %v82_v22  }
  0xf2   :  { %v10434_v33 = vpop.permute.xlu0 %326 }
  0xf3   :  { %v10436_v23 = vpop.permute.xlu1 %618 }
  0xf4   :  { %1158 = vperm.xlu0 %9471, %v10133_v35   ;;  %9404 = vset.pattern.permute.xlu1 %v15193_v0 }
  0xf5   :  { %670 = vperm.xlu1 %9404, %v82_v22  }
  0xf6   :  { %v10440_v42 = vpop.permute.xlu0 %336 }
  0xf8   :  { %1166 = vperm.xlu0 %9471, %v10140_v36   ;;  %v10443_v10 = vpop.permute.xlu1 %1050  ;;  %v84_v36 = vld [vmem:[%s15256_s26 + $0xe0] sm:$0xff] }
  0xf9   :  { %674 = vperm.xlu1 %9404, %v10089_v28  }
  0xfa   :  { %v10446_v46 = vpop.permute.xlu0 %346 }
  0xfb   :  { %15258 = vst [vmem:[#allocation2_spill] sm:$0xff] %v10446_v46 }
  0xfc   :  { %1174 = vperm.xlu0 %9471, %v10147_v37  }
  0xfd   :  { %9405 = vset.pattern.permute.xlu1 %v15189_v9  ;;  %v10450_v24 = vpop.permute.xlu1 %201 }
  0xfe   :  { %1106 = vperm.xlu1 %9405, %v82_v22   ;;  %v10452_v35 = vpop.permute.xlu0 %356 }
  0xff   :  { %15259 = vst [vmem:[#allocation3_spill] sm:$0xff] %v10452_v35  ;;  %v505_v35 = vmul.f32 %v10248_v6, %v10420_v17  ;;  %v868_v17 = vmul.f32 %v10243_v4, %v10407_v20 }
 0x100   :  { %1182 = vperm.xlu0 %9471, %v10156_v39  }
 0x102   :  { %9406 = vset.pattern.permute.xlu1 %v15191_v1  ;;  %v10459_v28 = vpop.permute.xlu1 %622  ;;  %v10461_v5 = vpop.permute.xlu0 %366 }
 0x103   :  { %15260 = vst [vmem:[#allocation4_spill] sm:$0xff] %v10461_v5  ;;  %271 = vperm.xlu1 %9406, %v84_v36  }
 0x104   :  { %1190 = vperm.xlu0 %9471, %v10163_v40   ;;  %v15264_v40 = vmov 2  }
 0x106   :  { %v10464_v37 = vpop.permute.xlu1 %626  ;;  %v10466_v22 = vpop.permute.xlu0 %376 }
 0x107   :  { %15261 = vst [vmem:[#allocation5_spill] sm:$0xff] %v10466_v22  ;;  %9407 = vset.pattern.permute.xlu1 %v15193_v0 }
 0x108   :  { %1198 = vperm.xlu0 %9471, %v10170_v41   ;;  %678 = vperm.xlu1 %9407, %v84_v36   ;;  %v86_v41 = vld [vmem:[%s15256_s26 + $0xf0] sm:$0xff] }
 0x10a   :  { %v10470_v39 = vpop.permute.xlu0 %386 }
 0x10b   :  { %15262 = vst [vmem:[#allocation6_spill] sm:$0xff] %v10470_v39  ;;  %v10472_v9 = vpop.permute.xlu1 %1058 }
 0x10c   :  { %1206 = vperm.xlu0 %9471, %v10177_v44   ;;  %682 = vperm.xlu1 %9407, %v10096_v29   ;;  %v15266_v44 = vmov 0  }
 0x10e   :  { %v10476_v1 = vpop.permute.xlu0 %396 }
 0x10f   :  { %15263 = vst [vmem:[#allocation7_spill] sm:$0xff] %v10476_v1 }
 0x110   :  { %1214 = vperm.xlu0 %9471, %v10186_v47   ;;  %9408 = vset.pattern.permute.xlu1 %v15264_v40  ;;  %v10480_v22 = vpop.permute.xlu1 %211 }
 0x111   :  { %1114 = vperm.xlu1 %9408, %v84_v36   ;;  %v15268_v36 = vmov 1  }
 0x112   :  { %v10482_v0 = vpop.permute.xlu0 %406 }
 0x113   :  { %15265 = vst [vmem:[#allocation8_spill] sm:$0xff] %v10482_v0 }
 0x114   :  { %1222 = vperm.xlu0 %9471, %v10200_v51  }
 0x115   :  { %9409 = vset.pattern.permute.xlu1 %v15266_v44  ;;  %v10489_v29 = vpop.permute.xlu1 %630 }
 0x116   :  { %281 = vperm.xlu1 %9409, %v86_v41   ;;  %v10491_v1 = vpop.permute.xlu0 %416 }
 0x117   :  { %15267 = vst [vmem:[#allocation9_spill] sm:$0xff] %v10491_v1 }
 0x118   :  { %1230 = vperm.xlu0 %9471, %v10210_v55  }
 0x119   :  { %v10494_v47 = vpop.permute.xlu1 %634 }
 0x11a   :  { %9410 = vset.pattern.permute.xlu1 %v15268_v36  ;;  %v10497_v0 = vpop.permute.xlu0 %426 }
 0x11b   :  { %15269 = vst [vmem:[#allocation10_spill] sm:$0xff] %v10497_v0  ;;  %686 = vperm.xlu1 %9410, %v86_v41  }
 0x11c   :  { %1238 = vperm.xlu0 %9471, %v10219_v57   ;;  %v88_v57 = vld [vmem:[%s15256_s26 + $0x100] sm:$0xff] }
 0x11e   :  { %v10500_v39 = vpop.permute.xlu1 %1066  ;;  %v10502_v51 = vpop.permute.xlu0 %436 }
 0x11f   :  { %15270 = vst [vmem:[#allocation11_spill] sm:$0xff] %v10502_v51  ;;  %690 = vperm.xlu1 %9410, %v10102_v30   ;;  %v866_v51 = vmul.f32 %v10243_v4, %v10373_v52  ;;  %v871_v52 = vmul.f32 %v10243_v4, %v10459_v28 }
 0x120   :  { %1246 = vperm.xlu0 %9471, %v10235_v63  }
 0x122   :  { %v10506_v1 = vpop.permute.xlu0 %446 }
 0x123   :  { %15271 = vst [vmem:[#allocation12_spill] sm:$0xff] %v10506_v1  ;;  %9411 = vset.pattern.permute.xlu1 %v15264_v40  ;;  %v10509_v55 = vpop.permute.xlu1 %221 }
 0x124   :  { %1254 = vperm.xlu0 %9471, %v10256_v8   ;;  %1122 = vperm.xlu1 %9411, %v86_v41   ;;  %v867_v41 = vmul.f32 %v10243_v4, %v10402_v25  ;;  %v10545_v25 = vsub.s32 4, %v10214_v56 }
 0x126   :  { %v10512_v0 = vpop.permute.xlu0 %456 }
 0x127   :  { %15272 = vst [vmem:[#allocation13_spill] sm:$0xff] %v10512_v0  ;;  %v1303_v0 = vmul.f32 %v10251_v7, %v10413_v53  ;;  %v869_v53 = vmul.f32 %v10243_v4, %v10431_v26  ;;  %v504_v26 = vmul.f32 %v10248_v6, %v10338_v49 }
 0x128   :  { %1262 = vperm.xlu0 %9471, %v10271_v27   ;;  %9412 = vset.pattern.permute.xlu1 %v15266_v44  ;;  %v10519_v30 = vpop.permute.xlu1 %638 }
 0x129   :  { %291 = vperm.xlu1 %9412, %v88_v57   ;;  %v941_v28 = vadd.f32 %v869_v53, %v505_v35  ;;  %v506_v35 = vmul.f32 %v10248_v6, %v10345_v18  ;;  %v508_v18 = vmul.f32 %v10248_v6, %v10352_v2  ;;  %v1309_v2 = vmul.f32 %v10251_v7, %v10500_v39 }
 0x12a   :  { %v10521_v63 = vpop.permute.xlu0 %466 }
 0x12b   :  { %15273 = vst [vmem:[#allocation14_spill] sm:$0xff] %v10521_v63  ;;  %v6380_v63 = vld [vmem:[%s15173_s4] sm:$0xff] }
 0x12c   :  { %1270 = vperm.xlu0 %9471, %v10286_v43   ;;  %v10524_v1 = vpop.permute.xlu1 %642  ;;  %v503_v43 = vmul.f32 %v10248_v6, %v10391_v19  ;;  %v6392_v19 = vrot.slane %v6380_v63, %v10227_v61 }
 0x12d   :  { %9413 = vset.pattern.permute.xlu1 %v15268_v36 }
 0x12e   :  { %694 = vperm.xlu1 %9413, %v88_v57   ;;  %v10527_v8 = vpop.permute.xlu0 %476  ;;  %v939_v5 = vadd.f32 %v867_v41, %v503_v43  ;;  %v6420_v41 = vrot.slane %v6380_v63, %v10545_v25  ;;  %v1307_v63 = vmul.f32 %v10251_v7, %v10472_v9  ;;  %v10582_v43 = vld [vmem:[%s15256_s26 + $0x110] sm:$0xff] }
 0x12f   :  { %15274 = vst [vmem:[#allocation15_spill] sm:$0xff] %v10527_v8 }
 0x130   :  { %1278 = vperm.xlu0 %9471, %v10298_v13   ;;  %v502_v13 = vmul.f32 %v10248_v6, %v10331_v45  ;;  %v1305_v45 = vmul.f32 %v10251_v7, %v10443_v10 }
 0x131   :  { %v10532_v27 = vpop.permute.xlu1 %1074 }
 0x132   :  { %698 = vperm.xlu1 %9413, %v10109_v31   ;;  %v10542_v8 = vpop.permute.xlu0 %486  ;;  %v1375_v31 = vadd.f32 %v1303_v0, %v939_v5  ;;  %v10568_v0 = vld [vmem:[%s15173_s4 + $0x8] sm:$0xff]  ;;  %v938_v5 = vadd.f32 %v866_v51, %v502_v13  ;;  %v1377_v13 = vadd.f32 %v1305_v45, %v941_v28 }
 0x133   :  { %15275 = vst [vmem:[#allocation16_spill] sm:$0xff] %v10542_v8  ;;  %v6455_v20 = vrot.slane %v10568_v0, %v10222_v60  ;;  %v6462_v45 = vrot.slane %v10568_v0, %v10230_v62 }
 0x134   :  { %1286 = vperm.xlu0 %9471, %v10308_v11   ;;  %v1454_v49 = vadd.f32 %v10280_v58, %v1375_v31 }
 0x136   :  { %9414 = vset.pattern.permute.xlu1 %v15264_v40  ;;  %v10556_v8 = vpop.permute.xlu1 %231 }
 0x137   :  { %v1039_v11 = vpop.permute.xlu0 %1038  ;;  %1130 = vperm.xlu1 %9414, %v88_v57   ;;  %v507_v57 = vmul.f32 %v10248_v6, %v10450_v24  ;;  %v870_v24 = vmul.f32 %v10243_v4, %v10436_v23  ;;  %v873_v23 = vmul.f32 %v10243_v4, %v10489_v29 }
 0x138   :  { %v1302_v10 = vmul.f32 %v10251_v7, %v1039_v11  ;;  %6394 = vbcast.lane.b32.xlu0 %v6392_v19, 256  ;;  %v940_v11 = vadd.f32 %v868_v17, %v504_v26  ;;  %v1526_v26 = vmax.f32 %v1454_v49, 0.0 }
 0x139   :  { %v943_v19 = vadd.f32 %v871_v52, %v507_v57  ;;  %v510_v52 = vmul.f32 %v10248_v6, %v10361_v14  ;;  %v942_v28 = vadd.f32 %v870_v24, %v506_v35  ;;  %v509_v57 = vmul.f32 %v10248_v6, %v10480_v22 }
 0x13a   :  { %v1374_v51 = vadd.f32 %v1302_v10, %v938_v5  ;;  %v875_v22 = vmul.f32 %v10243_v4, %v10519_v30  ;;  %v1311_v30 = vmul.f32 %v10251_v7, %v10532_v27 }
 0x13b   :  { %v1047_v9 = vpop.permute.xlu0 %1046  ;;  %9415 = vset.pattern.permute.xlu1 %v15266_v44  ;;  %v647_v53 = vpop.permute.xlu1 %646  ;;  %v1379_v5 = vadd.f32 %v1307_v63, %v943_v19  ;;  %v945_v49 = vadd.f32 %v873_v23, %v509_v57  ;;  %v876_v57 = vmul.f32 %v10243_v4, %v10524_v1  ;;  %v514_v1 = vmul.f32 %v10248_v6, %v10376_v50 }
 0x13c   :  { %v1453_v46 = vadd.f32 %v10280_v58, %v1374_v51  ;;  %v1304_v31 = vmul.f32 %v10251_v7, %v1047_v9  ;;  %6422 = vbcast.lane.b32.xlu0 %v6420_v41, 256  ;;  %301 = vperm.xlu1 %9415, %v10582_v43   ;;  %v1456_v41 = vadd.f32 %v10280_v58, %v1377_v13 }
 0x13d   :  { %v872_v51 = vmul.f32 %v10243_v4, %v10464_v37  ;;  %v874_v37 = vmul.f32 %v10243_v4, %v10494_v47  ;;  %v1381_v13 = vadd.f32 %v1309_v2, %v945_v49  ;;  %v511_v9 = vmul.f32 %v10248_v6, %v10509_v55 }
 0x13e   :  { %v1525_v17 = vmax.f32 %v1453_v46, 0.0  ;;  %v1376_v10 = vadd.f32 %v1304_v31, %v940_v11  ;;  %v1458_v46 = vadd.f32 %v10280_v58, %v1379_v5  ;;  %v1528_v24 = vmax.f32 %v1456_v41, 0.0 }
 0x13f   :  { %v1055_v63 = vpop.permute.xlu0 %1054  ;;  %v651_v29 = vpop.permute.xlu1 %650  ;;  %v944_v31 = vadd.f32 %v872_v51, %v508_v18  ;;  %v6476_v55 = vrot.slane %v10568_v0, %v10545_v25  ;;  %v946_v27 = vadd.f32 %v874_v37, %v510_v52  ;;  %v877_v18 = vmul.f32 %v10243_v4, %v647_v53 }
 0x140   :  { %v1455_v19 = vadd.f32 %v10280_v58, %v1376_v10  ;;  %v1306_v14 = vmul.f32 %v10251_v7, %v1055_v63  ;;  %6457 = vbcast.lane.b32.xlu0 %v6455_v20, 256  ;;  %8960 = vmatmul.mubr.msk.f32.gmra.mrb[8].mxu0 %vm1599_vm0, %v1525_v17  ;;  %v6448_v20 = vrot.slane %v10568_v0, %v10227_v61  ;;  %v1530_v17 = vmax.f32 %v1458_v46, 0.0  ;;  %v10645_v0 = vld [vmem:[%s15173_s4 + $0x10] sm:$0xff] }
 0x141   :  { %9416 = vset.pattern.permute.xlu1 %v15268_v36  ;;  %8962 = vmatprep.mubr.msk.f32.mxu0 %vm1599_vm0, %v1526_v26  ;;  %v512_v26 = vmul.f32 %v10248_v6, %v10369_v38  ;;  %v947_v10 = vadd.f32 %v875_v22, %v511_v9  ;;  %v513_v2 = vmul.f32 %v10248_v6, %v10556_v8 }
 0x142   :  { %v1527_v39 = vmax.f32 %v1455_v19, 0.0  ;;  %v1378_v35 = vadd.f32 %v1306_v14, %v942_v28  ;;  %702 = vperm.xlu1 %9416, %v10582_v43   ;;  %v6511_v46 = vrot.slane %v10645_v0, %v10222_v60 }
 0x143   :  { %v1063_v11 = vpop.permute.xlu0 %1062  ;;  %v1383_v38 = vadd.f32 %v1311_v30, %v947_v10  ;;  %v949_v51 = vadd.f32 %v877_v18, %v513_v2  ;;  %v948_v22 = vadd.f32 %v876_v57, %v512_v26 }
 0x144   :  { %v1457_v5 = vadd.f32 %v10280_v58, %v1378_v35  ;;  %v1308_v47 = vmul.f32 %v10251_v7, %v1063_v11  ;;  %6464 = vbcast.lane.b32.xlu0 %v6462_v45, 256  ;;  %8963 = vmatmul.mubr.msk.f32.gmra.mrb[10].mxu0 %vm1599_vm0, %v1527_v39  ;;  %v1083_v23 = vpop.permute.xlu1 %1082  ;;  %v1460_v45 = vadd.f32 %v10280_v58, %v1381_v13  ;;  %v92_v13 = vld [vmem:[%s15256_s26 + $0x120] sm:$0xff] }
 0x145   :  { %8965 = vmatprep.mubr.msk.f32.mxu0 %vm1599_vm0, %v1528_v24  ;;  %v1313_v52 = vmul.f32 %v10251_v7, %v1083_v23  ;;  %v1462_v37 = vadd.f32 %v10280_v58, %v1383_v38  ;;  %v878_v39 = vmul.f32 %v10243_v4, %v651_v29 }
 0x146   :  { %v1529_v28 = vmax.f32 %v1457_v5, 0.0  ;;  %v1380_v41 = vadd.f32 %v1308_v47, %v944_v31  ;;  %706 = vperm.xlu1 %9416, %v10116_v32   ;;  %v1532_v49 = vmax.f32 %v1460_v45, 0.0  ;;  %v6518_v31 = vrot.slane %v10645_v0, %v10230_v62 }
 0x147   :  { %v1071_v63 = vpop.permute.xlu0 %1070  ;;  %v1385_v35 = vadd.f32 %v1313_v52, %v949_v51  ;;  %v950_v11 = vadd.f32 %v878_v39, %v514_v1  ;;  %v1534_v5 = vmax.f32 %v1462_v37, 0.0  ;;  %v94_v39 = vld [vmem:[%s15256_s26 + $0x130] sm:$0xff] }
 0x148   :  { %v1459_v53 = vadd.f32 %v10280_v58, %v1380_v41  ;;  %v1310_v32 = vmul.f32 %v10251_v7, %v1071_v63  ;;  %6450 = vbcast.lane.b32.xlu0 %v6448_v20, 256  ;;  %8966 = vmatmul.mubr.msk.f32.gmra.mrb[12].mxu0 %vm1599_vm0, %v1529_v28  ;;  %v6504_v41 = vrot.slane %v10645_v0, %v10227_v61 }
 0x149   :  { %8968 = vmatprep.mubr.msk.f32.mxu0 %vm1599_vm0, %v1530_v17  ;;  %v242_v8 = vpop.permute.xlu1 %241  ;;  %v1464_v47 = vadd.f32 %v10280_v58, %v1385_v35  ;;  %v516_v17 = vmul.f32 %v10248_v6, %v10382_v59 }
 0x14a   :  { %v1531_v19 = vmax.f32 %v1459_v53, 0.0  ;;  %v1382_v14 = vadd.f32 %v1310_v32, %v946_v27  ;;  %9417 = vset.pattern.permute.xlu1 %v15264_v40  ;;  %v515_v63 = vmul.f32 %v10248_v6, %v242_v8  ;;  %v6383_v8 = vld [vmem:[%s15173_s4 + $0x18] sm:$0xff] }
 0x14b   :  { %1138 = vperm.xlu1 %9417, %v10582_v43   ;;  %v1079_v50 = vpop.permute.xlu0 %1078  ;;  %v1536_v45 = vmax.f32 %v1464_v47, 0.0  ;;  %v6567_v37 = vrot.slane %v6383_v8, %v10222_v60 }
 0x14c   :  { %v1461_v20 = vadd.f32 %v10280_v58, %v1382_v14  ;;  %v1312_v24 = vmul.f32 %v10251_v7, %v1079_v50  ;;  %6478 = vbcast.lane.b32.xlu0 %v6476_v55, 256  ;;  %8969 = vmatmul.mubr.msk.f32.gmra.mrb[14].mxu0 %vm1599_vm0, %v1531_v19  ;;  %v6532_v19 = vrot.slane %v10645_v0, %v10545_v25 }
 0x14d   :  { %8971 = vmatprep.mubr.msk.f32.mxu0 %vm1599_vm0, %v1532_v49  ;;  %v6574_v50 = vrot.slane %v6383_v8, %v10230_v62 }
 0x14e   :  { %v1533_v9 = vmax.f32 %v1461_v20, 0.0  ;;  %v1384_v30 = vadd.f32 %v1312_v24, %v948_v22  ;;  %v655_v29 = vpop.permute.xlu1 %654  ;;  %v518_v20 = vmul.f32 %v10248_v6, %v10387_v16  ;;  %v6560_v24 = vrot.slane %v6383_v8, %v10227_v61 }
 0x14f   :  { %9418 = vset.pattern.permute.xlu1 %v15266_v44  ;;  %v1087_v43 = vpop.permute.xlu0 %1086  ;;  %v879_v57 = vmul.f32 %v10243_v4, %v655_v29 }
 0x150   :  { %v1463_v23 = vadd.f32 %v10280_v58, %v1384_v30  ;;  %v1314_v26 = vmul.f32 %v10251_v7, %v1087_v43  ;;  %311 = vperm.xlu1 %9418, %v92_v13   ;;  %6513 = vbcast.lane.b32.xlu0 %v6511_v46, 256 }
 0x151   :  { %8972 = vmatmul.mubr.msk.f32.gmra.mrb[16].mxu0 %vm1599_vm0, %v1533_v9  ;;  %v951_v1 = vadd.f32 %v879_v57, %v515_v63 }
 0x152   :  { %v1535_v10 = vmax.f32 %v1463_v23, 0.0  ;;  %v1386_v55 = vadd.f32 %v1314_v26, %v950_v11  ;;  %8974 = vmatprep.mubr.msk.f32.mxu0 %vm1599_vm0, %v1534_v5  ;;  %v659_v27 = vpop.permute.xlu1 %658  ;;  %v6384_v5 = vld [vmem:[%s15173_s4 + $0x20] sm:$0xff] }
 0x153   :  { %v880_v18 = vmul.f32 %v10243_v4, %v659_v27  ;;  %v1095_v28 = vpop.permute.xlu0 %1094  ;;  %v6616_v63 = vrot.slane %v6384_v5, %v10227_v61 }
 0x154   :  { %v1465_v38 = vadd.f32 %v10280_v58, %v1386_v55  ;;  %v1316_v59 = vmul.f32 %v10251_v7, %v1095_v28  ;;  %9419 = vset.pattern.permute.xlu1 %v15268_v36  ;;  %6520 = vbcast.lane.b32.xlu0 %v6518_v31, 256  ;;  %v6588_v31 = vrot.slane %v6383_v8, %v10545_v25  ;;  %v6385_v8 = vld [vmem:[%s15173_s4 + $0x28] sm:$0xff] }
 0x155   :  { %v952_v2 = vadd.f32 %v880_v18, %v516_v17  ;;  %710 = vperm.xlu1 %9419, %v92_v13   ;;  %8975 = vmatmul.mubr.msk.f32.gmra.mrb[18].mxu0 %vm1599_vm0, %v1535_v10  ;;  %v9770_v10 = vld [vmem:[%s15256_s26 + $0x138] sm:$0xff]  ;;  %v6623_v55 = vrot.slane %v6384_v5, %v10222_v60 }
 0x156   :  { %v1537_v53 = vmax.f32 %v1465_v38, 0.0  ;;  %8977 = vmatprep.mubr.msk.f32.mxu0 %vm1599_vm0, %v1536_v45  ;;  %v6630_v45 = vrot.slane %v6384_v5, %v10230_v62 }
 0x157   :  { %v1388_v52 = vadd.f32 %v1316_v59, %v952_v2  ;;  %v1091_v32 = vpop.permute.xlu1 %1090  ;;  %v96_v59 = vld [vmem:[%s15256_s26 + $0x140] sm:$0xff] }
 0x158   :  { %v1315_v51 = vmul.f32 %v10251_v7, %v1091_v32  ;;  %6506 = vbcast.lane.b32.xlu0 %v6504_v41, 256 }
 0x159   :  { %714 = vperm.xlu1 %9419, %v10126_v34   ;;  %8978 = vmatmul.mubr.msk.f32.gmra.mrb[20].mxu0 %vm1599_vm0, %v1537_v53  ;;  %v1467_v46 = vadd.f32 %v10280_v58, %v1388_v52  ;;  %v520_v53 = vmul.f32 %v10248_v6, %v10394_v12 }
 0x15a   :  { %v1387_v14 = vadd.f32 %v1315_v51, %v951_v1  ;;  %v6644_v1 = vrot.slane %v6384_v5, %v10545_v25  ;;  %v6700_v5 = vrot.slane %v6385_v8, %v10545_v25 }
 0x15b   :  { %v1539_v34 = vmax.f32 %v1467_v46, 0.0 }
 0x15c   :  { %v1466_v49 = vadd.f32 %v10280_v58, %v1387_v14  ;;  %6534 = vbcast.lane.b32.xlu0 %v6532_v19, 256  ;;  %v252_v22 = vpop.permute.xlu1 %251 }
 0x15d   :  { %9420 = vset.pattern.permute.xlu1 %v15264_v40  ;;  %v517_v16 = vmul.f32 %v10248_v6, %v252_v22 }
 0x15e   :  { %v1538_v0 = vmax.f32 %v1466_v49, 0.0  ;;  %1146 = vperm.xlu1 %9420, %v92_v13   ;;  %v1103_v13 = vpop.permute.xlu0 %1102  ;;  %v6679_v49 = vrot.slane %v6385_v8, %v10222_v60 }
 0x15f   :  { %v1318_v30 = vmul.f32 %v10251_v7, %v1103_v13 }
 0x160   :  { %6569 = vbcast.lane.b32.xlu0 %v6567_v37, 256  ;;  %8980 = vmatprep.mubr.msk.f32.mxu0 %vm1599_vm0, %v1538_v0 }
 0x161   :  { %8981 = vmatmul.mubr.msk.f32.gmra.mrb[22].mxu0 %vm1599_vm0, %v1539_v34  ;;  %v663_v35 = vpop.permute.xlu1 %662 }
 0x162   :  { %9421 = vset.pattern.permute.xlu1 %v15266_v44  ;;  %v881_v11 = vmul.f32 %v10243_v4, %v663_v35  ;;  %v1111_v52 = vpop.permute.xlu0 %1110  ;;  %v6686_v35 = vrot.slane %v6385_v8, %v10230_v62 }
 0x163   :  { %321 = vperm.xlu1 %9421, %v94_v39   ;;  %v1320_v51 = vmul.f32 %v10251_v7, %v1111_v52  ;;  %v10789_v52 = vld [vmem:[%s15172_s6] ss:$0 sm:$0xff] }
 0x164   :  { %6576 = vbcast.lane.b32.xlu0 %v6574_v50, 256  ;;  %v953_v26 = vadd.f32 %v881_v11, %v517_v16 }
 0x165   :  { %v667_v9 = vpop.permute.xlu1 %666 }
 0x166   :  { %v882_v29 = vmul.f32 %v10243_v4, %v667_v9 }
 0x167   :  { %9422 = vset.pattern.permute.xlu1 %v15268_v36 }
 0x168   :  { %v954_v43 = vadd.f32 %v882_v29, %v518_v20  ;;  %718 = vperm.xlu1 %9422, %v94_v39   ;;  %6562 = vbcast.lane.b32.xlu0 %v6560_v24, 256  ;;  %v6672_v29 = vrot.slane %v6385_v8, %v10227_v61 }
 0x16a   :  { %v1390_v47 = vadd.f32 %v1318_v30, %v954_v43  ;;  %v1099_v23 = vpop.permute.xlu1 %1098 }
 0x16b   :  { %v1317_v17 = vmul.f32 %v10251_v7, %v1099_v23  ;;  %v6386_v23 = vld [vmem:[%s15173_s4 + $0x30] sm:$0xff] }
 0x16c   :  { %722 = vperm.xlu1 %9422, %v9770_v10   ;;  %6590 = vbcast.lane.b32.xlu0 %v6588_v31, 256  ;;  %v1469_v18 = vadd.f32 %v10280_v58, %v1390_v47  ;;  %v98_v31 = vld [vmem:[%s15256_s26 + $0x150] sm:$0xff] }
 0x16d   :  { %v1389_v27 = vadd.f32 %v1317_v17, %v953_v26  ;;  %v522_v26 = vmul.f32 %v10248_v6, %v10404_v3  ;;  %v1119_v17 = vpop.permute.xlu0 %1118 }
 0x16e   :  { %v1541_v38 = vmax.f32 %v1469_v18, 0.0  ;;  %v6735_v18 = vrot.slane %v6386_v23, %v10222_v60 }
 0x16f   :  { %v1468_v28 = vadd.f32 %v10280_v58, %v1389_v27  ;;  %v262_v41 = vpop.permute.xlu1 %261 }
 0x170   :  { %9423 = vset.pattern.permute.xlu1 %v15264_v40  ;;  %6625 = vbcast.lane.b32.xlu0 %v6623_v55, 256  ;;  %v519_v12 = vmul.f32 %v10248_v6, %v262_v41  ;;  %v1322_v55 = vmul.f32 %v10251_v7, %v1119_v17 }
 0x171   :  { %v1540_v57 = vmax.f32 %v1468_v28, 0.0  ;;  %1154 = vperm.xlu1 %9423, %v94_v39   ;;  %v9771_v39 = vld [vmem:[%s15256_s26 + $0x148] sm:$0xff] }
 0x173   :  { %8983 = vmatprep.mubr.msk.f32.mxu0 %vm1599_vm0, %v1540_v57 }
 0x174   :  { %6632 = vbcast.lane.b32.xlu0 %v6630_v45, 256  ;;  %8984 = vmatmul.mubr.msk.f32.gmra.mrb[24].mxu0 %vm1599_vm0, %v1541_v38  ;;  %v671_v2 = vpop.permute.xlu1 %670  ;;  %v6742_v38 = vrot.slane %v6386_v23, %v10230_v62 }
 0x175   :  { %9424 = vset.pattern.permute.xlu1 %v15266_v44  ;;  %v883_v14 = vmul.f32 %v10243_v4, %v671_v2 }
 0x176   :  { %331 = vperm.xlu1 %9424, %v96_v59  }
 0x177   :  { %v955_v0 = vadd.f32 %v883_v14, %v519_v12  ;;  %v1127_v12 = vpop.permute.xlu0 %1126 }
 0x178   :  { %6618 = vbcast.lane.b32.xlu0 %v6616_v63, 256  ;;  %v675_v32 = vpop.permute.xlu1 %674  ;;  %v9772_v63 = vld [vmem:[%s15256_s26 + $0x158] sm:$0xff] }
 0x179   :  { %v884_v19 = vmul.f32 %v10243_v4, %v675_v32 }
 0x17a   :  { %9425 = vset.pattern.permute.xlu1 %v15268_v36 }
 0x17b   :  { %v956_v46 = vadd.f32 %v884_v19, %v520_v53  ;;  %726 = vperm.xlu1 %9425, %v96_v59  }
 0x17c   :  { %6646 = vbcast.lane.b32.xlu0 %v6644_v1, 256  ;;  %v6728_v1 = vrot.slane %v6386_v23, %v10227_v61 }
 0x17d   :  { %v1392_v22 = vadd.f32 %v1320_v51, %v956_v46  ;;  %v1107_v37 = vpop.permute.xlu1 %1106 }
 0x17e   :  { %v1319_v34 = vmul.f32 %v10251_v7, %v1107_v37  ;;  %v100_v37 = vld [vmem:[%s15256_s26 + $0x160] sm:$0xff] }
 0x17f   :  { %730 = vperm.xlu1 %9425, %v9771_v39   ;;  %v1471_v20 = vadd.f32 %v10280_v58, %v1392_v22  ;;  %v6756_v22 = vrot.slane %v6386_v23, %v10545_v25 }
 0x180   :  { %v1391_v50 = vadd.f32 %v1319_v34, %v955_v0  ;;  %6681 = vbcast.lane.b32.xlu0 %v6679_v49, 256  ;;  %v6387_v0 = vld [vmem:[%s15173_s4 + $0x38] sm:$0xff] }
 0x181   :  { %v1543_v43 = vmax.f32 %v1471_v20, 0.0  ;;  %v6791_v39 = vrot.slane %v6387_v0, %v10222_v60 }
 0x182   :  { %v1470_v24 = vadd.f32 %v10280_v58, %v1391_v50  ;;  %v272_v13 = vpop.permute.xlu1 %271  ;;  %v524_v50 = vmul.f32 %v10248_v6, %v10410_v15 }
 0x183   :  { %9426 = vset.pattern.permute.xlu1 %v15264_v40  ;;  %v521_v45 = vmul.f32 %v10248_v6, %v272_v13 }
 0x184   :  { %v1542_v9 = vmax.f32 %v1470_v24, 0.0  ;;  %1162 = vperm.xlu1 %9426, %v96_v59   ;;  %6688 = vbcast.lane.b32.xlu0 %v6686_v35, 256  ;;  %v10754_v30 = vpop.f32.mrb[0].mxu0  ;;  %v1135_v35 = vpop.permute.xlu0 %1134  ;;  %v1324_v24 = vmul.f32 %v10251_v7, %v1127_v12 }
 0x185   :  { %v10757_v11 = vpop.f32.mrb[1].mxu0  ;;  %v1326_v12 = vmul.f32 %v10251_v7, %v1135_v35 }
 0x186   :  { %8986 = vmatprep.mubr.msk.f32.mxu0 %vm1599_vm0, %v1542_v9 }
 0x187   :  { %8987 = vmatmul.mubr.msk.f32.gmra.mrb[26].mxu0 %vm1599_vm0, %v1543_v43  ;;  %v679_v58 = vpop.permute.xlu1 %678  ;;  %v6798_v43 = vrot.slane %v6387_v0, %v10230_v62 }
 0x188   :  { %9427 = vset.pattern.permute.xlu1 %v15266_v44  ;;  %6674 = vbcast.lane.b32.xlu0 %v6672_v29, 256  ;;  %v10765_v16 = vpop.f32.mrb[2].mxu0  ;;  %v885_v28 = vmul.f32 %v10243_v4, %v679_v58 }
 0x189   :  { %341 = vperm.xlu1 %9427, %v98_v31   ;;  %v10768_v47 = vpop.f32.mrb[3].mxu0 }
 0x18a   :  { %v957_v59 = vadd.f32 %v885_v28, %v521_v45 }
 0x18b   :  { %v683_v10 = vpop.permute.xlu1 %682 }
 0x18c   :  { %v886_v27 = vmul.f32 %v10243_v4, %v683_v10  ;;  %6702 = vbcast.lane.b32.xlu0 %v6700_v5, 256 }
 0x18d   :  { %9428 = vset.pattern.permute.xlu1 %v15268_v36 }
 0x18e   :  { %v958_v41 = vadd.f32 %v886_v27, %v522_v26  ;;  %734 = vperm.xlu1 %9428, %v98_v31   ;;  %v10822_v26 = vpop.permute.xlu0 %1142  ;;  %v9774_v27 = vld [vmem:[%s15256_s26 + $0x168] sm:$0xff] }
 0x190   :  { %v1394_v57 = vadd.f32 %v1322_v55, %v958_v41  ;;  %6737 = vbcast.lane.b32.xlu0 %v6735_v18, 256  ;;  %v1115_v3 = vpop.permute.xlu1 %1114  ;;  %v6784_v55 = vrot.slane %v6387_v0, %v10227_v61 }
 0x191   :  { %v1321_v2 = vmul.f32 %v10251_v7, %v1115_v3  ;;  %v6388_v3 = vld [vmem:[%s15173_s4 + $0x40] sm:$0xff] }
 0x192   :  { %738 = vperm.xlu1 %9428, %v9772_v63   ;;  %v1473_v32 = vadd.f32 %v10789_v52, %v1394_v57  ;;  %v6812_v57 = vrot.slane %v6387_v0, %v10545_v25  ;;  %v102_v63 = vld [vmem:[%s15256_s26 + $0x170] sm:$0xff]  ;;  %v6840_v0 = vrot.slane %v6388_v3, %v10227_v61 }
 0x193   :  { %v1393_v53 = vadd.f32 %v1321_v2, %v957_v59 }
 0x194   :  { %6744 = vbcast.lane.b32.xlu0 %v6742_v38, 256  ;;  %v1545_v49 = vmax.f32 %v1473_v32, 0.0  ;;  %v10836_v38 = vpop.permute.xlu0 %1150 }
 0x195   :  { %v1472_v51 = vadd.f32 %v10789_v52, %v1393_v53  ;;  %v282_v19 = vpop.permute.xlu1 %281  ;;  %v6847_v53 = vrot.slane %v6388_v3, %v10222_v60 }
 0x196   :  { %9429 = vset.pattern.permute.xlu1 %v15264_v40  ;;  %v10795_v8 = vpop.f32.mrb[4].mxu0  ;;  %v523_v15 = vmul.f32 %v10248_v6, %v282_v19  ;;  %v6854_v19 = vrot.slane %v6388_v3, %v10230_v62 }
 0x197   :  { %v1544_v14 = vmax.f32 %v1472_v51, 0.0  ;;  %1170 = vperm.xlu1 %9429, %v98_v31   ;;  %v10797_v46 = vpop.f32.mrb[5].mxu0 }
 0x198   :  { %6730 = vbcast.lane.b32.xlu0 %v6728_v1, 256  ;;  %v526_v1 = vmul.f32 %v10248_v6, %v10416_v21  ;;  %v10847_v51 = vpop.permute.xlu0 %1158 }
 0x199   :  { %8989 = vmatprep.mubr.msk.f32.mxu0 %vm1599_vm0, %v1544_v14 }
 0x19a   :  { %8990 = vmatmul.mubr.msk.f32.gmra.mrb[28].mxu0 %vm1599_vm0, %v1545_v49  ;;  %v687_v34 = vpop.permute.xlu1 %686 }
 0x19b   :  { %9430 = vset.pattern.permute.xlu1 %v15266_v44  ;;  %v887_v9 = vmul.f32 %v10243_v4, %v687_v34 }
 0x19c   :  { %351 = vperm.xlu1 %9430, %v100_v37   ;;  %6758 = vbcast.lane.b32.xlu0 %v6756_v22, 256  ;;  %v10856_v34 = vpop.permute.xlu0 %1166 }
 0x19d   :  { %v959_v17 = vadd.f32 %v887_v9, %v523_v15  ;;  %v10864_v9 = vsub.s32 6, %v10214_v56 }
 0x19e   :  { %v691_v20 = vpop.permute.xlu1 %690 }
 0x19f   :  { %v888_v13 = vmul.f32 %v10243_v4, %v691_v20 }
 0x1a0   :  { %9431 = vset.pattern.permute.xlu1 %v15268_v36  ;;  %6793 = vbcast.lane.b32.xlu0 %v6791_v39, 256  ;;  %v10816_v29 = vpop.f32.mrb[6].mxu0 }
 0x1a1   :  { %v960_v31 = vadd.f32 %v888_v13, %v524_v50  ;;  %742 = vperm.xlu1 %9431, %v100_v37   ;;  %v10819_v58 = vpop.f32.mrb[7].mxu0  ;;  %v6868_v13 = vrot.slane %v6388_v3, %v10545_v25  ;;  %v10875_v25 = vld [vmem:[%s15174_s8] ss:$0 sm:$0xff] }
 0x1a3   :  { %v1396_v5 = vadd.f32 %v1324_v24, %v960_v31  ;;  %v1123_v23 = vpop.permute.xlu1 %1122  ;;  %v9775_v24 = vld [vmem:[%s15256_s26 + $0x178] sm:$0xff] }
 0x1a4   :  { %v1323_v10 = vmul.f32 %v10251_v7, %v1123_v23  ;;  %6800 = vbcast.lane.b32.xlu0 %v6798_v43, 256  ;;  %v10868_v23 = vpop.permute.xlu0 %1174 }
 0x1a5   :  { %746 = vperm.xlu1 %9431, %v9774_v27   ;;  %v1475_v28 = vadd.f32 %v10789_v52, %v1396_v5  ;;  %v104_v27 = vld [vmem:[%s15256_s26 + $0x180] sm:$0xff] }
 0x1a6   :  { %v1395_v18 = vadd.f32 %v1323_v10, %v959_v17  ;;  %v6882_v17 = vrot.slane %v6388_v3, %v10864_v9  ;;  %v1328_v3 = vmul.f32 %v10251_v7, %v10822_v26 }
 0x1a7   :  { %v1547_v2 = vmax.f32 %v1475_v28, 0.0 }
 0x1a8   :  { %v1474_v41 = vadd.f32 %v10789_v52, %v1395_v18  ;;  %6786 = vbcast.lane.b32.xlu0 %v6784_v55, 256  ;;  %v292_v45 = vpop.permute.xlu1 %291  ;;  %v10883_v28 = vpop.permute.xlu0 %1182 }
 0x1a9   :  { %9432 = vset.pattern.permute.xlu1 %v15264_v40  ;;  %v525_v21 = vmul.f32 %v10248_v6, %v292_v45  ;;  %v528_v45 = vmul.f32 %v10248_v6, %v10422_v54 }
 0x1aa   :  { %v1546_v59 = vmax.f32 %v1474_v41, 0.0  ;;  %1178 = vperm.xlu1 %9432, %v100_v37   ;;  %v10887_v41 = vadd.f32 %v10754_v30, %v10875_v25 }
 0x1ac   :  { %6814 = vbcast.lane.b32.xlu0 %v6812_v57, 256  ;;  %8992 = vmatprep.mubr.msk.f32.mxu0 %vm1599_vm0, %v1546_v59  ;;  %v10897_v59 = vadd.f32 %v10875_v25, %v10757_v11  ;;  %v10902_v54 = vpop.permute.xlu0 %1190 }
 0x1ad   :  { %8993 = vmatmul.mubr.msk.f32.gmra.mrb[30].mxu0 %vm1599_vm0, %v1547_v2  ;;  %v695_v32 = vpop.permute.xlu1 %694 }
 0x1ae   :  { %9433 = vset.pattern.permute.xlu1 %v15266_v44  ;;  %v889_v22 = vmul.f32 %v10243_v4, %v695_v32 }
 0x1af   :  { %361 = vperm.xlu1 %9433, %v102_v63  }
 0x1b0   :  { %6849 = vbcast.lane.b32.xlu0 %v6847_v53, 256  ;;  %v961_v20 = vadd.f32 %v889_v22, %v525_v21  ;;  %v106_v21 = vld [vmem:[%s15256_s26 + $0x190] sm:$0xff] }
 0x1b1   :  { %v699_v14 = vpop.permute.xlu1 %698 }
 0x1b2   :  { %v890_v49 = vmul.f32 %v10243_v4, %v699_v14 }
 0x1b3   :  { %9434 = vset.pattern.permute.xlu1 %v15268_v36 }
 0x1b4   :  { %v962_v37 = vadd.f32 %v890_v49, %v526_v1  ;;  %750 = vperm.xlu1 %9434, %v102_v63   ;;  %6856 = vbcast.lane.b32.xlu0 %v6854_v19, 256  ;;  %v9776_v19 = vld [vmem:[%s15256_s26 + $0x188] sm:$0xff] }
 0x1b6   :  { %v1398_v39 = vadd.f32 %v1326_v12, %v962_v37  ;;  %v1131_v50 = vpop.permute.xlu1 %1130 }
 0x1b7   :  { %v1325_v35 = vmul.f32 %v10251_v7, %v1131_v50  ;;  %v530_v50 = vmul.f32 %v10248_v6, %v10428_v48  ;;  %v9777_v48 = vld [vmem:[%s15256_s26 + $0x198] sm:$0xff] }
 0x1b8   :  { %754 = vperm.xlu1 %9434, %v9775_v24   ;;  %6842 = vbcast.lane.b32.xlu0 %v6840_v0, 256  ;;  %v1477_v31 = vadd.f32 %v10789_v52, %v1398_v39 }
 0x1b9   :  { %v1397_v43 = vadd.f32 %v1325_v35, %v961_v20  ;;  %v1330_v35 = vmul.f32 %v10251_v7, %v10836_v38 }
 0x1ba   :  { %v1549_v55 = vmax.f32 %v1477_v31, 0.0 }
 0x1bb   :  { %v1476_v15 = vadd.f32 %v10789_v52, %v1397_v43  ;;  %v302_v5 = vpop.permute.xlu1 %301 }
 0x1bc   :  { %9435 = vset.pattern.permute.xlu1 %v15264_v40  ;;  %6870 = vbcast.lane.b32.xlu0 %v6868_v13, 256  ;;  %v527_v53 = vmul.f32 %v10248_v6, %v302_v5 }
 0x1bd   :  { %v1548_v10 = vmax.f32 %v1476_v15, 0.0  ;;  %1186 = vperm.xlu1 %9435, %v102_v63  }
 0x1bf   :  { %8995 = vmatprep.mubr.msk.f32.mxu0 %vm1599_vm0, %v1548_v10 }
 0x1c0   :  { %6884 = vbcast.lane.b32.xlu0 %v6882_v17, 256  ;;  %8996 = vmatmul.mubr.msk.f32.gmra.mrb[32].mxu0 %vm1599_vm0, %v1549_v55 }
 0x1c1   :  { %9436 = vset.pattern.permute.xlu1 %v15266_v44  ;;  %v703_v18 = vpop.permute.xlu1 %702 }
 0x1c2   :  { %371 = vperm.xlu1 %9436, %v104_v27   ;;  %v891_v30 = vmul.f32 %v10243_v4, %v703_v18 }
 0x1c4   :  { %3350 = vrot.lane.b32.xlu0 %v10887_v41, %s9878_s19  ;;  %v963_v1 = vadd.f32 %v891_v30, %v527_v53  ;;  %v532_v30 = vmul.f32 %v10248_v6, %v10434_v33  ;;  %v1332_v53 = vmul.f32 %v10251_v7, %v10847_v51  ;;  %v9778_v33 = vld [vmem:[%s15256_s26 + $0x1a8] sm:$0xff] }
 0x1c5   :  { %v707_v57 = vpop.permute.xlu1 %706 }
 0x1c6   :  { %v892_v2 = vmul.f32 %v10243_v4, %v707_v57  ;;  %9437 = vset.pattern.permute.xlu1 %v15268_v36 }
 0x1c7   :  { %758 = vperm.xlu1 %9437, %v104_v27  }
 0x1c8   :  { %v964_v63 = vadd.f32 %v892_v2, %v528_v45  ;;  %3348 = vrot.lane.b32.xlu0 %v10897_v59, %s9878_s19 }
 0x1ca   :  { %v1400_v26 = vadd.f32 %v1328_v3, %v964_v63  ;;  %v1139_v32 = vpop.permute.xlu1 %1138  ;;  %v108_v3 = vld [vmem:[%s15256_s26 + $0x1a0] sm:$0xff] }
 0x1cb   :  { %v1327_v11 = vmul.f32 %v10251_v7, %v1139_v32  ;;  %762 = vperm.xlu1 %9437, %v9776_v19  }
 0x1cc   :  { %v1479_v12 = vadd.f32 %v10789_v52, %v1400_v26 }
 0x1cd   :  { %v1399_v14 = vadd.f32 %v1327_v11, %v963_v1 }
 0x1ce   :  { %v1551_v0 = vmax.f32 %v1479_v12, 0.0 }
 0x1cf   :  { %v1478_v49 = vadd.f32 %v10789_v52, %v1399_v14  ;;  %9438 = vset.pattern.permute.xlu1 %v15264_v40  ;;  %v312_v22 = vpop.permute.xlu1 %311 }
 0x1d0   :  { %1194 = vperm.xlu1 %9438, %v104_v27   ;;  %v529_v31 = vmul.f32 %v10248_v6, %v312_v22 }
 0x1d1   :  { %v1550_v37 = vmax.f32 %v1478_v49, 0.0 }
 0x1d3   :  { %8998 = vmatprep.mubr.msk.f32.mxu0 %vm1599_vm0, %v1550_v37 }
 0x1d4   :  { %9439 = vset.pattern.permute.xlu1 %v15266_v44  ;;  %8999 = vmatmul.mubr.msk.f32.gmra.mrb[34].mxu0 %vm1599_vm0, %v1551_v0  ;;  %v711_v39 = vpop.permute.xlu1 %710 }
 0x1d5   :  { %381 = vperm.xlu1 %9439, %v106_v21   ;;  %v893_v13 = vmul.f32 %v10243_v4, %v711_v39 }
 0x1d7   :  { %v965_v17 = vadd.f32 %v893_v13, %v529_v31  ;;  %v1334_v13 = vmul.f32 %v10251_v7, %v10856_v34 }
 0x1d8   :  { %v715_v20 = vpop.permute.xlu1 %714 }
 0x1d9   :  { %v894_v24 = vmul.f32 %v10243_v4, %v715_v20  ;;  %9440 = vset.pattern.permute.xlu1 %v15268_v36 }
 0x1da   :  { %766 = vperm.xlu1 %9440, %v106_v21  }
 0x1db   :  { %v966_v43 = vadd.f32 %v894_v24, %v530_v50  ;;  %v110_v50 = vld [vmem:[%s15256_s26 + $0x1b0] sm:$0xff] }
 0x1dd   :  { %v1402_v15 = vadd.f32 %v1330_v35, %v966_v43  ;;  %v1147_v5 = vpop.permute.xlu1 %1146  ;;  %v534_v35 = vmul.f32 %v10248_v6, %v10440_v42  ;;  %v9779_v42 = vld [vmem:[%s15256_s26 + $0x1b8] sm:$0xff] }
 0x1de   :  { %v1329_v10 = vmul.f32 %v10251_v7, %v1147_v5  ;;  %770 = vperm.xlu1 %9440, %v9777_v48  }
 0x1df   :  { %v1481_v55 = vadd.f32 %v10789_v52, %v1402_v15 }
 0x1e0   :  { %v1401_v38 = vadd.f32 %v1329_v10, %v965_v17 }
 0x1e1   :  { %v1553_v57 = vmax.f32 %v1481_v55, 0.0  ;;  %v10974_v55 = vpop.permute.xlu0 %1198 }
 0x1e2   :  { %v1480_v27 = vadd.f32 %v10789_v52, %v1401_v38  ;;  %9441 = vset.pattern.permute.xlu1 %v15264_v40  ;;  %v322_v18 = vpop.permute.xlu1 %321 }
 0x1e3   :  { %1202 = vperm.xlu1 %9441, %v106_v21   ;;  %v531_v11 = vmul.f32 %v10248_v6, %v322_v18 }
 0x1e4   :  { %v1552_v45 = vmax.f32 %v1480_v27, 0.0 }
 0x1e6   :  { %9001 = vmatprep.mubr.msk.f32.mxu0 %vm1599_vm0, %v1552_v45 }
 0x1e7   :  { %9442 = vset.pattern.permute.xlu1 %v15266_v44  ;;  %9002 = vmatmul.mubr.msk.f32.gmra.mrb[36].mxu0 %vm1599_vm0, %v1553_v57  ;;  %v719_v2 = vpop.permute.xlu1 %718 }
 0x1e8   :  { %391 = vperm.xlu1 %9442, %v108_v3   ;;  %v895_v32 = vmul.f32 %v10243_v4, %v719_v2  ;;  %v112_v2 = vld [vmem:[%s15256_s26 + $0x1c0] sm:$0xff] }
 0x1ea   :  { %v967_v12 = vadd.f32 %v895_v32, %v531_v11 }
 0x1eb   :  { %v723_v63 = vpop.permute.xlu1 %722 }
 0x1ec   :  { %v896_v26 = vmul.f32 %v10243_v4, %v723_v63  ;;  %9443 = vset.pattern.permute.xlu1 %v15268_v36 }
 0x1ed   :  { %774 = vperm.xlu1 %9443, %v108_v3  }
 0x1ee   :  { %v968_v1 = vadd.f32 %v896_v26, %v532_v30  ;;  %v10983_v30 = vpop.permute.xlu0 %1206  ;;  %v15276_v26 = vld [vmem:[#allocation2_spill] sm:$0xff] }
 0x1ef   :  { %v536_v32 = vmul.f32 %v10248_v6, %v15276_v26 }
 0x1f0   :  { %v1404_v19 = vadd.f32 %v1332_v53, %v968_v1  ;;  %v1155_v14 = vpop.permute.xlu1 %1154  ;;  %v1336_v1 = vmul.f32 %v10251_v7, %v10868_v23 }
 0x1f1   :  { %v1331_v49 = vmul.f32 %v10251_v7, %v1155_v14  ;;  %778 = vperm.xlu1 %9443, %v9778_v33  }
 0x1f2   :  { %v1483_v22 = vadd.f32 %v10789_v52, %v1404_v19  ;;  %v10993_v19 = vpop.permute.xlu0 %1214 }
 0x1f3   :  { %v1403_v51 = vadd.f32 %v1331_v49, %v967_v12 }
 0x1f4   :  { %v1555_v39 = vmax.f32 %v1483_v22, 0.0 }
 0x1f5   :  { %v1482_v37 = vadd.f32 %v10789_v52, %v1403_v51  ;;  %9444 = vset.pattern.permute.xlu1 %v15264_v40  ;;  %v332_v0 = vpop.permute.xlu1 %331 }
 0x1f6   :  { %1210 = vperm.xlu1 %9444, %v108_v3   ;;  %v533_v5 = vmul.f32 %v10248_v6, %v332_v0 }
 0x1f7   :  { %v1554_v21 = vmax.f32 %v1482_v37, 0.0 }
 0x1f9   :  { %9004 = vmatprep.mubr.msk.f32.mxu0 %vm1599_vm0, %v1554_v21 }
 0x1fa   :  { %9445 = vset.pattern.permute.xlu1 %v15266_v44  ;;  %9005 = vmatmul.mubr.msk.f32.gmra.mrb[38].mxu0 %vm1599_vm0, %v1555_v39  ;;  %v727_v20 = vpop.permute.xlu1 %726  ;;  %v9780_v39 = vld [vmem:[%s15256_s26 + $0x1c8] sm:$0xff] }
 0x1fb   :  { %401 = vperm.xlu1 %9445, %v110_v50   ;;  %v897_v31 = vmul.f32 %v10243_v4, %v727_v20 }
 0x1fd   :  { %v969_v48 = vadd.f32 %v897_v31, %v533_v5 }
 0x1fe   :  { %v731_v24 = vpop.permute.xlu1 %730 }
 0x1ff   :  { %v898_v43 = vmul.f32 %v10243_v4, %v731_v24  ;;  %9446 = vset.pattern.permute.xlu1 %v15268_v36 }
 0x200   :  { %782 = vperm.xlu1 %9446, %v110_v50  }
 0x201   :  { %v970_v15 = vadd.f32 %v898_v43, %v534_v35  ;;  %v11008_v35 = vpop.permute.xlu0 %1222 }
 0x203   :  { %v1406_v17 = vadd.f32 %v1334_v13, %v970_v15  ;;  %v1163_v10 = vpop.permute.xlu1 %1162 }
 0x204   :  { %v1333_v38 = vmul.f32 %v10251_v7, %v1163_v10  ;;  %786 = vperm.xlu1 %9446, %v9779_v42   ;;  %v114_v42 = vld [vmem:[%s15256_s26 + $0x1d0] sm:$0xff] }
 0x205   :  { %v1485_v27 = vadd.f32 %v10789_v52, %v1406_v17  ;;  %v11020_v17 = vadd.f32 %v10816_v29, %v10875_v25 }
 0x206   :  { %v1405_v34 = vadd.f32 %v1333_v38, %v969_v48 }
 0x207   :  { %v1557_v3 = vmax.f32 %v1485_v27, 0.0 }
 0x208   :  { %v1484_v18 = vadd.f32 %v10789_v52, %v1405_v34  ;;  %9447 = vset.pattern.permute.xlu1 %v15264_v40  ;;  %v342_v45 = vpop.permute.xlu1 %341  ;;  %v11027_v34 = vpop.permute.xlu0 %1230 }
 0x209   :  { %1218 = vperm.xlu1 %9447, %v110_v50   ;;  %v535_v22 = vmul.f32 %v10248_v6, %v342_v45 }
 0x20a   :  { %v1556_v57 = vmax.f32 %v1484_v18, 0.0 }
 0x20c   :  { %9007 = vmatprep.mubr.msk.f32.mxu0 %vm1599_vm0, %v1556_v57 }
 0x20d   :  { %9448 = vset.pattern.permute.xlu1 %v15266_v44  ;;  %9008 = vmatmul.mubr.msk.f32.gmra.mrb[40].mxu0 %vm1599_vm0, %v1557_v3  ;;  %v735_v63 = vpop.permute.xlu1 %734 }
 0x20e   :  { %411 = vperm.xlu1 %9448, %v112_v2   ;;  %v899_v14 = vmul.f32 %v10243_v4, %v735_v63 }
 0x210   :  { %v971_v0 = vadd.f32 %v899_v14, %v535_v22 }
 0x211   :  { %v739_v53 = vpop.permute.xlu1 %738 }
 0x212   :  { %v900_v11 = vmul.f32 %v10243_v4, %v739_v53  ;;  %9449 = vset.pattern.permute.xlu1 %v15268_v36  ;;  %v1338_v53 = vmul.f32 %v10251_v7, %v10883_v28 }
 0x213   :  { %790 = vperm.xlu1 %9449, %v112_v2   ;;  %v8961_v12 = vpop.f32.mrb[8].mxu0 }
 0x214   :  { %v972_v49 = vadd.f32 %v900_v11, %v536_v32  ;;  %v10997_v33 = vadd.f32 %v8961_v12, %v10875_v25  ;;  %v10999_v51 = vpop.f32.mrb[9].mxu0  ;;  %v11054_v11 = vpop.permute.xlu0 %1238 }
 0x216   :  { %v1408_v37 = vadd.f32 %v1336_v1, %v972_v49  ;;  %v1171_v23 = vpop.permute.xlu1 %1170  ;;  %3366 = vrot.lane.b32.xlu0 %v10997_v33, %s9878_s19 }
 0x217   :  { %v1335_v21 = vmul.f32 %v10251_v7, %v1171_v23  ;;  %794 = vperm.xlu1 %9449, %v9780_v39   ;;  %v8964_v50 = vpop.f32.mrb[10].mxu0 }
 0x218   :  { %v1932_v20 = vpop.f32.mrb[11].mxu0  ;;  %v1487_v43 = vadd.f32 %v10789_v52, %v1408_v37  ;;  %v11037_v45 = vadd.f32 %v8964_v50, %v10875_v25  ;;  %v9781_v50 = vld [vmem:[%s15256_s26 + $0x1d8] sm:$0xff] }
 0x219   :  { %v1407_v24 = vadd.f32 %v1335_v21, %v971_v0  ;;  %v11011_v13 = vadd.f32 %v10875_v25, %v1932_v20  ;;  %v11067_v20 = vpop.permute.xlu0 %1246 }
 0x21a   :  { %v1559_v38 = vmax.f32 %v1487_v43, 0.0 }
 0x21b   :  { %v1486_v31 = vadd.f32 %v10789_v52, %v1407_v24  ;;  %9450 = vset.pattern.permute.xlu1 %v15264_v40  ;;  %v352_v15 = vpop.permute.xlu1 %351  ;;  %3368 = vrot.lane.b32.xlu0 %v11011_v13, %s9878_s19  ;;  %v8967_v5 = vpop.f32.mrb[12].mxu0 }
 0x21c   :  { %1226 = vperm.xlu1 %9450, %v112_v2   ;;  %v11022_v48 = vpop.f32.mrb[13].mxu0  ;;  %v15277_v2 = vld [vmem:[#allocation3_spill] sm:$0xff]  ;;  %v11048_v26 = vadd.f32 %v8967_v5, %v10875_v25  ;;  %v537_v28 = vmul.f32 %v10248_v6, %v352_v15 }
 0x21d   :  { %v1558_v10 = vmax.f32 %v1486_v31, 0.0  ;;  %v538_v63 = vmul.f32 %v10248_v6, %v15277_v2  ;;  %v116_v2 = vld [vmem:[%s15256_s26 + $0x1e0] sm:$0xff] }
 0x21f   :  { %9010 = vmatprep.mubr.msk.f32.mxu0 %vm1599_vm0, %v1558_v10  ;;  %3362 = vrot.lane.b32.xlu0 %v11020_v17, %s9878_s19  ;;  %v8970_v27 = vpop.f32.mrb[14].mxu0 }
 0x220   :  { %9451 = vset.pattern.permute.xlu1 %v15266_v44  ;;  %9011 = vmatmul.mubr.msk.f32.gmra.mrb[42].mxu0 %vm1599_vm0, %v1559_v38  ;;  %v743_v29 = vpop.permute.xlu1 %742  ;;  %v11034_v18 = vpop.f32.mrb[15].mxu0  ;;  %v11075_v5 = vadd.f32 %v8970_v27, %v10875_v25 }
 0x221   :  { %421 = vperm.xlu1 %9451, %v114_v42   ;;  %v901_v14 = vmul.f32 %v10243_v4, %v743_v29 }
 0x223   :  { %3370 = vrot.lane.b32.xlu0 %v11037_v45, %s9878_s19  ;;  %v973_v0 = vadd.f32 %v901_v14, %v537_v28  ;;  %v15278_v28 = vld [vmem:[#allocation4_spill] sm:$0xff] }
 0x224   :  { %v11041_v57 = vpop.f32.mrb[16].mxu0  ;;  %v747_v3 = vpop.permute.xlu1 %746 }
 0x225   :  { %v902_v32 = vmul.f32 %v10243_v4, %v747_v3  ;;  %v11051_v1 = vpop.f32.mrb[17].mxu0  ;;  %9452 = vset.pattern.permute.xlu1 %v15268_v36 }
 0x226   :  { %798 = vperm.xlu1 %9452, %v114_v42  }
 0x227   :  { %v974_v12 = vadd.f32 %v902_v32, %v538_v63  ;;  %3374 = vrot.lane.b32.xlu0 %v11048_v26, %s9878_s19  ;;  %v11084_v63 = vpop.permute.xlu0 %1254 }
 0x228   :  { %v8976_v49 = vpop.f32.mrb[18].mxu0 }
 0x229   :  { %v1410_v22 = vadd.f32 %v1338_v53, %v974_v12  ;;  %v1972_v37 = vpop.f32.mrb[19].mxu0  ;;  %v1179_v23 = vpop.permute.xlu1 %1178  ;;  %v11087_v27 = vadd.f32 %v8976_v49, %v10875_v25  ;;  %v540_v49 = vmul.f32 %v10248_v6, %v15278_v28 }
 0x22a   :  { %v11061_v21 = vadd.f32 %v10875_v25, %v1972_v37  ;;  %v1337_v39 = vmul.f32 %v10251_v7, %v1179_v23  ;;  %802 = vperm.xlu1 %9452, %v9781_v50  }
 0x22b   :  { %v1489_v31 = vadd.f32 %v10789_v52, %v1410_v22  ;;  %v1340_v22 = vmul.f32 %v10251_v7, %v10902_v54  ;;  %v11105_v37 = vpop.permute.xlu0 %1262 }
 0x22c   :  { %v1409_v24 = vadd.f32 %v1337_v39, %v973_v0  ;;  %3384 = vrot.lane.b32.xlu0 %v11061_v21, %s9878_s19  ;;  %v8979_v43 = vpop.f32.mrb[20].mxu0 }
 0x22d   :  { %v11072_v15 = vpop.f32.mrb[21].mxu0  ;;  %v1561_v3 = vmax.f32 %v1489_v31, 0.0  ;;  %v11099_v14 = vadd.f32 %v8979_v43, %v10875_v25 }
 0x22e   :  { %v1488_v10 = vadd.f32 %v10789_v52, %v1409_v24  ;;  %9453 = vset.pattern.permute.xlu1 %v15264_v40  ;;  %v362_v38 = vpop.permute.xlu1 %361 }
 0x22f   :  { %1234 = vperm.xlu1 %9453, %v114_v42   ;;  %v539_v50 = vmul.f32 %v10248_v6, %v362_v38 }
 0x230   :  { %v1560_v29 = vmax.f32 %v1488_v10, 0.0  ;;  %3378 = vrot.lane.b32.xlu0 %v11075_v5, %s9878_s19  ;;  %v9782_v10 = vld [vmem:[%s15256_s26 + $0x1e8] sm:$0xff] }
 0x232   :  { %9013 = vmatprep.mubr.msk.f32.mxu0 %vm1599_vm0, %v1560_v29 }
 0x233   :  { %9454 = vset.pattern.permute.xlu1 %v15266_v44  ;;  %9014 = vmatmul.mubr.msk.f32.gmra.mrb[44].mxu0 %vm1599_vm0, %v1561_v3  ;;  %v751_v42 = vpop.permute.xlu1 %750 }
 0x234   :  { %3386 = vrot.lane.b32.xlu0 %v11087_v27, %s9878_s19  ;;  %431 = vperm.xlu1 %9454, %v116_v2   ;;  %v11094_v53 = vpop.f32.mrb[22].mxu0  ;;  %v903_v0 = vmul.f32 %v10243_v4, %v751_v42 }
 0x235   :  { %v11096_v32 = vpop.f32.mrb[23].mxu0 }
 0x236   :  { %v975_v31 = vadd.f32 %v903_v0, %v539_v50 }
 0x237   :  { %v755_v12 = vpop.permute.xlu1 %754 }
 0x238   :  { %v904_v23 = vmul.f32 %v10243_v4, %v755_v12  ;;  %3390 = vrot.lane.b32.xlu0 %v11099_v14, %s9878_s19  ;;  %9455 = vset.pattern.permute.xlu1 %v15268_v36 }
 0x239   :  { %806 = vperm.xlu1 %9455, %v116_v2  }
 0x23a   :  { %v976_v39 = vadd.f32 %v904_v23, %v540_v49  ;;  %v118_v49 = vld [vmem:[%s15256_s26 + $0x1f0] sm:$0xff] }
 0x23c   :  { %v1412_v24 = vadd.f32 %v1340_v22, %v976_v39  ;;  %v1187_v43 = vpop.permute.xlu1 %1186 }
 0x23d   :  { %v1339_v54 = vmul.f32 %v10251_v7, %v1187_v43  ;;  %810 = vperm.xlu1 %9455, %v9782_v10  }
 0x23e   :  { %v1491_v3 = vadd.f32 %v10789_v52, %v1412_v24  ;;  %v1342_v24 = vmul.f32 %v10251_v7, %v10974_v55 }
 0x23f   :  { %v1411_v29 = vadd.f32 %v1339_v54, %v975_v31 }
 0x240   :  { %v1563_v28 = vmax.f32 %v1491_v3, 0.0 }
 0x241   :  { %9456 = vset.pattern.permute.xlu1 %v15264_v40  ;;  %v372_v42 = vpop.permute.xlu1 %371  ;;  %v1490_v12 = vadd.f32 %v10789_v52, %v1411_v29 }
 0x242   :  { %1242 = vperm.xlu1 %9456, %v116_v2   ;;  %v15280_v2 = vld [vmem:[#allocation5_spill] sm:$0xff]  ;;  %v541_v10 = vmul.f32 %v10248_v6, %v372_v42 }
 0x243   :  { %v1562_v38 = vmax.f32 %v1490_v12, 0.0  ;;  %v542_v50 = vmul.f32 %v10248_v6, %v15280_v2 }
 0x245   :  { %9016 = vmatprep.mubr.msk.f32.mxu1 %vm1599_vm0, %v1562_v38 }
 0x246   :  { %9457 = vset.pattern.permute.xlu1 %v15266_v44  ;;  %9017 = vmatmul.mubr.msk.f32.vlgmr.msra.gmra.mrb[0].mxu1 %vm1599_vm0, %v1563_v28  ;;  %v759_v22 = vpop.permute.xlu1 %758  ;;  %v9783_v28 = vld [vmem:[%s15256_s26 + $0x1f8] sm:$0xff] }
 0x247   :  { %441 = vperm.xlu1 %9457, %v118_v49   ;;  %v11126_v23 = vpop.f32.mrb[24].mxu0  ;;  %v905_v31 = vmul.f32 %v10243_v4, %v759_v22 }
 0x248   :  { %15279 = vst [vmem:[#allocation2_spill] sm:$0xff] %v11126_v23  ;;  %v11128_v0 = vpop.f32.mrb[25].mxu0 }
 0x249   :  { %v977_v12 = vadd.f32 %v905_v31, %v541_v10  ;;  %v11151_v31 = vpop.permute.xlu0 %1270 }
 0x24a   :  { %v763_v39 = vpop.permute.xlu1 %762 }
 0x24b   :  { %v906_v43 = vmul.f32 %v10243_v4, %v763_v39  ;;  %9458 = vset.pattern.permute.xlu1 %v15268_v36 }
 0x24c   :  { %814 = vperm.xlu1 %9458, %v118_v49  }
 0x24d   :  { %v978_v54 = vadd.f32 %v906_v43, %v542_v50 }
 0x24f   :  { %v1414_v29 = vadd.f32 %v1342_v24, %v978_v54  ;;  %v1195_v3 = vpop.permute.xlu1 %1194  ;;  %v120_v24 = vld [vmem:[%s15256_s26 + $0x200] sm:$0xff] }
 0x250   :  { %v1341_v38 = vmul.f32 %v10251_v7, %v1195_v3  ;;  %818 = vperm.xlu1 %9458, %v9783_v28   ;;  %v15282_v3 = vld [vmem:[#allocation6_spill] sm:$0xff] }
 0x251   :  { %v1493_v39 = vadd.f32 %v10789_v52, %v1414_v29 }
 0x252   :  { %v1413_v55 = vadd.f32 %v1341_v38, %v977_v12  ;;  %v544_v12 = vmul.f32 %v10248_v6, %v15282_v3  ;;  %v1344_v38 = vmul.f32 %v10251_v7, %v10983_v30 }
 0x253   :  { %v1565_v50 = vmax.f32 %v1493_v39, 0.0  ;;  %v11165_v39 = vpop.permute.xlu0 %1278 }
 0x254   :  { %v1492_v2 = vadd.f32 %v10789_v52, %v1413_v55  ;;  %9459 = vset.pattern.permute.xlu1 %v15264_v40  ;;  %v382_v22 = vpop.permute.xlu1 %381 }
 0x255   :  { %1250 = vperm.xlu1 %9459, %v118_v49  }
 0x256   :  { %v1564_v42 = vmax.f32 %v1492_v2, 0.0  ;;  %v11169_v2 = vadd.f32 %v11094_v53, %v10875_v25 }
 0x258   :  { %9019 = vmatprep.mubr.msk.f32.mxu1 %vm1599_vm0, %v1564_v42 }
 0x259   :  { %9460 = vset.pattern.permute.xlu1 %v15266_v44  ;;  %9020 = vmatmul.mubr.msk.f32.gmra.mrb[2].mxu1 %vm1599_vm0, %v1565_v50  ;;  %v767_v43 = vpop.permute.xlu1 %766  ;;  %v543_v50 = vmul.f32 %v10248_v6, %v382_v22 }
 0x25a   :  { %451 = vperm.xlu1 %9460, %v120_v24   ;;  %v8988_v54 = vpop.f32.mrb[26].mxu0  ;;  %v907_v55 = vmul.f32 %v10243_v4, %v767_v43  ;;  %v9784_v43 = vld [vmem:[%s15256_s26 + $0x208] sm:$0xff] }
 0x25b   :  { %v2012_v10 = vpop.f32.mrb[27].mxu0 }
 0x25c   :  { %v11154_v49 = vadd.f32 %v10875_v25, %v2012_v10 }
 0x25d   :  { %v771_v29 = vpop.permute.xlu1 %770 }
 0x25e   :  { %15281 = vst [vmem:[#allocation3_spill] sm:$0xff] %v11154_v49  ;;  %v908_v28 = vmul.f32 %v10243_v4, %v771_v29  ;;  %9461 = vset.pattern.permute.xlu1 %v15268_v36  ;;  %3400 = vrot.lane.b32.xlu0 %v11154_v49, %s9878_s19  ;;  %v979_v29 = vadd.f32 %v907_v55, %v543_v50 }
 0x25f   :  { %822 = vperm.xlu1 %9461, %v120_v24   ;;  %v11179_v49 = vadd.f32 %v8988_v54, %v10875_v25  ;;  %v122_v54 = vld [vmem:[%s15256_s26 + $0x210] sm:$0xff] }
 0x260   :  { %v980_v42 = vadd.f32 %v908_v28, %v544_v12  ;;  %v11181_v12 = vpop.permute.xlu0 %1286 }
 0x261   :  { %15283 = vst [vmem:[#allocation4_spill] sm:$0xff] %v11179_v49 }
 0x262   :  { %v1416_v30 = vadd.f32 %v1344_v38, %v980_v42  ;;  %v1203_v10 = vpop.permute.xlu1 %1202  ;;  %3394 = vrot.lane.b32.xlu0 %v11169_v2, %s9878_s19 }
 0x263   :  { %v1343_v3 = vmul.f32 %v10251_v7, %v1203_v10  ;;  %826 = vperm.xlu1 %9461, %v9784_v43   ;;  %v15287_v43 = vld [vmem:[#allocation7_spill] sm:$0xff] }
 0x264   :  { %v1495_v22 = vadd.f32 %v10789_v52, %v1416_v30 }
 0x265   :  { %v1415_v53 = vadd.f32 %v1343_v3, %v979_v29 }
 0x266   :  { %3402 = vrot.lane.b32.xlu0 %v11179_v49, %s9878_s19  ;;  %v1567_v42 = vmax.f32 %v1495_v22, 0.0  ;;  %v1346_v22 = vmul.f32 %v10251_v7, %v10993_v19 }
 0x267   :  { %v1494_v38 = vadd.f32 %v10789_v52, %v1415_v53  ;;  %9462 = vset.pattern.permute.xlu1 %v15264_v40  ;;  %v392_v28 = vpop.permute.xlu1 %391  ;;  %v546_v53 = vmul.f32 %v10248_v6, %v15287_v43  ;;  %v9785_v43 = vld [vmem:[%s15256_s26 + $0x218] sm:$0xff] }
 0x268   :  { %1258 = vperm.xlu1 %9462, %v120_v24   ;;  %v11199_v24 = vpop.permute.xlu0 %6394 }
 0x269   :  { %v1566_v55 = vmax.f32 %v1494_v38, 0.0  ;;  %15286 = vst [vmem:[#allocation17_spill] sm:$0xff] %v11199_v24 }
 0x26b   :  { %9022 = vmatprep.mubr.msk.f32.mxu1 %vm1599_vm0, %v1566_v55 }
 0x26c   :  { %9463 = vset.pattern.permute.xlu1 %v15266_v44  ;;  %9023 = vmatmul.mubr.msk.f32.gmra.mrb[4].mxu1 %vm1599_vm0, %v1567_v42  ;;  %v775_v50 = vpop.permute.xlu1 %774 }
 0x26d   :  { %461 = vperm.xlu1 %9463, %v122_v54   ;;  %v8991_v30 = vpop.f32.mrb[28].mxu0  ;;  %v909_v55 = vmul.f32 %v10243_v4, %v775_v50 }
 0x26e   :  { %v11195_v10 = vadd.f32 %v8991_v30, %v10875_v25  ;;  %v11197_v29 = vpop.f32.mrb[29].mxu0  ;;  %v545_v30 = vmul.f32 %v10248_v6, %v392_v28 }
 0x26f   :  { %15285 = vst [vmem:[#allocation6_spill] sm:$0xff] %v11197_v29 }
 0x270   :  { %15284 = vst [vmem:[#allocation5_spill] sm:$0xff] %v11195_v10  ;;  %v779_v3 = vpop.permute.xlu1 %778  ;;  %3406 = vrot.lane.b32.xlu0 %v11195_v10, %s9878_s19  ;;  %v981_v29 = vadd.f32 %v909_v55, %v545_v30 }
 0x271   :  { %v910_v38 = vmul.f32 %v10243_v4, %v779_v3  ;;  %9464 = vset.pattern.permute.xlu1 %v15268_v36 }
 0x272   :  { %830 = vperm.xlu1 %9464, %v122_v54  }
 0x273   :  { %v982_v42 = vadd.f32 %v910_v38, %v546_v53  ;;  %v1348_v38 = vmul.f32 %v10251_v7, %v11008_v35 }
 0x275   :  { %v1418_v24 = vadd.f32 %v1346_v22, %v982_v42  ;;  %v1211_v49 = vpop.permute.xlu1 %1210 }
 0x276   :  { %v1345_v10 = vmul.f32 %v10251_v7, %v1211_v49  ;;  %834 = vperm.xlu1 %9464, %v9785_v43   ;;  %v124_v49 = vld [vmem:[%s15256_s26 + $0x220] sm:$0xff] }
 0x277   :  { %v1497_v3 = vadd.f32 %v10789_v52, %v1418_v24 }
 0x278   :  { %v1417_v19 = vadd.f32 %v1345_v10, %v981_v29 }
 0x279   :  { %v1569_v53 = vmax.f32 %v1497_v3, 0.0 }
 0x27a   :  { %v1496_v23 = vadd.f32 %v10789_v52, %v1417_v19  ;;  %9465 = vset.pattern.permute.xlu1 %v15264_v40  ;;  %v402_v50 = vpop.permute.xlu1 %401 }
 0x27b   :  { %1266 = vperm.xlu1 %9465, %v122_v54   ;;  %v15289_v54 = vld [vmem:[#allocation8_spill] sm:$0xff]  ;;  %v547_v43 = vmul.f32 %v10248_v6, %v402_v50 }
 0x27c   :  { %v1568_v28 = vmax.f32 %v1496_v23, 0.0  ;;  %v548_v23 = vmul.f32 %v10248_v6, %v15289_v54  ;;  %v9786_v54 = vld [vmem:[%s15256_s26 + $0x228] sm:$0xff] }
 0x27e   :  { %9025 = vmatprep.mubr.msk.f32.mxu1 %vm1599_vm0, %v1568_v28 }
 0x27f   :  { %9466 = vset.pattern.permute.xlu1 %v15266_v44  ;;  %9026 = vmatmul.mubr.msk.f32.gmra.mrb[6].mxu1 %vm1599_vm0, %v1569_v53  ;;  %v783_v10 = vpop.permute.xlu1 %782 }
 0x280   :  { %471 = vperm.xlu1 %9466, %v124_v49   ;;  %v11224_v29 = vpop.f32.mrb[30].mxu0  ;;  %v911_v42 = vmul.f32 %v10243_v4, %v783_v10 }
 0x281   :  { %15288 = vst [vmem:[#allocation7_spill] sm:$0xff] %v11224_v29  ;;  %v11226_v24 = vpop.f32.mrb[31].mxu0 }
 0x282   :  { %v983_v28 = vadd.f32 %v911_v42, %v547_v43 }
 0x283   :  { %v787_v22 = vpop.permute.xlu1 %786 }
 0x284   :  { %v912_v55 = vmul.f32 %v10243_v4, %v787_v22  ;;  %9467 = vset.pattern.permute.xlu1 %v15268_v36 }
 0x285   :  { %838 = vperm.xlu1 %9467, %v124_v49  }
 0x286   :  { %v984_v30 = vadd.f32 %v912_v55, %v548_v23 }
 0x288   :  { %v1420_v19 = vadd.f32 %v1348_v38, %v984_v30  ;;  %v1219_v3 = vpop.permute.xlu1 %1218  ;;  %v126_v38 = vld [vmem:[%s15256_s26 + $0x230] sm:$0xff] }
 0x289   :  { %v1347_v53 = vmul.f32 %v10251_v7, %v1219_v3  ;;  %842 = vperm.xlu1 %9467, %v9786_v54  }
 0x28a   :  { %v1499_v22 = vadd.f32 %v10789_v52, %v1420_v19 }
 0x28b   :  { %v1419_v35 = vadd.f32 %v1347_v53, %v983_v28 }
 0x28c   :  { %v1571_v23 = vmax.f32 %v1499_v22, 0.0 }
 0x28d   :  { %v1498_v29 = vadd.f32 %v10789_v52, %v1419_v35  ;;  %9468 = vset.pattern.permute.xlu1 %v15264_v40  ;;  %v412_v10 = vpop.permute.xlu1 %411 }
 0x28e   :  { %1274 = vperm.xlu1 %9468, %v124_v49   ;;  %v15290_v49 = vld [vmem:[#allocation9_spill] sm:$0xff]  ;;  %v549_v53 = vmul.f32 %v10248_v6, %v412_v10  ;;  %v11271_v10 = vld [vmem:[%s15173_s4] sm:$0xff] }
 0x28f   :  { %v1570_v50 = vmax.f32 %v1498_v29, 0.0  ;;  %v550_v29 = vmul.f32 %v10248_v6, %v15290_v49  ;;  %v6399_v49 = vrot.slane %v11271_v10, %v10222_v60  ;;  %v6406_v60 = vrot.slane %v11271_v10, %v10230_v62 }
 0x291   :  { %9028 = vmatprep.mubr.msk.f32.mxu1 %vm1599_vm0, %v1570_v50 }
 0x292   :  { %9469 = vset.pattern.permute.xlu1 %v15266_v44  ;;  %9029 = vmatmul.mubr.msk.f32.gmra.mrb[8].mxu1 %vm1599_vm0, %v1571_v23  ;;  %v791_v55 = vpop.permute.xlu1 %790  ;;  %v1350_v44 = vmul.f32 %v10251_v7, %v11027_v34  ;;  %v9787_v23 = vld [vmem:[%s15256_s26 + $0x238] sm:$0xff] }
 0x293   :  { %481 = vperm.xlu1 %9469, %v126_v38   ;;  %v11249_v42 = vpop.f32.mrb[32].mxu0  ;;  %v913_v3 = vmul.f32 %v10243_v4, %v791_v55 }
 0x294   :  { %v11251_v30 = vpop.f32.mrb[33].mxu0 }
 0x295   :  { %v985_v22 = vadd.f32 %v913_v3, %v549_v53  ;;  %v3636_v3 = vld [vmem:[%s15175_s9] sm:$0xff] }
 0x296   :  { %v795_v43 = vpop.permute.xlu1 %794 }
 0x297   :  { %v914_v19 = vmul.f32 %v10243_v4, %v795_v43  ;;  %9470 = vset.pattern.permute.xlu1 %v15268_v36 }
 0x298   :  { %846 = vperm.xlu1 %9470, %v126_v38  }
 0x299   :  { %v986_v28 = vadd.f32 %v914_v19, %v550_v29 }
 0x29b   :  { %v1422_v54 = vadd.f32 %v1350_v44, %v986_v28  ;;  %v1227_v35 = vpop.permute.xlu1 %1226  ;;  %v11286_v44 = vsub.s32 3, %v10214_v56  ;;  %v11288_v28 = vpop.permute.xlu0 %6422 }
 0x29c   :  { %v1349_v50 = vmul.f32 %v10251_v7, %v1227_v35  ;;  %850 = vperm.xlu1 %9470, %v9787_v23   ;;  %15291 = vst [vmem:[#allocation8_spill] sm:$0xff] %v11288_v28  ;;  %v3639_v35 = vld [vmem:[%s15175_s9 + $0x18] sm:$0xff] }
 0x29d   :  { %v1501_v55 = vadd.f32 %v10789_v52, %v1422_v54  ;;  %v3638_v54 = vld [vmem:[%s15175_s9 + $0x10] sm:$0xff] }
 0x29e   :  { %v1421_v36 = vadd.f32 %v1349_v50, %v985_v22  ;;  %v9334_v50 = vpack.c.bf16 %v3639_v35, %v3638_v54 }
 0x29f   :  { %v1573_v19 = vmax.f32 %v1501_v55, 0.0  ;;  %v11304_v55 = vsub.s32 5, %v10214_v56 }
 0x2a0   :  { %v1500_v43 = vadd.f32 %v10789_v52, %v1421_v36  ;;  %9472 = vset.pattern.permute.xlu1 %v15264_v40  ;;  %v422_v34 = vpop.permute.xlu1 %421  ;;  %v3637_v40 = vld [vmem:[%s15175_s9 + $0x8] sm:$0xff]  ;;  %v6413_v36 = vrot.slane %v11271_v10, %v11286_v44 }
 0x2a1   :  { %1282 = vperm.xlu1 %9472, %v126_v38   ;;  %v9330_v52 = vpack.c.bf16 %v3637_v40, %v3636_v3  ;;  %v1352_v3 = vmul.f32 %v10251_v7, %v11054_v11  ;;  %v551_v54 = vmul.f32 %v10248_v6, %v422_v34  ;;  %v11326_v11 = vadd.f32 %v10875_v25, %v11251_v30 }
 0x2a2   :  { %v1572_v29 = vmax.f32 %v1500_v43, 0.0  ;;  %v15293_v43 = vld [vmem:[#allocation10_spill] sm:$0xff]  ;;  %v6434_v34 = vrot.slane %v11271_v10, %v10864_v9 }
 0x2a3   :  { %9331 = vmatprep.subr.bf16.mxu1 %v9330_v52 }
 0x2a4   :  { %9031 = vmatprep.mubr.msk.f32.mxu1 %vm1599_vm0, %v1572_v29  ;;  %9333 = vmatpush3.bf16.msra.mxu1 %v9330_v52  ;;  %v8686_v52 = vld [vmem:[%s15176_s13] ss:$0 sm:$0xff] }
 0x2a5   :  { %6401 = vbcast.lane.b32.xlu1 %v6399_v49, 256  ;;  %9032 = vmatmul.mubr.msk.f32.gmra.mrb[10].mxu1 %vm1599_vm0, %v1573_v19  ;;  %v799_v38 = vpop.permute.xlu1 %798  ;;  %v552_v49 = vmul.f32 %v10248_v6, %v15293_v43 }
 0x2a6   :  { %9335 = vmatprep.subr.bf16.mxu1 %v9334_v50  ;;  %v915_v19 = vmul.f32 %v10243_v4, %v799_v38  ;;  %v6427_v38 = vrot.slane %v11271_v10, %v11304_v55 }
 0x2a7   :  { %v11290_v53 = vpop.f32.mrb[34].mxu0 }
 0x2a8   :  { %v2052_v22 = vpop.f32.mrb[35].mxu0  ;;  %9337 = vmatpush3.bf16.msra.mxu1 %v9334_v50 }
 0x2a9   :  { %v11299_v62 = vadd.f32 %v10875_v25, %v2052_v22  ;;  %6408 = vbcast.lane.b32.xlu1 %v6406_v60, 256  ;;  %v803_v23 = vpop.permute.xlu1 %802  ;;  %v11317_v60 = vpop.permute.xlu0 %6457 }
 0x2aa   :  { %v916_v29 = vmul.f32 %v10243_v4, %v803_v23  ;;  %15294 = vst [vmem:[#allocation10_spill] sm:$0xff] %v11317_v60  ;;  %v987_v23 = vadd.f32 %v915_v19, %v551_v54 }
 0x2ab   :  { %15292 = vst [vmem:[#allocation9_spill] sm:$0xff] %v11299_v62  ;;  %3416 = vrot.lane.b32.xlu0 %v11299_v62, %s9878_s19 }
 0x2ac   :  { %v988_v40 = vadd.f32 %v916_v29, %v552_v49  ;;  %v11336_v49 = vld [vmem:[%s15172_s6] ss:$0 sm:$0xff] }
 0x2ad   :  { %6415 = vbcast.lane.b32.xlu1 %v6413_v36, 256  ;;  %v11331_v36 = vsub.s32 7, %v10214_v56  ;;  %v11339_v19 = vpop.permute.xlu0 %6464 }
 0x2ae   :  { %v1424_v35 = vadd.f32 %v1352_v3, %v988_v40  ;;  %v1235_v22 = vpop.permute.xlu1 %1234  ;;  %15295 = vst [vmem:[#allocation18_spill] sm:$0xff] %v11339_v19  ;;  %v1354_v19 = vmul.f32 %v10251_v7, %v11067_v20 }
 0x2af   :  { %v1351_v50 = vmul.f32 %v10251_v7, %v1235_v22  ;;  %7836 = vrot.lane.b32.xlu0 %v8686_v52, %s9878_s19  ;;  %v6441_v52 = vrot.slane %v11271_v10, %v11331_v36 }
 0x2b0   :  { %v1503_v29 = vadd.f32 %v11336_v49, %v1424_v35  ;;  %v9790_v35 = vld [vmem:[%s15173_s4 + $0x8] sm:$0xff] }
 0x2b1   :  { %v1423_v43 = vadd.f32 %v1351_v50, %v987_v23  ;;  %6429 = vbcast.lane.b32.xlu1 %v6427_v38, 256  ;;  %v6469_v22 = vrot.slane %v9790_v35, %v11286_v44 }
 0x2b2   :  { %v1575_v54 = vmax.f32 %v1503_v29, 0.0  ;;  %v15297_v29 = vld [vmem:[#allocation11_spill] sm:$0xff] }
 0x2b3   :  { %v1502_v30 = vadd.f32 %v11336_v49, %v1423_v43  ;;  %3412 = vrot.lane.b32.xlu0 %v11326_v11, %s9878_s19  ;;  %v432_v3 = vpop.permute.xlu1 %431  ;;  %v11352_v43 = vpop.permute.xlu0 %6450 }
 0x2b4   :  { %15296 = vst [vmem:[#allocation19_spill] sm:$0xff] %v11352_v43 }
 0x2b5   :  { %v1574_v40 = vmax.f32 %v1502_v30, 0.0  ;;  %6436 = vbcast.lane.b32.xlu1 %v6434_v34, 256  ;;  %v554_v30 = vmul.f32 %v10248_v6, %v15297_v29 }
 0x2b7   :  { %9034 = vmatprep.mubr.msk.f32.mxu1 %vm1599_vm0, %v1574_v40  ;;  %v11371_v28 = vpop.permute.xlu0 %6478 }
 0x2b8   :  { %9035 = vmatmul.mubr.msk.f32.gmra.mrb[12].mxu1 %vm1599_vm0, %v1575_v54  ;;  %v807_v38 = vpop.permute.xlu1 %806  ;;  %15299 = vst [vmem:[#allocation20_spill] sm:$0xff] %v11371_v28 }
 0x2b9   :  { %6443 = vbcast.lane.b32.xlu1 %v6441_v52, 256  ;;  %v6483_v52 = vrot.slane %v9790_v35, %v11304_v55  ;;  %v917_v54 = vmul.f32 %v10243_v4, %v807_v38 }
 0x2ba   :  { %v9003_v23 = vpop.f32.mrb[36].mxu0 }
 0x2bb   :  { %v2062_v50 = vpop.f32.mrb[37].mxu0  ;;  %v11368_v43 = vadd.f32 %v9003_v23, %v10875_v25 }
 0x2bc   :  { %v11355_v34 = vadd.f32 %v10875_v25, %v2062_v50  ;;  %v811_v10 = vpop.permute.xlu1 %810  ;;  %v553_v50 = vmul.f32 %v10248_v6, %v432_v3  ;;  %v6497_v25 = vrot.slane %v9790_v35, %v11331_v36 }
 0x2bd   :  { %v918_v40 = vmul.f32 %v10243_v4, %v811_v10  ;;  %6471 = vbcast.lane.b32.xlu1 %v6469_v22, 256  ;;  %15298 = vst [vmem:[#allocation11_spill] sm:$0xff] %v11368_v43  ;;  %v6490_v22 = vrot.slane %v9790_v35, %v10864_v9 }
 0x2be   :  { %3420 = vrot.lane.b32.xlu0 %v11355_v34, %s9878_s19  ;;  %v989_v38 = vadd.f32 %v917_v54, %v553_v50 }
 0x2bf   :  { %v990_v60 = vadd.f32 %v918_v40, %v554_v30  ;;  %v9791_v40 = vld [vmem:[%s15173_s4 + $0x10] sm:$0xff] }
 0x2c0   :  { %v6539_v35 = vrot.slane %v9791_v40, %v11304_v55 }
 0x2c1   :  { %v1426_v29 = vadd.f32 %v1354_v19, %v990_v60  ;;  %6485 = vbcast.lane.b32.xlu1 %v6483_v52, 256  ;;  %v1243_v10 = vpop.permute.xlu1 %1242  ;;  %v6525_v52 = vrot.slane %v9791_v40, %v11286_v44 }
 0x2c2   :  { %v1353_v62 = vmul.f32 %v10251_v7, %v1243_v10  ;;  %3422 = vrot.lane.b32.xlu0 %v11368_v43, %s9878_s19  ;;  %v15301_v10 = vld [vmem:[#allocation12_spill] sm:$0xff] }
 0x2c3   :  { %v1505_v30 = vadd.f32 %v11336_v49, %v1426_v29 }
 0x2c4   :  { %v1425_v20 = vadd.f32 %v1353_v62, %v989_v38 }
 0x2c5   :  { %6492 = vbcast.lane.b32.xlu1 %v6490_v22, 256  ;;  %v1577_v23 = vmax.f32 %v1505_v30, 0.0  ;;  %v556_v22 = vmul.f32 %v10248_v6, %v15301_v10  ;;  %v6546_v30 = vrot.slane %v9791_v40, %v10864_v9  ;;  %v6553_v10 = vrot.slane %v9791_v40, %v11331_v36 }
 0x2c6   :  { %v1504_v60 = vadd.f32 %v11336_v49, %v1425_v20  ;;  %v442_v19 = vpop.permute.xlu1 %441 }
 0x2c8   :  { %v1576_v3 = vmax.f32 %v1504_v60, 0.0 }
 0x2c9   :  { %6499 = vbcast.lane.b32.xlu1 %v6497_v25, 256  ;;  %v1356_v25 = vmul.f32 %v10251_v7, %v11084_v63  ;;  %v9792_v63 = vld [vmem:[%s15173_s4 + $0x18] sm:$0xff] }
 0x2ca   :  { %9037 = vmatprep.mubr.msk.f32.mxu1 %vm1599_vm0, %v1576_v3  ;;  %v555_v3 = vmul.f32 %v10248_v6, %v442_v19  ;;  %v6581_v19 = vrot.slane %v9792_v63, %v11286_v44  ;;  %v6595_v40 = vrot.slane %v9792_v63, %v11304_v55 }
 0x2cb   :  { %9038 = vmatmul.mubr.msk.f32.gmra.mrb[14].mxu1 %vm1599_vm0, %v1577_v23  ;;  %v815_v62 = vpop.permute.xlu1 %814 }
 0x2cc   :  { %v919_v20 = vmul.f32 %v10243_v4, %v815_v62 }
 0x2cd   :  { %v11385_v54 = vpop.f32.mrb[38].mxu0  ;;  %6527 = vbcast.lane.b32.xlu1 %v6525_v52, 256 }
 0x2ce   :  { %v11388_v50 = vpop.f32.mrb[39].mxu0  ;;  %v991_v28 = vadd.f32 %v919_v20, %v555_v3 }
 0x2cf   :  { %15300 = vst [vmem:[#allocation21_spill] sm:$0xff] %v11388_v50  ;;  %v819_v29 = vpop.permute.xlu1 %818 }
 0x2d0   :  { %v920_v38 = vmul.f32 %v10243_v4, %v819_v29 }
 0x2d1   :  { %6541 = vbcast.lane.b32.xlu1 %v6539_v35, 256 }
 0x2d2   :  { %v992_v60 = vadd.f32 %v920_v38, %v556_v22 }
 0x2d4   :  { %v1428_v23 = vadd.f32 %v1356_v25, %v992_v60  ;;  %v1251_v52 = vpop.permute.xlu1 %1250  ;;  %v15304_v60 = vld [vmem:[#allocation13_spill] sm:$0xff] }
 0x2d5   :  { %v1355_v43 = vmul.f32 %v10251_v7, %v1251_v52  ;;  %6548 = vbcast.lane.b32.xlu1 %v6546_v30, 256  ;;  %v6602_v30 = vrot.slane %v9792_v63, %v10864_v9  ;;  %v558_v3 = vmul.f32 %v10248_v6, %v15304_v60 }
 0x2d6   :  { %v1507_v62 = vadd.f32 %v11336_v49, %v1428_v23 }
 0x2d7   :  { %v1427_v29 = vadd.f32 %v1355_v43, %v991_v28 }
 0x2d8   :  { %v1579_v38 = vmax.f32 %v1507_v62, 0.0  ;;  %v6609_v62 = vrot.slane %v9792_v63, %v11331_v36 }
 0x2d9   :  { %v1506_v35 = vadd.f32 %v11336_v49, %v1427_v29  ;;  %6555 = vbcast.lane.b32.xlu1 %v6553_v10, 256  ;;  %v452_v50 = vpop.permute.xlu1 %451  ;;  %v1358_v10 = vmul.f32 %v10251_v7, %v11105_v37 }
 0x2db   :  { %v1578_v22 = vmax.f32 %v1506_v35, 0.0  ;;  %v557_v35 = vmul.f32 %v10248_v6, %v452_v50 }
 0x2dd   :  { %6583 = vbcast.lane.b32.xlu1 %v6581_v19, 256  ;;  %9040 = vmatprep.mubr.msk.f32.mxu1 %vm1599_vm0, %v1578_v22 }
 0x2de   :  { %9041 = vmatmul.mubr.msk.f32.gmra.mrb[16].mxu1 %vm1599_vm0, %v1579_v38  ;;  %v823_v28 = vpop.permute.xlu1 %822 }
 0x2df   :  { %v921_v52 = vmul.f32 %v10243_v4, %v823_v28 }
 0x2e0   :  { %v11409_v43 = vpop.f32.mrb[40].mxu0 }
 0x2e1   :  { %15302 = vst [vmem:[#allocation12_spill] sm:$0xff] %v11409_v43  ;;  %v11411_v20 = vpop.f32.mrb[41].mxu0  ;;  %6597 = vbcast.lane.b32.xlu1 %v6595_v40, 256  ;;  %v993_v38 = vadd.f32 %v921_v52, %v557_v35 }
 0x2e2   :  { %15303 = vst [vmem:[#allocation22_spill] sm:$0xff] %v11411_v20  ;;  %v827_v25 = vpop.permute.xlu1 %826 }
 0x2e3   :  { %v922_v23 = vmul.f32 %v10243_v4, %v827_v25  ;;  %v9793_v25 = vld [vmem:[%s15173_s4 + $0x20] sm:$0xff] }
 0x2e4   :  { %v6637_v28 = vrot.slane %v9793_v25, %v11286_v44  ;;  %v6651_v50 = vrot.slane %v9793_v25, %v11304_v55 }
 0x2e5   :  { %v994_v29 = vadd.f32 %v922_v23, %v558_v3  ;;  %6604 = vbcast.lane.b32.xlu1 %v6602_v30, 256 }
 0x2e7   :  { %v1430_v19 = vadd.f32 %v1358_v10, %v994_v29  ;;  %v1259_v22 = vpop.permute.xlu1 %1258  ;;  %v6658_v10 = vrot.slane %v9793_v25, %v10864_v9  ;;  %v11433_v29 = vpop.permute.xlu0 %6513 }
 0x2e8   :  { %v1357_v40 = vmul.f32 %v10251_v7, %v1259_v22  ;;  %15305 = vst [vmem:[#allocation13_spill] sm:$0xff] %v11433_v29 }
 0x2e9   :  { %6611 = vbcast.lane.b32.xlu1 %v6609_v62, 256  ;;  %v1509_v37 = vadd.f32 %v11336_v49, %v1430_v19  ;;  %v11438_v19 = vld [vmem:[%s15174_s8] ss:$0 sm:$0xff] }
 0x2ea   :  { %v1429_v60 = vadd.f32 %v1357_v40, %v993_v38  ;;  %v6665_v40 = vrot.slane %v9793_v25, %v11331_v36 }
 0x2eb   :  { %v1581_v23 = vmax.f32 %v1509_v37, 0.0 }
 0x2ec   :  { %v1508_v30 = vadd.f32 %v11336_v49, %v1429_v60  ;;  %v462_v63 = vpop.permute.xlu1 %461 }
 0x2ed   :  { %6639 = vbcast.lane.b32.xlu1 %v6637_v28, 256  ;;  %v15307_v28 = vld [vmem:[#allocation14_spill] sm:$0xff]  ;;  %v559_v25 = vmul.f32 %v10248_v6, %v462_v63 }
 0x2ee   :  { %v1580_v3 = vmax.f32 %v1508_v30, 0.0  ;;  %v560_v60 = vmul.f32 %v10248_v6, %v15307_v28 }
 0x2f0   :  { %9043 = vmatprep.mubr.msk.f32.mxu1 %vm1599_vm0, %v1580_v3 }
 0x2f1   :  { %6653 = vbcast.lane.b32.xlu1 %v6651_v50, 256  ;;  %9044 = vmatmul.mubr.msk.f32.gmra.mrb[18].mxu1 %vm1599_vm0, %v1581_v23  ;;  %v831_v52 = vpop.permute.xlu1 %830  ;;  %v1360_v50 = vmul.f32 %v10251_v7, %v11151_v31  ;;  %v11452_v23 = vpop.permute.xlu0 %6520 }
 0x2f2   :  { %v923_v30 = vmul.f32 %v10243_v4, %v831_v52  ;;  %15308 = vst [vmem:[#allocation14_spill] sm:$0xff] %v11452_v23  ;;  %v9795_v52 = vld [vmem:[%s15173_s4 + $0x28] sm:$0xff] }
 0x2f3   :  { %v9012_v62 = vpop.f32.mrb[42].mxu0  ;;  %v6707_v63 = vrot.slane %v9795_v52, %v11304_v55 }
 0x2f4   :  { %v2092_v35 = vpop.f32.mrb[43].mxu0  ;;  %v995_v29 = vadd.f32 %v923_v30, %v559_v25  ;;  %v6714_v25 = vrot.slane %v9795_v52, %v10864_v9 }
 0x2f5   :  { %v11441_v22 = vadd.f32 %v11438_v19, %v2092_v35  ;;  %6660 = vbcast.lane.b32.xlu1 %v6658_v10, 256  ;;  %v835_v38 = vpop.permute.xlu1 %834  ;;  %v11456_v10 = vadd.f32 %v11438_v19, %v11385_v54  ;;  %v6693_v35 = vrot.slane %v9795_v52, %v11286_v44  ;;  %v11467_v54 = vadd.f32 %v11438_v19, %v9012_v62 }
 0x2f6   :  { %v924_v37 = vmul.f32 %v10243_v4, %v835_v38 }
 0x2f7   :  { %15306 = vst [vmem:[#allocation23_spill] sm:$0xff] %v11441_v22  ;;  %3432 = vrot.lane.b32.xlu0 %v11441_v22, %s9878_s19  ;;  %15309 = vst [vmem:[#allocation24_spill] sm:$0xff] %v11456_v10 }
 0x2f8   :  { %v996_v3 = vadd.f32 %v924_v37, %v560_v60  ;;  %15310 = vst [vmem:[#allocation25_spill] sm:$0xff] %v11467_v54  ;;  %v11471_v37 = vpop.permute.xlu0 %6506 }
 0x2f9   :  { %6667 = vbcast.lane.b32.xlu1 %v6665_v40, 256  ;;  %15311 = vst [vmem:[#allocation26_spill] sm:$0xff] %v11471_v37 }
 0x2fa   :  { %v1432_v38 = vadd.f32 %v1360_v50, %v996_v3  ;;  %v1267_v28 = vpop.permute.xlu1 %1266 }
 0x2fb   :  { %v1359_v31 = vmul.f32 %v10251_v7, %v1267_v28  ;;  %3426 = vrot.lane.b32.xlu0 %v11456_v10, %s9878_s19 }
 0x2fc   :  { %v1511_v40 = vadd.f32 %v11336_v49, %v1432_v38  ;;  %v11487_v23 = vpop.permute.xlu0 %6534 }
 0x2fd   :  { %v1431_v60 = vadd.f32 %v1359_v31, %v995_v29  ;;  %6695 = vbcast.lane.b32.xlu1 %v6693_v35, 256  ;;  %v6721_v35 = vrot.slane %v9795_v52, %v11331_v36  ;;  %v9796_v52 = vld [vmem:[%s15173_s4 + $0x30] sm:$0xff] }
 0x2fe   :  { %v1583_v62 = vmax.f32 %v1511_v40, 0.0 }
 0x2ff   :  { %v1510_v50 = vadd.f32 %v11336_v49, %v1431_v60  ;;  %3434 = vrot.lane.b32.xlu0 %v11467_v54, %s9878_s19  ;;  %v472_v30 = vpop.permute.xlu1 %471 }
 0x301   :  { %v1582_v3 = vmax.f32 %v1510_v50, 0.0  ;;  %6709 = vbcast.lane.b32.xlu1 %v6707_v63, 256  ;;  %v15314_v50 = vld [vmem:[#allocation15_spill] sm:$0xff] }
 0x302   :  { %v562_v63 = vmul.f32 %v10248_v6, %v15314_v50  ;;  %15315 = vst [vmem:[#allocation15_spill] sm:$0xff] %v11487_v23  ;;  %v9879_v50 = vmov 1966171168  }
 0x303   :  { %9046 = vmatprep.mubr.msk.f32.mxu1 %vm1599_vm0, %v1582_v3  ;;  %v6749_v3 = vrot.slane %v9796_v52, %v11286_v44  ;;  %v2333_v23 = vunpack.c.l.s4 %v9879_v50 }
 0x304   :  { %9047 = vmatmul.mubr.msk.f32.gmra.mrb[20].mxu1 %vm1599_vm0, %v1583_v62  ;;  %v839_v29 = vpop.permute.xlu1 %838  ;;  %v1362_v62 = vmul.f32 %v10251_v7, %v11165_v39  ;;  %v6770_v39 = vrot.slane %v9796_v52, %v10864_v9 }
 0x305   :  { %6716 = vbcast.lane.b32.xlu1 %v6714_v25, 256  ;;  %v925_v25 = vmul.f32 %v10243_v4, %v839_v29  ;;  %v2334_v22 = vunpack.c.0.s8 %v2333_v23  ;;  %v6777_v23 = vrot.slane %v9796_v52, %v11331_v36 }
 0x306   :  { %v9015_v38 = vpop.f32.mrb[44].mxu0 }
 0x307   :  { %v11481_v28 = vadd.f32 %v11438_v19, %v9015_v38  ;;  %v11483_v31 = vpop.f32.mrb[45].mxu0 }
 0x308   :  { %15313 = vst [vmem:[#allocation28_spill] sm:$0xff] %v11483_v31  ;;  %v843_v60 = vpop.permute.xlu1 %842 }
 0x309   :  { %15312 = vst [vmem:[#allocation27_spill] sm:$0xff] %v11481_v28  ;;  %v926_v40 = vmul.f32 %v10243_v4, %v843_v60  ;;  %3438 = vrot.lane.b32.xlu0 %v11481_v28, %s9878_s19  ;;  %6723 = vbcast.lane.b32.xlu1 %v6721_v35, 256  ;;  %v561_v60 = vmul.f32 %v10248_v6, %v472_v30 }
 0x30a   :  { %v6763_v35 = vrot.slane %v9796_v52, %v11304_v55  ;;  %v11506_v30 = vsub.s32 %v2334_v22, %v10214_v56  ;;  %v9797_v56 = vld [vmem:[%s15173_s4 + $0x38] sm:$0xff] }
 0x30b   :  { %v998_v38 = vadd.f32 %v926_v40, %v562_v63  ;;  %v997_v54 = vadd.f32 %v925_v25, %v561_v60  ;;  %v2313_v25 = vld [vmem:[%s15177_s1] sm:$0xff]  ;;  %v6805_v22 = vrot.slane %v9797_v56, %v11286_v44 }
 0x30d   :  { %v1434_v37 = vadd.f32 %v1362_v62, %v998_v38  ;;  %6751 = vbcast.lane.b32.xlu1 %v6749_v3, 256  ;;  %v1275_v28 = vpop.permute.xlu1 %1274  ;;  %v2331_v62 = vcombine.high %v2313_v25, %v2313_v25  ;;  %v15317_v38 = vld [vmem:[#allocation16_spill] sm:$0xff] }
 0x30e   :  { %v1361_v31 = vmul.f32 %v10251_v7, %v1275_v28  ;;  %v564_v50 = vmul.f32 %v10248_v6, %v15317_v38 }
 0x30f   :  { %v1513_v29 = vadd.f32 %v11336_v49, %v1434_v37 }
 0x310   :  { %v1433_v43 = vadd.f32 %v1361_v31, %v997_v54 }
 0x311   :  { %6765 = vbcast.lane.b32.xlu1 %v6763_v35, 256  ;;  %v1585_v28 = vmax.f32 %v1513_v29, 0.0 }
 0x312   :  { %v1512_v63 = vadd.f32 %v11336_v49, %v1433_v43  ;;  %v482_v40 = vpop.permute.xlu1 %481  ;;  %v2338_v43 = vrot.slane %v2313_v25, %v11506_v30  ;;  %v2345_v25 = vrot.slane %v2331_v62, %v11506_v30 }
 0x314   :  { %v1584_v3 = vmax.f32 %v1512_v63, 0.0  ;;  %v2346_v60 = vcombine.high %v2338_v43, %v2338_v43  ;;  %v2354_v29 = vrot.slane %v2338_v43, %v11506_v30  ;;  %v6819_v63 = vrot.slane %v9797_v56, %v11304_v55 }
 0x315   :  { %6772 = vbcast.lane.b32.xlu1 %v6770_v39, 256  ;;  %v2347_v62 = vcombine.high %v2345_v25, %v2345_v25 }
 0x316   :  { %9049 = vmatprep.mubr.msk.f32.mxu1 %vm1599_vm0, %v1584_v3  ;;  %v1364_v3 = vmul.f32 %v10251_v7, %v11181_v12  ;;  %v2368_v38 = vrot.slane %v2346_v60, %v11506_v30  ;;  %v2775_v43 = vrot.slane %v2354_v29, %v10227_v61  ;;  %v2241_v12 = vld [vmem:[%s15178_s2] sm:$0xff]  ;;  %v2361_v60 = vrot.slane %v2345_v25, %v11506_v30 }
 0x317   :  { %9050 = vmatmul.mubr.msk.f32.gmra.mrb[22].mxu1 %vm1599_vm0, %v1585_v28  ;;  %v847_v54 = vpop.permute.xlu1 %846 }
 0x318   :  { %v927_v39 = vmul.f32 %v10243_v4, %v847_v54  ;;  %v6826_v54 = vrot.slane %v9797_v56, %v10864_v9  ;;  %v2242_v9 = vld [vmem:[%s15178_s2 + $0x8] sm:$0xff] }
 0x319   :  { %v11515_v37 = vpop.f32.mrb[0].mxu1  ;;  %6779 = vbcast.lane.b32.xlu1 %v6777_v23, 256  ;;  %v563_v23 = vmul.f32 %v10248_v6, %v482_v40  ;;  %v2779_v40 = vrot.slane %v2368_v38, %v10227_v61 }
 0x31a   :  { %v11521_v31 = vpop.f32.mrb[1].mxu1 }
 0x31b   :  { %15316 = vst [vmem:[#allocation29_spill] sm:$0xff] %v11521_v31  ;;  %v851_v52 = vpop.permute.xlu1 %850  ;;  %v2376_v31 = vcombine.high %v2354_v29, %v2354_v29  ;;  %v999_v20 = vadd.f32 %v927_v39, %v563_v23  ;;  %v3132_v29 = vsub.f32 %v2241_v12, %v2775_v43  ;;  %v2791_v43 = vrot.slane %v2361_v60, %v10227_v61 }
 0x31c   :  { %v928_v35 = vmul.f32 %v10243_v4, %v851_v52 }
 0x31d   :  { %6807 = vbcast.lane.b32.xlu1 %v6805_v22, 256  ;;  %v2378_v22 = vcombine.high %v2368_v38, %v2368_v38  ;;  %v3133_v38 = vsub.f32 %v2242_v9, %v2779_v40 }
 0x31e   :  { %v1000_v28 = vadd.f32 %v928_v35, %v564_v50  ;;  %v2783_v50 = vrot.slane %v2376_v31, %v10227_v61  ;;  %v6833_v31 = vrot.slane %v9797_v56, %v11331_v36  ;;  %v11565_v56 = vadd.f32 %v11438_v19, %v10768_v47 }
 0x320   :  { %v1436_v10 = vadd.f32 %v1364_v3, %v1000_v28  ;;  %v1283_v52 = vpop.permute.xlu1 %1282  ;;  %v2375_v3 = vrot.slane %v2347_v62, %v11506_v30  ;;  %v2377_v28 = vcombine.high %v2361_v60, %v2361_v60  ;;  %v2245_v62 = vld [vmem:[%s15178_s2 + $0x20] sm:$0xff]  ;;  %v2246_v60 = vld [vmem:[%s15178_s2 + $0x28] sm:$0xff] }
 0x321   :  { %v1363_v4 = vmul.f32 %v10251_v7, %v1283_v52  ;;  %6821 = vbcast.lane.b32.xlu1 %v6819_v63, 256  ;;  %v2314_v7 = vld [vmem:[%s15177_s1 + $0x8] sm:$0xff]  ;;  %v2787_v63 = vrot.slane %v2378_v22, %v10227_v61 }
 0x322   :  { %v1515_v35 = vadd.f32 %v11336_v49, %v1436_v10  ;;  %v2244_v10 = vld [vmem:[%s15178_s2 + $0x18] sm:$0xff]  ;;  %v2387_v25 = vrot.slane %v2314_v7, %v11506_v30  ;;  %v2379_v47 = vcombine.high %v2375_v3, %v2375_v3 }
 0x323   :  { %v1435_v6 = vadd.f32 %v1363_v4, %v999_v20  ;;  %v2243_v20 = vld [vmem:[%s15178_s2 + $0x10] sm:$0xff]  ;;  %v3204_v4 = vadd.f32 %v3132_v29, %v10897_v59  ;;  %v3135_v22 = vsub.f32 %v2244_v10, %v2787_v63  ;;  %v2795_v59 = vrot.slane %v2375_v3, %v10227_v61 }
 0x324   :  { %v3134_v52 = vsub.f32 %v2243_v20, %v2783_v50  ;;  %v2395_v40 = vcombine.high %v2387_v25, %v2387_v25  ;;  %v3205_v50 = vadd.f32 %v3133_v38, %v10887_v41  ;;  %v2403_v9 = vrot.slane %v2387_v25, %v11506_v30 }
 0x325   :  { %v1514_v39 = vadd.f32 %v11336_v49, %v1435_v6  ;;  %6828 = vbcast.lane.b32.xlu1 %v6826_v54, 256  ;;  %v1587_v49 = vmax.f32 %v1515_v35, 0.0  ;;  %v9798_v54 = vld [vmem:[%s15173_s4 + $0x40] sm:$0xff]  ;;  %v2799_v6 = vrot.slane %v2377_v28, %v10227_v61  ;;  %v2247_v35 = vld [vmem:[%s15178_s2 + $0x30] sm:$0xff]  ;;  %v2380_v29 = vcombine.high %v2314_v7, %v2314_v7 }
 0x326   :  { %v6861_v12 = vrot.slane %v9798_v54, %v11286_v44  ;;  %v11582_v44 = vadd.f32 %v11438_v19, %v10765_v16  ;;  %v11596_v41 = vadd.f32 %v11438_v19, %v10797_v46  ;;  %v3136_v16 = vsub.f32 %v2245_v62, %v2791_v43 }
 0x327   :  { %v1586_v23 = vmax.f32 %v1514_v39, 0.0  ;;  %v3206_v39 = vadd.f32 %v3134_v52, %v11565_v56  ;;  %v6875_v63 = vrot.slane %v9798_v54, %v11304_v55  ;;  %v3137_v10 = vsub.f32 %v2246_v60, %v2795_v59  ;;  %v2248_v55 = vld [vmem:[%s15178_s2 + $0x38] sm:$0xff] }
 0x328   :  { %v2803_v3 = vrot.slane %v2379_v47, %v10227_v61  ;;  %v3138_v7 = vsub.f32 %v2247_v35, %v2799_v6  ;;  %v2417_v28 = vrot.slane %v2395_v40, %v11506_v30  ;;  %v3207_v25 = vadd.f32 %v3135_v22, %v11582_v44  ;;  %v2315_v6 = vld [vmem:[%s15177_s1 + $0x10] sm:$0xff] }
 0x329   :  { %6835 = vbcast.lane.b32.xlu1 %v6833_v31, 256  ;;  %9052 = vmatprep.mubr.msk.f32.mxu1 %vm1599_vm0, %v1586_v23  ;;  %v11608_v46 = vadd.f32 %v11438_v19, %v10795_v8  ;;  %v2807_v23 = vrot.slane %v2403_v9, %v10227_v61  ;;  %v2394_v38 = vrot.slane %v2380_v29, %v11506_v30  ;;  %v2251_v35 = vld [vmem:[%s15178_s2 + $0x50] sm:$0xff] }
 0x32a   :  { %9053 = vmatmul.mubr.msk.f32.gmra.mrb[24].mxu1 %vm1599_vm0, %v1587_v49  ;;  %v3208_v52 = vadd.f32 %v3136_v16, %v11596_v41  ;;  %v11618_v43 = vadd.f32 %v11438_v19, %v10819_v58  ;;  %v2249_v49 = vld [vmem:[%s15178_s2 + $0x40] sm:$0xff]  ;;  %v2425_v8 = vcombine.high %v2403_v9, %v2403_v9  ;;  %v2811_v22 = vrot.slane %v2417_v28, %v10227_v61 }
 0x32b   :  { %9063 = vmatprep.mubr.msk.f32.mxu1 %vm1599_vm0, %v3204_v4  ;;  %v6889_v4 = vrot.slane %v9798_v54, %v11331_v36  ;;  %v3209_v62 = vadd.f32 %v3137_v10, %v11608_v46  ;;  %v3140_v59 = vsub.f32 %v2249_v49, %v2807_v23  ;;  %v2427_v58 = vcombine.high %v2417_v28, %v2417_v28  ;;  %v2250_v36 = vld [vmem:[%s15178_s2 + $0x48] sm:$0xff]  ;;  %v2252_v10 = vld [vmem:[%s15178_s2 + $0x58] sm:$0xff] }
 0x32c   :  { %v11591_v20 = vpop.f32.mrb[2].mxu1  ;;  %v2396_v47 = vcombine.high %v2394_v38, %v2394_v38  ;;  %v3210_v40 = vadd.f32 %v3138_v7, %v11618_v43  ;;  %v11637_v54 = vadd.f32 %v11438_v19, %v10999_v51  ;;  %v2410_v60 = vrot.slane %v2394_v38, %v11506_v30 }
 0x32d   :  { %v11598_v31 = vpop.f32.mrb[3].mxu1  ;;  %6863 = vbcast.lane.b32.xlu1 %v6861_v12, 256  ;;  %v3139_v12 = vsub.f32 %v2248_v55, %v2803_v3  ;;  %v2436_v9 = vrot.slane %v2315_v6, %v11506_v30  ;;  %v2819_v51 = vrot.slane %v2427_v58, %v10227_v61  ;;  %v2429_v23 = vcombine.high %v2315_v6, %v2315_v6 }
 0x32e   :  { %9064 = vmatmul.mubr.msk.f32.vlgmr.msra.gmra.mrb[26].mxu1 %vm1599_vm0, %v3205_v50  ;;  %v2815_v50 = vrot.slane %v2425_v8, %v10227_v61  ;;  %v2424_v16 = vrot.slane %v2396_v47, %v11506_v30  ;;  %v2823_v7 = vrot.slane %v2410_v60, %v10227_v61  ;;  %v2426_v28 = vcombine.high %v2410_v60, %v2410_v60 }
 0x32f   :  { %9066 = vmatprep.mubr.msk.f32.mxu1 %vm1599_vm0, %v3206_v39  ;;  %v3211_v29 = vadd.f32 %v3139_v12, %v11020_v17  ;;  %v3141_v39 = vsub.f32 %v2250_v36, %v2811_v22  ;;  %v2253_v17 = vld [vmem:[%s15178_s2 + $0x60] sm:$0xff]  ;;  %v2444_v55 = vcombine.high %v2436_v9, %v2436_v9  ;;  %v2452_v8 = vrot.slane %v2436_v9, %v11506_v30 }
 0x330   :  { %v3142_v3 = vsub.f32 %v2251_v35, %v2815_v50  ;;  %v2827_v49 = vrot.slane %v2424_v16, %v10227_v61  ;;  %v11671_v12 = vadd.f32 %v11438_v19, %v11022_v48  ;;  %v3144_v22 = vsub.f32 %v2253_v17, %v2823_v7  ;;  %v2316_v17 = vld [vmem:[%s15177_s1 + $0x18] sm:$0xff] }
 0x331   :  { %6877 = vbcast.lane.b32.xlu1 %v6875_v63, 256  ;;  %v3212_v63 = vadd.f32 %v3140_v59, %v11637_v54  ;;  %v3213_v38 = vadd.f32 %v3141_v39, %v10997_v33  ;;  %v2255_v33 = vld [vmem:[%s15178_s2 + $0x70] sm:$0xff]  ;;  %v2466_v58 = vrot.slane %v2444_v55, %v11506_v30  ;;  %v2443_v48 = vrot.slane %v2429_v23, %v11506_v30 }
 0x332   :  { %9067 = vmatmul.mubr.msk.f32.gmra.mrb[28].mxu1 %vm1599_vm0, %v3207_v25  ;;  %v2428_v25 = vcombine.high %v2424_v16, %v2424_v16  ;;  %v2839_v36 = vrot.slane %v2452_v8, %v10227_v61  ;;  %v2474_v50 = vcombine.high %v2452_v8, %v2452_v8  ;;  %v3216_v35 = vadd.f32 %v3144_v22, %v11671_v12 }
 0x333   :  { %9069 = vmatprep.mubr.msk.f32.mxu1 %vm1599_vm0, %v3208_v52  ;;  %v3143_v52 = vsub.f32 %v2252_v10, %v2819_v51  ;;  %v11694_v9 = vadd.f32 %v11438_v19, %v11034_v18  ;;  %v2843_v16 = vrot.slane %v2466_v58, %v10227_v61  ;;  %v11706_v10 = vpop.permute.xlu1 %6401  ;;  %v2476_v7 = vcombine.high %v2466_v58, %v2466_v58 }
 0x334   :  { %v2835_v59 = vrot.slane %v2428_v25, %v10227_v61  ;;  %v11724_v23 = vadd.f32 %v11438_v19, %v11051_v1  ;;  %v2485_v1 = vrot.slane %v2316_v17, %v11506_v30 }
 0x335   :  { %6891 = vbcast.lane.b32.xlu1 %v6889_v4, 256  ;;  %v2254_v4 = vld [vmem:[%s15178_s2 + $0x68] sm:$0xff]  ;;  %v3215_v6 = vadd.f32 %v3143_v52, %v11037_v45  ;;  %v2257_v45 = vld [vmem:[%s15178_s2 + $0x80] sm:$0xff]  ;;  %v11732_v52 = vadd.f32 %v11438_v19, %v11515_v37  ;;  %v11745_v37 = vadd.f32 %v11438_v19, %v11041_v57 }
 0x336   :  { %9070 = vmatmul.mubr.msk.f32.gmra.mrb[30].mxu1 %vm1599_vm0, %v3209_v62  ;;  %v2831_v62 = vrot.slane %v2426_v28, %v10227_v61  ;;  %v2847_v28 = vrot.slane %v2474_v50, %v10227_v61  ;;  %v2261_v57 = vld [vmem:[%s15178_s2 + $0xa0] sm:$0xff]  ;;  %v2501_v50 = vrot.slane %v2485_v1, %v11506_v30 }
 0x337   :  { %9072 = vmatprep.mubr.msk.f32.mxu1 %vm1599_vm0, %v3210_v40  ;;  %v2256_v40 = vld [vmem:[%s15178_s2 + $0x78] sm:$0xff]  ;;  %v11753_v58 = vpop.permute.xlu1 %6408 }
 0x338   :  { %v3147_v51 = vsub.f32 %v2256_v40, %v2835_v59  ;;  %v2493_v40 = vcombine.high %v2485_v1, %v2485_v1 }
 0x339   :  { %3352 = vrot.lane.b32.xlu1 %v11565_v56, %s9878_s19  ;;  %v3214_v56 = vadd.f32 %v3142_v3, %v11011_v13  ;;  %v11680_v13 = vpop.permute.xlu0 %6569  ;;  %v2258_v3 = vld [vmem:[%s15178_s2 + $0x88] sm:$0xff] }
 0x33a   :  { %9073 = vmatmul.mubr.msk.f32.gmra.mrb[32].mxu1 %vm1599_vm0, %v3211_v29  ;;  %15318 = vst [vmem:[#allocation16_spill] sm:$0xff] %v11680_v13  ;;  %v3146_v29 = vsub.f32 %v2255_v33, %v2831_v62  ;;  %v2260_v62 = vld [vmem:[%s15178_s2 + $0x98] sm:$0xff] }
 0x33b   :  { %9075 = vmatprep.mubr.msk.f32.mxu1 %vm1599_vm0, %v3212_v63  ;;  %v2445_v63 = vcombine.high %v2443_v48, %v2443_v48 }
 0x33c   :  { %v3218_v55 = vadd.f32 %v3146_v29, %v11694_v9  ;;  %v11778_v29 = vadd.f32 %v11438_v19, %v11072_v15 }
 0x33d   :  { %3354 = vrot.lane.b32.xlu1 %v11582_v44, %s9878_s19  ;;  %v3145_v44 = vsub.f32 %v2254_v4, %v2827_v49  ;;  %v11719_v25 = vpop.permute.xlu0 %6576  ;;  %v3149_v49 = vsub.f32 %v2258_v3, %v2843_v16  ;;  %v2473_v8 = vrot.slane %v2445_v63, %v11506_v30  ;;  %v2263_v16 = vld [vmem:[%s15178_s2 + $0xb0] sm:$0xff]  ;;  %v11789_v3 = vpop.permute.xlu1 %6415 }
 0x33e   :  { %9076 = vmatmul.mubr.msk.f32.gmra.mrb[34].mxu1 %vm1599_vm0, %v3213_v38  ;;  %15319 = vst [vmem:[#allocation30_spill] sm:$0xff] %v11719_v25  ;;  %v2459_v38 = vrot.slane %v2443_v48, %v11506_v30 }
 0x33f   :  { %v9024_v47 = vpop.f32.mrb[4].mxu1  ;;  %9078 = vmatprep.mubr.msk.f32.mxu1 %vm1599_vm0, %v3214_v56  ;;  %v3217_v18 = vadd.f32 %v3145_v44, %v11048_v26  ;;  %v2259_v26 = vld [vmem:[%s15178_s2 + $0x90] sm:$0xff]  ;;  %v3219_v56 = vadd.f32 %v3147_v51, %v11075_v5  ;;  %v2477_v44 = vcombine.high %v2473_v8, %v2473_v8 }
 0x340   :  { %v2132_v60 = vpop.f32.mrb[5].mxu1  ;;  %v3150_v4 = vsub.f32 %v2259_v26, %v2847_v28  ;;  %v2855_v33 = vrot.slane %v2459_v38, %v10227_v61  ;;  %v2475_v59 = vcombine.high %v2459_v38, %v2459_v38  ;;  %v11756_v5 = vadd.f32 %v11438_v19, %v9024_v47 }
 0x341   :  { %v11700_v39 = vadd.f32 %v11438_v19, %v2132_v60  ;;  %3356 = vrot.lane.b32.xlu1 %v11596_v41, %s9878_s19  ;;  %v3148_v41 = vsub.f32 %v2257_v45, %v2839_v36  ;;  %v11764_v48 = vpop.permute.xlu0 %6562  ;;  %v3221_v47 = vadd.f32 %v3149_v49, %v11745_v37  ;;  %v2262_v36 = vld [vmem:[%s15178_s2 + $0xa8] sm:$0xff]  ;;  %v2478_v60 = vcombine.high %v2316_v17, %v2316_v17 }
 0x342   :  { %9079 = vmatmul.mubr.msk.f32.gmra.mrb[36].mxu1 %vm1599_vm0, %v3215_v6  ;;  %15320 = vst [vmem:[#allocation31_spill] sm:$0xff] %v11764_v48  ;;  %v2859_v6 = vrot.slane %v2473_v8, %v10227_v61  ;;  %v3152_v45 = vsub.f32 %v2261_v57, %v2855_v33  ;;  %v2863_v51 = vrot.slane %v2475_v59, %v10227_v61 }
 0x343   :  { %3448 = vrot.lane.b32.xlu0 %v11700_v39, %s9878_s19  ;;  %9081 = vmatprep.mubr.msk.f32.mxu1 %vm1599_vm0, %v3216_v35  ;;  %v3220_v22 = vadd.f32 %v3148_v41, %v11724_v23  ;;  %v3222_v35 = vadd.f32 %v3150_v4, %v11061_v21  ;;  %v2515_v21 = vrot.slane %v2493_v40, %v11506_v30  ;;  %v2267_v40 = vld [vmem:[%s15178_s2 + $0xd0] sm:$0xff] }
 0x344   :  { %v3153_v63 = vsub.f32 %v2262_v36, %v2859_v6  ;;  %v2871_v41 = vrot.slane %v2501_v50, %v10227_v61  ;;  %v2492_v28 = vrot.slane %v2478_v60, %v11506_v30  ;;  %v3224_v17 = vadd.f32 %v3152_v45, %v11778_v29  ;;  %v15322_v36 = vld [vmem:[#allocation2_spill] sm:$0xff] }
 0x345   :  { %3358 = vrot.lane.b32.xlu1 %v11608_v46, %s9878_s19  ;;  %v2851_v46 = vrot.slane %v2476_v7, %v10227_v61  ;;  %v2523_v7 = vcombine.high %v2501_v50, %v2501_v50  ;;  %v3154_v26 = vsub.f32 %v2263_v16, %v2863_v51  ;;  %v2875_v8 = vrot.slane %v2515_v21, %v10227_v61  ;;  %v11821_v33 = vpop.permute.xlu0 %6590 }
 0x346   :  { %9082 = vmatmul.mubr.msk.f32.gmra.mrb[38].mxu1 %vm1599_vm0, %v3217_v18  ;;  %v2867_v18 = vrot.slane %v2477_v44, %v10227_v61  ;;  %v2525_v1 = vcombine.high %v2515_v21, %v2515_v21  ;;  %15321 = vst [vmem:[#allocation32_spill] sm:$0xff] %v11821_v33  ;;  %v11826_v57 = vadd.f32 %v11438_v19, %v11128_v0  ;;  %v11832_v44 = vpop.permute.xlu1 %6429 }
 0x347   :  { %3442 = vrot.lane.b32.xlu0 %v11732_v52, %s9878_s19  ;;  %9084 = vmatprep.mubr.msk.f32.mxu1 %vm1599_vm0, %v3218_v55  ;;  %v11801_v55 = vadd.f32 %v11438_v19, %v11096_v32  ;;  %v2508_v6 = vrot.slane %v2492_v28, %v11506_v30  ;;  %v2008_v50 = vadd.f32 %v11438_v19, %v15322_v36 }
 0x349   :  { %3360 = vrot.lane.b32.xlu1 %v11618_v43, %s9878_s19  ;;  %v3151_v43 = vsub.f32 %v2260_v62, %v2851_v46  ;;  %v3225_v46 = vadd.f32 %v3153_v63, %v11099_v14  ;;  %v2494_v62 = vcombine.high %v2492_v28, %v2492_v28  ;;  %v3226_v59 = vadd.f32 %v3154_v26, %v11801_v55  ;;  %v2317_v14 = vld [vmem:[%s15177_s1 + $0x20] sm:$0xff] }
 0x34a   :  { %9085 = vmatmul.mubr.msk.f32.gmra.mrb[40].mxu1 %vm1599_vm0, %v3219_v56  ;;  %v2887_v16 = vrot.slane %v2508_v6, %v10227_v61  ;;  %v2524_v63 = vcombine.high %v2508_v6, %v2508_v6  ;;  %v2272_v6 = vld [vmem:[%s15178_s2 + $0xf8] sm:$0xff] }
 0x34b   :  { %3450 = vrot.lane.b32.xlu0 %v11756_v5, %s9878_s19  ;;  %9087 = vmatprep.mubr.msk.f32.mxu1 %vm1599_vm0, %v3220_v22  ;;  %v3223_v15 = vadd.f32 %v3151_v43, %v11087_v27  ;;  %v2265_v27 = vld [vmem:[%s15178_s2 + $0xc0] sm:$0xff]  ;;  %v2879_v22 = vrot.slane %v2523_v7, %v10227_v61  ;;  %v2522_v60 = vrot.slane %v2494_v62, %v11506_v30 }
 0x34c   :  { %v3156_v4 = vsub.f32 %v2265_v27, %v2871_v41  ;;  %v2270_v27 = vld [vmem:[%s15178_s2 + $0xe8] sm:$0xff] }
 0x34d   :  { %3364 = vrot.lane.b32.xlu1 %v11637_v54, %s9878_s19  ;;  %v2264_v54 = vld [vmem:[%s15178_s2 + $0xb8] sm:$0xff]  ;;  %v3158_v51 = vsub.f32 %v2267_v40, %v2879_v22  ;;  %v2526_v21 = vcombine.high %v2522_v60, %v2522_v60  ;;  %v2891_v7 = vrot.slane %v2522_v60, %v10227_v61  ;;  %v15326_v22 = vld [vmem:[#allocation4_spill] sm:$0xff]  ;;  %v4360_v60 = vld [vmem:[%s15179_s11] sm:$0xff] }
 0x34e   :  { %9088 = vmatmul.mubr.msk.f32.gmra.mrb[42].mxu1 %vm1599_vm0, %v3221_v47  ;;  %v3155_v49 = vsub.f32 %v2264_v54, %v2867_v18  ;;  %v2883_v47 = vrot.slane %v2525_v1, %v10227_v61  ;;  %v3228_v45 = vadd.f32 %v3156_v4, %v11826_v57  ;;  %v11860_v54 = vpop.permute.xlu1 %6436  ;;  %v2895_v1 = vrot.slane %v2524_v63, %v10227_v61  ;;  %v15328_v63 = vld [vmem:[#allocation5_spill] sm:$0xff] }
 0x34f   :  { %9090 = vmatprep.mubr.msk.f32.mxu1 %vm1599_vm0, %v3222_v35  ;;  %v2534_v35 = vrot.slane %v2317_v14, %v11506_v30  ;;  %15323 = vst [vmem:[#allocation2_spill] sm:$0xff] %v11860_v54 }
 0x350   :  { %v3227_v43 = vadd.f32 %v3155_v49, %v11169_v2  ;;  %v2269_v2 = vld [vmem:[%s15178_s2 + $0xe0] sm:$0xff] }
 0x351   :  { %3372 = vrot.lane.b32.xlu1 %v11671_v12, %s9878_s19  ;;  %v2266_v12 = vld [vmem:[%s15178_s2 + $0xc8] sm:$0xff]  ;;  %v2542_v28 = vcombine.high %v2534_v35, %v2534_v35 }
 0x352   :  { %v9027_v38 = vpop.f32.mrb[6].mxu1  ;;  %9091 = vmatmul.mubr.msk.f32.gmra.mrb[44].mxu1 %vm1599_vm0, %v3223_v15  ;;  %v3157_v0 = vsub.f32 %v2266_v12, %v2875_v8  ;;  %v2527_v15 = vcombine.high %v2317_v14, %v2317_v14  ;;  %v3160_v8 = vsub.f32 %v2269_v2, %v2887_v16  ;;  %v2899_v12 = vrot.slane %v2526_v21, %v10227_v61 }
 0x353   :  { %v11811_v56 = vadd.f32 %v11438_v19, %v9027_v38  ;;  %v11813_v32 = vpop.f32.mrb[7].mxu1  ;;  %9093 = vmatprep.mubr.msk.f32.mxu1 %vm1599_vm0, %v3224_v17  ;;  %v2550_v17 = vrot.slane %v2534_v35, %v11506_v30  ;;  %v15325_v38 = vld [vmem:[#allocation6_spill] sm:$0xff] }
 0x354   :  { %v3229_v41 = vadd.f32 %v3157_v0, %v2008_v50  ;;  %v11871_v49 = vadd.f32 %v11438_v19, %v15325_v38  ;;  %v2541_v4 = vrot.slane %v2527_v15, %v11506_v30  ;;  %v11892_v0 = vadd.f32 %v11438_v19, %v11226_v24  ;;  %v4361_v24 = vld [vmem:[%s15179_s11 + $0x8] sm:$0xff] }
 0x355   :  { %3454 = vrot.lane.b32.xlu0 %v11811_v56, %s9878_s19  ;;  %3382 = vrot.lane.b32.xlu1 %v11745_v37, %s9878_s19  ;;  %v2268_v37 = vld [vmem:[%s15178_s2 + $0xd8] sm:$0xff]  ;;  %v2903_v14 = vrot.slane %v2550_v17, %v10227_v61  ;;  %v2572_v36 = vcombine.high %v2550_v17, %v2550_v17  ;;  %v3163_v35 = vsub.f32 %v2272_v6, %v2899_v12 }
 0x356   :  { %9094 = vmatmul.mubr.msk.f32.gmra.mrb[46].mxu1 %vm1599_vm0, %v3225_v46  ;;  %v3159_v18 = vsub.f32 %v2268_v37, %v2883_v47  ;;  %v2271_v46 = vld [vmem:[%s15178_s2 + $0xf0] sm:$0xff]  ;;  %v3232_v40 = vadd.f32 %v3160_v8, %v11871_v49  ;;  %v11897_v37 = vpop.permute.xlu1 %6443  ;;  %v9338_v16 = vpack.c.bf16 %v4361_v24, %v4360_v60  ;;  %v11957_v60 = vadd.f32 %v11438_v19, %v11290_v53 }
 0x357   :  { %9096 = vmatprep.mubr.msk.f32.mxu1 %vm1599_vm0, %v3226_v59  ;;  %v3161_v59 = vsub.f32 %v2270_v27, %v2891_v7  ;;  %v3162_v47 = vsub.f32 %v2271_v46, %v2895_v1  ;;  %v2911_v17 = vrot.slane %v2572_v36, %v10227_v61  ;;  %v2275_v27 = vld [vmem:[%s15178_s2 + $0x110] sm:$0xff] }
 0x358   :  { %v3231_v62 = vadd.f32 %v3159_v18, %v15326_v22  ;;  %v15329_v18 = vld [vmem:[#allocation7_spill] sm:$0xff]  ;;  %9339 = vmatprep.subr.bf16.mxu0 %v9338_v16  ;;  %v2279_v53 = vld [vmem:[%s15178_s2 + $0x130] sm:$0xff] }
 0x359   :  { %3376 = vrot.lane.b32.xlu1 %v11694_v9, %s9878_s19  ;;  %v15324_v9 = vld [vmem:[#allocation3_spill] sm:$0xff]  ;;  %v3233_v2 = vadd.f32 %v3161_v59, %v15328_v63  ;;  %v3234_v7 = vadd.f32 %v3162_v47, %v11892_v0  ;;  %9341 = vmatpush3.bf16.msra.mxu0 %v9338_v16  ;;  %v3166_v6 = vsub.f32 %v2275_v27, %v2911_v17  ;;  %v2280_v17 = vld [vmem:[%s15178_s2 + $0x138] sm:$0xff] }
 0x35a   :  { %9097 = vmatmul.mubr.msk.f32.gmra.mrb[48].mxu1 %vm1599_vm0, %v3227_v43  ;;  %v3230_v26 = vadd.f32 %v3158_v51, %v15324_v9  ;;  %v2273_v43 = vld [vmem:[%s15178_s2 + $0x100] sm:$0xff]  ;;  %15327 = vst [vmem:[#allocation3_spill] sm:$0xff] %v11897_v37  ;;  %v2543_v51 = vcombine.high %v2541_v4, %v2541_v4  ;;  %v2557_v9 = vrot.slane %v2541_v4, %v11506_v30  ;;  %v11936_v12 = vpop.permute.xlu1 %6471 }
 0x35b   :  { %9099 = vmatprep.mubr.msk.f32.mxu1 %vm1599_vm0, %v3228_v45  ;;  %v3164_v15 = vsub.f32 %v2273_v43, %v2903_v14  ;;  %15330 = vst [vmem:[#allocation6_spill] sm:$0xff] %v11936_v12  ;;  %v2048_v4 = vadd.f32 %v11438_v19, %v11249_v42 }
 0x35c   :  { %v2571_v1 = vrot.slane %v2543_v51, %v11506_v30  ;;  %v2573_v14 = vcombine.high %v2557_v9, %v2557_v9  ;;  %v2278_v51 = vld [vmem:[%s15178_s2 + $0x128] sm:$0xff] }
 0x35d   :  { %3380 = vrot.lane.b32.xlu1 %v11724_v23, %s9878_s19  ;;  %v2564_v23 = vrot.slane %v2542_v28, %v11506_v30  ;;  %v2274_v28 = vld [vmem:[%s15178_s2 + $0x108] sm:$0xff]  ;;  %v3236_v59 = vadd.f32 %v3164_v15, %v11326_v11 }
 0x35e   :  { %9100 = vmatmul.mubr.msk.f32.gmra.mrb[50].mxu1 %vm1599_vm0, %v3229_v41  ;;  %v2318_v41 = vld [vmem:[%s15177_s1 + $0x28] sm:$0xff]  ;;  %v2923_v47 = vrot.slane %v2571_v1, %v10227_v61  ;;  %v2575_v24 = vcombine.high %v2571_v1, %v2571_v1  ;;  %v2927_v63 = vrot.slane %v2573_v14, %v10227_v61  ;;  %v2281_v1 = vld [vmem:[%s15178_s2 + $0x140] sm:$0xff] }
 0x35f   :  { %9102 = vmatprep.mubr.msk.f32.mxu1 %vm1599_vm0, %v3230_v26  ;;  %v2574_v45 = vcombine.high %v2564_v23, %v2564_v23  ;;  %v2907_v21 = vrot.slane %v2564_v23, %v10227_v61  ;;  %v2583_v46 = vrot.slane %v2318_v41, %v11506_v30  ;;  %v2919_v23 = vrot.slane %v2557_v9, %v10227_v61  ;;  %v15333_v9 = vld [vmem:[#allocation21_spill] sm:$0xff] }
 0x360   :  { %v2576_v36 = vcombine.high %v2318_v41, %v2318_v41  ;;  %v3169_v41 = vsub.f32 %v2278_v51, %v2923_v47  ;;  %v11985_v27 = vadd.f32 %v11438_v19, %v15333_v9  ;;  %v2285_v9 = vld [vmem:[%s15178_s2 + $0x160] sm:$0xff] }
 0x361   :  { %3388 = vrot.lane.b32.xlu1 %v11778_v29, %s9878_s19  ;;  %v11912_v29 = vadd.f32 %v11438_v19, %v15329_v18  ;;  %v2915_v8 = vrot.slane %v2574_v45, %v10227_v61  ;;  %v3165_v22 = vsub.f32 %v2274_v28, %v2907_v21  ;;  %v2591_v43 = vcombine.high %v2583_v46, %v2583_v46 }
 0x362   :  { %9103 = vmatmul.mubr.msk.f32.gmra.mrb[52].mxu1 %vm1599_vm0, %v3231_v62  ;;  %v2276_v62 = vld [vmem:[%s15178_s2 + $0x118] sm:$0xff]  ;;  %v2590_v21 = vrot.slane %v2576_v36, %v11506_v30 }
 0x363   :  { %9105 = vmatprep.mubr.msk.f32.mxu1 %vm1599_vm0, %v3232_v40  ;;  %v2277_v40 = vld [vmem:[%s15178_s2 + $0x120] sm:$0xff]  ;;  %v3167_v42 = vsub.f32 %v2276_v62, %v2915_v8  ;;  %v3237_v11 = vadd.f32 %v3165_v22, %v2048_v4  ;;  %v2613_v18 = vrot.slane %v2591_v43, %v11506_v30  ;;  %v3170_v8 = vsub.f32 %v2279_v53, %v2927_v63  ;;  %v15335_v62 = vld [vmem:[#allocation11_spill] sm:$0xff] }
 0x364   :  { %v3168_v16 = vsub.f32 %v2277_v40, %v2919_v23  ;;  %v2282_v23 = vld [vmem:[%s15178_s2 + $0x148] sm:$0xff]  ;;  %v2606_v36 = vrot.slane %v2590_v21, %v11506_v30 }
 0x365   :  { %v11924_v26 = vpop.f32.mrb[8].mxu1  ;;  %3398 = vrot.lane.b32.xlu1 %v2008_v50, %s9878_s19  ;;  %v3235_v50 = vadd.f32 %v3163_v35, %v11912_v29  ;;  %v15331_v35 = vld [vmem:[#allocation9_spill] sm:$0xff]  ;;  %v3239_v15 = vadd.f32 %v3167_v42, %v11957_v60  ;;  %v2623_v40 = vcombine.high %v2613_v18, %v2613_v18  ;;  %v15336_v42 = vld [vmem:[#allocation22_spill] sm:$0xff] }
 0x366   :  { %v11930_v38 = vpop.f32.mrb[9].mxu1  ;;  %9106 = vmatmul.mubr.msk.f32.gmra.mrb[54].mxu1 %vm1599_vm0, %v3233_v2  ;;  %v3238_v45 = vadd.f32 %v3166_v6, %v15331_v35  ;;  %v11965_v2 = vpop.permute.xlu1 %6485  ;;  %v12004_v47 = vadd.f32 %v11438_v19, %v15336_v42 }
 0x367   :  { %9108 = vmatprep.mubr.msk.f32.mxu1 %vm1599_vm0, %v3234_v7  ;;  %15332 = vst [vmem:[#allocation4_spill] sm:$0xff] %v11965_v2  ;;  %v2931_v7 = vrot.slane %v2575_v24, %v10227_v61  ;;  %v2283_v24 = vld [vmem:[%s15178_s2 + $0x150] sm:$0xff]  ;;  %v2947_v53 = vrot.slane %v2623_v40, %v10227_v61 }
 0x369   :  { %3392 = vrot.lane.b32.xlu1 %v11801_v55, %s9878_s19  ;;  %v2599_v55 = vrot.slane %v2583_v46, %v11506_v30  ;;  %v3171_v6 = vsub.f32 %v2280_v17, %v2931_v7  ;;  %v2951_v7 = vrot.slane %v2606_v36, %v10227_v61 }
 0x36a   :  { %9109 = vmatmul.mubr.msk.f32.gmra.mrb[56].mxu1 %vm1599_vm0, %v3235_v50  ;;  %v2592_v50 = vcombine.high %v2590_v21, %v2590_v21  ;;  %v11994_v22 = vpop.permute.xlu1 %6492 }
 0x36b   :  { %9111 = vmatprep.mubr.msk.f32.mxu1 %vm1599_vm0, %v3236_v59  ;;  %v2935_v28 = vrot.slane %v2599_v55, %v10227_v61  ;;  %v2621_v46 = vcombine.high %v2599_v55, %v2599_v55  ;;  %15334 = vst [vmem:[#allocation5_spill] sm:$0xff] %v11994_v22  ;;  %v3241_v59 = vadd.f32 %v3169_v41, %v15335_v62  ;;  %v2286_v62 = vld [vmem:[%s15178_s2 + $0x168] sm:$0xff] }
 0x36c   :  { %v2620_v35 = vrot.slane %v2592_v50, %v11506_v30 }
 0x36d   :  { %3396 = vrot.lane.b32.xlu1 %v11826_v57, %s9878_s19  ;;  %v3240_v57 = vadd.f32 %v3168_v16, %v11355_v34  ;;  %v2939_v34 = vrot.slane %v2613_v18, %v10227_v61  ;;  %v3172_v14 = vsub.f32 %v2281_v1, %v2935_v28  ;;  %v2943_v43 = vrot.slane %v2621_v46, %v10227_v61  ;;  %v15338_v16 = vld [vmem:[#allocation12_spill] sm:$0xff] }
 0x36e   :  { %9112 = vmatmul.mubr.msk.f32.gmra.mrb[58].mxu1 %vm1599_vm0, %v3237_v11  ;;  %v2319_v11 = vld [vmem:[%s15177_s1 + $0x30] sm:$0xff]  ;;  %v12021_v63 = vadd.f32 %v11438_v19, %v15338_v16  ;;  %v2622_v28 = vcombine.high %v2606_v36, %v2606_v36  ;;  %v2624_v1 = vcombine.high %v2620_v35, %v2620_v35 }
 0x36f   :  { %9114 = vmatprep.mubr.msk.f32.mxu1 %vm1599_vm0, %v3238_v45  ;;  %v3173_v55 = vsub.f32 %v2282_v23, %v2939_v34  ;;  %v15337_v45 = vld [vmem:[#allocation24_spill] sm:$0xff]  ;;  %v3244_v21 = vadd.f32 %v3172_v14, %v12004_v47  ;;  %v3174_v41 = vsub.f32 %v2283_v24, %v2943_v43  ;;  %v2625_v46 = vcombine.high %v2319_v11, %v2319_v11 }
 0x370   :  { %v3243_v51 = vadd.f32 %v3171_v6, %v15337_v45  ;;  %v15340_v6 = vld [vmem:[#allocation23_spill] sm:$0xff]  ;;  %v15341_v14 = vld [vmem:[#allocation28_spill] sm:$0xff]  ;;  %v2959_v42 = vrot.slane %v2622_v28, %v10227_v61 }
 0x371   :  { %3404 = vrot.lane.b32.xlu1 %v11871_v49, %s9878_s19  ;;  %v3242_v49 = vadd.f32 %v3170_v8, %v11985_v27  ;;  %v2955_v8 = vrot.slane %v2620_v35, %v10227_v61  ;;  %v3245_v34 = vadd.f32 %v3173_v55, %v12021_v63  ;;  %v3246_v23 = vadd.f32 %v3174_v41, %v15340_v6  ;;  %v2287_v43 = vld [vmem:[%s15178_s2 + $0x170] sm:$0xff]  ;;  %v15343_v55 = vld [vmem:[#allocation25_spill] sm:$0xff] }
 0x372   :  { %9115 = vmatmul.mubr.msk.f32.gmra.mrb[60].mxu1 %vm1599_vm0, %v3239_v15  ;;  %v2284_v15 = vld [vmem:[%s15178_s2 + $0x158] sm:$0xff]  ;;  %v12052_v40 = vadd.f32 %v11438_v19, %v15341_v14  ;;  %v2639_v19 = vrot.slane %v2625_v46, %v11506_v30  ;;  %v3178_v41 = vsub.f32 %v2287_v43, %v2959_v42  ;;  %v4362_v28 = vld [vmem:[%s15179_s11 + $0x10] sm:$0xff] }
 0x373   :  { %9117 = vmatprep.mubr.msk.f32.mxu1 %vm1599_vm0, %v3240_v57  ;;  %v12032_v57 = vpop.permute.xlu1 %6499  ;;  %v3175_v50 = vsub.f32 %v2284_v15, %v2947_v53  ;;  %v3177_v36 = vsub.f32 %v2286_v62, %v2955_v8  ;;  %v8687_v8 = vld [vmem:[%s15180_s14] ss:$0 sm:$0xff] }
 0x374   :  { %15339 = vst [vmem:[#allocation7_spill] sm:$0xff] %v12032_v57 }
 0x375   :  { %3414 = vrot.lane.b32.xlu1 %v2048_v4, %s9878_s19  ;;  %v2632_v4 = vrot.slane %v2319_v11, %v11506_v30  ;;  %v2963_v11 = vrot.slane %v2624_v1, %v10227_v61  ;;  %v3247_v35 = vadd.f32 %v3175_v50, %v15343_v55  ;;  %v2641_v50 = vcombine.high %v2639_v19, %v2639_v19 }
 0x376   :  { %9118 = vmatmul.mubr.msk.f32.gmra.mrb[62].mxu1 %vm1599_vm0, %v3241_v59 }
 0x377   :  { %9120 = vmatprep.mubr.msk.f32.mxu1 %vm1599_vm0, %v3242_v49  ;;  %v2648_v59 = vrot.slane %v2632_v4, %v11506_v30  ;;  %v3176_v49 = vsub.f32 %v2285_v9, %v2951_v7  ;;  %v12062_v24 = vpop.permute.xlu1 %6527  ;;  %v2289_v7 = vld [vmem:[%s15178_s2 + $0x180] sm:$0xff]  ;;  %v4363_v9 = vld [vmem:[%s15179_s11 + $0x18] sm:$0xff] }
 0x378   :  { %v12025_v18 = vpop.f32.mrb[10].mxu1  ;;  %15342 = vst [vmem:[#allocation9_spill] sm:$0xff] %v12062_v24  ;;  %v9342_v1 = vpack.c.bf16 %v4363_v9, %v4362_v28 }
 0x379   :  { %v12034_v17 = vpop.f32.mrb[11].mxu1  ;;  %3408 = vrot.lane.b32.xlu1 %v11892_v0, %s9878_s19  ;;  %v2640_v0 = vcombine.high %v2632_v4, %v2632_v4  ;;  %v2670_v16 = vcombine.high %v2648_v59, %v2648_v59  ;;  %v3248_v53 = vadd.f32 %v3176_v49, %v12052_v40  ;;  %v12076_v4 = vld [vmem:[%s15174_s8] ss:$0 sm:$0xff]  ;;  %v2290_v49 = vld [vmem:[%s15178_s2 + $0x188] sm:$0xff] }
 0x37a   :  { %9121 = vmatmul.mubr.msk.f32.gmra.mrb[64].mxu1 %vm1599_vm0, %v3243_v51  ;;  %v2967_v51 = vrot.slane %v2648_v59, %v10227_v61  ;;  %9343 = vmatprep.subr.bf16.mxu0 %v9342_v1  ;;  %v12110_v42 = vadd.f32 %v12076_v4, %v11598_v31 }
 0x37b   :  { %9123 = vmatprep.mubr.msk.f32.mxu1 %vm1599_vm0, %v3244_v21  ;;  %v2662_v45 = vrot.slane %v2640_v0, %v11506_v30  ;;  %v15344_v21 = vld [vmem:[#allocation29_spill] sm:$0xff]  ;;  %v2975_v6 = vrot.slane %v2670_v16, %v10227_v61  ;;  %v12112_v43 = vpop.permute.xlu1 %6541  ;;  %9345 = vmatpush3.bf16.msra.mxu0 %v9342_v1 }
 0x37c   :  { %v12080_v15 = vadd.f32 %v12076_v4, %v15344_v21  ;;  %v3180_v59 = vsub.f32 %v2289_v7, %v2967_v51  ;;  %15346 = vst [vmem:[#allocation21_spill] sm:$0xff] %v12112_v43  ;;  %v2292_v51 = vld [vmem:[%s15178_s2 + $0x198] sm:$0xff]  ;;  %v12136_v7 = vpop.permute.xlu0 %6625 }
 0x37d   :  { %3410 = vrot.lane.b32.xlu1 %v11912_v29, %s9878_s19  ;;  %v2288_v29 = vld [vmem:[%s15178_s2 + $0x178] sm:$0xff]  ;;  %v2971_v0 = vrot.slane %v2662_v45, %v10227_v61  ;;  %15347 = vst [vmem:[#allocation11_spill] sm:$0xff] %v12136_v7 }
 0x37e   :  { %9124 = vmatmul.mubr.msk.f32.gmra.mrb[66].mxu1 %vm1599_vm0, %v3245_v34  ;;  %v3179_v46 = vsub.f32 %v2288_v29, %v2963_v11  ;;  %v2672_v34 = vcombine.high %v2662_v45, %v2662_v45  ;;  %v3250_v14 = vadd.f32 %v3178_v41, %v12080_v15  ;;  %v2291_v11 = vld [vmem:[%s15178_s2 + $0x190] sm:$0xff] }
 0x37f   :  { %9126 = vmatprep.mubr.msk.f32.mxu1 %vm1599_vm0, %v3246_v23  ;;  %v2320_v23 = vld [vmem:[%s15177_s1 + $0x38] sm:$0xff]  ;;  %v3181_v45 = vsub.f32 %v2290_v49, %v2971_v0  ;;  %v3182_v21 = vsub.f32 %v2291_v11, %v2975_v6  ;;  %v12143_v9 = vpop.permute.xlu1 %6548  ;;  %v12155_v6 = vadd.f32 %v12076_v4, %v11813_v32  ;;  %v2295_v49 = vld [vmem:[%s15178_s2 + $0x1b0] sm:$0xff] }
 0x380   :  { %v2979_v55 = vrot.slane %v2672_v34, %v10227_v61  ;;  %v2681_v31 = vrot.slane %v2320_v23, %v11506_v30  ;;  %v3251_v29 = vadd.f32 %v3179_v46, %v11732_v52  ;;  %15348 = vst [vmem:[#allocation22_spill] sm:$0xff] %v12143_v9  ;;  %v2294_v34 = vld [vmem:[%s15178_s2 + $0x1a8] sm:$0xff]  ;;  %v2674_v0 = vcombine.high %v2320_v23, %v2320_v23 }
 0x381   :  { %3418 = vrot.lane.b32.xlu1 %v11957_v60, %s9878_s19  ;;  %v15345_v60 = vld [vmem:[#allocation27_spill] sm:$0xff] }
 0x382   :  { %9127 = vmatmul.mubr.msk.f32.gmra.mrb[68].mxu1 %vm1599_vm0, %v3247_v35  ;;  %v3249_v62 = vadd.f32 %v3177_v36, %v15345_v60  ;;  %v2655_v36 = vrot.slane %v2639_v19, %v11506_v30  ;;  %v2669_v35 = vrot.slane %v2641_v50, %v11506_v30  ;;  %v12127_v19 = vadd.f32 %v12076_v4, %v11591_v20  ;;  %v2293_v20 = vld [vmem:[%s15178_s2 + $0x1a0] sm:$0xff] }
 0x383   :  { %9129 = vmatprep.mubr.msk.f32.mxu1 %vm1599_vm0, %v3248_v53  ;;  %v3252_v53 = vadd.f32 %v3180_v59, %v12110_v42  ;;  %v3183_v52 = vsub.f32 %v2292_v51, %v2979_v55  ;;  %v2689_v1 = vcombine.high %v2681_v31, %v2681_v31  ;;  %v2697_v60 = vrot.slane %v2681_v31, %v11506_v30  ;;  %v2296_v55 = vld [vmem:[%s15178_s2 + $0x1b8] sm:$0xff]  ;;  %v12177_v51 = vpop.permute.xlu1 %6555 }
 0x384   :  { %v2671_v16 = vcombine.high %v2655_v36, %v2655_v36  ;;  %v2983_v41 = vrot.slane %v2655_v36, %v10227_v61  ;;  %v2987_v28 = vrot.slane %v2669_v35, %v10227_v61  ;;  %v3254_v59 = vadd.f32 %v3182_v21, %v11700_v39  ;;  %15350 = vst [vmem:[#allocation12_spill] sm:$0xff] %v12177_v51 }
 0x385   :  { %7917 = vrot.lane.b32.xlu1 %v8687_v8, %s9878_s19  ;;  %v2673_v8 = vcombine.high %v2669_v35, %v2669_v35  ;;  %v2711_v39 = vrot.slane %v2689_v1, %v11506_v30  ;;  %v3255_v32 = vadd.f32 %v3183_v52, %v11756_v5  ;;  %v2688_v31 = vrot.slane %v2674_v0, %v11506_v30 }
 0x386   :  { %9130 = vmatmul.mubr.msk.f32.gmra.mrb[70].mxu1 %vm1599_vm0, %v3249_v62  ;;  %v2991_v50 = vrot.slane %v2671_v16, %v10227_v61  ;;  %v3185_v11 = vsub.f32 %v2294_v34, %v2987_v28  ;;  %v2158_v16 = vadd.f32 %v12076_v4, %v11924_v26  ;;  %v12183_v5 = vadd.f32 %v12076_v4, %v11930_v38  ;;  %v2298_v38 = vld [vmem:[%s15178_s2 + $0x1c8] sm:$0xff] }
 0x387   :  { %9132 = vmatprep.mubr.msk.f32.mxu1 %vm1599_vm0, %v3250_v14  ;;  %v3184_v14 = vsub.f32 %v2293_v20, %v2983_v41  ;;  %v2995_v23 = vrot.slane %v2673_v8, %v10227_v61  ;;  %v2719_v21 = vcombine.high %v2697_v60, %v2697_v60  ;;  %v3003_v20 = vrot.slane %v2711_v39, %v10227_v61 }
 0x388   :  { %v3186_v35 = vsub.f32 %v2295_v49, %v2991_v50  ;;  %v3257_v26 = vadd.f32 %v3185_v11, %v11811_v56  ;;  %v2721_v28 = vcombine.high %v2711_v39, %v2711_v39  ;;  %v2690_v8 = vcombine.high %v2688_v31, %v2688_v31  ;;  %v2299_v56 = vld [vmem:[%s15178_s2 + $0x1d0] sm:$0xff]  ;;  %v2300_v49 = vld [vmem:[%s15178_s2 + $0x1d8] sm:$0xff] }
 0x389   :  { %3430 = vrot.lane.b32.xlu1 %v12021_v63, %s9878_s19  ;;  %v3253_v63 = vadd.f32 %v3181_v45, %v12127_v19  ;;  %v3256_v45 = vadd.f32 %v3184_v14, %v12155_v6  ;;  %v3187_v41 = vsub.f32 %v2296_v55, %v2995_v23  ;;  %v2163_v1 = vadd.f32 %v12076_v4, %v12034_v17 }
 0x38a   :  { %9133 = vmatmul.mubr.msk.f32.gmra.mrb[72].mxu1 %vm1599_vm0, %v3251_v29  ;;  %v12174_v29 = vpop.permute.xlu0 %6632  ;;  %v3007_v34 = vrot.slane %v2719_v21, %v10227_v61  ;;  %v2704_v50 = vrot.slane %v2688_v31, %v11506_v30  ;;  %v3189_v17 = vsub.f32 %v2298_v38, %v3003_v20  ;;  %v3011_v0 = vrot.slane %v2721_v28, %v10227_v61 }
 0x38b   :  { %v9036_v46 = vpop.f32.mrb[12].mxu1  ;;  %9135 = vmatprep.mubr.msk.f32.mxu1 %vm1599_vm0, %v3252_v53  ;;  %15349 = vst [vmem:[#allocation24_spill] sm:$0xff] %v12174_v29  ;;  %v2297_v53 = vld [vmem:[%s15178_s2 + $0x1c0] sm:$0xff] }
 0x38c   :  { %v2172_v62 = vpop.f32.mrb[13].mxu1  ;;  %v3190_v11 = vsub.f32 %v2299_v56, %v3007_v34  ;;  %v3015_v23 = vrot.slane %v2704_v50, %v10227_v61  ;;  %v2720_v28 = vcombine.high %v2704_v50, %v2704_v50  ;;  %v2304_v34 = vld [vmem:[%s15178_s2 + $0x1f8] sm:$0xff] }
 0x38d   :  { %v2173_v36 = vadd.f32 %v12076_v4, %v2172_v62  ;;  %3424 = vrot.lane.b32.xlu1 %v11985_v27, %s9878_s19  ;;  %v2999_v27 = vrot.slane %v2697_v60, %v10227_v61  ;;  %v12212_v62 = vpop.permute.xlu1 %6583 }
 0x38e   :  { %9136 = vmatmul.mubr.msk.f32.gmra.mrb[74].mxu1 %vm1599_vm0, %v3253_v63  ;;  %v2178_v63 = vadd.f32 %v12076_v4, %v9036_v46  ;;  %v12210_v60 = vpop.permute.xlu0 %6618  ;;  %15352 = vst [vmem:[#allocation28_spill] sm:$0xff] %v12212_v62  ;;  %v3259_v46 = vadd.f32 %v3187_v41, %v2158_v16 }
 0x38f   :  { %3464 = vrot.lane.b32.xlu0 %v2173_v36, %s9878_s19  ;;  %9138 = vmatprep.mubr.msk.f32.mxu1 %vm1599_vm0, %v3254_v59  ;;  %v3188_v52 = vsub.f32 %v2297_v53, %v2999_v27  ;;  %15351 = vst [vmem:[#allocation23_spill] sm:$0xff] %v12210_v60  ;;  %v2718_v59 = vrot.slane %v2690_v8, %v11506_v30 }
 0x390   :  { %v3262_v27 = vadd.f32 %v3190_v11, %v2173_v36 }
 0x391   :  { %3428 = vrot.lane.b32.xlu1 %v12004_v47, %s9878_s19  ;;  %v3258_v47 = vadd.f32 %v3186_v35, %v12183_v5  ;;  %v3260_v14 = vadd.f32 %v3188_v52, %v2163_v1  ;;  %v3019_v55 = vrot.slane %v2718_v59, %v10227_v61  ;;  %v12232_v35 = vpop.permute.xlu1 %6597  ;;  %v2722_v8 = vcombine.high %v2718_v59, %v2718_v59 }
 0x392   :  { %9139 = vmatmul.mubr.msk.f32.gmra.mrb[76].mxu1 %vm1599_vm0, %v3255_v32  ;;  %v3191_v32 = vsub.f32 %v2300_v49, %v3011_v0  ;;  %15353 = vst [vmem:[#allocation25_spill] sm:$0xff] %v12232_v35  ;;  %v12243_v20 = vpop.permute.xlu0 %6646 }
 0x393   :  { %3458 = vrot.lane.b32.xlu0 %v2158_v16, %s9878_s19  ;;  %9141 = vmatprep.mubr.msk.f32.mxu1 %vm1599_vm0, %v3256_v45  ;;  %15354 = vst [vmem:[#allocation29_spill] sm:$0xff] %v12243_v20 }
 0x394   :  { %v3263_v21 = vadd.f32 %v3191_v32, %v2178_v63 }
 0x395   :  { %3436 = vrot.lane.b32.xlu1 %v12052_v40, %s9878_s19  ;;  %v2168_v40 = vadd.f32 %v12076_v4, %v12025_v18  ;;  %v2301_v18 = vld [vmem:[%s15178_s2 + $0x1e0] sm:$0xff] }
 0x396   :  { %9142 = vmatmul.mubr.msk.f32.gmra.mrb[78].mxu1 %vm1599_vm0, %v3257_v26  ;;  %v3192_v45 = vsub.f32 %v2301_v18, %v3015_v23  ;;  %v12249_v26 = vpop.permute.xlu1 %6604 }
 0x397   :  { %3466 = vrot.lane.b32.xlu0 %v2178_v63, %s9878_s19  ;;  %9144 = vmatprep.mubr.msk.f32.mxu1 %vm1599_vm0, %v3258_v47  ;;  %v3261_v39 = vadd.f32 %v3189_v17, %v2168_v40  ;;  %15355 = vst [vmem:[#allocation27_spill] sm:$0xff] %v12249_v26  ;;  %v3027_v47 = vrot.slane %v2722_v8, %v10227_v61  ;;  %v2303_v63 = vld [vmem:[%s15178_s2 + $0x1f0] sm:$0xff] }
 0x399   :  { %3446 = vrot.lane.b32.xlu1 %v12127_v19, %s9878_s19  ;;  %v2302_v19 = vld [vmem:[%s15178_s2 + $0x1e8] sm:$0xff]  ;;  %v3195_v17 = vsub.f32 %v2304_v34, %v3027_v47  ;;  %v2308_v34 = vld [vmem:[%s15178_s2 + $0x218] sm:$0xff] }
 0x39a   :  { %9145 = vmatmul.mubr.msk.f32.gmra.mrb[80].mxu1 %vm1599_vm0, %v3259_v46  ;;  %v3193_v41 = vsub.f32 %v2302_v19, %v3019_v55  ;;  %v12255_v52 = vpop.permute.xlu1 %6611  ;;  %v2305_v55 = vld [vmem:[%s15178_s2 + $0x200] sm:$0xff] }
 0x39b   :  { %9147 = vmatprep.mubr.msk.f32.mxu1 %vm1599_vm0, %v3260_v14  ;;  %15356 = vst [vmem:[#allocation33_spill] sm:$0xff] %v12255_v52 }
 0x39d   :  { %3440 = vrot.lane.b32.xlu1 %v12080_v15, %s9878_s19 }
 0x39e   :  { %v9039_v31 = vpop.f32.mrb[14].mxu1  ;;  %9148 = vmatmul.mubr.msk.f32.gmra.mrb[82].mxu1 %vm1599_vm0, %v3261_v39 }
 0x39f   :  { %v2188_v16 = vadd.f32 %v12076_v4, %v9039_v31  ;;  %v2182_v53 = vpop.f32.mrb[15].mxu1  ;;  %9150 = vmatprep.mubr.msk.f32.mxu1 %vm1599_vm0, %v3262_v27  ;;  %v2306_v27 = vld [vmem:[%s15178_s2 + $0x208] sm:$0xff] }
 0x3a0   :  { %v2183_v36 = vadd.f32 %v12076_v4, %v2182_v53 }
 0x3a1   :  { %3470 = vrot.lane.b32.xlu0 %v2188_v16, %s9878_s19  ;;  %3444 = vrot.lane.b32.xlu1 %v12110_v42, %s9878_s19  ;;  %v3265_v38 = vadd.f32 %v3193_v41, %v2188_v16  ;;  %v3023_v42 = vrot.slane %v2720_v28, %v10227_v61 }
 0x3a2   :  { %v3264_v15 = vadd.f32 %v3192_v45, %v2183_v36  ;;  %9151 = vmatmul.mubr.msk.f32.gmra.mrb[84].mxu1 %vm1599_vm0, %v3263_v21 }
 0x3a3   :  { %v3194_v50 = vsub.f32 %v2303_v63, %v3023_v42  ;;  %v2307_v63 = vld [vmem:[%s15178_s2 + $0x210] sm:$0xff] }
 0x3a4   :  { %9153 = vmatprep.mubr.msk.f32.mxu1 %vm1599_vm0, %v3264_v15 }
 0x3a5   :  { %3452 = vrot.lane.b32.xlu1 %v12155_v6, %s9878_s19  ;;  %v12265_v6 = vpop.permute.xlu1 %6639 }
 0x3a6   :  { %9154 = vmatmul.mubr.msk.f32.gmra.mrb[86].mxu1 %vm1599_vm0, %v3265_v38  ;;  %15357 = vst [vmem:[#allocation34_spill] sm:$0xff] %v12265_v6 }
 0x3a9   :  { %3462 = vrot.lane.b32.xlu1 %v2168_v40, %s9878_s19  ;;  %v2321_v40 = vld [vmem:[%s15177_s1 + $0x40] sm:$0xff]  ;;  %v12278_v59 = vpop.permute.xlu1 %6653 }
 0x3aa   :  { %15359 = vst [vmem:[#allocation36_spill] sm:$0xff] %v12278_v59  ;;  %v2730_v49 = vrot.slane %v2321_v40, %v11506_v30 }
 0x3ac   :  { %v2738_v11 = vcombine.high %v2730_v49, %v2730_v49  ;;  %v2746_v23 = vrot.slane %v2730_v49, %v11506_v30 }
 0x3ad   :  { %3456 = vrot.lane.b32.xlu1 %v12183_v5, %s9878_s19  ;;  %v12295_v45 = vpop.permute.xlu1 %6660 }
 0x3ae   :  { %v2760_v18 = vrot.slane %v2738_v11, %v11506_v30  ;;  %v3031_v39 = vrot.slane %v2746_v23, %v10227_v61  ;;  %15360 = vst [vmem:[#allocation37_spill] sm:$0xff] %v12295_v45  ;;  %v2768_v28 = vcombine.high %v2746_v23, %v2746_v23 }
 0x3b0   :  { %v3035_v32 = vrot.slane %v2760_v18, %v10227_v61  ;;  %v3196_v31 = vsub.f32 %v2305_v55, %v3031_v39  ;;  %v2770_v8 = vcombine.high %v2760_v18, %v2760_v18  ;;  %v3039_v42 = vrot.slane %v2768_v28, %v10227_v61 }
 0x3b1   :  { %v9042_v56 = vpop.f32.mrb[16].mxu1  ;;  %3460 = vrot.lane.b32.xlu1 %v2163_v1, %s9878_s19  ;;  %v12304_v38 = vpop.permute.xlu1 %6667 }
 0x3b2   :  { %v12272_v5 = vadd.f32 %v12076_v4, %v9042_v56  ;;  %v2192_v46 = vpop.f32.mrb[17].mxu1  ;;  %v3197_v53 = vsub.f32 %v2306_v27, %v3035_v32  ;;  %15362 = vst [vmem:[#allocation39_spill] sm:$0xff] %v12304_v38  ;;  %v3043_v47 = vrot.slane %v2770_v8, %v10227_v61 }
 0x3b3   :  { %v2193_v0 = vadd.f32 %v12076_v4, %v2192_v46 }
 0x3b4   :  { %15358 = vst [vmem:[#allocation35_spill] sm:$0xff] %v12272_v5  ;;  %v3267_v1 = vadd.f32 %v3195_v17, %v12272_v5  ;;  %v2723_v17 = vcombine.high %v2321_v40, %v2321_v40  ;;  %v12327_v40 = vpop.permute.xlu0 %6681 }
 0x3b5   :  { %v3266_v14 = vadd.f32 %v3194_v50, %v2193_v0  ;;  %3468 = vrot.lane.b32.xlu1 %v2183_v36, %s9878_s19  ;;  %v3198_v50 = vsub.f32 %v2307_v63, %v3039_v42  ;;  %15365 = vst [vmem:[#allocation42_spill] sm:$0xff] %v12327_v40 }
 0x3b6   :  { %v2737_v11 = vrot.slane %v2723_v17, %v11506_v30 }
 0x3b7   :  { %9156 = vmatprep.mubr.msk.f32.mxu1 %vm1599_vm0, %v3266_v14 }
 0x3b8   :  { %9157 = vmatmul.mubr.msk.f32.gmra.mrb[88].mxu1 %vm1599_vm0, %v3267_v1  ;;  %v2739_v18 = vcombine.high %v2737_v11, %v2737_v11  ;;  %v2753_v39 = vrot.slane %v2737_v11, %v11506_v30 }
 0x3ba   :  { %v2767_v32 = vrot.slane %v2739_v18, %v11506_v30  ;;  %v3047_v55 = vrot.slane %v2753_v39, %v10227_v61 }
 0x3bc   :  { %v3051_v27 = vrot.slane %v2767_v32, %v10227_v61 }
 0x3c4   :  { %v9045_v19 = vpop.f32.mrb[18].mxu1 }
 0x3c5   :  { %v2208_v16 = vadd.f32 %v12076_v4, %v9045_v19  ;;  %v2202_v21 = vpop.f32.mrb[19].mxu1  ;;  %v2309_v19 = vld [vmem:[%s15178_s2 + $0x220] sm:$0xff] }
 0x3c6   :  { %v12299_v41 = vadd.f32 %v12076_v4, %v2202_v21  ;;  %v3200_v21 = vsub.f32 %v2309_v19, %v3047_v55 }
 0x3c7   :  { %3478 = vrot.lane.b32.xlu1 %v2208_v16, %s9878_s19  ;;  %v3269_v15 = vadd.f32 %v3197_v53, %v2208_v16  ;;  %v2310_v16 = vld [vmem:[%s15178_s2 + $0x228] sm:$0xff] }
 0x3c8   :  { %15361 = vst [vmem:[#allocation38_spill] sm:$0xff] %v12299_v41  ;;  %v3268_v36 = vadd.f32 %v3196_v31, %v12299_v41  ;;  %v12336_v31 = vpop.permute.xlu0 %6688  ;;  %v3201_v30 = vsub.f32 %v2310_v16, %v3051_v27 }
 0x3c9   :  { %15366 = vst [vmem:[#allocation43_spill] sm:$0xff] %v12336_v31 }
 0x3ca   :  { %9159 = vmatprep.mubr.msk.f32.mxu1 %vm1599_vm0, %v3268_v36 }
 0x3cb   :  { %3472 = vrot.lane.b32.xlu1 %v2193_v0, %s9878_s19  ;;  %9160 = vmatmul.mubr.msk.f32.gmra.mrb[90].mxu1 %vm1599_vm0, %v3269_v15  ;;  %v3199_v0 = vsub.f32 %v2308_v34, %v3043_v47  ;;  %v2769_v34 = vcombine.high %v2753_v39, %v2753_v39 }
 0x3cc   :  { %v12347_v8 = vpop.permute.xlu0 %6674 }
 0x3cd   :  { %15369 = vst [vmem:[#allocation46_spill] sm:$0xff] %v12347_v8 }
 0x3d0   :  { %v12353_v63 = vpop.permute.xlu0 %6702 }
 0x3d1   :  { %15370 = vst [vmem:[#allocation47_spill] sm:$0xff] %v12353_v63 }
 0x3d4   :  { %v12356_v17 = vpop.permute.xlu0 %6737 }
 0x3d5   :  { %15371 = vst [vmem:[#allocation48_spill] sm:$0xff] %v12356_v17 }
 0x3d7   :  { %v9048_v56 = vpop.f32.mrb[20].mxu1 }
 0x3d8   :  { %v12317_v46 = vadd.f32 %v12076_v4, %v9048_v56  ;;  %v2212_v14 = vpop.f32.mrb[21].mxu1  ;;  %v2771_v56 = vcombine.high %v2767_v32, %v2767_v32  ;;  %v12376_v27 = vpop.permute.xlu0 %6744 }
 0x3d9   :  { %v12320_v49 = vadd.f32 %v12076_v4, %v2212_v14  ;;  %v2311_v14 = vld [vmem:[%s15178_s2 + $0x230] sm:$0xff]  ;;  %15374 = vst [vmem:[#allocation51_spill] sm:$0xff] %v12376_v27 }
 0x3da   :  { %15363 = vst [vmem:[#allocation40_spill] sm:$0xff] %v12317_v46  ;;  %v3271_v23 = vadd.f32 %v3199_v0, %v12317_v46  ;;  %v3059_v0 = vrot.slane %v2771_v56, %v10227_v61 }
 0x3db   :  { %15364 = vst [vmem:[#allocation41_spill] sm:$0xff] %v12320_v49  ;;  %v3270_v1 = vadd.f32 %v3198_v50, %v12320_v49  ;;  %v3055_v50 = vrot.slane %v2769_v34, %v10227_v61  ;;  %v12374_v61 = vld [vmem:[%s15181_s10] ss:$0 sm:$0xff] }
 0x3dd   :  { %9162 = vmatprep.mubr.msk.f32.mxu1 %vm1599_vm0, %v3270_v1  ;;  %v2312_v1 = vld [vmem:[%s15178_s2 + $0x238] sm:$0xff] }
 0x3de   :  { %9163 = vmatmul.mubr.msk.f32.gmra.mrb[92].mxu1 %vm1599_vm0, %v3271_v23  ;;  %v3202_v23 = vsub.f32 %v2311_v14, %v3055_v50  ;;  %v3203_v39 = vsub.f32 %v2312_v1, %v3059_v0 }
 0x3ea   :  { %v9051_v53 = vpop.f32.mrb[22].mxu1 }
 0x3eb   :  { %v12342_v36 = vadd.f32 %v12076_v4, %v9051_v53  ;;  %v2222_v15 = vpop.f32.mrb[23].mxu1 }
 0x3ec   :  { %v12345_v28 = vadd.f32 %v12076_v4, %v2222_v15 }
 0x3ed   :  { %15367 = vst [vmem:[#allocation44_spill] sm:$0xff] %v12342_v36  ;;  %v3273_v47 = vadd.f32 %v3201_v30, %v12342_v36 }
 0x3ee   :  { %15368 = vst [vmem:[#allocation45_spill] sm:$0xff] %v12345_v28  ;;  %v3272_v42 = vadd.f32 %v3200_v21, %v12345_v28 }
 0x3f0   :  { %9165 = vmatprep.mubr.msk.f32.mxu1 %vm1599_vm0, %v3272_v42 }
 0x3f1   :  { %9166 = vmatmul.mubr.msk.f32.gmra.mrb[94].mxu1 %vm1599_vm0, %v3273_v47  ;;  %v12384_v47 = vpop.permute.xlu0 %6730 }
 0x3f2   :  { %15375 = vst [vmem:[#allocation52_spill] sm:$0xff] %v12384_v47 }
 0x3fd   :  { %v9054_v11 = vpop.f32.mrb[24].mxu1 }
 0x3fe   :  { %v12366_v18 = vadd.f32 %v12076_v4, %v9054_v11  ;;  %v2232_v32 = vpop.f32.mrb[25].mxu1 }
 0x3ff   :  { %v12369_v55 = vadd.f32 %v12076_v4, %v2232_v32 }
 0x400   :  { %15372 = vst [vmem:[#allocation49_spill] sm:$0xff] %v12366_v18  ;;  %v3275_v53 = vadd.f32 %v3203_v39, %v12366_v18 }
 0x401   :  { %15373 = vst [vmem:[#allocation50_spill] sm:$0xff] %v12369_v55  ;;  %v3274_v19 = vadd.f32 %v3202_v23, %v12369_v55  ;;  %v9065_v16 = vpop.f32.mrb[26].mxu1 }
 0x402   :  { %v3935_v21 = vadd.f32 %v9065_v16, %v12374_v61  ;;  %v3929_v30 = vpop.f32.mrb[27].mxu1 }
 0x403   :  { %v3930_v15 = vadd.f32 %v12374_v61, %v3929_v30  ;;  %9168 = vmatprep.mubr.msk.f32.mxu1 %vm1599_vm0, %v3274_v19  ;;  %v12393_v19 = vpop.permute.xlu0 %6758 }
 0x404   :  { %9169 = vmatmul.mubr.msk.f32.gmra.mrb[96].mxu1 %vm1599_vm0, %v3275_v53  ;;  %v4289_v34 = vmax.f32 %v3935_v21, 0.0  ;;  %15376 = vst [vmem:[#allocation53_spill] sm:$0xff] %v12393_v19 }
 0x405   :  { %v4288_v4 = vmax.f32 %v3930_v15, 0.0  ;;  %v9068_v42 = vpop.f32.mrb[28].mxu1 }
 0x406   :  { %v3945_v56 = vadd.f32 %v9068_v42, %v12374_v61  ;;  %v3939_v50 = vpop.f32.mrb[29].mxu1 }
 0x407   :  { %v3940_v0 = vadd.f32 %v12374_v61, %v3939_v50  ;;  %9179 = vmatprep.mubr.msk.f32.mxu0 %vm1599_vm0, %v4288_v4 }
 0x408   :  { %9180 = vmatmul.mubr.msk.f32.vlgmr.msra.gmra.mrb[46].mxu0 %vm1599_vm0, %v4289_v34  ;;  %v4291_v11 = vmax.f32 %v3945_v56, 0.0  ;;  %v12400_v56 = vpop.permute.xlu0 %6793 }
 0x409   :  { %v4290_v14 = vmax.f32 %v3940_v0, 0.0  ;;  %v9071_v1 = vpop.f32.mrb[30].mxu1  ;;  %15377 = vst [vmem:[#allocation54_spill] sm:$0xff] %v12400_v56 }
 0x40a   :  { %v3955_v23 = vadd.f32 %v9071_v1, %v12374_v61  ;;  %v3949_v39 = vpop.f32.mrb[31].mxu1 }
 0x40b   :  { %v3950_v32 = vadd.f32 %v12374_v61, %v3949_v39  ;;  %9182 = vmatprep.mubr.msk.f32.mxu0 %vm1599_vm0, %v4290_v14 }
 0x40c   :  { %9183 = vmatmul.mubr.msk.f32.gmra.mrb[48].mxu0 %vm1599_vm0, %v4291_v11  ;;  %v4293_v21 = vmax.f32 %v3955_v23, 0.0 }
 0x40d   :  { %v4292_v16 = vmax.f32 %v3950_v32, 0.0  ;;  %v9074_v53 = vpop.f32.mrb[32].mxu1 }
 0x40e   :  { %v3965_v30 = vadd.f32 %v9074_v53, %v12374_v61  ;;  %v3959_v15 = vpop.f32.mrb[33].mxu1 }
 0x40f   :  { %v3960_v4 = vadd.f32 %v12374_v61, %v3959_v15  ;;  %9185 = vmatprep.mubr.msk.f32.mxu0 %vm1599_vm0, %v4292_v16 }
 0x410   :  { %9186 = vmatmul.mubr.msk.f32.gmra.mrb[50].mxu0 %vm1599_vm0, %v4293_v21  ;;  %v4295_v50 = vmax.f32 %v3965_v30, 0.0  ;;  %v12409_v21 = vpop.permute.xlu0 %6800 }
 0x411   :  { %v4294_v42 = vmax.f32 %v3960_v4, 0.0  ;;  %v9077_v34 = vpop.f32.mrb[34].mxu1  ;;  %15378 = vst [vmem:[#allocation55_spill] sm:$0xff] %v12409_v21 }
 0x412   :  { %v3975_v0 = vadd.f32 %v9077_v34, %v12374_v61  ;;  %v3969_v14 = vpop.f32.mrb[35].mxu1 }
 0x413   :  { %v3970_v1 = vadd.f32 %v12374_v61, %v3969_v14  ;;  %9188 = vmatprep.mubr.msk.f32.mxu0 %vm1599_vm0, %v4294_v42 }
 0x414   :  { %9189 = vmatmul.mubr.msk.f32.gmra.mrb[52].mxu0 %vm1599_vm0, %v4295_v50  ;;  %v4297_v39 = vmax.f32 %v3975_v0, 0.0  ;;  %v12413_v50 = vpop.permute.xlu1 %6695 }
 0x415   :  { %v4296_v11 = vmax.f32 %v3970_v1, 0.0  ;;  %v9080_v23 = vpop.f32.mrb[36].mxu1  ;;  %15379 = vst [vmem:[#allocation56_spill] sm:$0xff] %v12413_v50 }
 0x416   :  { %v3985_v32 = vadd.f32 %v9080_v23, %v12374_v61  ;;  %v3979_v16 = vpop.f32.mrb[37].mxu1 }
 0x417   :  { %v3980_v53 = vadd.f32 %v12374_v61, %v3979_v16  ;;  %9191 = vmatprep.mubr.msk.f32.mxu0 %vm1599_vm0, %v4296_v11  ;;  %v12418_v11 = vpop.permute.xlu0 %6786 }
 0x418   :  { %9192 = vmatmul.mubr.msk.f32.gmra.mrb[54].mxu0 %vm1599_vm0, %v4297_v39  ;;  %v4299_v4 = vmax.f32 %v3985_v32, 0.0  ;;  %15380 = vst [vmem:[#allocation57_spill] sm:$0xff] %v12418_v11 }
 0x419   :  { %v4298_v30 = vmax.f32 %v3980_v53, 0.0  ;;  %v9083_v15 = vpop.f32.mrb[38].mxu1  ;;  %v12424_v53 = vpop.permute.xlu1 %6709 }
 0x41a   :  { %v3995_v42 = vadd.f32 %v9083_v15, %v12374_v61  ;;  %v3989_v34 = vpop.f32.mrb[39].mxu1  ;;  %15381 = vst [vmem:[#allocation58_spill] sm:$0xff] %v12424_v53 }
 0x41b   :  { %v3990_v0 = vadd.f32 %v12374_v61, %v3989_v34  ;;  %9194 = vmatprep.mubr.msk.f32.mxu0 %vm1599_vm0, %v4298_v30 }
 0x41c   :  { %9195 = vmatmul.mubr.msk.f32.gmra.mrb[56].mxu0 %vm1599_vm0, %v4299_v4  ;;  %v4301_v23 = vmax.f32 %v3995_v42, 0.0  ;;  %v12429_v42 = vpop.permute.xlu0 %6814 }
 0x41d   :  { %v4300_v14 = vmax.f32 %v3990_v0, 0.0  ;;  %v9086_v1 = vpop.f32.mrb[40].mxu1  ;;  %15382 = vst [vmem:[#allocation59_spill] sm:$0xff] %v12429_v42 }
 0x41e   :  { %v4005_v39 = vadd.f32 %v9086_v1, %v12374_v61  ;;  %v3999_v16 = vpop.f32.mrb[41].mxu1 }
 0x41f   :  { %v4000_v32 = vadd.f32 %v12374_v61, %v3999_v16  ;;  %9197 = vmatprep.mubr.msk.f32.mxu0 %vm1599_vm0, %v4300_v14 }
 0x420   :  { %9198 = vmatmul.mubr.msk.f32.gmra.mrb[58].mxu0 %vm1599_vm0, %v4301_v23  ;;  %v4303_v34 = vmax.f32 %v4005_v39, 0.0 }
 0x421   :  { %v4302_v15 = vmax.f32 %v4000_v32, 0.0  ;;  %v9089_v30 = vpop.f32.mrb[42].mxu1  ;;  %v12433_v32 = vpop.permute.xlu1 %6716 }
 0x422   :  { %v4015_v4 = vadd.f32 %v9089_v30, %v12374_v61  ;;  %v4009_v0 = vpop.f32.mrb[43].mxu1  ;;  %15383 = vst [vmem:[#allocation60_spill] sm:$0xff] %v12433_v32 }
 0x423   :  { %v4010_v18 = vadd.f32 %v12374_v61, %v4009_v0  ;;  %9200 = vmatprep.mubr.msk.f32.mxu0 %vm1599_vm0, %v4302_v15  ;;  %v12438_v0 = vpop.permute.xlu0 %6849 }
 0x424   :  { %9201 = vmatmul.mubr.msk.f32.gmra.mrb[60].mxu0 %vm1599_vm0, %v4303_v34  ;;  %v4305_v16 = vmax.f32 %v4015_v4, 0.0  ;;  %15384 = vst [vmem:[#allocation61_spill] sm:$0xff] %v12438_v0 }
 0x425   :  { %v4304_v1 = vmax.f32 %v4010_v18, 0.0  ;;  %v9092_v14 = vpop.f32.mrb[44].mxu1 }
 0x426   :  { %v4025_v23 = vadd.f32 %v9092_v14, %v12374_v61  ;;  %v4019_v55 = vpop.f32.mrb[45].mxu1  ;;  %v12444_v14 = vpop.permute.xlu1 %6723 }
 0x427   :  { %v4020_v39 = vadd.f32 %v12374_v61, %v4019_v55  ;;  %9203 = vmatprep.mubr.msk.f32.mxu0 %vm1599_vm0, %v4304_v1  ;;  %15385 = vst [vmem:[#allocation62_spill] sm:$0xff] %v12444_v14 }
 0x428   :  { %9204 = vmatmul.mubr.msk.f32.gmra.mrb[62].mxu0 %vm1599_vm0, %v4305_v16  ;;  %v4307_v36 = vmax.f32 %v4025_v23, 0.0  ;;  %v12449_v23 = vpop.permute.xlu0 %6856 }
 0x429   :  { %v4306_v30 = vmax.f32 %v4020_v39, 0.0  ;;  %v9095_v15 = vpop.f32.mrb[46].mxu1  ;;  %15386 = vst [vmem:[#allocation63_spill] sm:$0xff] %v12449_v23 }
 0x42a   :  { %v4035_v18 = vadd.f32 %v9095_v15, %v12374_v61  ;;  %v4029_v34 = vpop.f32.mrb[47].mxu1 }
 0x42b   :  { %v4030_v4 = vadd.f32 %v12374_v61, %v4029_v34  ;;  %9206 = vmatprep.mubr.msk.f32.mxu0 %vm1599_vm0, %v4306_v30 }
 0x42c   :  { %9207 = vmatmul.mubr.msk.f32.gmra.mrb[64].mxu0 %vm1599_vm0, %v4307_v36  ;;  %v4309_v28 = vmax.f32 %v4035_v18, 0.0 }
 0x42d   :  { %v4308_v55 = vmax.f32 %v4030_v4, 0.0  ;;  %v9098_v1 = vpop.f32.mrb[48].mxu1  ;;  %v12453_v4 = vpop.permute.xlu1 %6751 }
 0x42e   :  { %v4045_v16 = vadd.f32 %v9098_v1, %v12374_v61  ;;  %v4039_v39 = vpop.f32.mrb[49].mxu1  ;;  %15387 = vst [vmem:[#allocation64_spill] sm:$0xff] %v12453_v4 }
 0x42f   :  { %v4040_v0 = vadd.f32 %v12374_v61, %v4039_v39  ;;  %9209 = vmatprep.mubr.msk.f32.mxu0 %vm1599_vm0, %v4308_v55  ;;  %v12458_v39 = vpop.permute.xlu0 %6842 }
 0x430   :  { %9210 = vmatmul.mubr.msk.f32.gmra.mrb[66].mxu0 %vm1599_vm0, %v4309_v28  ;;  %v4311_v34 = vmax.f32 %v4045_v16, 0.0  ;;  %15388 = vst [vmem:[#allocation65_spill] sm:$0xff] %v12458_v39 }
 0x431   :  { %v4310_v15 = vmax.f32 %v4040_v0, 0.0  ;;  %v9101_v30 = vpop.f32.mrb[50].mxu1 }
 0x432   :  { %v4055_v36 = vadd.f32 %v9101_v30, %v12374_v61  ;;  %v4049_v46 = vpop.f32.mrb[51].mxu1  ;;  %v12464_v30 = vpop.permute.xlu1 %6765 }
 0x433   :  { %v4050_v18 = vadd.f32 %v12374_v61, %v4049_v46  ;;  %9212 = vmatprep.mubr.msk.f32.mxu0 %vm1599_vm0, %v4310_v15  ;;  %15389 = vst [vmem:[#allocation66_spill] sm:$0xff] %v12464_v30 }
 0x434   :  { %9213 = vmatmul.mubr.msk.f32.gmra.mrb[68].mxu0 %vm1599_vm0, %v4311_v34  ;;  %v4313_v23 = vmax.f32 %v4055_v36, 0.0  ;;  %v12469_v36 = vpop.permute.xlu0 %6870 }
 0x435   :  { %v4312_v1 = vmax.f32 %v4050_v18, 0.0  ;;  %v9104_v55 = vpop.f32.mrb[52].mxu1  ;;  %15390 = vst [vmem:[#allocation67_spill] sm:$0xff] %v12469_v36 }
 0x436   :  { %v4065_v28 = vadd.f32 %v9104_v55, %v12374_v61  ;;  %v4059_v0 = vpop.f32.mrb[53].mxu1 }
 0x437   :  { %v4060_v16 = vadd.f32 %v12374_v61, %v4059_v0  ;;  %9215 = vmatprep.mubr.msk.f32.mxu0 %vm1599_vm0, %v4312_v1 }
 0x438   :  { %9216 = vmatmul.mubr.msk.f32.gmra.mrb[70].mxu0 %vm1599_vm0, %v4313_v23  ;;  %v4315_v5 = vmax.f32 %v4065_v28, 0.0 }
 0x439   :  { %v4314_v46 = vmax.f32 %v4060_v16, 0.0  ;;  %v9107_v15 = vpop.f32.mrb[54].mxu1  ;;  %v12473_v16 = vpop.permute.xlu1 %6772 }
 0x43a   :  { %v4075_v34 = vadd.f32 %v9107_v15, %v12374_v61  ;;  %v4069_v18 = vpop.f32.mrb[55].mxu1  ;;  %15391 = vst [vmem:[#allocation68_spill] sm:$0xff] %v12473_v16 }
 0x43b   :  { %v4070_v39 = vadd.f32 %v12374_v61, %v4069_v18  ;;  %9218 = vmatprep.mubr.msk.f32.mxu0 %vm1599_vm0, %v4314_v46  ;;  %v12478_v18 = vpop.permute.xlu0 %6884 }
 0x43c   :  { %9219 = vmatmul.mubr.msk.f32.gmra.mrb[72].mxu0 %vm1599_vm0, %v4315_v5  ;;  %v4317_v0 = vmax.f32 %v4075_v34, 0.0  ;;  %15392 = vst [vmem:[#allocation69_spill] sm:$0xff] %v12478_v18 }
 0x43d   :  { %v4316_v55 = vmax.f32 %v4070_v39, 0.0  ;;  %v9110_v1 = vpop.f32.mrb[56].mxu1 }
 0x43e   :  { %v4085_v23 = vadd.f32 %v9110_v1, %v12374_v61  ;;  %v4079_v42 = vpop.f32.mrb[57].mxu1  ;;  %v12484_v1 = vpop.permute.xlu1 %6779 }
 0x43f   :  { %v4080_v28 = vadd.f32 %v12374_v61, %v4079_v42  ;;  %9221 = vmatprep.mubr.msk.f32.mxu0 %vm1599_vm0, %v4316_v55  ;;  %15393 = vst [vmem:[#allocation70_spill] sm:$0xff] %v12484_v1 }
 0x440   :  { %9222 = vmatmul.mubr.msk.f32.gmra.mrb[74].mxu0 %vm1599_vm0, %v4317_v0  ;;  %v4319_v36 = vmax.f32 %v4085_v23, 0.0  ;;  %v12489_v23 = vpop.permute.xlu0 %3350 }
 0x441   :  { %v4318_v15 = vmax.f32 %v4080_v28, 0.0  ;;  %v9113_v46 = vpop.f32.mrb[58].mxu1 }
 0x442   :  { %v4095_v5 = vadd.f32 %v9113_v46, %v12374_v61  ;;  %v4089_v39 = vpop.f32.mrb[59].mxu1 }
 0x443   :  { %v4090_v34 = vadd.f32 %v12374_v61, %v4089_v39  ;;  %9224 = vmatprep.mubr.msk.f32.mxu0 %vm1599_vm0, %v4318_v15 }
 0x444   :  { %9225 = vmatmul.mubr.msk.f32.gmra.mrb[76].mxu0 %vm1599_vm0, %v4319_v36  ;;  %v4321_v49 = vmax.f32 %v4095_v5, 0.0 }
 0x445   :  { %v4320_v42 = vmax.f32 %v4090_v34, 0.0  ;;  %v9116_v55 = vpop.f32.mrb[60].mxu1  ;;  %v12493_v34 = vpop.permute.xlu1 %6807 }
 0x446   :  { %v4105_v0 = vadd.f32 %v9116_v55, %v12374_v61  ;;  %v4099_v28 = vpop.f32.mrb[61].mxu1  ;;  %15394 = vst [vmem:[#allocation71_spill] sm:$0xff] %v12493_v34 }
 0x447   :  { %v4100_v18 = vadd.f32 %v12374_v61, %v4099_v28  ;;  %9227 = vmatprep.mubr.msk.f32.mxu0 %vm1599_vm0, %v4320_v42  ;;  %v12498_v28 = vpop.permute.xlu0 %3348 }
 0x448   :  { %9228 = vmatmul.mubr.msk.f32.gmra.mrb[78].mxu0 %vm1599_vm0, %v4321_v49  ;;  %v4323_v39 = vmax.f32 %v4105_v0, 0.0 }
 0x449   :  { %v4322_v46 = vmax.f32 %v4100_v18, 0.0  ;;  %v9119_v15 = vpop.f32.mrb[62].mxu1 }
 0x44a   :  { %v4115_v36 = vadd.f32 %v9119_v15, %v12374_v61  ;;  %v4109_v21 = vpop.f32.mrb[63].mxu1  ;;  %v12504_v15 = vpop.permute.xlu1 %6821 }
 0x44b   :  { %v4110_v5 = vadd.f32 %v12374_v61, %v4109_v21  ;;  %9230 = vmatprep.mubr.msk.f32.mxu0 %vm1599_vm0, %v4322_v46  ;;  %15395 = vst [vmem:[#allocation72_spill] sm:$0xff] %v12504_v15  ;;  %v12506_v34 = vpop.permute.xlu0 %3366 }
 0x44c   :  { %9231 = vmatmul.mubr.msk.f32.gmra.mrb[80].mxu0 %vm1599_vm0, %v4323_v39  ;;  %v4325_v41 = vmax.f32 %v4115_v36, 0.0 }
 0x44d   :  { %v4324_v55 = vmax.f32 %v4110_v5, 0.0  ;;  %v9122_v42 = vpop.f32.mrb[64].mxu1 }
 0x44e   :  { %v4125_v49 = vadd.f32 %v9122_v42, %v12374_v61  ;;  %v4119_v18 = vpop.f32.mrb[65].mxu1 }
 0x44f   :  { %v4120_v0 = vadd.f32 %v12374_v61, %v4119_v18  ;;  %9233 = vmatprep.mubr.msk.f32.mxu0 %vm1599_vm0, %v4324_v55 }
 0x450   :  { %9234 = vmatmul.mubr.msk.f32.gmra.mrb[82].mxu0 %vm1599_vm0, %v4325_v41  ;;  %v4327_v39 = vmax.f32 %v4125_v49, 0.0  ;;  %v12517_v49 = vpop.permute.xlu0 %3368 }
 0x451   :  { %v4326_v21 = vmax.f32 %v4120_v0, 0.0  ;;  %v9125_v46 = vpop.f32.mrb[66].mxu1  ;;  %v12513_v0 = vpop.permute.xlu1 %6828 }
 0x452   :  { %v4135_v5 = vadd.f32 %v9125_v46, %v12374_v61  ;;  %v4129_v56 = vpop.f32.mrb[67].mxu1  ;;  %15396 = vst [vmem:[#allocation73_spill] sm:$0xff] %v12513_v0 }
 0x453   :  { %v4130_v36 = vadd.f32 %v12374_v61, %v4129_v56  ;;  %9236 = vmatprep.mubr.msk.f32.mxu0 %vm1599_vm0, %v4326_v21 }
 0x454   :  { %9237 = vmatmul.mubr.msk.f32.gmra.mrb[84].mxu0 %vm1599_vm0, %v4327_v39  ;;  %v4329_v18 = vmax.f32 %v4135_v5, 0.0  ;;  %v12526_v0 = vpop.permute.xlu0 %3362 }
 0x455   :  { %v4328_v42 = vmax.f32 %v4130_v36, 0.0  ;;  %v9128_v55 = vpop.f32.mrb[68].mxu1 }
 0x456   :  { %v4145_v41 = vadd.f32 %v9128_v55, %v12374_v61  ;;  %v4139_v15 = vpop.f32.mrb[69].mxu1  ;;  %v12524_v55 = vpop.permute.xlu1 %6835 }
 0x457   :  { %v4140_v16 = vadd.f32 %v12374_v61, %v4139_v15  ;;  %9239 = vmatprep.mubr.msk.f32.mxu0 %vm1599_vm0, %v4328_v42  ;;  %15397 = vst [vmem:[#allocation74_spill] sm:$0xff] %v12524_v55 }
 0x458   :  { %9240 = vmatmul.mubr.msk.f32.gmra.mrb[86].mxu0 %vm1599_vm0, %v4329_v18  ;;  %v4331_v46 = vmax.f32 %v4145_v41, 0.0 }
 0x459   :  { %v4330_v56 = vmax.f32 %v4140_v16, 0.0  ;;  %v9131_v21 = vpop.f32.mrb[70].mxu1 }
 0x45a   :  { %v4155_v39 = vadd.f32 %v9131_v21, %v12374_v61  ;;  %v4149_v36 = vpop.f32.mrb[71].mxu1 }
 0x45b   :  { %v4150_v5 = vadd.f32 %v12374_v61, %v4149_v36  ;;  %9242 = vmatprep.mubr.msk.f32.mxu0 %vm1599_vm0, %v4330_v56 }
 0x45c   :  { %9243 = vmatmul.mubr.msk.f32.gmra.mrb[88].mxu0 %vm1599_vm0, %v4331_v46  ;;  %v4333_v11 = vmax.f32 %v4155_v39, 0.0  ;;  %v12537_v39 = vpop.permute.xlu0 %3370 }
 0x45d   :  { %v4332_v15 = vmax.f32 %v4150_v5, 0.0  ;;  %v9134_v42 = vpop.f32.mrb[72].mxu1  ;;  %v12533_v5 = vpop.permute.xlu1 %6863 }
 0x45e   :  { %v4165_v16 = vadd.f32 %v9134_v42, %v12374_v61  ;;  %v4159_v18 = vpop.f32.mrb[73].mxu1  ;;  %15398 = vst [vmem:[#allocation75_spill] sm:$0xff] %v12533_v5 }
 0x45f   :  { %v4160_v41 = vadd.f32 %v12374_v61, %v4159_v18  ;;  %9245 = vmatprep.mubr.msk.f32.mxu0 %vm1599_vm0, %v4332_v15 }
 0x460   :  { %9246 = vmatmul.mubr.msk.f32.gmra.mrb[90].mxu0 %vm1599_vm0, %v4333_v11  ;;  %v4335_v36 = vmax.f32 %v4165_v16, 0.0  ;;  %v12546_v5 = vpop.permute.xlu0 %3374 }
 0x461   :  { %v4334_v21 = vmax.f32 %v4160_v41, 0.0  ;;  %v9137_v56 = vpop.f32.mrb[74].mxu1 }
 0x462   :  { %v4175_v46 = vadd.f32 %v9137_v56, %v12374_v61  ;;  %v4169_v55 = vpop.f32.mrb[75].mxu1  ;;  %v12544_v56 = vpop.permute.xlu1 %6877 }
 0x463   :  { %v4170_v19 = vadd.f32 %v12374_v61, %v4169_v55  ;;  %9248 = vmatprep.mubr.msk.f32.mxu0 %vm1599_vm0, %v4334_v21  ;;  %15399 = vst [vmem:[#allocation76_spill] sm:$0xff] %v12544_v56 }
 0x464   :  { %9249 = vmatmul.mubr.msk.f32.gmra.mrb[92].mxu0 %vm1599_vm0, %v4335_v36  ;;  %v4337_v18 = vmax.f32 %v4175_v46, 0.0 }
 0x465   :  { %v4336_v42 = vmax.f32 %v4170_v19, 0.0  ;;  %v9140_v15 = vpop.f32.mrb[76].mxu1 }
 0x466   :  { %v4185_v11 = vadd.f32 %v9140_v15, %v12374_v61  ;;  %v4179_v41 = vpop.f32.mrb[77].mxu1 }
 0x467   :  { %v4180_v16 = vadd.f32 %v12374_v61, %v4179_v41  ;;  %9251 = vmatprep.mubr.msk.f32.mxu0 %vm1599_vm0, %v4336_v42 }
 0x468   :  { %9252 = vmatmul.mubr.msk.f32.gmra.mrb[94].mxu0 %vm1599_vm0, %v4337_v18  ;;  %v4339_v1 = vmax.f32 %v4185_v11, 0.0  ;;  %v12557_v11 = vpop.permute.xlu0 %3384 }
 0x469   :  { %v4338_v55 = vmax.f32 %v4180_v16, 0.0  ;;  %v9143_v21 = vpop.f32.mrb[78].mxu1  ;;  %v12553_v16 = vpop.permute.xlu1 %6891 }
 0x46a   :  { %v4195_v19 = vadd.f32 %v9143_v21, %v12374_v61  ;;  %v4189_v36 = vpop.f32.mrb[79].mxu1  ;;  %15400 = vst [vmem:[#allocation77_spill] sm:$0xff] %v12553_v16 }
 0x46b   :  { %v4190_v46 = vadd.f32 %v12374_v61, %v4189_v36  ;;  %9254 = vmatprep.mubr.msk.f32.mxu0 %vm1599_vm0, %v4338_v55 }
 0x46c   :  { %9255 = vmatmul.mubr.msk.f32.gmra.mrb[96].mxu0 %vm1599_vm0, %v4339_v1  ;;  %v4341_v41 = vmax.f32 %v4195_v19, 0.0  ;;  %v12566_v16 = vpop.permute.xlu0 %3378 }
 0x46d   :  { %v4340_v15 = vmax.f32 %v4190_v46, 0.0  ;;  %v9146_v42 = vpop.f32.mrb[80].mxu1 }
 0x46e   :  { %v4205_v18 = vadd.f32 %v9146_v42, %v12374_v61  ;;  %v4199_v56 = vpop.f32.mrb[81].mxu1  ;;  %v12564_v42 = vpop.permute.xlu1 %3352 }
 0x46f   :  { %v4200_v30 = vadd.f32 %v12374_v61, %v4199_v56  ;;  %9257 = vmatprep.mubr.msk.f32.mxu0 %vm1599_vm0, %v4340_v15 }
 0x470   :  { %9258 = vmatmul.mubr.msk.f32.gmra.mrb[98].mxu0 %vm1599_vm0, %v4341_v41  ;;  %v4343_v36 = vmax.f32 %v4205_v18, 0.0 }
 0x471   :  { %v4342_v21 = vmax.f32 %v4200_v30, 0.0  ;;  %v9149_v55 = vpop.f32.mrb[82].mxu1 }
 0x472   :  { %v4215_v1 = vadd.f32 %v9149_v55, %v12374_v61  ;;  %v4209_v46 = vpop.f32.mrb[83].mxu1 }
 0x473   :  { %v4210_v19 = vadd.f32 %v12374_v61, %v4209_v46  ;;  %9260 = vmatprep.mubr.msk.f32.mxu0 %vm1599_vm0, %v4342_v21 }
 0x474   :  { %9261 = vmatmul.mubr.msk.f32.gmra.mrb[100].mxu0 %vm1599_vm0, %v4343_v36  ;;  %v4345_v4 = vmax.f32 %v4215_v1, 0.0  ;;  %v12577_v1 = vpop.permute.xlu0 %3386 }
 0x475   :  { %v4344_v56 = vmax.f32 %v4210_v19, 0.0  ;;  %v9152_v15 = vpop.f32.mrb[84].mxu1  ;;  %v12573_v19 = vpop.permute.xlu1 %3354 }
 0x476   :  { %v4225_v30 = vadd.f32 %v9152_v15, %v12374_v61  ;;  %v4219_v41 = vpop.f32.mrb[85].mxu1 }
 0x477   :  { %v4220_v18 = vadd.f32 %v12374_v61, %v4219_v41  ;;  %9263 = vmatprep.mubr.msk.f32.mxu0 %vm1599_vm0, %v4344_v56 }
 0x478   :  { %9264 = vmatmul.mubr.msk.f32.gmra.mrb[102].mxu0 %vm1599_vm0, %v4345_v4  ;;  %v4347_v46 = vmax.f32 %v4225_v30, 0.0  ;;  %v12584_v30 = vpop.permute.xlu0 %3390 }
 0x479   :  { %v4346_v55 = vmax.f32 %v4220_v18, 0.0  ;;  %v9155_v21 = vpop.f32.mrb[86].mxu1  ;;  %v12582_v4 = vpop.permute.xlu1 %3356 }
 0x47a   :  { %v4235_v36 = vadd.f32 %v9155_v21, %v12374_v61  ;;  %v4229_v17 = vpop.f32.mrb[87].mxu1 }
 0x47b   :  { %v4230_v27 = vadd.f32 %v12374_v61, %v4229_v17  ;;  %9266 = vmatprep.mubr.msk.f32.mxu0 %vm1599_vm0, %v4346_v55 }
 0x47c   :  { %9267 = vmatmul.mubr.msk.f32.gmra.mrb[104].mxu0 %vm1599_vm0, %v4347_v46  ;;  %v4349_v56 = vmax.f32 %v4235_v36, 0.0  ;;  %v12586_v41 = vpop.permute.xlu0 %3400 }
 0x47d   :  { %v4348_v15 = vmax.f32 %v4230_v27, 0.0  ;;  %v12588_v18 = vpop.permute.xlu1 %3358 }
 0x47f   :  { %9269 = vmatprep.mubr.msk.f32.mxu0 %vm1599_vm0, %v4348_v15 }
 0x480   :  { %9270 = vmatmul.mubr.msk.f32.gmra.mrb[106].mxu0 %vm1599_vm0, %v4349_v56  ;;  %v12590_v55 = vpop.permute.xlu0 %3394 }
 0x481   :  { %v12593_v27 = vpop.permute.xlu1 %3360 }
 0x484   :  { %v12597_v47 = vpop.permute.xlu0 %3402 }
 0x485   :  { %v12600_v32 = vpop.permute.xlu1 %3364 }
 0x488   :  { %v12602_v63 = vpop.permute.xlu0 %3406 }
 0x489   :  { %v12604_v14 = vpop.permute.xlu1 %3372 }
 0x48b   :  { %v9158_v17 = vpop.f32.mrb[88].mxu1 }
 0x48c   :  { %v4245_v21 = vadd.f32 %v9158_v17, %v12374_v61  ;;  %v4239_v46 = vpop.f32.mrb[89].mxu1  ;;  %v12606_v17 = vpop.permute.xlu0 %3416 }
 0x48d   :  { %v4240_v36 = vadd.f32 %v12374_v61, %v4239_v46  ;;  %v12608_v50 = vpop.permute.xlu1 %3382 }
 0x48e   :  { %v4351_v56 = vmax.f32 %v4245_v21, 0.0 }
 0x48f   :  { %v4350_v15 = vmax.f32 %v4240_v36, 0.0 }
 0x490   :  { %v12611_v36 = vpop.permute.xlu0 %7836 }
 0x491   :  { %9272 = vmatprep.mubr.msk.f32.mxu0 %vm1599_vm0, %v4350_v15  ;;  %15401 = vst [vmem:[#allocation78_spill] sm:$0xff] %v12611_v36  ;;  %v12615_v31 = vpop.permute.xlu1 %3376 }
 0x492   :  { %9273 = vmatmul.mubr.msk.f32.gmra.mrb[108].mxu0 %vm1599_vm0, %v4351_v56 }
 0x494   :  { %v12618_v8 = vpop.permute.xlu0 %3412 }
 0x495   :  { %v12622_v20 = vpop.permute.xlu1 %3380 }
 0x498   :  { %v12620_v45 = vpop.permute.xlu0 %3420 }
 0x499   :  { %v12626_v38 = vpop.permute.xlu1 %3388 }
 0x49d   :  { %v12632_v29 = vpop.permute.xlu1 %3398 }
 0x49e   :  { %v9161_v53 = vpop.f32.mrb[90].mxu1 }
 0x49f   :  { %v4255_v46 = vadd.f32 %v9161_v53, %v12374_v61  ;;  %v4249_v21 = vpop.f32.mrb[91].mxu1  ;;  %v12624_v53 = vpop.permute.xlu0 %3422 }
 0x4a0   :  { %v4250_v15 = vadd.f32 %v12374_v61, %v4249_v21 }
 0x4a1   :  { %v4353_v56 = vmax.f32 %v4255_v46, 0.0  ;;  %v12638_v6 = vpop.permute.xlu1 %3392 }
 0x4a2   :  { %v4352_v40 = vmax.f32 %v4250_v15, 0.0 }
 0x4a3   :  { %v12630_v15 = vpop.permute.xlu0 %3432 }
 0x4a4   :  { %9275 = vmatprep.mubr.msk.f32.mxu0 %vm1599_vm0, %v4352_v40 }
 0x4a5   :  { %9276 = vmatmul.mubr.msk.f32.gmra.mrb[110].mxu0 %vm1599_vm0, %v4353_v56 }
 0x4a7   :  { %v12636_v60 = vpop.permute.xlu0 %3426 }
 0x4ab   :  { %v12640_v7 = vpop.permute.xlu0 %3434 }
 0x4b1   :  { %v9164_v36 = vpop.f32.mrb[92].mxu1 }
 0x4b2   :  { %v4265_v21 = vadd.f32 %v9164_v36, %v12374_v61  ;;  %v4259_v46 = vpop.f32.mrb[93].mxu1  ;;  %v12642_v36 = vpop.permute.xlu1 %3396 }
 0x4b3   :  { %v4260_v40 = vadd.f32 %v12374_v61, %v4259_v46  ;;  %v12644_v46 = vpop.permute.xlu0 %3438 }
 0x4b4   :  { %v4355_v56 = vmax.f32 %v4265_v21, 0.0 }
 0x4b5   :  { %v4354_v59 = vmax.f32 %v4260_v40, 0.0 }
 0x4b7   :  { %9278 = vmatprep.mubr.msk.f32.mxu0 %vm1599_vm0, %v4354_v59  ;;  %v12648_v59 = vpop.permute.xlu0 %3448 }
 0x4b8   :  { %9279 = vmatmul.mubr.msk.f32.gmra.mrb[112].mxu0 %vm1599_vm0, %v4355_v56  ;;  %v12650_v56 = vpop.permute.xlu1 %3404 }
 0x4bb   :  { %v3443_v62 = vpop.permute.xlu0 %3442 }
 0x4bc   :  { %v12654_v25 = vpop.permute.xlu1 %3414 }
 0x4c4   :  { %v9167_v52 = vpop.f32.mrb[94].mxu1 }
 0x4c5   :  { %v4275_v40 = vadd.f32 %v9167_v52, %v12374_v61  ;;  %v4269_v21 = vpop.f32.mrb[95].mxu1  ;;  %v9800_v52 = vld [vmem:[%s15178_s2 + $0x8] sm:$0xff] }
 0x4c6   :  { %v4270_v26 = vadd.f32 %v12374_v61, %v4269_v21  ;;  %v12660_v13 = vadd.f32 %v9800_v52, %v12489_v23  ;;  %v9803_v21 = vld [vmem:[%s15178_s2 + $0x50] sm:$0xff]  ;;  %v9804_v52 = vld [vmem:[%s15178_s2 + $0x38] sm:$0xff] }
 0x4c7   :  { %v4357_v33 = vmax.f32 %v4275_v40, 0.0  ;;  %v12678_v23 = vadd.f32 %v9803_v21, %v12517_v49  ;;  %v3451_v21 = vpop.permute.xlu0 %3450 }
 0x4c8   :  { %v4356_v35 = vmax.f32 %v4270_v26, 0.0  ;;  %15402 = vst [vmem:[#allocation79_spill] sm:$0xff] %v12660_v13  ;;  %v9801_v26 = vld [vmem:[%s15178_s2] sm:$0xff] }
 0x4c9   :  { %v12666_v40 = vadd.f32 %v9801_v26, %v12498_v28  ;;  %15405 = vst [vmem:[#allocation82_spill] sm:$0xff] %v12678_v23  ;;  %v12684_v28 = vadd.f32 %v9804_v52, %v12526_v0  ;;  %v9805_v26 = vld [vmem:[%s15178_s2 + $0x58] sm:$0xff]  ;;  %v12698_v23 = vpop.permute.xlu1 %3408  ;;  %v9807_v0 = vld [vmem:[%s15178_s2 + $0x90] sm:$0xff] }
 0x4ca   :  { %9281 = vmatprep.mubr.msk.f32.mxu0 %vm1599_vm0, %v4356_v35  ;;  %v12704_v52 = vadd.f32 %v9807_v0, %v12557_v11  ;;  %v9811_v0 = vld [vmem:[%s15178_s2 + $0xd0] sm:$0xff] }
 0x4cb   :  { %9282 = vmatmul.mubr.msk.f32.gmra.mrb[114].mxu0 %vm1599_vm0, %v4357_v33  ;;  %15403 = vst [vmem:[#allocation80_spill] sm:$0xff] %v12666_v40  ;;  %v9802_v33 = vld [vmem:[%s15178_s2 + $0x48] sm:$0xff]  ;;  %15406 = vst [vmem:[#allocation83_spill] sm:$0xff] %v12684_v28 }
 0x4cc   :  { %v12672_v35 = vadd.f32 %v9802_v33, %v12506_v34  ;;  %v12690_v34 = vadd.f32 %v9805_v26, %v12537_v39  ;;  %v9806_v33 = vld [vmem:[%s15178_s2 + $0x68] sm:$0xff]  ;;  %15409 = vst [vmem:[#allocation86_spill] sm:$0xff] %v12704_v52  ;;  %v9808_v39 = vld [vmem:[%s15178_s2 + $0x78] sm:$0xff] }
 0x4cd   :  { %v12696_v49 = vadd.f32 %v9806_v33, %v12546_v5  ;;  %v12710_v26 = vadd.f32 %v9808_v39, %v12566_v16  ;;  %v9809_v5 = vld [vmem:[%s15178_s2 + $0x98] sm:$0xff]  ;;  %v12728_v16 = vadd.f32 %v9811_v0, %v12586_v41 }
 0x4ce   :  { %15404 = vst [vmem:[#allocation81_spill] sm:$0xff] %v12672_v35  ;;  %15407 = vst [vmem:[#allocation84_spill] sm:$0xff] %v12690_v34  ;;  %v12716_v33 = vadd.f32 %v9809_v5, %v12577_v1  ;;  %v9812_v39 = vld [vmem:[%s15178_s2 + $0xb8] sm:$0xff] }
 0x4cf   :  { %15408 = vst [vmem:[#allocation85_spill] sm:$0xff] %v12696_v49  ;;  %15410 = vst [vmem:[#allocation87_spill] sm:$0xff] %v12710_v26  ;;  %v9810_v49 = vld [vmem:[%s15178_s2 + $0xa8] sm:$0xff]  ;;  %v12734_v1 = vadd.f32 %v9812_v39, %v12590_v55  ;;  %v9813_v5 = vld [vmem:[%s15178_s2 + $0xd8] sm:$0xff] }
 0x4d0   :  { %15411 = vst [vmem:[#allocation88_spill] sm:$0xff] %v12716_v33  ;;  %v12722_v11 = vadd.f32 %v9810_v49, %v12584_v30  ;;  %15413 = vst [vmem:[#allocation90_spill] sm:$0xff] %v12728_v16  ;;  %v12740_v30 = vadd.f32 %v9813_v5, %v12597_v47  ;;  %v9814_v49 = vld [vmem:[%s15178_s2 + $0xe8] sm:$0xff]  ;;  %v9815_v55 = vld [vmem:[%s15178_s2 + $0x110] sm:$0xff] }
 0x4d1   :  { %15414 = vst [vmem:[#allocation91_spill] sm:$0xff] %v12734_v1  ;;  %v12746_v41 = vadd.f32 %v9814_v49, %v12602_v63  ;;  %v12752_v39 = vadd.f32 %v9815_v55, %v12606_v17  ;;  %v9816_v47 = vld [vmem:[%s15178_s2 + $0x100] sm:$0xff]  ;;  %v9818_v17 = vld [vmem:[%s15178_s2 + $0x128] sm:$0xff] }
 0x4d2   :  { %15412 = vst [vmem:[#allocation89_spill] sm:$0xff] %v12722_v11  ;;  %15415 = vst [vmem:[#allocation92_spill] sm:$0xff] %v12740_v30  ;;  %v12758_v5 = vadd.f32 %v9816_v47, %v12618_v8  ;;  %v9817_v63 = vld [vmem:[%s15178_s2 + $0x120] sm:$0xff]  ;;  %v12771_v55 = vadd.f32 %v9818_v17, %v12624_v53  ;;  %v9819_v8 = vld [vmem:[%s15178_s2 + $0x150] sm:$0xff] }
 0x4d3   :  { %15416 = vst [vmem:[#allocation93_spill] sm:$0xff] %v12746_v41  ;;  %15417 = vst [vmem:[#allocation94_spill] sm:$0xff] %v12752_v39  ;;  %v12764_v49 = vadd.f32 %v9817_v63, %v12620_v45  ;;  %v12777_v47 = vadd.f32 %v9819_v8, %v12630_v15  ;;  %v9820_v45 = vld [vmem:[%s15178_s2 + $0x138] sm:$0xff]  ;;  %v3455_v63 = vpop.permute.xlu0 %3454  ;;  %v12789_v53 = vld [vmem:[%s15182_s12] ss:$0 sm:$0xff] }
 0x4d4   :  { %15418 = vst [vmem:[#allocation95_spill] sm:$0xff] %v12758_v5  ;;  %15420 = vst [vmem:[#allocation97_spill] sm:$0xff] %v12771_v55  ;;  %v9821_v15 = vld [vmem:[%s15178_s2 + $0x158] sm:$0xff]  ;;  %v9842_v55 = vld [vmem:[%s15178_s2 + $0x108] sm:$0xff] }
 0x4d5   :  { %15419 = vst [vmem:[#allocation96_spill] sm:$0xff] %v12764_v49  ;;  %15421 = vst [vmem:[#allocation98_spill] sm:$0xff] %v12777_v47  ;;  %v12795_v17 = vadd.f32 %v9821_v15, %v12640_v7  ;;  %v9825_v15 = vld [vmem:[%s15178_s2 + $0x178] sm:$0xff]  ;;  %v9840_v47 = vld [vmem:[%s15178_s2 + $0xc0] sm:$0xff]  ;;  %v12936_v39 = vadd.f32 %v9842_v55, %v12654_v25 }
 0x4d7   :  { %v9170_v0 = vpop.f32.mrb[96].mxu1  ;;  %15423 = vst [vmem:[#allocation100_spill] sm:$0xff] %v12795_v17  ;;  %15444 = vst [vmem:[#allocation121_spill] sm:$0xff] %v12936_v39 }
 0x4d8   :  { %v4285_v41 = vadd.f32 %v9170_v0, %v12374_v61  ;;  %v4279_v30 = vpop.f32.mrb[97].mxu1  ;;  %v12783_v0 = vadd.f32 %v9820_v45, %v12636_v60  ;;  %v9822_v60 = vld [vmem:[%s15178_s2 + $0x168] sm:$0xff]  ;;  %v9824_v45 = vld [vmem:[%s15178_s2 + $0x10] sm:$0xff] }
 0x4d9   :  { %v4280_v49 = vadd.f32 %v12374_v61, %v4279_v30  ;;  %v12801_v8 = vadd.f32 %v9822_v60, %v12644_v46  ;;  %v9823_v61 = vld [vmem:[%s15178_s2 + $0x190] sm:$0xff]  ;;  %v12813_v7 = vadd.f32 %v9824_v45, %v12564_v42  ;;  %v12818_v46 = vadd.f32 %v9825_v15, %v3443_v62  ;;  %v9826_v60 = vld [vmem:[%s15178_s2 + $0x18] sm:$0xff]  ;;  %v3411_v42 = vpop.permute.xlu1 %3410  ;;  %v9828_v62 = vld [vmem:[%s15178_s2 + $0x20] sm:$0xff] }
 0x4da   :  { %15422 = vst [vmem:[#allocation99_spill] sm:$0xff] %v12783_v0  ;;  %v12807_v30 = vadd.f32 %v9823_v61, %v12648_v59  ;;  %v12824_v59 = vadd.f32 %v9826_v60, %v12573_v19  ;;  %v9827_v61 = vld [vmem:[%s15178_s2 + $0x198] sm:$0xff]  ;;  %v12835_v15 = vadd.f32 %v9828_v62, %v12582_v4  ;;  %v9829_v19 = vld [vmem:[%s15178_s2 + $0x28] sm:$0xff]  ;;  %v9831_v4 = vld [vmem:[%s15178_s2 + $0x30] sm:$0xff]  ;;  %v12921_v0 = vadd.f32 %v9840_v47, %v12642_v36 }
 0x4db   :  { %15424 = vst [vmem:[#allocation101_spill] sm:$0xff] %v12801_v8  ;;  %15426 = vst [vmem:[#allocation103_spill] sm:$0xff] %v12813_v7  ;;  %v4358_v45 = vmax.f32 %v4280_v49, 0.0  ;;  %v9181_v8 = vpop.f32.mrb[46].mxu0  ;;  %v12841_v60 = vadd.f32 %v9829_v19, %v12588_v18  ;;  %v12855_v62 = vadd.f32 %v9831_v4, %v12593_v27  ;;  %v9832_v18 = vld [vmem:[%s15178_s2 + $0x40] sm:$0xff]  ;;  %v9843_v36 = vld [vmem:[%s15178_s2 + $0xf0] sm:$0xff] }
 0x4dc   :  { %15425 = vst [vmem:[#allocation102_spill] sm:$0xff] %v12807_v30  ;;  %15427 = vst [vmem:[#allocation104_spill] sm:$0xff] %v12818_v46  ;;  %v12829_v30 = vadd.f32 %v9827_v61, %v3451_v21  ;;  %v4359_v46 = vmax.f32 %v4285_v41, 0.0  ;;  %v12844_v21 = vadd.f32 %v9181_v8, %v12789_v53  ;;  %v4653_v49 = vpop.f32.mrb[47].mxu0  ;;  %v9830_v61 = vld [vmem:[%s15178_s2 + $0x1a8] sm:$0xff]  ;;  %v12861_v41 = vadd.f32 %v9832_v18, %v12600_v32  ;;  %v3465_v8 = vpop.permute.xlu0 %3464 }
 0x4dd   :  { %15428 = vst [vmem:[#allocation105_spill] sm:$0xff] %v12824_v59  ;;  %15430 = vst [vmem:[#allocation107_spill] sm:$0xff] %v12835_v15  ;;  %v12864_v19 = vadd.f32 %v12789_v53, %v4653_v49  ;;  %9284 = vmatprep.mubr.msk.f32.mxu0 %vm1599_vm0, %v4358_v45  ;;  %v9835_v49 = vld [vmem:[%s15178_s2 + $0x70] sm:$0xff]  ;;  %v12942_v47 = vadd.f32 %v9843_v36, %v12698_v23  ;;  %v9845_v23 = vld [vmem:[%s15178_s2 + $0x118] sm:$0xff] }
 0x4de   :  { %15429 = vst [vmem:[#allocation106_spill] sm:$0xff] %v12829_v30  ;;  %15431 = vst [vmem:[#allocation108_spill] sm:$0xff] %v12841_v60  ;;  %v12849_v30 = vadd.f32 %v9830_v61, %v3455_v63  ;;  %v9833_v63 = vld [vmem:[%s15178_s2 + $0x60] sm:$0xff]  ;;  %v9834_v61 = vld [vmem:[%s15178_s2 + $0x88] sm:$0xff]  ;;  %v12883_v45 = vadd.f32 %v9835_v49, %v12615_v31  ;;  %v5019_v4 = vsel %vm1599_vm0, %v12844_v21, -inf  ;;  %9285 = vmatmul.mubr.msk.f32.gmra.mrb[116].mxu0 %vm1599_vm0, %v4359_v46 }
 0x4df   :  { %15433 = vst [vmem:[#allocation110_spill] sm:$0xff] %v12855_v62  ;;  %15434 = vst [vmem:[#allocation111_spill] sm:$0xff] %v12861_v41  ;;  %v12871_v27 = vadd.f32 %v9833_v63, %v12604_v14  ;;  %v12877_v32 = vadd.f32 %v9834_v61, %v12608_v50  ;;  %v9836_v14 = vld [vmem:[%s15178_s2 + $0x80] sm:$0xff]  ;;  %v5020_v31 = vrot.slane %v5019_v4, 4  ;;  %v5012_v61 = vsel %vm1599_vm0, %v12864_v19, -inf  ;;  %v9184_v49 = vpop.f32.mrb[48].mxu0 }
 0x4e0   :  { %15432 = vst [vmem:[#allocation109_spill] sm:$0xff] %v12849_v30  ;;  %15437 = vst [vmem:[#allocation114_spill] sm:$0xff] %v12883_v45  ;;  %v12892_v18 = vadd.f32 %v9836_v14, %v12622_v20  ;;  %v9837_v50 = vld [vmem:[%s15178_s2 + $0xa0] sm:$0xff]  ;;  %v9838_v46 = vld [vmem:[%s15178_s2 + $0xc8] sm:$0xff]  ;;  %v4663_v17 = vpop.f32.mrb[49].mxu0 }
 0x4e1   :  { %15435 = vst [vmem:[#allocation112_spill] sm:$0xff] %v12871_v27  ;;  %15436 = vst [vmem:[#allocation113_spill] sm:$0xff] %v12877_v32  ;;  %v12898_v63 = vadd.f32 %v9837_v50, %v12626_v38  ;;  %v12906_v30 = vadd.f32 %v9838_v46, %v12632_v29  ;;  %v9839_v20 = vld [vmem:[%s15178_s2 + $0xb0] sm:$0xff]  ;;  %v5013_v38 = vrot.slane %v5012_v61, 4  ;;  %v12915_v50 = vadd.f32 %v9184_v49, %v12789_v53  ;;  %v9841_v29 = vld [vmem:[%s15178_s2 + $0xe0] sm:$0xff] }
 0x4e2   :  { %15438 = vst [vmem:[#allocation115_spill] sm:$0xff] %v12892_v18  ;;  %v12912_v14 = vadd.f32 %v9839_v20, %v12638_v6  ;;  %15442 = vst [vmem:[#allocation119_spill] sm:$0xff] %v12921_v0  ;;  %v12927_v46 = vadd.f32 %v9841_v29, %v12650_v56  ;;  %v3419_v6 = vpop.permute.xlu1 %3418  ;;  %v5021_v20 = vmax.f32 %v5019_v4, %v5020_v31  ;;  %v3459_v29 = vpop.permute.xlu0 %3458 }
 0x4e3   :  { %15439 = vst [vmem:[#allocation116_spill] sm:$0xff] %v12898_v63  ;;  %15440 = vst [vmem:[#allocation117_spill] sm:$0xff] %v12906_v30  ;;  %v12930_v49 = vadd.f32 %v12789_v53, %v4663_v17  ;;  %v5014_v56 = vmax.f32 %v5012_v61, %v5013_v38  ;;  %v5033_v4 = vsel %vm1599_vm0, %v12915_v50, -inf  ;;  %v9844_v17 = vld [vmem:[%s15178_s2 + $0xf8] sm:$0xff]  ;;  %v9187_v39 = vpop.f32.mrb[50].mxu0  ;;  %v12956_v61 = vadd.f32 %v9845_v23, %v3419_v6 }
 0x4e4   :  { %15441 = vst [vmem:[#allocation118_spill] sm:$0xff] %v12912_v14  ;;  %15443 = vst [vmem:[#allocation120_spill] sm:$0xff] %v12927_v46  ;;  %v12949_v31 = vadd.f32 %v9844_v17, %v3411_v42  ;;  %v5022_v25 = vrot.slane %v5021_v20, 2  ;;  %v5034_v55 = vrot.slane %v5033_v4, 4  ;;  %v4673_v42 = vpop.f32.mrb[51].mxu0  ;;  %v9846_v17 = vld [vmem:[%s15178_s2 + $0x1d0] sm:$0xff] }
 0x4e5   :  { %15445 = vst [vmem:[#allocation122_spill] sm:$0xff] %v12942_v47  ;;  %v5026_v5 = vsel %vm1599_vm0, %v12930_v49, -inf  ;;  %15447 = vst [vmem:[#allocation124_spill] sm:$0xff] %v12956_v61  ;;  %v5015_v38 = vrot.slane %v5014_v56, 2  ;;  %v12959_v47 = vadd.f32 %v9187_v39, %v12789_v53  ;;  %v12967_v30 = vadd.f32 %v12789_v53, %v4673_v42  ;;  %v9847_v6 = vld [vmem:[%s15178_s2 + $0x1b8] sm:$0xff] }
 0x4e6   :  { %15446 = vst [vmem:[#allocation123_spill] sm:$0xff] %v12949_v31  ;;  %v5027_v36 = vrot.slane %v5026_v5, 4  ;;  %v12964_v31 = vadd.f32 %v9846_v17, %v3465_v8  ;;  %v5023_v46 = vmax.f32 %v5021_v20, %v5022_v25  ;;  %v5035_v16 = vmax.f32 %v5033_v4, %v5034_v55 }
 0x4e7   :  { %v12972_v23 = vadd.f32 %v9847_v6, %v3459_v29  ;;  %v5016_v39 = vmax.f32 %v5014_v56, %v5015_v38  ;;  %v5047_v0 = vsel %vm1599_vm0, %v12959_v47, -inf  ;;  %v5040_v20 = vsel %vm1599_vm0, %v12967_v30, -inf  ;;  %v9190_v4 = vpop.f32.mrb[52].mxu0 }
 0x4e8   :  { %15448 = vst [vmem:[#allocation125_spill] sm:$0xff] %v12964_v31  ;;  %v5028_v61 = vmax.f32 %v5026_v5, %v5027_v36  ;;  %v5024_v14 = vrot.slane %v5023_v46, 1  ;;  %v5036_v63 = vrot.slane %v5035_v16, 2  ;;  %v5048_v8 = vrot.slane %v5047_v0, 4  ;;  %v4683_v29 = vpop.f32.mrb[53].mxu0 }
 0x4e9   :  { %15449 = vst [vmem:[#allocation126_spill] sm:$0xff] %v12972_v23  ;;  %v5017_v25 = vrot.slane %v5016_v39, 1  ;;  %v5041_v42 = vrot.slane %v5040_v20, 4  ;;  %v12979_v17 = vadd.f32 %v9190_v4, %v12789_v53  ;;  %v12982_v38 = vadd.f32 %v12789_v53, %v4683_v29 }
 0x4ea   :  { %v5029_v55 = vrot.slane %v5028_v61, 2  ;;  %v5025_v6 = vmax.f32 %v5023_v46, %v5024_v14  ;;  %v5037_v56 = vmax.f32 %v5035_v16, %v5036_v63  ;;  %v5049_v5 = vmax.f32 %v5047_v0, %v5048_v8 }
 0x4eb   :  { %v5018_v36 = vmax.f32 %v5016_v39, %v5017_v25  ;;  %v5042_v23 = vmax.f32 %v5040_v20, %v5041_v42  ;;  %v5061_v1 = vsel %vm1599_vm0, %v12979_v17, -inf  ;;  %v9193_v4 = vpop.f32.mrb[54].mxu0  ;;  %v5054_v0 = vsel %vm1599_vm0, %v12982_v38, -inf }
 0x4ec   :  { %v5030_v31 = vmax.f32 %v5028_v61, %v5029_v55  ;;  %v5517_v11 = vsub.f32 %v12844_v21, %v5025_v6  ;;  %v5038_v33 = vrot.slane %v5037_v56, 1  ;;  %v5050_v52 = vrot.slane %v5049_v5, 2  ;;  %v4693_v63 = vpop.f32.mrb[55].mxu0 }
 0x4ed   :  { %v5062_v32 = vrot.slane %v5061_v1, 4  ;;  %v5516_v18 = vsub.f32 %v12864_v19, %v5018_v36  ;;  %v5043_v16 = vrot.slane %v5042_v23, 2  ;;  %v5055_v21 = vrot.slane %v5054_v0, 4 }
 0x4ee   :  { %v5031_v14 = vrot.slane %v5030_v31, 1  ;;  %v5590_v46 = vmul.f32 1.442695, %v5517_v11  ;;  %v5039_v61 = vmax.f32 %v5037_v56, %v5038_v33  ;;  %v5051_v39 = vmax.f32 %v5049_v5, %v5050_v52 }
 0x4ef   :  { %v5063_v8 = vmax.f32 %v5061_v1, %v5062_v32  ;;  %v5588_v20 = vmul.f32 1.442695, %v5516_v18  ;;  %v5044_v55 = vmax.f32 %v5042_v23, %v5043_v16  ;;  %v9196_v19 = vpop.f32.mrb[56].mxu0  ;;  %v5056_v27 = vmax.f32 %v5054_v0, %v5055_v21 }
 0x4f0   :  { %v5032_v25 = vmax.f32 %v5030_v31, %v5031_v14  ;;  %9482 = vpow2.f32 %v5590_v46  ;;  %v5519_v42 = vsub.f32 %v12915_v50, %v5039_v61  ;;  %v5052_v29 = vrot.slane %v5051_v39, 1  ;;  %v4703_v26 = vpop.f32.mrb[57].mxu0 }
 0x4f1   :  { %v5064_v6 = vrot.slane %v5063_v8, 2  ;;  %9484 = vpow2.f32 %v5588_v20  ;;  %v5045_v45 = vrot.slane %v5044_v55, 1  ;;  %v12993_v1 = vadd.f32 %v9193_v4, %v12789_v53 }
 0x4f2   :  { %v5518_v36 = vsub.f32 %v12930_v49, %v5032_v25  ;;  %v5594_v11 = vmul.f32 1.442695, %v5519_v42  ;;  %v5053_v33 = vmax.f32 %v5051_v39, %v5052_v29  ;;  %v5057_v31 = vrot.slane %v5056_v27, 2 }
 0x4f3   :  { %v5065_v52 = vmax.f32 %v5063_v8, %v5064_v6  ;;  %v5046_v18 = vmax.f32 %v5044_v55, %v5045_v45  ;;  %v12996_v50 = vadd.f32 %v12789_v53, %v4693_v63  ;;  %v5075_v49 = vsel %vm1599_vm0, %v12993_v1, -inf  ;;  %v9199_v5 = vpop.f32.mrb[58].mxu0 }
 0x4f4   :  { %v5592_v32 = vmul.f32 1.442695, %v5518_v36  ;;  %9486 = vpow2.f32 %v5594_v11  ;;  %v5521_v23 = vsub.f32 %v12959_v47, %v5053_v33  ;;  %v5058_v16 = vmax.f32 %v5056_v27, %v5057_v31  ;;  %v13002_v0 = vpop.f32.mrb[59].mxu0 }
 0x4f5   :  { %v5066_v56 = vrot.slane %v5065_v52, 1  ;;  %v5520_v14 = vsub.f32 %v12967_v30, %v5046_v18  ;;  %v5076_v4 = vrot.slane %v5075_v49, 4  ;;  %v5068_v63 = vsel %vm1599_vm0, %v12996_v50, -inf }
 0x4f6   :  { %9488 = vpow2.f32 %v5592_v32  ;;  %v5598_v45 = vmul.f32 1.442695, %v5521_v23  ;;  %v13007_v61 = vadd.f32 %v9196_v19, %v12789_v53  ;;  %v5059_v39 = vrot.slane %v5058_v16, 1 }
 0x4f7   :  { %v5067_v46 = vmax.f32 %v5065_v52, %v5066_v56  ;;  %v5596_v47 = vmul.f32 1.442695, %v5520_v14  ;;  %v5077_v8 = vmax.f32 %v5075_v49, %v5076_v4  ;;  %v5069_v20 = vrot.slane %v5068_v63, 4  ;;  %v13015_v55 = vpop.f32.mrb[60].mxu0 }
 0x4f8   :  { %9490 = vpow2.f32 %v5598_v45  ;;  %v5089_v30 = vsel %vm1599_vm0, %v13007_v61, -inf  ;;  %v13013_v27 = vadd.f32 %v12789_v53, %v4703_v26  ;;  %v5060_v21 = vmax.f32 %v5058_v16, %v5059_v39  ;;  %v13017_v6 = vpop.f32.mrb[61].mxu0 }
 0x4f9   :  { %v5523_v25 = vsub.f32 %v12979_v17, %v5067_v46  ;;  %9492 = vpow2.f32 %v5596_v47  ;;  %v5078_v42 = vrot.slane %v5077_v8, 2  ;;  %v5070_v29 = vmax.f32 %v5068_v63, %v5069_v20 }
 0x4fa   :  { %v13019_v19 = vpop.eup %9482  ;;  %v5090_v11 = vrot.slane %v5089_v30, 4  ;;  %v5082_v17 = vsel %vm1599_vm0, %v13013_v27, -inf  ;;  %v13024_v33 = vadd.f32 %v9199_v5, %v12789_v53  ;;  %v5522_v32 = vsub.f32 %v12982_v38, %v5060_v21 }
 0x4fb   :  { %v5602_v36 = vmul.f32 1.442695, %v5523_v25  ;;  %v13026_v26 = vpop.eup %9484  ;;  %v5739_v52 = vsel %vm1599_vm0, %v13019_v19, 0.0  ;;  %v5079_v18 = vmax.f32 %v5077_v8, %v5078_v42  ;;  %v5071_v31 = vrot.slane %v5070_v29, 2  ;;  %v13033_v14 = vpop.f32.mrb[62].mxu0 }
 0x4fc   :  { %v5740_v23 = vrot.slane %v5739_v52, 4  ;;  %v5732_v56 = vsel %vm1599_vm0, %v13026_v26, 0.0  ;;  %v5091_v49 = vmax.f32 %v5089_v30, %v5090_v11  ;;  %v5600_v5 = vmul.f32 1.442695, %v5522_v32  ;;  %v13035_v46 = vpop.f32.mrb[63].mxu0 }
 0x4fd   :  { %9494 = vpow2.f32 %v5602_v36  ;;  %v5733_v16 = vrot.slane %v5732_v56, 4  ;;  %v5080_v4 = vrot.slane %v5079_v18, 1  ;;  %v5072_v45 = vmax.f32 %v5070_v29, %v5071_v31 }
 0x4fe   :  { %v13037_v63 = vpop.eup %9486  ;;  %v5741_v47 = vadd.f32 %v5740_v23, %v5739_v52  ;;  %v5092_v38 = vrot.slane %v5091_v49, 2  ;;  %v5083_v39 = vrot.slane %v5082_v17, 4  ;;  %v13041_v8 = vsel %vm1599_vm0, %v13024_v33, -inf }
 0x4ff   :  { %v5734_v25 = vadd.f32 %v5733_v16, %v5732_v56  ;;  %v5753_v30 = vsel %vm1599_vm0, %v13037_v63, 0.0  ;;  %9496 = vpow2.f32 %v5600_v5  ;;  %v5081_v21 = vmax.f32 %v5079_v18, %v5080_v4  ;;  %v13049_v52 = vpop.f32.mrb[64].mxu0 }
 0x500   :  { %v13043_v20 = vpop.eup %9488  ;;  %v5742_v42 = vrot.slane %v5741_v47, 2  ;;  %v5754_v29 = vrot.slane %v5753_v30, 4  ;;  %v5073_v11 = vrot.slane %v5072_v45, 1  ;;  %v5093_v34 = vmax.f32 %v5091_v49, %v5092_v38  ;;  %v13052_v35 = vpop.f32.mrb[65].mxu0 }
 0x501   :  { %v5746_v36 = vsel %vm1599_vm0, %v13043_v20, 0.0  ;;  %v5735_v32 = vrot.slane %v5734_v25, 2  ;;  %v5525_v23 = vsub.f32 %v12993_v1, %v5081_v21  ;;  %v5084_v4 = vmax.f32 %v5082_v17, %v5083_v39 }
 0x502   :  { %v5747_v31 = vrot.slane %v5746_v36, 4  ;;  %v13054_v56 = vpop.eup %9490  ;;  %v5743_v16 = vadd.f32 %v5742_v42, %v5741_v47  ;;  %v5755_v5 = vadd.f32 %v5754_v29, %v5753_v30  ;;  %v5074_v18 = vmax.f32 %v5072_v45, %v5073_v11 }
 0x503   :  { %v13056_v41 = vpop.eup %9492  ;;  %v5736_v62 = vadd.f32 %v5735_v32, %v5734_v25  ;;  %v5767_v15 = vsel %vm1599_vm0, %v13054_v56, 0.0  ;;  %v5606_v60 = vmul.f32 1.442695, %v5525_v23  ;;  %v13062_v38 = vpop.f32.mrb[66].mxu0  ;;  %v5085_v9 = vrot.slane %v5084_v4, 2 }
 0x504   :  { %v5748_v28 = vadd.f32 %v5747_v31, %v5746_v36  ;;  %v5744_v7 = vrot.slane %v5743_v16, 1  ;;  %v5756_v59 = vrot.slane %v5755_v5, 2  ;;  %v5768_v1 = vrot.slane %v5767_v15, 4  ;;  %v13064_v17 = vpop.f32.mrb[67].mxu0 }
 0x505   :  { %v5760_v49 = vsel %vm1599_vm0, %v13056_v41, 0.0  ;;  %v5737_v47 = vrot.slane %v5736_v62, 1  ;;  %9498 = vpow2.f32 %v5606_v60  ;;  %v5524_v29 = vsub.f32 %v12996_v50, %v5074_v18 }
 0x506   :  { %v5749_v30 = vrot.slane %v5748_v28, 2  ;;  %v5761_v45 = vrot.slane %v5760_v49, 4  ;;  %v5745_v25 = vadd.f32 %v5744_v7, %v5743_v16  ;;  %v5757_v21 = vadd.f32 %v5756_v59, %v5755_v5 }
 0x507   :  { %v13066_v39 = vpop.eup %9494  ;;  %v5769_v42 = vadd.f32 %v5768_v1, %v5767_v15  ;;  %v5738_v36 = vadd.f32 %v5737_v47, %v5736_v62  ;;  %v13071_v60 = vpop.f32.mrb[68].mxu0  ;;  %v5604_v15 = vmul.f32 1.442695, %v5524_v29 }
 0x508   :  { %15450 = vst [vmem:[#allocation127_spill] sm:$0xff] %v13066_v39  ;;  %v5750_v11 = vadd.f32 %v5749_v30, %v5748_v28  ;;  %v5762_v32 = vadd.f32 %v5761_v45, %v5760_v49  ;;  %v5781_v31 = vsel %vm1599_vm0, %v13066_v39, 0.0  ;;  %9500 = vrcp.f32 %v5745_v25  ;;  %v13075_v16 = vpop.f32.mrb[69].mxu0 }
 0x509   :  { %v5758_v23 = vrot.slane %v5757_v21, 1  ;;  %v5770_v40 = vrot.slane %v5769_v42, 2  ;;  %v5782_v13 = vrot.slane %v5781_v31, 4  ;;  %v13073_v48 = vpop.eup %9496  ;;  %9502 = vrcp.f32 %v5738_v36 }
 0x50a   :  { %15451 = vst [vmem:[#allocation128_spill] sm:$0xff] %v13073_v48  ;;  %v5751_v7 = vrot.slane %v5750_v11, 1  ;;  %v5763_v59 = vrot.slane %v5762_v32, 2  ;;  %v5774_v5 = vsel %vm1599_vm0, %v13073_v48, 0.0  ;;  %9504 = vpow2.f32 %v5604_v15 }
 0x50b   :  { %v5759_v62 = vadd.f32 %v5758_v23, %v5757_v21  ;;  %v5771_v28 = vadd.f32 %v5770_v40, %v5769_v42  ;;  %v5783_v50 = vadd.f32 %v5782_v13, %v5781_v31  ;;  %v5775_v49 = vrot.slane %v5774_v5, 4  ;;  %v13079_v25 = vpop.f32.mrb[70].mxu0 }
 0x50c   :  { %v5752_v18 = vadd.f32 %v5751_v7, %v5750_v11  ;;  %v5764_v1 = vadd.f32 %v5763_v59, %v5762_v32  ;;  %v5094_v45 = vrot.slane %v5093_v34, 1  ;;  %v13081_v21 = vpop.f32.mrb[71].mxu0  ;;  %v5104_v11 = vrot.slane %v13041_v8, 4 }
 0x50d   :  { %9506 = vrcp.f32 %v5759_v62  ;;  %v5772_v47 = vrot.slane %v5771_v28, 1  ;;  %v5784_v30 = vrot.slane %v5783_v50, 2  ;;  %v5776_v36 = vadd.f32 %v5775_v49, %v5774_v5 }
 0x50e   :  { %9508 = vrcp.f32 %v5752_v18  ;;  %v5765_v29 = vrot.slane %v5764_v1, 1  ;;  %v5095_v42 = vmax.f32 %v5093_v34, %v5094_v45  ;;  %v5086_v7 = vmax.f32 %v5084_v4, %v5085_v9 }
 0x50f   :  { %v5773_v13 = vadd.f32 %v5772_v47, %v5771_v28  ;;  %v5785_v40 = vadd.f32 %v5784_v30, %v5783_v50  ;;  %v13084_v32 = vpop.eup %9498  ;;  %v5777_v23 = vrot.slane %v5776_v36, 2  ;;  %v13088_v59 = vadd.f32 %v12789_v53, %v13002_v0  ;;  %v13093_v50 = vpop.f32.mrb[72].mxu0 }
 0x510   :  { %15452 = vst [vmem:[#allocation129_spill] sm:$0xff] %v13084_v32  ;;  %v5766_v31 = vadd.f32 %v5765_v29, %v5764_v1  ;;  %v5795_v62 = vsel %vm1599_vm0, %v13084_v32, 0.0  ;;  %v5527_v28 = vsub.f32 %v13007_v61, %v5095_v42  ;;  %v5087_v18 = vrot.slane %v5086_v7, 1  ;;  %v13095_v1 = vpop.f32.mrb[73].mxu0 }
 0x511   :  { %9510 = vrcp.f32 %v5773_v13  ;;  %v5786_v15 = vrot.slane %v5785_v40, 1  ;;  %v5778_v34 = vadd.f32 %v5777_v23, %v5776_v36  ;;  %v5796_v5 = vrot.slane %v5795_v62, 4 }
 0x512   :  { %9512 = vrcp.f32 %v5766_v31  ;;  %v13097_v9 = vpop.eup %9500  ;;  %v5610_v0 = vmul.f32 1.442695, %v5527_v28  ;;  %v5105_v49 = vmax.f32 %v13041_v8, %v5104_v11  ;;  %v5096_v47 = vsel %vm1599_vm0, %v13088_v59, -inf }
 0x513   :  { %v5787_v4 = vadd.f32 %v5786_v15, %v5785_v40  ;;  %v13102_v30 = vpop.eup %9502  ;;  %v5779_v61 = vrot.slane %v5778_v34, 1  ;;  %v5797_v45 = vadd.f32 %v5796_v5, %v5795_v62  ;;  %v5088_v29 = vmax.f32 %v5086_v7, %v5087_v18  ;;  %v13112_v8 = vpop.f32.mrb[74].mxu0 }
 0x514   :  { %v5097_v13 = vrot.slane %v5096_v47, 4  ;;  %v5106_v36 = vrot.slane %v5105_v49, 2  ;;  %v13106_v42 = vadd.f32 %v13015_v55, %v12789_v53  ;;  %v13110_v40 = vadd.f32 %v12789_v53, %v13017_v6  ;;  %v13114_v11 = vpop.eup %9504  ;;  %v13117_v15 = vpop.f32.mrb[75].mxu0 }
 0x515   :  { %9514 = vrcp.f32 %v5787_v4  ;;  %15453 = vst [vmem:[#allocation130_spill] sm:$0xff] %v13114_v11  ;;  %v5780_v31 = vadd.f32 %v5779_v61, %v5778_v34  ;;  %v5798_v23 = vrot.slane %v5797_v45, 2  ;;  %v5526_v7 = vsub.f32 %v13013_v27, %v5088_v29 }
 0x516   :  { %9516 = vpow2.f32 %v5610_v0  ;;  %v5788_v55 = vsel %vm1599_vm0, %v13114_v11, 0.0  ;;  %v5107_v28 = vmax.f32 %v5105_v49, %v5106_v36  ;;  %v5098_v5 = vmax.f32 %v5096_v47, %v5097_v13 }
 0x517   :  { %v13119_v62 = vpop.eup %9506  ;;  %v5117_v6 = vsel %vm1599_vm0, %v13106_v42, -inf  ;;  %9518 = vrcp.f32 %v5780_v31  ;;  %v5799_v34 = vadd.f32 %v5798_v23, %v5797_v45  ;;  %v5789_v4 = vrot.slane %v5788_v55, 4  ;;  %v13129_v43 = vpop.f32.mrb[76].mxu0 }
 0x518   :  { %v13125_v18 = vpop.eup %9508  ;;  %v5608_v0 = vmul.f32 1.442695, %v5526_v7  ;;  %v5108_v61 = vrot.slane %v5107_v28, 1  ;;  %v5099_v27 = vrot.slane %v5098_v5, 2  ;;  %v5118_v29 = vrot.slane %v5117_v6, 4  ;;  %v13131_v13 = vpop.f32.mrb[77].mxu0 }
 0x519   :  { %v5110_v51 = vsel %vm1599_vm0, %v13110_v40, -inf  ;;  %v5800_v24 = vrot.slane %v5799_v34, 1  ;;  %v5790_v49 = vadd.f32 %v5789_v4, %v5788_v55  ;;  %v13137_v7 = vadd.f32 %v13033_v14, %v12789_v53 }
 0x51a   :  { %9520 = vpow2.f32 %v5608_v0  ;;  %v5111_v47 = vrot.slane %v5110_v51, 4  ;;  %v5109_v31 = vmax.f32 %v5107_v28, %v5108_v61  ;;  %v5100_v45 = vmax.f32 %v5098_v5, %v5099_v27 }
 0x51b   :  { %v13133_v36 = vpop.eup %9510  ;;  %v5119_v23 = vmax.f32 %v5117_v6, %v5118_v29  ;;  %v5801_v57 = vadd.f32 %v5800_v24, %v5799_v34  ;;  %v5791_v2 = vrot.slane %v5790_v49, 2  ;;  %v13143_v55 = vadd.f32 %v12789_v53, %v13035_v46  ;;  %v13148_v5 = vpop.f32.mrb[78].mxu0 }
 0x51c   :  { %v13139_v22 = vpop.eup %9512  ;;  %v5112_v12 = vmax.f32 %v5110_v51, %v5111_v47  ;;  %v5529_v4 = vsub.f32 %v13024_v33, %v5109_v31  ;;  %v5101_v0 = vrot.slane %v5100_v45, 1  ;;  %v5131_v28 = vsel %vm1599_vm0, %v13137_v7, -inf  ;;  %v13150_v24 = vpop.f32.mrb[79].mxu0 }
 0x51d   :  { %15454 = vst [vmem:[#allocation131_spill] sm:$0xff] %v13139_v22  ;;  %v5120_v32 = vrot.slane %v5119_v23, 2  ;;  %9522 = vrcp.f32 %v5801_v57  ;;  %v5792_v14 = vadd.f32 %v5791_v2, %v5790_v49  ;;  %v5132_v61 = vrot.slane %v5131_v28, 4 }
 0x51e   :  { %v5113_v6 = vrot.slane %v5112_v12, 2  ;;  %v5614_v34 = vmul.f32 1.442695, %v5529_v4  ;;  %v5102_v46 = vmax.f32 %v5100_v45, %v5101_v0  ;;  %v5124_v33 = vsel %vm1599_vm0, %v13143_v55, -inf }
 0x51f   :  { %v13152_v51 = vpop.eup %9514  ;;  %v5121_v27 = vmax.f32 %v5119_v23, %v5120_v32  ;;  %v5793_v47 = vrot.slane %v5792_v14, 1  ;;  %v5133_v11 = vmax.f32 %v5131_v28, %v5132_v61  ;;  %v5125_v54 = vrot.slane %v5124_v33, 4  ;;  %v13161_v48 = vpop.f32.mrb[80].mxu0 }
 0x520   :  { %15455 = vst [vmem:[#allocation132_spill] sm:$0xff] %v13152_v51  ;;  %v13156_v29 = vpop.eup %9516  ;;  %v5114_v31 = vmax.f32 %v5112_v12, %v5113_v6  ;;  %9524 = vpow2.f32 %v5614_v34  ;;  %v5528_v57 = vsub.f32 %v13088_v59, %v5102_v46  ;;  %v13165_v37 = vpop.f32.mrb[81].mxu0  ;;  %v13169_v61 = vadd.f32 %v13049_v52, %v12789_v53 }
 0x521   :  { %15456 = vst [vmem:[#allocation133_spill] sm:$0xff] %v13156_v29  ;;  %v5809_v2 = vsel %vm1599_vm0, %v13156_v29, 0.0  ;;  %v5122_v49 = vrot.slane %v5121_v27, 1  ;;  %v13163_v45 = vpop.eup %9518  ;;  %v5794_v32 = vadd.f32 %v5793_v47, %v5792_v14  ;;  %v5134_v0 = vrot.slane %v5133_v11, 2 }
 0x522   :  { %15457 = vst [vmem:[#allocation134_spill] sm:$0xff] %v13163_v45  ;;  %v5810_v23 = vrot.slane %v5809_v2, 4  ;;  %v5115_v4 = vrot.slane %v5114_v31, 1  ;;  %v5612_v12 = vmul.f32 1.442695, %v5528_v57  ;;  %v5126_v6 = vmax.f32 %v5124_v33, %v5125_v54 }
 0x523   :  { %v5123_v28 = vmax.f32 %v5121_v27, %v5122_v49  ;;  %9526 = vrcp.f32 %v5794_v32  ;;  %v5135_v29 = vmax.f32 %v5133_v11, %v5134_v0  ;;  %v13176_v57 = vpop.f32.mrb[82].mxu0  ;;  %v5145_v11 = vsel %vm1599_vm0, %v13169_v61, -inf }
 0x524   :  { %v13171_v34 = vpop.eup %9520  ;;  %v5811_v59 = vadd.f32 %v5810_v23, %v5809_v2  ;;  %v5116_v46 = vmax.f32 %v5114_v31, %v5115_v4  ;;  %9528 = vpow2.f32 %v5612_v12  ;;  %v5127_v45 = vrot.slane %v5126_v6, 2  ;;  %15459 = vst [vmem:[#allocation136_spill] sm:$0xff] %v13176_v57  ;;  %v13179_v49 = vpop.f32.mrb[83].mxu0 }
 0x525   :  { %15458 = vst [vmem:[#allocation135_spill] sm:$0xff] %v13171_v34  ;;  %v5802_v14 = vsel %vm1599_vm0, %v13171_v34, 0.0  ;;  %v5531_v47 = vsub.f32 %v13106_v42, %v5123_v28  ;;  %v5136_v33 = vrot.slane %v5135_v29, 1  ;;  %15460 = vst [vmem:[#allocation137_spill] sm:$0xff] %v13179_v49  ;;  %v13185_v31 = vadd.f32 %v12789_v53, %v13052_v35 }
 0x526   :  { %v5812_v54 = vrot.slane %v5811_v59, 2  ;;  %v5803_v27 = vrot.slane %v5802_v14, 4  ;;  %v5530_v52 = vsub.f32 %v13110_v40, %v5116_v46  ;;  %v5128_v2 = vmax.f32 %v5126_v6, %v5127_v45 }
 0x527   :  { %v5618_v32 = vmul.f32 1.442695, %v5531_v47  ;;  %v13187_v42 = vpop.eup %9522  ;;  %v5137_v12 = vmax.f32 %v5135_v29, %v5136_v33  ;;  %v5146_v28 = vrot.slane %v5145_v11, 4  ;;  %v5138_v46 = vsel %vm1599_vm0, %v13185_v31, -inf  ;;  %v13191_v45 = vpop.f32.mrb[84].mxu0 }
 0x528   :  { %15461 = vst [vmem:[#allocation138_spill] sm:$0xff] %v13187_v42  ;;  %v5813_v23 = vadd.f32 %v5812_v54, %v5811_v59  ;;  %v5804_v4 = vadd.f32 %v5803_v27, %v5802_v14  ;;  %v5616_v0 = vmul.f32 1.442695, %v5530_v52  ;;  %v5129_v40 = vrot.slane %v5128_v2, 1  ;;  %15462 = vst [vmem:[#allocation139_spill] sm:$0xff] %v13191_v45  ;;  %v13194_v34 = vpop.f32.mrb[85].mxu0 }
 0x529   :  { %9530 = vpow2.f32 %v5618_v32  ;;  %v5533_v35 = vsub.f32 %v13137_v7, %v5137_v12  ;;  %15463 = vst [vmem:[#allocation140_spill] sm:$0xff] %v13194_v34  ;;  %v5147_v14 = vmax.f32 %v5145_v11, %v5146_v28  ;;  %v5139_v29 = vrot.slane %v5138_v46, 4 }
 0x52a   :  { %v5814_v6 = vrot.slane %v5813_v23, 1  ;;  %v5805_v47 = vrot.slane %v5804_v4, 2  ;;  %9532 = vpow2.f32 %v5616_v0  ;;  %v13196_v42 = vpop.eup %9524  ;;  %v5130_v59 = vmax.f32 %v5128_v2, %v5129_v40 }
 0x52b   :  { %15464 = vst [vmem:[#allocation141_spill] sm:$0xff] %v13196_v42  ;;  %v13200_v54 = vadd.f32 %v13062_v38, %v12789_v53  ;;  %v5823_v33 = vsel %vm1599_vm0, %v13196_v42, 0.0  ;;  %v5622_v32 = vmul.f32 1.442695, %v5533_v35  ;;  %v5148_v12 = vrot.slane %v5147_v14, 2  ;;  %v13205_v45 = vpop.f32.mrb[86].mxu0 }
 0x52c   :  { %v5815_v27 = vadd.f32 %v5814_v6, %v5813_v23  ;;  %v5806_v52 = vadd.f32 %v5805_v47, %v5804_v4  ;;  %v5824_v0 = vrot.slane %v5823_v33, 4  ;;  %v5532_v7 = vsub.f32 %v13143_v55, %v5130_v59  ;;  %15465 = vst [vmem:[#allocation142_spill] sm:$0xff] %v13205_v45  ;;  %v13215_v4 = vpop.f32.mrb[87].mxu0 }
 0x52d   :  { %v5140_v34 = vmax.f32 %v5138_v46, %v5139_v29  ;;  %v13207_v2 = vpop.eup %9526  ;;  %v5159_v38 = vsel %vm1599_vm0, %v13200_v54, -inf  ;;  %v13213_v23 = vadd.f32 %v12789_v53, %v13064_v17  ;;  %15467 = vst [vmem:[#allocation144_spill] sm:$0xff] %v13215_v4  ;;  %v5149_v46 = vmax.f32 %v5147_v14, %v5148_v12 }
 0x52e   :  { %15466 = vst [vmem:[#allocation143_spill] sm:$0xff] %v13207_v2  ;;  %9534 = vrcp.f32 %v5815_v27  ;;  %v5807_v11 = vrot.slane %v5806_v52, 1  ;;  %v13217_v40 = vpop.eup %9528  ;;  %v5825_v55 = vadd.f32 %v5824_v0, %v5823_v33  ;;  %v5620_v28 = vmul.f32 1.442695, %v5532_v7 }
 0x52f   :  { %15468 = vst [vmem:[#allocation145_spill] sm:$0xff] %v13217_v40  ;;  %9536 = vpow2.f32 %v5622_v32  ;;  %v5816_v47 = vsel %vm1599_vm0, %v13217_v40, 0.0  ;;  %v5141_v35 = vrot.slane %v5140_v34, 2  ;;  %v5160_v59 = vrot.slane %v5159_v38, 4  ;;  %v13221_v17 = vpop.f32.mrb[88].mxu0 }
 0x530   :  { %v5808_v6 = vadd.f32 %v5807_v11, %v5806_v52  ;;  %v5826_v29 = vrot.slane %v5825_v55, 2  ;;  %v5817_v27 = vrot.slane %v5816_v47, 4  ;;  %9538 = vpow2.f32 %v5620_v28  ;;  %15469 = vst [vmem:[#allocation146_spill] sm:$0xff] %v13221_v17  ;;  %v13225_v32 = vpop.f32.mrb[89].mxu0 }
 0x531   :  { %v5150_v42 = vrot.slane %v5149_v46, 1  ;;  %v5142_v4 = vmax.f32 %v5140_v34, %v5141_v35  ;;  %v5161_v45 = vmax.f32 %v5159_v38, %v5160_v59  ;;  %v5152_v33 = vsel %vm1599_vm0, %v13213_v23, -inf  ;;  %15470 = vst [vmem:[#allocation147_spill] sm:$0xff] %v13225_v32 }
 0x532   :  { %9540 = vrcp.f32 %v5808_v6  ;;  %v5827_v52 = vadd.f32 %v5826_v29, %v5825_v55  ;;  %v5818_v0 = vadd.f32 %v5817_v27, %v5816_v47  ;;  %v5153_v12 = vrot.slane %v5152_v33, 4 }
 0x533   :  { %v13227_v14 = vpop.eup %9530  ;;  %v5151_v7 = vmax.f32 %v5149_v46, %v5150_v42  ;;  %v5143_v40 = vrot.slane %v5142_v4, 1  ;;  %v5162_v6 = vrot.slane %v5161_v45, 2  ;;  %v13235_v34 = vadd.f32 %v13071_v60, %v12789_v53  ;;  %v13239_v47 = vpop.f32.mrb[90].mxu0 }
 0x534   :  { %15471 = vst [vmem:[#allocation148_spill] sm:$0xff] %v13227_v14  ;;  %v13229_v11 = vpop.eup %9532  ;;  %v5837_v28 = vsel %vm1599_vm0, %v13227_v14, 0.0  ;;  %v5828_v38 = vrot.slane %v5827_v52, 1  ;;  %v5819_v35 = vrot.slane %v5818_v0, 2  ;;  %15473 = vst [vmem:[#allocation150_spill] sm:$0xff] %v13239_v47  ;;  %v5154_v2 = vmax.f32 %v5152_v33, %v5153_v12  ;;  %v13242_v49 = vpop.f32.mrb[91].mxu0 }
 0x535   :  { %15472 = vst [vmem:[#allocation149_spill] sm:$0xff] %v13229_v11  ;;  %v5838_v59 = vrot.slane %v5837_v28, 4  ;;  %v5830_v55 = vsel %vm1599_vm0, %v13229_v11, 0.0  ;;  %v5535_v46 = vsub.f32 %v13169_v61, %v5151_v7  ;;  %v5144_v29 = vmax.f32 %v5142_v4, %v5143_v40 }
 0x536   :  { %v5831_v42 = vrot.slane %v5830_v55, 4  ;;  %v5163_v27 = vmax.f32 %v5161_v45, %v5162_v6  ;;  %v5829_v14 = vadd.f32 %v5828_v38, %v5827_v52  ;;  %v5820_v32 = vadd.f32 %v5819_v35, %v5818_v0 }
 0x537   :  { %v5839_v17 = vadd.f32 %v5838_v59, %v5837_v28  ;;  %v5626_v51 = vmul.f32 1.442695, %v5535_v46  ;;  %v5534_v39 = vsub.f32 %v13185_v31, %v5144_v29  ;;  %v5155_v4 = vrot.slane %v5154_v2, 2  ;;  %v13253_v31 = vpop.f32.mrb[92].mxu0 }
 0x538   :  { %v13244_v60 = vpop.eup %9534  ;;  %v5832_v57 = vadd.f32 %v5831_v42, %v5830_v55  ;;  %v5164_v11 = vrot.slane %v5163_v27, 1  ;;  %9542 = vrcp.f32 %v5829_v14  ;;  %v5821_v47 = vrot.slane %v5820_v32, 1  ;;  %15476 = vst [vmem:[#allocation153_spill] sm:$0xff] %v13253_v31  ;;  %v13259_v59 = vpop.f32.mrb[93].mxu0 }
 0x539   :  { %v13247_v22 = vpop.eup %9536  ;;  %v5840_v61 = vrot.slane %v5839_v17, 2  ;;  %9544 = vpow2.f32 %v5626_v51  ;;  %v5624_v33 = vmul.f32 1.442695, %v5534_v39  ;;  %v5156_v35 = vmax.f32 %v5154_v2, %v5155_v4  ;;  %15477 = vst [vmem:[#allocation154_spill] sm:$0xff] %v13259_v59 }
 0x53a   :  { %15474 = vst [vmem:[#allocation151_spill] sm:$0xff] %v13247_v22  ;;  %v5833_v45 = vrot.slane %v5832_v57, 2  ;;  %v5851_v40 = vsel %vm1599_vm0, %v13247_v22, 0.0  ;;  %v13251_v52 = vpop.eup %9538  ;;  %v5822_v0 = vadd.f32 %v5821_v47, %v5820_v32  ;;  %v5165_v28 = vmax.f32 %v5163_v27, %v5164_v11 }
 0x53b   :  { %15475 = vst [vmem:[#allocation152_spill] sm:$0xff] %v13251_v52  ;;  %v5841_v7 = vadd.f32 %v5840_v61, %v5839_v17  ;;  %v5852_v12 = vrot.slane %v5851_v40, 4  ;;  %v5844_v38 = vsel %vm1599_vm0, %v13251_v52, 0.0  ;;  %9546 = vpow2.f32 %v5624_v33 }
 0x53c   :  { %v13255_v6 = vpop.eup %9540  ;;  %v5834_v14 = vadd.f32 %v5833_v45, %v5832_v57  ;;  %9548 = vrcp.f32 %v5822_v0  ;;  %v5845_v55 = vrot.slane %v5844_v38, 4  ;;  %v5537_v17 = vsub.f32 %v13200_v54, %v5165_v28 }
 0x53d   :  { %v5842_v39 = vrot.slane %v5841_v7, 1  ;;  %v5853_v51 = vadd.f32 %v5852_v12, %v5851_v40  ;;  %v5157_v11 = vrot.slane %v5156_v35, 1  ;;  %v5173_v47 = vsel %vm1599_vm0, %v13235_v34, -inf }
 0x53e   :  { %v5835_v32 = vrot.slane %v5834_v14, 1  ;;  %v5846_v46 = vadd.f32 %v5845_v55, %v5844_v38  ;;  %v5174_v29 = vrot.slane %v5173_v47, 4  ;;  %v5630_v61 = vmul.f32 1.442695, %v5537_v17 }
 0x53f   :  { %v5843_v42 = vadd.f32 %v5842_v39, %v5841_v7  ;;  %v5854_v57 = vrot.slane %v5853_v51, 2  ;;  %v5158_v2 = vmax.f32 %v5156_v35, %v5157_v11  ;;  %v13266_v4 = vadd.f32 %v12789_v53, %v13075_v16 }
 0x540   :  { %v5836_v27 = vadd.f32 %v5835_v32, %v5834_v14  ;;  %v5847_v40 = vrot.slane %v5846_v46, 2  ;;  %v5175_v33 = vmax.f32 %v5173_v47, %v5174_v29  ;;  %v13273_v7 = vadd.f32 %v13079_v25, %v12789_v53 }
 0x541   :  { %9550 = vrcp.f32 %v5843_v42  ;;  %v5855_v45 = vadd.f32 %v5854_v57, %v5853_v51  ;;  %v5536_v54 = vsub.f32 %v13213_v23, %v5158_v2  ;;  %v5166_v0 = vsel %vm1599_vm0, %v13266_v4, -inf }
 0x542   :  { %9552 = vrcp.f32 %v5836_v27  ;;  %v13275_v12 = vpop.eup %9542  ;;  %v5848_v14 = vadd.f32 %v5847_v40, %v5846_v46  ;;  %v5176_v16 = vrot.slane %v5175_v33, 2  ;;  %v5167_v39 = vrot.slane %v5166_v0, 4  ;;  %v13293_v27 = vpop.f32.mrb[94].mxu0 }
 0x543   :  { %v5856_v28 = vrot.slane %v5855_v45, 1  ;;  %9554 = vpow2.f32 %v5630_v61  ;;  %v13277_v38 = vpop.eup %9544  ;;  %v5628_v35 = vmul.f32 1.442695, %v5536_v54  ;;  %v5187_v23 = vsel %vm1599_vm0, %v13273_v7, -inf  ;;  %15480 = vst [vmem:[#allocation157_spill] sm:$0xff] %v13293_v27 }
 0x544   :  { %15478 = vst [vmem:[#allocation155_spill] sm:$0xff] %v13277_v38  ;;  %v13283_v51 = vadd.f32 %v12789_v53, %v13081_v21  ;;  %v5849_v25 = vrot.slane %v5848_v14, 1  ;;  %v5865_v32 = vsel %vm1599_vm0, %v13277_v38, 0.0  ;;  %v5177_v17 = vmax.f32 %v5175_v33, %v5176_v16 }
 0x545   :  { %v5857_v55 = vadd.f32 %v5856_v28, %v5855_v45  ;;  %v13287_v11 = vpop.eup %9546  ;;  %v5866_v47 = vrot.slane %v5865_v32, 4  ;;  %9556 = vpow2.f32 %v5628_v35  ;;  %v5168_v42 = vmax.f32 %v5166_v0, %v5167_v39  ;;  %v13300_v0 = vld [vmem:[%s15182_s12] ss:$0 sm:$0xff] }
 0x546   :  { %15479 = vst [vmem:[#allocation156_spill] sm:$0xff] %v13287_v11  ;;  %v5188_v57 = vrot.slane %v5187_v23, 4  ;;  %v13289_v46 = vpop.eup %9548  ;;  %v5850_v29 = vadd.f32 %v5849_v25, %v5848_v14  ;;  %v5858_v53 = vsel %vm1599_vm0, %v13287_v11, 0.0  ;;  %v5178_v21 = vrot.slane %v5177_v17, 1  ;;  %v13306_v14 = vpop.f32.mrb[95].mxu0 }
 0x547   :  { %9558 = vrcp.f32 %v5857_v55  ;;  %v5867_v61 = vadd.f32 %v5866_v47, %v5865_v32  ;;  %v5859_v2 = vrot.slane %v5858_v53, 4  ;;  %v5169_v45 = vrot.slane %v5168_v42, 2  ;;  %15481 = vst [vmem:[#allocation158_spill] sm:$0xff] %v13306_v14 }
 0x548   :  { %v5189_v40 = vmax.f32 %v5187_v23, %v5188_v57  ;;  %9560 = vrcp.f32 %v5850_v29  ;;  %v5179_v33 = vmax.f32 %v5177_v17, %v5178_v21  ;;  %v5180_v54 = vsel %vm1599_vm0, %v13283_v51, -inf }
 0x549   :  { %v13304_v28 = vadd.f32 %v13300_v0, %v13093_v50  ;;  %v5868_v16 = vrot.slane %v5867_v61, 2  ;;  %v5860_v35 = vadd.f32 %v5859_v2, %v5858_v53  ;;  %v5170_v39 = vmax.f32 %v5168_v42, %v5169_v45 }
 0x54a   :  { %v5190_v23 = vrot.slane %v5189_v40, 2  ;;  %v5539_v25 = vsub.f32 %v13235_v34, %v5179_v33  ;;  %v5181_v32 = vrot.slane %v5180_v54, 4  ;;  %v13315_v47 = vadd.f32 %v13300_v0, %v13095_v1 }
 0x54b   :  { %v13308_v55 = vpop.eup %9550  ;;  %v5201_v17 = vsel %vm1599_vm0, %v13304_v28, -inf  ;;  %v5869_v57 = vadd.f32 %v5868_v16, %v5867_v61  ;;  %v5861_v29 = vrot.slane %v5860_v35, 2  ;;  %v5171_v21 = vrot.slane %v5170_v39, 1 }
 0x54c   :  { %v13317_v50 = vpop.eup %9552  ;;  %v5191_v53 = vmax.f32 %v5189_v40, %v5190_v23  ;;  %v5634_v2 = vmul.f32 1.442695, %v5539_v25  ;;  %v5182_v45 = vmax.f32 %v5180_v54, %v5181_v32  ;;  %v5202_v38 = vrot.slane %v5201_v17, 4 }
 0x54d   :  { %v13319_v42 = vpop.eup %9554  ;;  %v5194_v34 = vsel %vm1599_vm0, %v13315_v47, -inf  ;;  %v5870_v33 = vrot.slane %v5869_v57, 1  ;;  %v5862_v14 = vadd.f32 %v5861_v29, %v5860_v35  ;;  %v5172_v11 = vmax.f32 %v5170_v39, %v5171_v21  ;;  %v13332_v39 = vpop.f32.mrb[96].mxu0 }
 0x54e   :  { %15482 = vst [vmem:[#allocation159_spill] sm:$0xff] %v13319_v42  ;;  %v5879_v1 = vsel %vm1599_vm0, %v13319_v42, 0.0  ;;  %9562 = vpow2.f32 %v5634_v2  ;;  %v5192_v61 = vrot.slane %v5191_v53, 1  ;;  %v5183_v16 = vrot.slane %v5182_v45, 2  ;;  %v13334_v31 = vpop.f32.mrb[97].mxu0 }
 0x54f   :  { %v5880_v27 = vrot.slane %v5879_v1, 4  ;;  %v13325_v22 = vpop.eup %9556  ;;  %v5871_v40 = vadd.f32 %v5870_v33, %v5869_v57  ;;  %v5863_v23 = vrot.slane %v5862_v14, 1  ;;  %v5538_v54 = vsub.f32 %v13266_v4, %v5172_v11  ;;  %v13338_v4 = vpop.permute.xlu1 %7917 }
 0x550   :  { %15483 = vst [vmem:[#allocation160_spill] sm:$0xff] %v13325_v22  ;;  %v5203_v25 = vmax.f32 %v5201_v17, %v5202_v38  ;;  %v5872_v35 = vsel %vm1599_vm0, %v13325_v22, 0.0  ;;  %v5193_v29 = vmax.f32 %v5191_v53, %v5192_v61  ;;  %v5184_v42 = vmax.f32 %v5182_v45, %v5183_v16  ;;  %15484 = vst [vmem:[#allocation161_spill] sm:$0xff] %v13338_v4  ;;  %v13345_v16 = vpop.f32.mrb[98].mxu0 }
 0x551   :  { %v13328_v32 = vpop.eup %9558  ;;  %v5881_v59 = vadd.f32 %v5880_v27, %v5879_v1  ;;  %9564 = vrcp.f32 %v5871_v40  ;;  %v5864_v21 = vadd.f32 %v5863_v23, %v5862_v14  ;;  %v5873_v2 = vrot.slane %v5872_v35, 4 }
 0x552   :  { %v5632_v52 = vmul.f32 1.442695, %v5538_v54  ;;  %v13336_v57 = vpop.eup %9560  ;;  %v5541_v11 = vsub.f32 %v13273_v7, %v5193_v29  ;;  %v5185_v27 = vrot.slane %v5184_v42, 1  ;;  %v5204_v17 = vrot.slane %v5203_v25, 2 }
 0x553   :  { %v5882_v38 = vrot.slane %v5881_v59, 2  ;;  %9566 = vrcp.f32 %v5864_v21  ;;  %v5874_v53 = vadd.f32 %v5873_v2, %v5872_v35  ;;  %v5195_v45 = vrot.slane %v5194_v34, 4 }
 0x554   :  { %v13343_v33 = vadd.f32 %v13300_v0, %v13112_v8  ;;  %9568 = vpow2.f32 %v5632_v52  ;;  %v5638_v1 = vmul.f32 1.442695, %v5541_v11  ;;  %v5186_v61 = vmax.f32 %v5184_v42, %v5185_v27  ;;  %v3431_v42 = vpop.permute.xlu1 %3430 }
 0x555   :  { %v5883_v14 = vadd.f32 %v5882_v38, %v5881_v59  ;;  %v5875_v40 = vrot.slane %v5874_v53, 2  ;;  %v5205_v23 = vmax.f32 %v5203_v25, %v5204_v17  ;;  %v5196_v54 = vmax.f32 %v5194_v34, %v5195_v45 }
 0x556   :  { %v5215_v7 = vsel %vm1599_vm0, %v13343_v33, -inf  ;;  %9570 = vpow2.f32 %v5638_v1  ;;  %v5540_v35 = vsub.f32 %v13283_v51, %v5186_v61  ;;  %v13352_v52 = vadd.f32 %v13300_v0, %v13117_v15 }
 0x557   :  { %v5884_v29 = vrot.slane %v5883_v14, 1  ;;  %v5216_v21 = vrot.slane %v5215_v7, 4  ;;  %v5876_v2 = vadd.f32 %v5875_v40, %v5874_v53  ;;  %v5206_v8 = vrot.slane %v5205_v23, 1 }
 0x558   :  { %v5197_v4 = vrot.slane %v5196_v54, 2  ;;  %v13354_v59 = vpop.eup %9562  ;;  %v5636_v34 = vmul.f32 1.442695, %v5540_v35  ;;  %v6309_v11 = vmul.f32 %v13097_v9, %v13019_v19  ;;  %v5208_v15 = vsel %vm1599_vm0, %v13352_v52, -inf }
 0x559   :  { %v5885_v25 = vadd.f32 %v5884_v29, %v5883_v14  ;;  %v5217_v38 = vmax.f32 %v5215_v7, %v5216_v21  ;;  %v5877_v27 = vrot.slane %v5876_v2, 1  ;;  %v5893_v51 = vsel %vm1599_vm0, %v13354_v59, 0.0  ;;  %v9849_v14 = vld [vmem:[%s15178_s2 + $0x148] sm:$0xff] }
 0x55a   :  { %v5207_v17 = vmax.f32 %v5205_v23, %v5206_v8  ;;  %v5198_v53 = vmax.f32 %v5196_v54, %v5197_v4  ;;  %v5894_v45 = vrot.slane %v5893_v51, 4  ;;  %v13367_v40 = vadd.f32 %v9849_v14, %v3431_v42 }
 0x55b   :  { %9572 = vrcp.f32 %v5885_v25  ;;  %v5218_v1 = vrot.slane %v5217_v38, 2  ;;  %v13362_v61 = vpop.eup %9564  ;;  %v5209_v54 = vrot.slane %v5208_v15, 4  ;;  %v6894_v7 = vmul.f32 %v11706_v10, %v6309_v11 }
 0x55c   :  { %15485 = vst [vmem:[#allocation162_spill] sm:$0xff] %v13367_v40  ;;  %9574 = vpow2.f32 %v5636_v34  ;;  %v5543_v19 = vsub.f32 %v13304_v28, %v5207_v17  ;;  %v5199_v9 = vrot.slane %v5198_v53, 1  ;;  %v5895_v23 = vadd.f32 %v5894_v45, %v5893_v51 }
 0x55d   :  { %v5219_v4 = vmax.f32 %v5217_v38, %v5218_v1  ;;  %v13371_v29 = vpop.eup %9566  ;;  %v5878_v35 = vadd.f32 %v5877_v27, %v5876_v2  ;;  %v6308_v25 = vmul.f32 %v13102_v30, %v13026_v26  ;;  %v5210_v14 = vmax.f32 %v5208_v15, %v5209_v54  ;;  %7039 = vrot.lane.b32.xlu0 %v6894_v7, %s9878_s19  ;;  %v15486_v38 = vld [vmem:[#allocation17_spill] sm:$0xff]  ;;  %v13386_v26 = vpop.f32.mrb[99].mxu0 }
 0x55e   :  { %v5642_v21 = vmul.f32 1.442695, %v5543_v19  ;;  %v5200_v8 = vmax.f32 %v5198_v53, %v5199_v9  ;;  %v13375_v22 = vpop.eup %9568  ;;  %v5896_v42 = vrot.slane %v5895_v23, 2  ;;  %v13380_v28 = vadd.f32 %v13300_v0, %v13129_v43 }
 0x55f   :  { %v5220_v34 = vrot.slane %v5219_v4, 1  ;;  %v5886_v10 = vsel %vm1599_vm0, %v13375_v22, 0.0  ;;  %v6893_v11 = vmul.f32 %v15486_v38, %v6308_v25  ;;  %v5211_v53 = vrot.slane %v5210_v14, 2 }
 0x560   :  { %9576 = vpow2.f32 %v5642_v21  ;;  %v5542_v2 = vsub.f32 %v13315_v47, %v5200_v8  ;;  %v13388_v30 = vpop.eup %9570  ;;  %v5897_v27 = vadd.f32 %v5896_v42, %v5895_v23  ;;  %v5887_v51 = vrot.slane %v5886_v10, 4  ;;  %v13402_v21 = vpop.f32.mrb[100].mxu0 }
 0x561   :  { %v5221_v17 = vmax.f32 %v5219_v4, %v5220_v34  ;;  %v5907_v43 = vsel %vm1599_vm0, %v13388_v30, 0.0  ;;  %7037 = vrot.lane.b32.xlu1 %v6893_v11, %s9878_s19  ;;  %v5229_v1 = vsel %vm1599_vm0, %v13380_v28, -inf  ;;  %v13397_v47 = vadd.f32 %v13300_v0, %v13131_v13 }
 0x562   :  { %v5640_v45 = vmul.f32 1.442695, %v5542_v2  ;;  %v5898_v15 = vrot.slane %v5897_v27, 1  ;;  %v5888_v19 = vadd.f32 %v5887_v51, %v5886_v10  ;;  %v5908_v9 = vrot.slane %v5907_v43, 4 }
 0x563   :  { %v5545_v23 = vsub.f32 %v13343_v33, %v5221_v17  ;;  %v5212_v4 = vmax.f32 %v5210_v14, %v5211_v53  ;;  %v5230_v54 = vrot.slane %v5229_v1, 4  ;;  %v5222_v7 = vsel %vm1599_vm0, %v13397_v47, -inf  ;;  %v13412_v53 = vpop.f32.mrb[101].mxu0 }
 0x564   :  { %9578 = vpow2.f32 %v5640_v45  ;;  %v5889_v25 = vrot.slane %v5888_v19, 2  ;;  %v5909_v42 = vadd.f32 %v5908_v9, %v5907_v43  ;;  %v5223_v38 = vrot.slane %v5222_v7, 4 }
 0x565   :  { %v13404_v8 = vpop.eup %9572  ;;  %9580 = vrcp.f32 %v5878_v35  ;;  %v5646_v13 = vmul.f32 1.442695, %v5545_v23  ;;  %v5213_v10 = vrot.slane %v5212_v4, 1  ;;  %v5231_v2 = vmax.f32 %v5229_v1, %v5230_v54 }
 0x566   :  { %v13406_v34 = vpop.eup %9574  ;;  %v6311_v33 = vmul.f32 %v13119_v62, %v13037_v63  ;;  %v5899_v14 = vadd.f32 %v5898_v15, %v5897_v27  ;;  %v5890_v11 = vadd.f32 %v5889_v25, %v5888_v19  ;;  %v5910_v51 = vrot.slane %v5909_v42, 2  ;;  %v3467_v63 = vpop.permute.xlu0 %3466 }
 0x567   :  { %v5900_v17 = vsel %vm1599_vm0, %v13406_v34, 0.0  ;;  %9582 = vpow2.f32 %v5646_v13  ;;  %v5214_v43 = vmax.f32 %v5212_v4, %v5213_v10  ;;  %v5232_v45 = vrot.slane %v5231_v2, 2 }
 0x568   :  { %v5901_v35 = vrot.slane %v5900_v17, 4  ;;  %v5891_v9 = vrot.slane %v5890_v11, 1  ;;  %v5911_v23 = vadd.f32 %v5910_v51, %v5909_v42  ;;  %v5224_v40 = vmax.f32 %v5222_v7, %v5223_v38 }
 0x569   :  { %v6896_v1 = vmul.f32 %v11789_v3, %v6311_v33  ;;  %v5544_v27 = vsub.f32 %v13352_v52, %v5214_v43  ;;  %v5233_v15 = vmax.f32 %v5231_v2, %v5232_v45  ;;  %v13420_v19 = vadd.f32 %v13300_v0, %v13148_v5  ;;  %v9850_v52 = vld [vmem:[%s15178_s2 + $0x1d8] sm:$0xff] }
 0x56a   :  { %v13415_v54 = vpop.eup %9576  ;;  %v5902_v62 = vadd.f32 %v5901_v35, %v5900_v17  ;;  %v5892_v25 = vadd.f32 %v5891_v9, %v5890_v11  ;;  %v5912_v13 = vrot.slane %v5911_v23, 1  ;;  %v5225_v42 = vrot.slane %v5224_v40, 2 }
 0x56b   :  { %15487 = vst [vmem:[#allocation17_spill] sm:$0xff] %v13415_v54  ;;  %v5921_v4 = vsel %vm1599_vm0, %v13415_v54, 0.0  ;;  %7043 = vrot.lane.b32.xlu0 %v6896_v1, %s9878_s19  ;;  %v5644_v10 = vmul.f32 1.442695, %v5544_v27  ;;  %v5234_v38 = vrot.slane %v5233_v15, 1  ;;  %v13428_v2 = vadd.f32 %v9850_v52, %v3467_v63  ;;  %v15520_v54 = vld [vmem:[#allocation10_spill] sm:$0xff] }
 0x56c   :  { %v5903_v3 = vrot.slane %v5902_v62, 2  ;;  %v5922_v7 = vrot.slane %v5921_v4, 4  ;;  %9584 = vrcp.f32 %v5899_v14  ;;  %v5226_v5 = vmax.f32 %v5224_v40, %v5225_v42 }
 0x56d   :  { %15488 = vst [vmem:[#allocation163_spill] sm:$0xff] %v13428_v2  ;;  %v5243_v33 = vsel %vm1599_vm0, %v13420_v19, -inf  ;;  %9586 = vpow2.f32 %v5644_v10  ;;  %v5235_v35 = vmax.f32 %v5233_v15, %v5234_v38  ;;  %v5913_v63 = vadd.f32 %v5912_v13, %v5911_v23  ;;  %v13443_v15 = vpop.f32.mrb[102].mxu0 }
 0x56e   :  { %v13432_v11 = vpop.eup %9578  ;;  %v5904_v51 = vadd.f32 %v5903_v3, %v5902_v62  ;;  %v5923_v17 = vadd.f32 %v5922_v7, %v5921_v4  ;;  %9588 = vrcp.f32 %v5892_v25  ;;  %v5227_v9 = vrot.slane %v5226_v5, 1  ;;  %v13454_v38 = vpop.f32.mrb[103].mxu0 }
 0x56f   :  { %v13434_v43 = vpop.eup %9580  ;;  %v5914_v45 = vsel %vm1599_vm0, %v13432_v11, 0.0  ;;  %v5244_v1 = vrot.slane %v5243_v33, 4  ;;  %v5547_v27 = vsub.f32 %v13380_v28, %v5235_v35  ;;  %v13441_v62 = vadd.f32 %v13300_v0, %v13150_v24 }
 0x570   :  { %v5924_v14 = vrot.slane %v5923_v17, 2  ;;  %v5915_v40 = vrot.slane %v5914_v45, 4  ;;  %v5905_v42 = vrot.slane %v5904_v51, 1  ;;  %v5228_v52 = vmax.f32 %v5226_v5, %v5227_v9 }
 0x571   :  { %v5245_v2 = vmax.f32 %v5243_v33, %v5244_v1  ;;  %v13445_v25 = vpop.eup %9582  ;;  %v5650_v7 = vmul.f32 1.442695, %v5547_v27  ;;  %v6310_v23 = vmul.f32 %v13125_v18, %v13043_v20  ;;  %v5236_v24 = vsel %vm1599_vm0, %v13441_v62, -inf }
 0x572   :  { %15489 = vst [vmem:[#allocation164_spill] sm:$0xff] %v13445_v25  ;;  %v5925_v4 = vadd.f32 %v5924_v14, %v5923_v17  ;;  %v5916_v3 = vadd.f32 %v5915_v40, %v5914_v45  ;;  %v5935_v28 = vsel %vm1599_vm0, %v13445_v25, 0.0  ;;  %v5546_v13 = vsub.f32 %v13397_v47, %v5228_v52 }
 0x573   :  { %v5246_v10 = vrot.slane %v5245_v2, 2  ;;  %9590 = vrcp.f32 %v5913_v63  ;;  %v5936_v17 = vrot.slane %v5935_v28, 4  ;;  %v5237_v9 = vrot.slane %v5236_v24, 4 }
 0x574   :  { %v5926_v5 = vrot.slane %v5925_v4, 1  ;;  %v5917_v33 = vrot.slane %v5916_v3, 2  ;;  %9592 = vpow2.f32 %v5650_v7  ;;  %v5648_v35 = vmul.f32 1.442695, %v5546_v13 }
 0x575   :  { %v5247_v45 = vmax.f32 %v5245_v2, %v5246_v10  ;;  %v5906_v20 = vadd.f32 %v5905_v42, %v5904_v51  ;;  %v5937_v1 = vadd.f32 %v5936_v17, %v5935_v28  ;;  %v6895_v14 = vmul.f32 %v11753_v58, %v6310_v23 }
 0x576   :  { %v5918_v18 = vadd.f32 %v5917_v33, %v5916_v3  ;;  %v13457_v47 = vpop.eup %9584  ;;  %9594 = vpow2.f32 %v5648_v35  ;;  %v5238_v27 = vmax.f32 %v5236_v24, %v5237_v9  ;;  %v6313_v63 = vmul.f32 %v13133_v36, %v13054_v56  ;;  %v13483_v35 = vpop.f32.mrb[104].mxu0 }
 0x577   :  { %v5248_v40 = vrot.slane %v5247_v45, 1  ;;  %v13461_v52 = vpop.eup %9586  ;;  %v5927_v25 = vadd.f32 %v5926_v5, %v5925_v4  ;;  %v5938_v13 = vrot.slane %v5937_v1, 2  ;;  %7041 = vrot.lane.b32.xlu0 %v6895_v14, %s9878_s19  ;;  %v13466_v2 = vadd.f32 %v13300_v0, %v13161_v48 }
 0x578   :  { %15490 = vst [vmem:[#allocation165_spill] sm:$0xff] %v13461_v52  ;;  %v5919_v7 = vrot.slane %v5918_v18, 1  ;;  %v13468_v58 = vpop.eup %9588  ;;  %v5928_v51 = vsel %vm1599_vm0, %v13461_v52, 0.0  ;;  %v5239_v3 = vrot.slane %v5238_v27, 2  ;;  %v6898_v56 = vmul.f32 %v11832_v44, %v6313_v63  ;;  %v15491_v44 = vld [vmem:[#allocation131_spill] sm:$0xff] }
 0x579   :  { %v5249_v42 = vmax.f32 %v5247_v45, %v5248_v40  ;;  %9596 = vrcp.f32 %v5906_v20  ;;  %v5939_v36 = vadd.f32 %v5938_v13, %v5937_v1  ;;  %v5929_v4 = vrot.slane %v5928_v51, 4  ;;  %15492 = vst [vmem:[#allocation131_spill] sm:$0xff] %v13483_v35  ;;  %v13487_v1 = vpop.f32.mrb[105].mxu0  ;;  %v15496_v13 = vld [vmem:[#allocation127_spill] sm:$0xff] }
 0x57a   :  { %v5257_v23 = vsel %vm1599_vm0, %v13466_v2, -inf  ;;  %v5240_v10 = vmax.f32 %v5238_v27, %v5239_v3  ;;  %7047 = vrot.lane.b32.xlu1 %v6898_v56, %s9878_s19  ;;  %v13479_v24 = vadd.f32 %v13300_v0, %v13165_v37  ;;  %9598 = vrcp.f32 %v5927_v25  ;;  %15493 = vst [vmem:[#allocation166_spill] sm:$0xff] %v13487_v1 }
 0x57b   :  { %v5549_v28 = vsub.f32 %v13420_v19, %v5249_v42  ;;  %v5258_v48 = vrot.slane %v5257_v23, 4  ;;  %v5920_v5 = vadd.f32 %v5919_v7, %v5918_v18  ;;  %v5930_v33 = vadd.f32 %v5929_v4, %v5928_v51  ;;  %v15494_v18 = vld [vmem:[#allocation8_spill] sm:$0xff] }
 0x57c   :  { %v6312_v17 = vmul.f32 %v15491_v44, %v13056_v41  ;;  %v5241_v9 = vrot.slane %v5240_v10, 1  ;;  %v5250_v19 = vsel %vm1599_vm0, %v13479_v24, -inf  ;;  %v5940_v37 = vrot.slane %v5939_v36, 1  ;;  %v15497_v51 = vld [vmem:[#allocation132_spill] sm:$0xff] }
 0x57d   :  { %v5654_v45 = vmul.f32 1.442695, %v5549_v28  ;;  %v5259_v20 = vmax.f32 %v5257_v23, %v5258_v48  ;;  %v13489_v14 = vpop.eup %9590  ;;  %v5931_v40 = vrot.slane %v5930_v33, 2  ;;  %v5251_v25 = vrot.slane %v5250_v19, 4 }
 0x57e   :  { %v6897_v27 = vmul.f32 %v15494_v18, %v6312_v17  ;;  %v13492_v63 = vpop.eup %9592  ;;  %v5242_v41 = vmax.f32 %v5240_v10, %v5241_v9  ;;  %v6315_v42 = vmul.f32 %v15497_v51, %v15496_v13  ;;  %v15499_v17 = vld [vmem:[#allocation3_spill] sm:$0xff]  ;;  %v13510_v13 = vpop.f32.mrb[106].mxu0 }
 0x57f   :  { %15495 = vst [vmem:[#allocation8_spill] sm:$0xff] %v13492_v63  ;;  %9600 = vpow2.f32 %v5654_v45  ;;  %v5260_v7 = vrot.slane %v5259_v20, 2  ;;  %v5932_v3 = vadd.f32 %v5931_v40, %v5930_v33  ;;  %v5949_v56 = vsel %vm1599_vm0, %v13492_v63, 0.0  ;;  %v15500_v33 = vld [vmem:[#allocation136_spill] sm:$0xff]  ;;  %15501 = vst [vmem:[#allocation132_spill] sm:$0xff] %v13510_v13 }
 0x580   :  { %9602 = vrcp.f32 %v5920_v5  ;;  %v5252_v4 = vmax.f32 %v5250_v19, %v5251_v25  ;;  %7045 = vrot.lane.b32.xlu1 %v6897_v27, %s9878_s19  ;;  %v13499_v23 = vpop.eup %9594  ;;  %v5950_v28 = vrot.slane %v5949_v56, 4  ;;  %v5548_v48 = vsub.f32 %v13441_v62, %v5242_v41  ;;  %v15502_v41 = vld [vmem:[#allocation137_spill] sm:$0xff] }
 0x581   :  { %15498 = vst [vmem:[#allocation127_spill] sm:$0xff] %v13499_v23  ;;  %v5261_v44 = vmax.f32 %v5259_v20, %v5260_v7  ;;  %v6900_v10 = vmul.f32 %v15499_v17, %v6315_v42  ;;  %v5941_v45 = vadd.f32 %v5940_v37, %v5939_v36  ;;  %v5942_v9 = vsel %vm1599_vm0, %v13499_v23, 0.0 }
 0x582   :  { %v5253_v5 = vrot.slane %v5252_v4, 2  ;;  %v13507_v40 = vadd.f32 %v13300_v0, %v15500_v33  ;;  %v5951_v19 = vadd.f32 %v5950_v28, %v5949_v56  ;;  %v5943_v25 = vrot.slane %v5942_v9, 4 }
 0x583   :  { %v5652_v18 = vmul.f32 1.442695, %v5548_v48  ;;  %v5262_v27 = vrot.slane %v5261_v44, 1  ;;  %7051 = vrot.lane.b32.xlu0 %v6900_v10, %s9878_s19  ;;  %v13512_v62 = vpop.eup %9596  ;;  %v5933_v20 = vrot.slane %v5932_v3, 1  ;;  %v13518_v7 = vadd.f32 %v13300_v0, %v15502_v41 }
 0x584   :  { %v5254_v36 = vmax.f32 %v5252_v4, %v5253_v5  ;;  %v5271_v37 = vsel %vm1599_vm0, %v13507_v40, -inf  ;;  %v5952_v51 = vrot.slane %v5951_v19, 2  ;;  %v5944_v42 = vadd.f32 %v5943_v25, %v5942_v9  ;;  %v13520_v28 = vpop.eup %9598  ;;  %v13524_v4 = vpop.f32.mrb[107].mxu0  ;;  %v15505_v9 = vld [vmem:[#allocation128_spill] sm:$0xff]  ;;  %v15506_v25 = vld [vmem:[#allocation134_spill] sm:$0xff] }
 0x585   :  { %9604 = vpow2.f32 %v5652_v18  ;;  %v5263_v56 = vmax.f32 %v5261_v44, %v5262_v27  ;;  %15503 = vst [vmem:[#allocation3_spill] sm:$0xff] %v13520_v28  ;;  %v5272_v17 = vrot.slane %v5271_v37, 4  ;;  %v5264_v10 = vsel %vm1599_vm0, %v13518_v7, -inf  ;;  %15504 = vst [vmem:[#allocation136_spill] sm:$0xff] %v13524_v4  ;;  %v15507_v18 = vld [vmem:[#allocation139_spill] sm:$0xff] }
 0x586   :  { %9606 = vrcp.f32 %v5941_v45  ;;  %v5255_v48 = vrot.slane %v5254_v36, 1  ;;  %v5953_v5 = vadd.f32 %v5952_v51, %v5951_v19  ;;  %v5945_v33 = vrot.slane %v5944_v42, 2  ;;  %v3425_v51 = vpop.permute.xlu1 %3424 }
 0x587   :  { %v5551_v63 = vsub.f32 %v13466_v2, %v5263_v56  ;;  %v5265_v41 = vrot.slane %v5264_v10, 4  ;;  %v5273_v13 = vmax.f32 %v5271_v37, %v5272_v17  ;;  %v6314_v44 = vmul.f32 %v15506_v25, %v15505_v9  ;;  %v15509_v56 = vld [vmem:[#allocation2_spill] sm:$0xff] }
 0x588   :  { %v5256_v23 = vmax.f32 %v5254_v36, %v5255_v48  ;;  %v13531_v45 = vadd.f32 %v13300_v0, %v15507_v18  ;;  %v5934_v1 = vadd.f32 %v5933_v20, %v5932_v3  ;;  %v5954_v52 = vrot.slane %v5953_v5, 1 }
 0x589   :  { %v13533_v27 = vpop.eup %9600  ;;  %v5658_v35 = vmul.f32 1.442695, %v5551_v63  ;;  %v5266_v4 = vmax.f32 %v5264_v10, %v5265_v41  ;;  %v5274_v37 = vrot.slane %v5273_v13, 2  ;;  %v6899_v48 = vmul.f32 %v15509_v56, %v6314_v44  ;;  %v9851_v10 = vld [vmem:[%s15178_s2 + $0x130] sm:$0xff] }
 0x58a   :  { %15508 = vst [vmem:[#allocation137_spill] sm:$0xff] %v13533_v27  ;;  %v13535_v19 = vpop.eup %9602  ;;  %v5963_v2 = vsel %vm1599_vm0, %v13533_v27, 0.0  ;;  %v5550_v36 = vsub.f32 %v13479_v24, %v5256_v23  ;;  %v5955_v17 = vadd.f32 %v5954_v52, %v5953_v5  ;;  %v5946_v9 = vadd.f32 %v5945_v33, %v5944_v42  ;;  %v15511_v5 = vld [vmem:[#allocation130_spill] sm:$0xff] }
 0x58b   :  { %v5964_v25 = vrot.slane %v5963_v2, 4  ;;  %9608 = vpow2.f32 %v5658_v35  ;;  %v5275_v3 = vmax.f32 %v5273_v13, %v5274_v37  ;;  %v5267_v20 = vrot.slane %v5266_v4, 2  ;;  %7049 = vrot.lane.b32.xlu0 %v6899_v48, %s9878_s19  ;;  %v15512_v13 = vld [vmem:[#allocation143_spill] sm:$0xff]  ;;  %v15514_v37 = vld [vmem:[#allocation140_spill] sm:$0xff]  ;;  %v15519_v27 = vld [vmem:[#allocation142_spill] sm:$0xff] }
 0x58c   :  { %v5656_v18 = vmul.f32 1.442695, %v5550_v36  ;;  %v5285_v63 = vsel %vm1599_vm0, %v13531_v45, -inf  ;;  %v13547_v24 = vadd.f32 %v9851_v10, %v3425_v51  ;;  %9610 = vrcp.f32 %v5934_v1 }
 0x58d   :  { %v5965_v23 = vadd.f32 %v5964_v25, %v5963_v2  ;;  %v5286_v52 = vrot.slane %v5285_v63, 4  ;;  %v5276_v42 = vrot.slane %v5275_v3, 1  ;;  %v5268_v35 = vmax.f32 %v5266_v4, %v5267_v20  ;;  %v15516_v4 = vld [vmem:[#allocation19_spill] sm:$0xff] }
 0x58e   :  { %15510 = vst [vmem:[#allocation128_spill] sm:$0xff] %v13547_v24  ;;  %9612 = vpow2.f32 %v5656_v18  ;;  %v6316_v33 = vmul.f32 %v15512_v13, %v15511_v5  ;;  %v5947_v44 = vrot.slane %v5946_v9, 1  ;;  %v13555_v56 = vadd.f32 %v13300_v0, %v15514_v37  ;;  %v15517_v13 = vld [vmem:[#allocation129_spill] sm:$0xff]  ;;  %v15518_v37 = vld [vmem:[#allocation138_spill] sm:$0xff] }
 0x58f   :  { %v13551_v41 = vpop.eup %9604  ;;  %9614 = vrcp.f32 %v5955_v17  ;;  %v5287_v36 = vmax.f32 %v5285_v63, %v5286_v52  ;;  %v5277_v2 = vmax.f32 %v5275_v3, %v5276_v42  ;;  %v5269_v48 = vrot.slane %v5268_v35, 1 }
 0x590   :  { %15513 = vst [vmem:[#allocation134_spill] sm:$0xff] %v13551_v41  ;;  %v13557_v51 = vpop.eup %9606  ;;  %v5956_v1 = vsel %vm1599_vm0, %v13551_v41, 0.0  ;;  %v6901_v25 = vmul.f32 %v15516_v4, %v6316_v33  ;;  %v5966_v18 = vrot.slane %v5965_v23, 2  ;;  %v5278_v17 = vsel %vm1599_vm0, %v13555_v56, -inf }
 0x591   :  { %15515 = vst [vmem:[#allocation139_spill] sm:$0xff] %v13557_v51  ;;  %v5957_v20 = vrot.slane %v5956_v1, 4  ;;  %v5288_v10 = vrot.slane %v5287_v36, 2  ;;  %v5553_v63 = vsub.f32 %v13507_v40, %v5277_v2  ;;  %v5270_v52 = vmax.f32 %v5268_v35, %v5269_v48 }
 0x592   :  { %7053 = vrot.lane.b32.xlu1 %v6901_v25, %s9878_s19  ;;  %v5279_v5 = vrot.slane %v5278_v17, 4  ;;  %v6317_v24 = vmul.f32 %v15518_v37, %v15517_v13  ;;  %v5948_v41 = vadd.f32 %v5947_v44, %v5946_v9  ;;  %v13570_v33 = vadd.f32 %v13300_v0, %v15519_v27 }
 0x593   :  { %v5958_v3 = vadd.f32 %v5957_v20, %v5956_v1  ;;  %v5289_v42 = vmax.f32 %v5287_v36, %v5288_v10  ;;  %v5662_v4 = vmul.f32 1.442695, %v5553_v63  ;;  %v5552_v51 = vsub.f32 %v13518_v7, %v5270_v52  ;;  %v15523_v10 = vld [vmem:[#allocation135_spill] sm:$0xff] }
 0x594   :  { %v5280_v28 = vmax.f32 %v5278_v17, %v5279_v5  ;;  %v6902_v40 = vmul.f32 %v15520_v54, %v6317_v24  ;;  %v5967_v2 = vadd.f32 %v5966_v18, %v5965_v23  ;;  %v5299_v9 = vsel %vm1599_vm0, %v13570_v33, -inf }
 0x595   :  { %v13574_v35 = vpop.eup %9608  ;;  %v5959_v48 = vrot.slane %v5958_v3, 2  ;;  %v5290_v25 = vrot.slane %v5289_v42, 1  ;;  %9616 = vpow2.f32 %v5662_v4  ;;  %v5660_v27 = vmul.f32 1.442695, %v5552_v51 }
 0x596   :  { %15521 = vst [vmem:[#allocation2_spill] sm:$0xff] %v13574_v35  ;;  %v5977_v44 = vsel %vm1599_vm0, %v13574_v35, 0.0  ;;  %v5281_v36 = vrot.slane %v5280_v28, 2  ;;  %7055 = vrot.lane.b32.xlu0 %v6902_v40, %s9878_s19  ;;  %v13581_v7 = vpop.eup %9610  ;;  %9618 = vrcp.f32 %v5948_v41  ;;  %v5300_v20 = vrot.slane %v5299_v9, 4  ;;  %v15535_v35 = vld [vmem:[#allocation147_spill] sm:$0xff] }
 0x597   :  { %v5960_v54 = vadd.f32 %v5959_v48, %v5958_v3  ;;  %v5978_v24 = vrot.slane %v5977_v44, 4  ;;  %v5291_v1 = vmax.f32 %v5289_v42, %v5290_v25  ;;  %9620 = vpow2.f32 %v5660_v27  ;;  %v15524_v42 = vld [vmem:[#allocation18_spill] sm:$0xff]  ;;  %v15525_v25 = vld [vmem:[#allocation144_spill] sm:$0xff] }
 0x598   :  { %v13583_v23 = vpop.eup %9612  ;;  %v5282_v18 = vmax.f32 %v5280_v28, %v5281_v36  ;;  %v6318_v17 = vmul.f32 %v13255_v6, %v15523_v10  ;;  %v5968_v51 = vrot.slane %v5967_v2, 1  ;;  %v5301_v3 = vmax.f32 %v5299_v9, %v5300_v20  ;;  %v15527_v20 = vld [vmem:[#allocation146_spill] sm:$0xff] }
 0x599   :  { %15522 = vst [vmem:[#allocation130_spill] sm:$0xff] %v13583_v23  ;;  %v13587_v63 = vpop.eup %9614  ;;  %v5979_v52 = vadd.f32 %v5978_v24, %v5977_v44  ;;  %v5970_v5 = vsel %vm1599_vm0, %v13583_v23, 0.0  ;;  %v5555_v41 = vsub.f32 %v13531_v45, %v5291_v1  ;;  %v5961_v40 = vrot.slane %v5960_v54, 1  ;;  %v15526_v24 = vld [vmem:[#allocation133_spill] sm:$0xff] }
 0x59a   :  { %v5971_v13 = vrot.slane %v5970_v5, 4  ;;  %v5283_v37 = vrot.slane %v5282_v18, 1  ;;  %v6903_v4 = vmul.f32 %v15524_v42, %v6318_v17  ;;  %v13595_v6 = vadd.f32 %v13300_v0, %v15525_v25 }
 0x59b   :  { %v5980_v28 = vrot.slane %v5979_v52, 2  ;;  %v5666_v48 = vmul.f32 1.442695, %v5555_v41  ;;  %v5302_v44 = vrot.slane %v5301_v3, 2  ;;  %v6319_v45 = vmul.f32 %v13244_v60, %v15526_v24 }
 0x59c   :  { %v5972_v27 = vadd.f32 %v5971_v13, %v5970_v5  ;;  %v5284_v36 = vmax.f32 %v5282_v18, %v5283_v37  ;;  %7057 = vrot.lane.b32.xlu1 %v6903_v4, %s9878_s19  ;;  %v5969_v1 = vadd.f32 %v5968_v51, %v5967_v2  ;;  %v5292_v9 = vsel %vm1599_vm0, %v13595_v6, -inf  ;;  %v13607_v13 = vpop.f32.mrb[108].mxu0  ;;  %v15529_v4 = vld [vmem:[#allocation6_spill] sm:$0xff] }
 0x59d   :  { %v5981_v10 = vadd.f32 %v5980_v28, %v5979_v52  ;;  %v13604_v17 = vadd.f32 %v13300_v0, %v15527_v20  ;;  %9622 = vpow2.f32 %v5666_v48  ;;  %v5303_v18 = vmax.f32 %v5301_v3, %v5302_v44  ;;  %15528 = vst [vmem:[#allocation143_spill] sm:$0xff] %v13607_v13  ;;  %v13612_v51 = vpop.f32.mrb[109].mxu0  ;;  %v15532_v3 = vld [vmem:[#allocation141_spill] sm:$0xff] }
 0x59e   :  { %v5973_v41 = vrot.slane %v5972_v27, 2  ;;  %v5554_v5 = vsub.f32 %v13555_v56, %v5284_v36  ;;  %v5962_v37 = vadd.f32 %v5961_v40, %v5960_v54  ;;  %v5293_v42 = vrot.slane %v5292_v9, 4  ;;  %15530 = vst [vmem:[#allocation140_spill] sm:$0xff] %v13612_v51 }
 0x59f   :  { %v6904_v60 = vmul.f32 %v15529_v4, %v6319_v45  ;;  %v5313_v2 = vsel %vm1599_vm0, %v13604_v17, -inf  ;;  %v13614_v52 = vpop.eup %9616  ;;  %v5982_v28 = vrot.slane %v5981_v10, 1  ;;  %v5304_v24 = vrot.slane %v5303_v18, 1 }
 0x5a0   :  { %15531 = vst [vmem:[#allocation19_spill] sm:$0xff] %v13614_v52  ;;  %v5664_v25 = vmul.f32 1.442695, %v5554_v5  ;;  %v5314_v48 = vrot.slane %v5313_v2, 4  ;;  %v13616_v20 = vpop.eup %9618  ;;  %9624 = vrcp.f32 %v5969_v1  ;;  %v5991_v56 = vsel %vm1599_vm0, %v13614_v52, 0.0 }
 0x5a1   :  { %v5294_v54 = vmax.f32 %v5292_v9, %v5293_v42  ;;  %7059 = vrot.lane.b32.xlu0 %v6904_v60, %s9878_s19  ;;  %v6321_v40 = vmul.f32 %v13275_v12, %v15532_v3  ;;  %v13623_v36 = vpop.eup %9620  ;;  %v5974_v44 = vadd.f32 %v5973_v41, %v5972_v27  ;;  %v5992_v45 = vrot.slane %v5991_v56, 4  ;;  %v15534_v12 = vld [vmem:[#allocation4_spill] sm:$0xff] }
 0x5a2   :  { %15533 = vst [vmem:[#allocation129_spill] sm:$0xff] %v13623_v36  ;;  %9626 = vpow2.f32 %v5664_v25  ;;  %v5305_v5 = vmax.f32 %v5303_v18, %v5304_v24  ;;  %v5984_v4 = vsel %vm1599_vm0, %v13623_v36, 0.0  ;;  %v5315_v51 = vmax.f32 %v5313_v2, %v5314_v48 }
 0x5a3   :  { %9628 = vrcp.f32 %v5962_v37  ;;  %v5295_v1 = vrot.slane %v5294_v54, 2  ;;  %v5983_v13 = vadd.f32 %v5982_v28, %v5981_v10  ;;  %v5993_v52 = vadd.f32 %v5992_v45, %v5991_v56 }
 0x5a4   :  { %v5985_v9 = vrot.slane %v5984_v4, 4  ;;  %v5557_v42 = vsub.f32 %v13570_v33, %v5305_v5  ;;  %v5316_v23 = vrot.slane %v5315_v51, 2  ;;  %v6906_v3 = vmul.f32 %v15534_v12, %v6321_v40  ;;  %v15536_v33 = vld [vmem:[#allocation148_spill] sm:$0xff] }
 0x5a5   :  { %v5296_v60 = vmax.f32 %v5294_v54, %v5295_v1  ;;  %v13631_v27 = vadd.f32 %v13300_v0, %v15535_v35  ;;  %v5975_v41 = vrot.slane %v5974_v44, 1  ;;  %v5994_v18 = vrot.slane %v5993_v52, 2 }
 0x5a6   :  { %v5986_v37 = vadd.f32 %v5985_v9, %v5984_v4  ;;  %v5670_v25 = vmul.f32 1.442695, %v5557_v42  ;;  %v5317_v36 = vmax.f32 %v5315_v51, %v5316_v23  ;;  %7063 = vrot.lane.b32.xlu1 %v6906_v3, %s9878_s19  ;;  %v6323_v2 = vmul.f32 %v13308_v55, %v15536_v33  ;;  %v15537_v23 = vld [vmem:[#allocation7_spill] sm:$0xff]  ;;  %v3429_v55 = vpop.permute.xlu1 %3428  ;;  %v15538_v3 = vld [vmem:[#allocation150_spill] sm:$0xff] }
 0x5a7   :  { %v5297_v24 = vrot.slane %v5296_v60, 1  ;;  %v5306_v10 = vsel %vm1599_vm0, %v13631_v27, -inf  ;;  %v13638_v28 = vpop.eup %9622  ;;  %v5995_v48 = vadd.f32 %v5994_v18, %v5993_v52  ;;  %v5976_v5 = vadd.f32 %v5975_v41, %v5974_v44 }
 0x5a8   :  { %v5987_v56 = vrot.slane %v5986_v37, 2  ;;  %9630 = vpow2.f32 %v5670_v25  ;;  %v5307_v35 = vrot.slane %v5306_v10, 4  ;;  %v6005_v54 = vsel %vm1599_vm0, %v13638_v28, 0.0 }
 0x5a9   :  { %v5298_v40 = vmax.f32 %v5296_v60, %v5297_v24  ;;  %v5318_v45 = vrot.slane %v5317_v36, 1  ;;  %v6908_v51 = vmul.f32 %v15537_v23, %v6323_v2  ;;  %v6006_v1 = vrot.slane %v6005_v54, 4  ;;  %v9852_v2 = vld [vmem:[%s15178_s2 + $0x140] sm:$0xff] }
 0x5aa   :  { %v5988_v4 = vadd.f32 %v5987_v56, %v5986_v37  ;;  %v5308_v9 = vmax.f32 %v5306_v10, %v5307_v35  ;;  %v13643_v42 = vpop.eup %9624  ;;  %9632 = vrcp.f32 %v5983_v13  ;;  %v13649_v18 = vadd.f32 %v13300_v0, %v15538_v3  ;;  %v15540_v37 = vld [vmem:[#allocation145_spill] sm:$0xff] }
 0x5ab   :  { %v5556_v52 = vsub.f32 %v13595_v6, %v5298_v40  ;;  %v5319_v12 = vmax.f32 %v5317_v36, %v5318_v45  ;;  %7067 = vrot.lane.b32.xlu0 %v6908_v51, %s9878_s19  ;;  %v5996_v25 = vrot.slane %v5995_v48, 1  ;;  %v6007_v44 = vadd.f32 %v6006_v1, %v6005_v54 }
 0x5ac   :  { %v13651_v60 = vpop.eup %9626  ;;  %v5309_v41 = vrot.slane %v5308_v9, 2  ;;  %v6320_v24 = vmul.f32 %v13289_v46, %v15540_v37  ;;  %v5327_v33 = vsel %vm1599_vm0, %v13649_v18, -inf  ;;  %v13665_v56 = vadd.f32 %v9852_v2, %v3429_v55  ;;  %v13672_v55 = vpop.f32.mrb[110].mxu0 }
 0x5ad   :  { %15539 = vst [vmem:[#allocation138_spill] sm:$0xff] %v13651_v60  ;;  %v13655_v10 = vpop.eup %9628  ;;  %v5998_v6 = vsel %vm1599_vm0, %v13651_v60, 0.0  ;;  %v5668_v13 = vmul.f32 1.442695, %v5556_v52  ;;  %v5559_v36 = vsub.f32 %v13604_v17, %v5319_v12  ;;  %9634 = vrcp.f32 %v5976_v5  ;;  %v15542_v17 = vld [vmem:[#allocation20_spill] sm:$0xff]  ;;  %15543 = vst [vmem:[#allocation10_spill] sm:$0xff] %v13672_v55 }
 0x5ae   :  { %15541 = vst [vmem:[#allocation142_spill] sm:$0xff] %v13665_v56  ;;  %v5989_v35 = vrot.slane %v5988_v4, 1  ;;  %v5999_v46 = vrot.slane %v5998_v6, 4  ;;  %v5310_v40 = vmax.f32 %v5308_v9, %v5309_v41  ;;  %v5328_v45 = vrot.slane %v5327_v33, 4 }
 0x5af   :  { %9636 = vpow2.f32 %v5668_v13  ;;  %v5674_v54 = vmul.f32 1.442695, %v5559_v36  ;;  %v5997_v23 = vadd.f32 %v5996_v25, %v5995_v48  ;;  %v6008_v51 = vrot.slane %v6007_v44, 2  ;;  %v15545_v48 = vld [vmem:[#allocation149_spill] sm:$0xff] }
 0x5b0   :  { %v6000_v1 = vadd.f32 %v5999_v46, %v5998_v6  ;;  %v6905_v52 = vmul.f32 %v15542_v17, %v6320_v24  ;;  %v5311_v12 = vrot.slane %v5310_v40, 1  ;;  %v5329_v3 = vmax.f32 %v5327_v33, %v5328_v45  ;;  %v15546_v25 = vld [vmem:[#allocation153_spill] sm:$0xff]  ;;  %v13683_v24 = vpop.f32.mrb[111].mxu0 }
 0x5b1   :  { %9638 = vpow2.f32 %v5674_v54  ;;  %v13670_v37 = vadd.f32 %v13300_v0, %v13242_v49  ;;  %v5990_v13 = vadd.f32 %v5989_v35, %v5988_v4  ;;  %v6322_v9 = vmul.f32 %v13317_v50, %v15545_v48  ;;  %15547 = vst [vmem:[#allocation18_spill] sm:$0xff] %v13683_v24  ;;  %v15548_v45 = vld [vmem:[#allocation5_spill] sm:$0xff] }
 0x5b2   :  { %v13674_v5 = vpop.eup %9630  ;;  %v6001_v36 = vrot.slane %v6000_v1, 2  ;;  %7061 = vrot.lane.b32.xlu1 %v6905_v52, %s9878_s19  ;;  %v13681_v41 = vadd.f32 %v13300_v0, %v15546_v25  ;;  %v5312_v6 = vmax.f32 %v5310_v40, %v5311_v12  ;;  %v5330_v33 = vrot.slane %v5329_v3, 2 }
 0x5b3   :  { %15544 = vst [vmem:[#allocation135_spill] sm:$0xff] %v13674_v5  ;;  %v6019_v49 = vsel %vm1599_vm0, %v13674_v5, 0.0  ;;  %v5320_v4 = vsel %vm1599_vm0, %v13670_v37, -inf  ;;  %9640 = vrcp.f32 %v5997_v23  ;;  %v6009_v2 = vadd.f32 %v6008_v51, %v6007_v44  ;;  %v15549_v23 = vld [vmem:[#allocation152_spill] sm:$0xff]  ;;  %v15554_v5 = vld [vmem:[#allocation151_spill] sm:$0xff] }
 0x5b4   :  { %v6020_v35 = vrot.slane %v6019_v49, 4  ;;  %v5321_v46 = vrot.slane %v5320_v4, 4  ;;  %v13689_v54 = vpop.eup %9632  ;;  %v5558_v50 = vsub.f32 %v13631_v27, %v5312_v6  ;;  %v5331_v0 = vmax.f32 %v5329_v3, %v5330_v33 }
 0x5b5   :  { %v6907_v17 = vmul.f32 %v15548_v45, %v6322_v9  ;;  %v5341_v52 = vsel %vm1599_vm0, %v13681_v41, -inf  ;;  %9642 = vrcp.f32 %v5990_v13  ;;  %v6002_v40 = vadd.f32 %v6001_v36, %v6000_v1  ;;  %v13703_v13 = vld [vmem:[%s15182_s12] ss:$0 sm:$0xff] }
 0x5b6   :  { %v6021_v12 = vadd.f32 %v6020_v35, %v6019_v49  ;;  %v5322_v48 = vmax.f32 %v5320_v4, %v5321_v46  ;;  %v5672_v25 = vmul.f32 1.442695, %v5558_v50  ;;  %v5332_v56 = vrot.slane %v5331_v0, 1  ;;  %v15550_v1 = vld [vmem:[#allocation154_spill] sm:$0xff] }
 0x5b7   :  { %7065 = vrot.lane.b32.xlu0 %v6907_v17, %s9878_s19  ;;  %v5342_v44 = vrot.slane %v5341_v52, 4  ;;  %v6324_v51 = vmul.f32 %v13336_v57, %v15549_v23  ;;  %v13698_v24 = vpop.eup %9634  ;;  %v6010_v27 = vrot.slane %v6009_v2, 1  ;;  %v13707_v36 = vadd.f32 %v13703_v13, %v15550_v1  ;;  %v15552_v57 = vld [vmem:[#allocation26_spill] sm:$0xff] }
 0x5b8   :  { %v6022_v3 = vrot.slane %v6021_v12, 2  ;;  %v5323_v9 = vrot.slane %v5322_v48, 2  ;;  %9644 = vpow2.f32 %v5672_v25  ;;  %v5333_v6 = vmax.f32 %v5331_v0, %v5332_v56 }
 0x5b9   :  { %v13709_v49 = vpop.eup %9636  ;;  %v5343_v33 = vmax.f32 %v5341_v52, %v5342_v44  ;;  %v6909_v4 = vmul.f32 %v15552_v57, %v6324_v51  ;;  %v6003_v35 = vrot.slane %v6002_v40, 1  ;;  %v5334_v56 = vsel %vm1599_vm0, %v13707_v36, -inf }
 0x5ba   :  { %15551 = vst [vmem:[#allocation144_spill] sm:$0xff] %v13709_v49  ;;  %v6023_v46 = vadd.f32 %v6022_v3, %v6021_v12  ;;  %v6012_v50 = vsel %vm1599_vm0, %v13709_v49, 0.0  ;;  %v5324_v45 = vmax.f32 %v5322_v48, %v5323_v9  ;;  %v5561_v55 = vsub.f32 %v13649_v18, %v5333_v6 }
 0x5bb   :  { %v13714_v17 = vpop.eup %9638  ;;  %v6013_v23 = vrot.slane %v6012_v50, 4  ;;  %v5344_v1 = vrot.slane %v5343_v33, 2  ;;  %7069 = vrot.lane.b32.xlu1 %v6909_v4, %s9878_s19  ;;  %v6011_v0 = vadd.f32 %v6010_v27, %v6009_v2  ;;  %v5335_v25 = vrot.slane %v5334_v56, 4 }
 0x5bc   :  { %15553 = vst [vmem:[#allocation133_spill] sm:$0xff] %v13714_v17  ;;  %v6033_v52 = vsel %vm1599_vm0, %v13714_v17, 0.0  ;;  %v5325_v12 = vrot.slane %v5324_v45, 1  ;;  %v5678_v48 = vmul.f32 1.442695, %v5561_v55  ;;  %v6004_v57 = vadd.f32 %v6003_v35, %v6002_v40  ;;  %v15555_v55 = vld [vmem:[#allocation13_spill] sm:$0xff] }
 0x5bd   :  { %v6014_v44 = vadd.f32 %v6013_v23, %v6012_v50  ;;  %v6034_v51 = vrot.slane %v6033_v52, 4  ;;  %v5345_v3 = vmax.f32 %v5343_v33, %v5344_v1  ;;  %v13722_v9 = vpop.eup %9640  ;;  %v5336_v6 = vmax.f32 %v5334_v56, %v5335_v25  ;;  %v15556_v35 = vld [vmem:[#allocation157_spill] sm:$0xff]  ;;  %v15557_v56 = vld [vmem:[#allocation156_spill] sm:$0xff] }
 0x5be   :  { %v5326_v18 = vmax.f32 %v5324_v45, %v5325_v12  ;;  %v6325_v4 = vmul.f32 %v13328_v32, %v15554_v5  ;;  %v6024_v49 = vrot.slane %v6023_v46, 1  ;;  %9646 = vpow2.f32 %v5678_v48 }
 0x5bf   :  { %v6015_v60 = vrot.slane %v6014_v44, 2  ;;  %v5346_v2 = vrot.slane %v5345_v3, 1  ;;  %v13726_v27 = vpop.eup %9642  ;;  %9648 = vrcp.f32 %v6011_v0  ;;  %v5337_v23 = vrot.slane %v5336_v6, 2  ;;  %v15558_v0 = vld [vmem:[#allocation158_spill] sm:$0xff] }
 0x5c0   :  { %v5560_v50 = vsub.f32 %v13670_v37, %v5326_v18  ;;  %v6910_v33 = vmul.f32 %v15555_v55, %v6325_v4  ;;  %v6035_v17 = vadd.f32 %v6034_v51, %v6033_v52  ;;  %v13732_v45 = vadd.f32 %v13703_v13, %v15556_v35  ;;  %v3471_v51 = vpop.permute.xlu0 %3470  ;;  %v13748_v18 = vpop.f32.mrb[112].mxu0 }
 0x5c1   :  { %v6016_v1 = vadd.f32 %v6015_v60, %v6014_v44  ;;  %v5347_v40 = vmax.f32 %v5345_v3, %v5346_v2  ;;  %v5338_v5 = vmax.f32 %v5336_v6, %v5337_v23  ;;  %v6326_v12 = vmul.f32 %v13371_v29, %v15557_v56  ;;  %15559 = vst [vmem:[#allocation146_spill] sm:$0xff] %v13748_v18 }
 0x5c2   :  { %v5676_v32 = vmul.f32 1.442695, %v5560_v50  ;;  %7071 = vrot.lane.b32.xlu0 %v6910_v33, %s9878_s19  ;;  %v13739_v37 = vadd.f32 %v13703_v13, %v15558_v0  ;;  %v13741_v25 = vpop.eup %9644  ;;  %9650 = vrcp.f32 %v6004_v57  ;;  %v6025_v60 = vadd.f32 %v6024_v49, %v6023_v46  ;;  %v13750_v57 = vpop.f32.mrb[113].mxu0  ;;  %v15561_v46 = vld [vmem:[#allocation14_spill] sm:$0xff]  ;;  %v9854_v33 = vld [vmem:[%s15178_s2 + $0x1e8] sm:$0xff] }
 0x5c3   :  { %v5563_v52 = vsub.f32 %v13681_v41, %v5347_v40  ;;  %v5355_v44 = vsel %vm1599_vm0, %v13732_v45, -inf  ;;  %v6026_v48 = vsel %vm1599_vm0, %v13741_v25, 0.0  ;;  %v5339_v3 = vrot.slane %v5338_v5, 1  ;;  %15560 = vst [vmem:[#allocation6_spill] sm:$0xff] %v13750_v57 }
 0x5c4   :  { %9652 = vpow2.f32 %v5676_v32  ;;  %v5356_v29 = vrot.slane %v5355_v44, 4  ;;  %v6017_v6 = vrot.slane %v6016_v1, 1  ;;  %v6036_v4 = vrot.slane %v6035_v17, 2 }
 0x5c5   :  { %v6027_v2 = vrot.slane %v6026_v48, 4  ;;  %v5682_v50 = vmul.f32 1.442695, %v5563_v52  ;;  %v5340_v49 = vmax.f32 %v5338_v5, %v5339_v3  ;;  %v6911_v23 = vmul.f32 %v15561_v46, %v6326_v12  ;;  %v15563_v5 = vld [vmem:[#allocation155_spill] sm:$0xff] }
 0x5c6   :  { %v5357_v41 = vmax.f32 %v5355_v44, %v5356_v29  ;;  %v5348_v55 = vsel %vm1599_vm0, %v13739_v37, -inf  ;;  %v13758_v40 = vadd.f32 %v9854_v33, %v3471_v51  ;;  %9654 = vrcp.f32 %v6025_v60 }
 0x5c7   :  { %v6028_v35 = vadd.f32 %v6027_v2, %v6026_v48  ;;  %v5349_v32 = vrot.slane %v5348_v55, 4  ;;  %9656 = vpow2.f32 %v5682_v50  ;;  %v5562_v56 = vsub.f32 %v13707_v36, %v5340_v49  ;;  %7073 = vrot.lane.b32.xlu1 %v6911_v23, %s9878_s19  ;;  %v15564_v50 = vld [vmem:[#allocation9_spill] sm:$0xff] }
 0x5c8   :  { %15562 = vst [vmem:[#allocation141_spill] sm:$0xff] %v13758_v40  ;;  %v5358_v0 = vrot.slane %v5357_v41, 2  ;;  %v6327_v12 = vmul.f32 %v13362_v61, %v15563_v5  ;;  %v13764_v52 = vpop.eup %9646  ;;  %v6018_v44 = vadd.f32 %v6017_v6, %v6016_v1  ;;  %v6037_v3 = vadd.f32 %v6036_v4, %v6035_v17  ;;  %v15565_v6 = vld [vmem:[#allocation159_spill] sm:$0xff] }
 0x5c9   :  { %v5350_v29 = vmax.f32 %v5348_v55, %v5349_v32  ;;  %v13768_v51 = vadd.f32 %v13703_v13, %v13332_v39  ;;  %v13770_v60 = vpop.eup %9648  ;;  %v6047_v36 = vsel %vm1599_vm0, %v13764_v52, 0.0  ;;  %v5680_v48 = vmul.f32 1.442695, %v5562_v56 }
 0x5ca   :  { %v5359_v2 = vmax.f32 %v5357_v41, %v5358_v0  ;;  %v6912_v49 = vmul.f32 %v15564_v50, %v6327_v12  ;;  %v6029_v46 = vrot.slane %v6028_v35, 2  ;;  %v6048_v61 = vrot.slane %v6047_v36, 4 }
 0x5cb   :  { %v5351_v23 = vrot.slane %v5350_v29, 2  ;;  %v5369_v17 = vsel %vm1599_vm0, %v13768_v51, -inf  ;;  %9658 = vpow2.f32 %v5680_v48  ;;  %v6329_v4 = vmul.f32 %v13404_v8, %v15565_v6  ;;  %v15567_v48 = vld [vmem:[#allocation21_spill] sm:$0xff] }
 0x5cc   :  { %v5360_v1 = vrot.slane %v5359_v2, 1  ;;  %7075 = vrot.lane.b32.xlu0 %v6912_v49, %s9878_s19  ;;  %v5370_v39 = vrot.slane %v5369_v17, 4  ;;  %v13780_v55 = vpop.eup %9650  ;;  %v6038_v33 = vrot.slane %v6037_v3, 1  ;;  %v6049_v41 = vadd.f32 %v6048_v61, %v6047_v36 }
 0x5cd   :  { %v5352_v32 = vmax.f32 %v5350_v29, %v5351_v23  ;;  %v13784_v56 = vadd.f32 %v13703_v13, %v13334_v31  ;;  %v6914_v50 = vmul.f32 %v15567_v48, %v6329_v4  ;;  %v6331_v49 = vmul.f32 %v13457_v47, %v13354_v59  ;;  %v15568_v4 = vld [vmem:[#allocation12_spill] sm:$0xff] }
 0x5ce   :  { %v13786_v0 = vpop.eup %9652  ;;  %v5361_v5 = vmax.f32 %v5359_v2, %v5360_v1  ;;  %v5371_v12 = vmax.f32 %v5369_v17, %v5370_v39  ;;  %v6030_v40 = vadd.f32 %v6029_v46, %v6028_v35  ;;  %v6050_v8 = vrot.slane %v6049_v41, 2 }
 0x5cf   :  { %15566 = vst [vmem:[#allocation4_spill] sm:$0xff] %v13786_v0  ;;  %v6040_v6 = vsel %vm1599_vm0, %v13786_v0, 0.0  ;;  %v5353_v36 = vrot.slane %v5352_v32, 1  ;;  %7079 = vrot.lane.b32.xlu1 %v6914_v50, %s9878_s19  ;;  %v5362_v2 = vsel %vm1599_vm0, %v13784_v56, -inf  ;;  %9660 = vrcp.f32 %v6018_v44 }
 0x5d0   :  { %v6041_v29 = vrot.slane %v6040_v6, 4  ;;  %v5565_v61 = vsub.f32 %v13732_v45, %v5361_v5  ;;  %v5372_v31 = vrot.slane %v5371_v12, 2  ;;  %v13797_v23 = vpop.eup %9654  ;;  %v6051_v17 = vadd.f32 %v6050_v8, %v6049_v41 }
 0x5d1   :  { %v5354_v59 = vmax.f32 %v5352_v32, %v5353_v36  ;;  %v5363_v47 = vrot.slane %v5362_v2, 4  ;;  %v13799_v35 = vpop.eup %9656  ;;  %v6916_v48 = vmul.f32 %v15568_v4, %v6331_v49  ;;  %v6031_v45 = vrot.slane %v6030_v40, 1 }
 0x5d2   :  { %v6042_v46 = vadd.f32 %v6041_v29, %v6040_v6  ;;  %v5686_v1 = vmul.f32 1.442695, %v5565_v61  ;;  %v5373_v39 = vmax.f32 %v5371_v12, %v5372_v31  ;;  %v6061_v5 = vsel %vm1599_vm0, %v13799_v35, 0.0 }
 0x5d3   :  { %v5564_v50 = vsub.f32 %v13739_v37, %v5354_v59  ;;  %v5364_v57 = vmax.f32 %v5362_v2, %v5363_v47  ;;  %v6062_v0 = vrot.slane %v6061_v5, 4  ;;  %7083 = vrot.lane.b32.xlu0 %v6916_v48, %s9878_s19  ;;  %v6039_v41 = vadd.f32 %v6038_v33, %v6037_v3  ;;  %v15569_v37 = vld [vmem:[#allocation160_spill] sm:$0xff] }
 0x5d4   :  { %v6043_v18 = vrot.slane %v6042_v46, 2  ;;  %9662 = vpow2.f32 %v5686_v1  ;;  %v5374_v44 = vrot.slane %v5373_v39, 1  ;;  %v13808_v12 = vadd.f32 %v13703_v13, %v13345_v16 }
 0x5d5   :  { %v5684_v32 = vmul.f32 1.442695, %v5564_v50  ;;  %v5365_v8 = vrot.slane %v5364_v57, 2  ;;  %v13810_v49 = vpop.eup %9658  ;;  %v6052_v6 = vrot.slane %v6051_v17, 1  ;;  %v6063_v36 = vadd.f32 %v6062_v0, %v6061_v5 }
 0x5d6   :  { %v5375_v29 = vmax.f32 %v5373_v39, %v5374_v44  ;;  %v6328_v61 = vmul.f32 %v13434_v43, %v15569_v37  ;;  %v6032_v31 = vadd.f32 %v6031_v45, %v6030_v40  ;;  %v6054_v2 = vsel %vm1599_vm0, %v13810_v49, 0.0  ;;  %v15570_v39 = vld [vmem:[#allocation15_spill] sm:$0xff] }
 0x5d7   :  { %v5366_v59 = vmax.f32 %v5364_v57, %v5365_v8  ;;  %v5383_v3 = vsel %vm1599_vm0, %v13808_v12, -inf  ;;  %v6044_v33 = vadd.f32 %v6043_v18, %v6042_v46  ;;  %v6064_v47 = vrot.slane %v6063_v36, 2 }
 0x5d8   :  { %v6055_v16 = vrot.slane %v6054_v2, 4  ;;  %9664 = vpow2.f32 %v5684_v32  ;;  %v5567_v1 = vsub.f32 %v13768_v51, %v5375_v29  ;;  %v5384_v0 = vrot.slane %v5383_v3, 4 }
 0x5d9   :  { %v5367_v4 = vrot.slane %v5366_v59, 1  ;;  %v6913_v48 = vmul.f32 %v15570_v39, %v6328_v61  ;;  %9666 = vrcp.f32 %v6039_v41  ;;  %v6053_v43 = vadd.f32 %v6052_v6, %v6051_v17  ;;  %v13824_v57 = vpop.eup %9660 }
 0x5da   :  { %v6065_v40 = vadd.f32 %v6064_v47, %v6063_v36  ;;  %v13822_v45 = vadd.f32 %v13703_v13, %v13386_v26  ;;  %v5690_v5 = vmul.f32 1.442695, %v5567_v1  ;;  %v5385_v46 = vmax.f32 %v5383_v3, %v5384_v0  ;;  %v15571_v36 = vld [vmem:[#allocation22_spill] sm:$0xff] }
 0x5db   :  { %v5368_v18 = vmax.f32 %v5366_v59, %v5367_v4  ;;  %7077 = vrot.lane.b32.xlu1 %v6913_v48, %s9878_s19  ;;  %v6330_v51 = vmul.f32 %v13468_v58, %v13375_v22  ;;  %9668 = vrcp.f32 %v6032_v31  ;;  %v6045_v50 = vrot.slane %v6044_v33, 1 }
 0x5dc   :  { %v6056_v44 = vadd.f32 %v6055_v16, %v6054_v2  ;;  %v5376_v17 = vsel %vm1599_vm0, %v13822_v45, -inf  ;;  %9670 = vpow2.f32 %v5690_v5  ;;  %v5386_v41 = vrot.slane %v5385_v46, 2 }
 0x5dd   :  { %v5566_v26 = vsub.f32 %v13784_v56, %v5368_v18  ;;  %v5377_v32 = vrot.slane %v5376_v17, 4  ;;  %9672 = vrcp.f32 %v6053_v43  ;;  %v6066_v6 = vrot.slane %v6065_v40, 1 }
 0x5de   :  { %v13832_v8 = vpop.eup %9662  ;;  %v6915_v29 = vmul.f32 %v15571_v36, %v6330_v51  ;;  %v13837_v22 = vadd.f32 %v13703_v13, %v13402_v21  ;;  %v5387_v61 = vmax.f32 %v5385_v46, %v5386_v41  ;;  %v6046_v2 = vadd.f32 %v6045_v50, %v6044_v33  ;;  %v13844_v21 = vpop.f32.mrb[114].mxu0  ;;  %v15574_v41 = vld [vmem:[#allocation31_spill] sm:$0xff] }
 0x5df   :  { %v6075_v58 = vsel %vm1599_vm0, %v13832_v8, 0.0  ;;  %v5688_v37 = vmul.f32 1.442695, %v5566_v26  ;;  %v5378_v31 = vmax.f32 %v5376_v17, %v5377_v32  ;;  %v6057_v56 = vrot.slane %v6056_v44, 2  ;;  %15572 = vst [vmem:[#allocation147_spill] sm:$0xff] %v13844_v21  ;;  %v13854_v43 = vpop.f32.mrb[115].mxu0 }
 0x5e0   :  { %v6076_v59 = vrot.slane %v6075_v58, 4  ;;  %7081 = vrot.lane.b32.xlu0 %v6915_v29, %s9878_s19  ;;  %v5397_v3 = vsel %vm1599_vm0, %v13837_v22, -inf  ;;  %v5388_v47 = vrot.slane %v5387_v61, 1  ;;  %v6067_v0 = vadd.f32 %v6066_v6, %v6065_v40  ;;  %15573 = vst [vmem:[#allocation148_spill] sm:$0xff] %v13854_v43 }
 0x5e1   :  { %9674 = vpow2.f32 %v5688_v37  ;;  %v5379_v16 = vrot.slane %v5378_v31, 2  ;;  %v5398_v1 = vrot.slane %v5397_v3, 4  ;;  %v6332_v33 = vmul.f32 %v13512_v62, %v13406_v34 }
 0x5e2   :  { %v13846_v4 = vpop.eup %9664  ;;  %v6077_v39 = vadd.f32 %v6076_v59, %v6075_v58  ;;  %v13852_v48 = vadd.f32 %v13703_v13, %v13412_v53  ;;  %v5389_v18 = vmax.f32 %v5387_v61, %v5388_v47  ;;  %v6058_v17 = vadd.f32 %v6057_v56, %v6056_v44 }
 0x5e3   :  { %v6068_v5 = vsel %vm1599_vm0, %v13846_v4, 0.0  ;;  %v5380_v46 = vmax.f32 %v5378_v31, %v5379_v16  ;;  %v5399_v51 = vmax.f32 %v5397_v3, %v5398_v1  ;;  %v13858_v50 = vpop.eup %9666  ;;  %v6917_v32 = vmul.f32 %v15574_v41, %v6332_v33 }
 0x5e4   :  { %v6078_v40 = vrot.slane %v6077_v39, 2  ;;  %v6069_v26 = vrot.slane %v6068_v5, 4  ;;  %v5569_v34 = vsub.f32 %v13808_v12, %v5389_v18  ;;  %v5390_v6 = vsel %vm1599_vm0, %v13852_v48, -inf }
 0x5e5   :  { %v5381_v62 = vrot.slane %v5380_v46, 1  ;;  %v5400_v53 = vrot.slane %v5399_v51, 2  ;;  %v13864_v36 = vpop.eup %9668  ;;  %7085 = vrot.lane.b32.xlu1 %v6917_v32, %s9878_s19  ;;  %v5391_v37 = vrot.slane %v5390_v6, 4  ;;  %v6333_v44 = vmul.f32 %v13489_v14, %v13388_v30 }
 0x5e6   :  { %v6079_v29 = vadd.f32 %v6078_v40, %v6077_v39  ;;  %v6070_v58 = vadd.f32 %v6069_v26, %v6068_v5  ;;  %v13869_v61 = vpop.eup %9670  ;;  %v5694_v31 = vmul.f32 1.442695, %v5569_v34  ;;  %v13873_v59 = vadd.f32 %v13703_v13, %v13443_v15 }
 0x5e7   :  { %15575 = vst [vmem:[#allocation7_spill] sm:$0xff] %v13869_v61  ;;  %v5382_v56 = vmax.f32 %v5380_v46, %v5381_v62  ;;  %v5401_v12 = vmax.f32 %v5399_v51, %v5400_v53  ;;  %v13875_v3 = vpop.eup %9672  ;;  %v6059_v47 = vrot.slane %v6058_v17, 1  ;;  %v6089_v1 = vsel %vm1599_vm0, %v13869_v61, 0.0  ;;  %v15576_v51 = vld [vmem:[#allocation16_spill] sm:$0xff] }
 0x5e8   :  { %v6071_v16 = vrot.slane %v6070_v58, 2  ;;  %v5392_v39 = vmax.f32 %v5390_v6, %v5391_v37  ;;  %v6090_v33 = vrot.slane %v6089_v1, 4  ;;  %9676 = vpow2.f32 %v5694_v31  ;;  %v13888_v6 = vpop.permute.xlu1 %3436 }
 0x5e9   :  { %v5568_v30 = vsub.f32 %v13822_v45, %v5382_v56  ;;  %v5402_v14 = vrot.slane %v5401_v12, 1  ;;  %v6080_v5 = vrot.slane %v6079_v29, 1  ;;  %v6918_v40 = vmul.f32 %v15576_v51, %v6333_v44 }
 0x5ea   :  { %v6072_v18 = vadd.f32 %v6071_v16, %v6070_v58  ;;  %v5393_v46 = vrot.slane %v5392_v39, 2  ;;  %v6091_v26 = vadd.f32 %v6090_v33, %v6089_v1  ;;  %v5411_v34 = vsel %vm1599_vm0, %v13873_v59, -inf  ;;  %v15578_v33 = vld [vmem:[#allocation30_spill] sm:$0xff] }
 0x5eb   :  { %v13881_v15 = vpop.eup %9674  ;;  %v5692_v41 = vmul.f32 1.442695, %v5568_v30  ;;  %v5403_v32 = vmax.f32 %v5401_v12, %v5402_v14  ;;  %9678 = vrcp.f32 %v6046_v2  ;;  %v6060_v62 = vadd.f32 %v6059_v47, %v6058_v17  ;;  %7087 = vrot.lane.b32.xlu0 %v6918_v40, %s9878_s19 }
 0x5ec   :  { %15577 = vst [vmem:[#allocation150_spill] sm:$0xff] %v13881_v15  ;;  %v6082_v53 = vsel %vm1599_vm0, %v13881_v15, 0.0  ;;  %v5394_v45 = vmax.f32 %v5392_v39, %v5393_v46  ;;  %v6073_v58 = vrot.slane %v6072_v18, 1  ;;  %v5412_v56 = vrot.slane %v5411_v34, 4  ;;  %v13906_v40 = vpop.permute.xlu1 %3446 }
 0x5ed   :  { %v6083_v37 = vrot.slane %v6082_v53, 4  ;;  %9680 = vpow2.f32 %v5692_v41  ;;  %v5571_v44 = vsub.f32 %v13837_v22, %v5403_v32  ;;  %v6334_v2 = vmul.f32 %v13535_v19, %v13432_v11  ;;  %v15582_v41 = vld [vmem:[#allocation131_spill] sm:$0xff] }
 0x5ee   :  { %9682 = vrcp.f32 %v6067_v0  ;;  %v5395_v31 = vrot.slane %v5394_v45, 1  ;;  %v6081_v17 = vadd.f32 %v6080_v5, %v6079_v29  ;;  %v6092_v12 = vrot.slane %v6091_v26, 2  ;;  %v15579_v5 = vld [vmem:[#allocation17_spill] sm:$0xff] }
 0x5ef   :  { %v5698_v47 = vmul.f32 1.442695, %v5571_v44  ;;  %v13895_v16 = vadd.f32 %v13703_v13, %v13454_v38  ;;  %9684 = vrcp.f32 %v6060_v62  ;;  %v5413_v39 = vmax.f32 %v5411_v34, %v5412_v56  ;;  %v15580_v38 = vld [vmem:[#allocation3_spill] sm:$0xff]  ;;  %v15583_v34 = vld [vmem:[#allocation165_spill] sm:$0xff] }
 0x5f0   :  { %v5396_v1 = vmax.f32 %v5394_v45, %v5395_v31  ;;  %v6919_v30 = vmul.f32 %v15578_v33, %v6334_v2  ;;  %v6074_v14 = vadd.f32 %v6073_v58, %v6072_v18  ;;  %v6084_v22 = vadd.f32 %v6083_v37, %v6082_v53  ;;  %v15584_v31 = vld [vmem:[#allocation28_spill] sm:$0xff] }
 0x5f1   :  { %9686 = vpow2.f32 %v5698_v47  ;;  %v5404_v0 = vsel %vm1599_vm0, %v13895_v16, -inf  ;;  %v5414_v19 = vrot.slane %v5413_v39, 2  ;;  %v6335_v46 = vmul.f32 %v15580_v38, %v15579_v5  ;;  %v15586_v33 = vld [vmem:[#allocation32_spill] sm:$0xff]  ;;  %v13933_v38 = vpop.permute.xlu1 %3440 }
 0x5f2   :  { %v5570_v11 = vsub.f32 %v13852_v48, %v5396_v1  ;;  %7089 = vrot.lane.b32.xlu1 %v6919_v30, %s9878_s19  ;;  %v5405_v29 = vrot.slane %v5404_v0, 4  ;;  %v13904_v51 = vpop.eup %9676  ;;  %9688 = vrcp.f32 %v6081_v17  ;;  %v6093_v18 = vadd.f32 %v6092_v12, %v6091_v26  ;;  %15588 = vst [vmem:[#allocation149_spill] sm:$0xff] %v13933_v38 }
 0x5f3   :  { %15581 = vst [vmem:[#allocation145_spill] sm:$0xff] %v13904_v51  ;;  %v13910_v32 = vadd.f32 %v13703_v13, %v15582_v41  ;;  %v6336_v48 = vmul.f32 %v13581_v7, %v15583_v34  ;;  %v6103_v62 = vsel %vm1599_vm0, %v13904_v51, 0.0  ;;  %v5415_v45 = vmax.f32 %v5413_v39, %v5414_v19 }
 0x5f4   :  { %v5696_v53 = vmul.f32 1.442695, %v5570_v11  ;;  %v5406_v58 = vmax.f32 %v5404_v0, %v5405_v29  ;;  %9690 = vrcp.f32 %v6074_v14  ;;  %v6085_v37 = vrot.slane %v6084_v22, 2  ;;  %v15587_v29 = vld [vmem:[#allocation166_spill] sm:$0xff] }
 0x5f5   :  { %v6104_v44 = vrot.slane %v6103_v62, 4  ;;  %v6920_v56 = vmul.f32 %v15584_v31, %v6335_v46  ;;  %v13917_v2 = vpop.eup %9678  ;;  %v5416_v26 = vrot.slane %v5415_v45, 1  ;;  %v5425_v12 = vsel %vm1599_vm0, %v13910_v32, -inf  ;;  %v15590_v31 = vld [vmem:[#allocation139_spill] sm:$0xff] }
 0x5f6   :  { %9692 = vpow2.f32 %v5696_v53  ;;  %v5407_v17 = vrot.slane %v5406_v58, 2  ;;  %v6094_v47 = vrot.slane %v6093_v18, 1  ;;  %v5426_v39 = vrot.slane %v5425_v12, 4 }
 0x5f7   :  { %v13921_v7 = vpop.eup %9680  ;;  %v6105_v1 = vadd.f32 %v6104_v44, %v6103_v62  ;;  %7091 = vrot.lane.b32.xlu0 %v6920_v56, %s9878_s19  ;;  %v6921_v30 = vmul.f32 %v15586_v33, %v6336_v48  ;;  %v5417_v11 = vmax.f32 %v5415_v45, %v5416_v26  ;;  %v13931_v5 = vadd.f32 %v13703_v13, %v15587_v29 }
 0x5f8   :  { %15585 = vst [vmem:[#allocation20_spill] sm:$0xff] %v13921_v7  ;;  %v13925_v14 = vpop.eup %9682  ;;  %v6096_v0 = vsel %vm1599_vm0, %v13921_v7, 0.0  ;;  %v5408_v19 = vmax.f32 %v5406_v58, %v5407_v17  ;;  %v6086_v46 = vadd.f32 %v6085_v37, %v6084_v22  ;;  %v5427_v62 = vmax.f32 %v5425_v12, %v5426_v39  ;;  %v15589_v58 = vld [vmem:[#allocation164_spill] sm:$0xff]  ;;  %v13945_v12 = vpop.f32.mrb[116].mxu0 }
 0x5f9   :  { %v6106_v41 = vrot.slane %v6105_v1, 2  ;;  %v6097_v34 = vrot.slane %v6096_v0, 4  ;;  %7093 = vrot.lane.b32.xlu1 %v6921_v30, %s9878_s19  ;;  %v13936_v48 = vpop.eup %9684  ;;  %v5573_v53 = vsub.f32 %v13873_v59, %v5417_v11  ;;  %v5418_v45 = vsel %vm1599_vm0, %v13931_v5, -inf  ;;  %15592 = vst [vmem:[#allocation5_spill] sm:$0xff] %v13945_v12  ;;  %v15593_v11 = vld [vmem:[#allocation25_spill] sm:$0xff] }
 0x5fa   :  { %v5409_v44 = vrot.slane %v5408_v19, 1  ;;  %v6337_v56 = vmul.f32 %v15590_v31, %v15589_v58  ;;  %v5428_v37 = vrot.slane %v5427_v62, 2  ;;  %v5419_v33 = vrot.slane %v5418_v45, 4 }
 0x5fb   :  { %v13943_v26 = vpop.eup %9686  ;;  %v6107_v17 = vadd.f32 %v6106_v41, %v6105_v1  ;;  %v6098_v22 = vadd.f32 %v6097_v34, %v6096_v0  ;;  %v5702_v30 = vmul.f32 1.442695, %v5573_v53  ;;  %v6087_v21 = vrot.slane %v6086_v46, 1  ;;  %v15594_v41 = vld [vmem:[#allocation132_spill] sm:$0xff] }
 0x5fc   :  { %15591 = vst [vmem:[#allocation153_spill] sm:$0xff] %v13943_v26  ;;  %v6117_v39 = vsel %vm1599_vm0, %v13943_v26, 0.0  ;;  %v5410_v59 = vmax.f32 %v5408_v19, %v5409_v44  ;;  %v6922_v29 = vmul.f32 %v15593_v11, %v6337_v56  ;;  %v13950_v43 = vpop.eup %9688  ;;  %v5429_v31 = vmax.f32 %v5427_v62, %v5428_v37  ;;  %v13960_v19 = vpop.permute.xlu1 %3444 }
 0x5fd   :  { %v6099_v7 = vrot.slane %v6098_v22, 2  ;;  %v6118_v58 = vrot.slane %v6117_v39, 4  ;;  %9694 = vpow2.f32 %v5702_v30  ;;  %v5420_v0 = vmax.f32 %v5418_v45, %v5419_v33  ;;  %15595 = vst [vmem:[#allocation152_spill] sm:$0xff] %v13960_v19  ;;  %v13962_v26 = vpop.f32.mrb[117].mxu0  ;;  %v15597_v33 = vld [vmem:[#allocation127_spill] sm:$0xff] }
 0x5fe   :  { %v5572_v1 = vsub.f32 %v13895_v16, %v5410_v59  ;;  %7095 = vrot.lane.b32.xlu0 %v6922_v29, %s9878_s19  ;;  %v13956_v34 = vadd.f32 %v13703_v13, %v15594_v41  ;;  %v13958_v53 = vpop.eup %9690  ;;  %v6095_v44 = vadd.f32 %v6094_v47, %v6093_v18  ;;  %v6108_v56 = vrot.slane %v6107_v17, 1  ;;  %15596 = vst [vmem:[#allocation154_spill] sm:$0xff] %v13962_v26  ;;  %v15598_v19 = vld [vmem:[#allocation27_spill] sm:$0xff] }
 0x5ff   :  { %v6119_v11 = vadd.f32 %v6118_v58, %v6117_v39  ;;  %v5430_v12 = vrot.slane %v5429_v31, 1  ;;  %v5421_v45 = vrot.slane %v5420_v0, 2  ;;  %v6338_v30 = vmul.f32 %v13616_v20, %v15597_v33  ;;  %v15599_v20 = vld [vmem:[#allocation136_spill] sm:$0xff] }
 0x600   :  { %v13964_v62 = vpop.eup %9692  ;;  %v5700_v16 = vmul.f32 1.442695, %v5572_v1  ;;  %v5439_v37 = vsel %vm1599_vm0, %v13956_v34, -inf  ;;  %v6088_v59 = vadd.f32 %v6087_v21, %v6086_v46  ;;  %v6100_v29 = vadd.f32 %v6099_v7, %v6098_v22  ;;  %v13978_v7 = vpop.permute.xlu1 %3452 }
 0x601   :  { %v6120_v41 = vrot.slane %v6119_v11, 2  ;;  %v6110_v18 = vsel %vm1599_vm0, %v13964_v62, 0.0  ;;  %v5431_v39 = vmax.f32 %v5429_v31, %v5430_v12  ;;  %v5422_v58 = vmax.f32 %v5420_v0, %v5421_v45  ;;  %v15600_v12 = vld [vmem:[#allocation8_spill] sm:$0xff] }
 0x602   :  { %v6111_v47 = vrot.slane %v6110_v18, 4  ;;  %9696 = vpow2.f32 %v5700_v16  ;;  %v6109_v26 = vadd.f32 %v6108_v56, %v6107_v17  ;;  %v5440_v1 = vrot.slane %v5439_v37, 4  ;;  %v15601_v16 = vld [vmem:[#allocation33_spill] sm:$0xff] }
 0x603   :  { %9698 = vrcp.f32 %v6095_v44  ;;  %v6923_v51 = vmul.f32 %v15598_v19, %v6338_v30  ;;  %v5575_v61 = vsub.f32 %v13910_v32, %v5431_v39  ;;  %v5423_v15 = vrot.slane %v5422_v58, 1 }
 0x604   :  { %v6112_v38 = vadd.f32 %v6111_v47, %v6110_v18  ;;  %v13976_v21 = vadd.f32 %v13703_v13, %v15599_v20  ;;  %9700 = vrcp.f32 %v6088_v59  ;;  %v6101_v46 = vrot.slane %v6100_v29, 1  ;;  %v15603_v47 = vld [vmem:[#allocation11_spill] sm:$0xff]  ;;  %v15604_v20 = vld [vmem:[#allocation2_spill] sm:$0xff] }
 0x605   :  { %v5441_v22 = vmax.f32 %v5439_v37, %v5440_v1  ;;  %7097 = vrot.lane.b32.xlu1 %v6923_v51, %s9878_s19  ;;  %v6339_v17 = vmul.f32 %v13587_v63, %v15600_v12  ;;  %v6121_v31 = vadd.f32 %v6120_v41, %v6119_v11  ;;  %v5706_v0 = vmul.f32 1.442695, %v5575_v61  ;;  %v15602_v37 = vld [vmem:[#allocation137_spill] sm:$0xff] }
 0x606   :  { %v5424_v19 = vmax.f32 %v5422_v58, %v5423_v15  ;;  %v5432_v32 = vsel %vm1599_vm0, %v13976_v21, -inf  ;;  %9702 = vrcp.f32 %v6109_v26  ;;  %v6113_v30 = vrot.slane %v6112_v38, 2  ;;  %v13995_v58 = vpop.permute.xlu1 %3462 }
 0x607   :  { %v5442_v44 = vrot.slane %v5441_v22, 2  ;;  %v5433_v56 = vrot.slane %v5432_v32, 4  ;;  %v6924_v45 = vmul.f32 %v15601_v16, %v6339_v17  ;;  %v13986_v33 = vpop.eup %9694  ;;  %9704 = vpow2.f32 %v5706_v0  ;;  %v15607_v16 = vld [vmem:[#allocation34_spill] sm:$0xff] }
 0x608   :  { %v5574_v51 = vsub.f32 %v13931_v5, %v5424_v19  ;;  %v6341_v63 = vmul.f32 %v13643_v42, %v15602_v37  ;;  %v6102_v11 = vadd.f32 %v6101_v46, %v6100_v29  ;;  %v6131_v61 = vsel %vm1599_vm0, %v13986_v33, 0.0  ;;  %v15605_v29 = vld [vmem:[#allocation134_spill] sm:$0xff]  ;;  %v15608_v37 = vld [vmem:[#allocation23_spill] sm:$0xff] }
 0x609   :  { %v5443_v15 = vmax.f32 %v5441_v22, %v5442_v44  ;;  %v5434_v59 = vmax.f32 %v5432_v32, %v5433_v56  ;;  %7099 = vrot.lane.b32.xlu0 %v6924_v45, %s9878_s19  ;;  %v6122_v26 = vrot.slane %v6121_v31, 1  ;;  %v6132_v41 = vrot.slane %v6131_v61, 4  ;;  %v9855_v22 = vld [vmem:[%s15178_s2 + $0x160] sm:$0xff] }
 0x60a   :  { %v5704_v18 = vmul.f32 1.442695, %v5574_v51  ;;  %v6926_v39 = vmul.f32 %v15603_v47, %v6341_v63  ;;  %v6343_v42 = vmul.f32 %v13689_v54, %v15604_v20  ;;  %v6340_v46 = vmul.f32 %v13655_v10, %v15605_v29  ;;  %v15606_v19 = vld [vmem:[#allocation130_spill] sm:$0xff]  ;;  %v15609_v47 = vld [vmem:[#allocation19_spill] sm:$0xff] }
 0x60b   :  { %v5444_v1 = vrot.slane %v5443_v15, 1  ;;  %v5435_v5 = vrot.slane %v5434_v59, 2  ;;  %v14007_v17 = vadd.f32 %v9855_v22, %v13888_v6  ;;  %v6114_v0 = vadd.f32 %v6113_v30, %v6112_v38 }
 0x60c   :  { %v14001_v12 = vpop.eup %9696  ;;  %9706 = vpow2.f32 %v5704_v18  ;;  %7103 = vrot.lane.b32.xlu1 %v6926_v39, %s9878_s19  ;;  %v6342_v32 = vmul.f32 %v13698_v24, %v15606_v19  ;;  %v6928_v45 = vmul.f32 %v15607_v16, %v6343_v42  ;;  %v6133_v51 = vadd.f32 %v6132_v41, %v6131_v61  ;;  %v15612_v42 = vld [vmem:[#allocation143_spill] sm:$0xff] }
 0x60d   :  { %v14012_v54 = vpop.eup %9698  ;;  %v6124_v10 = vsel %vm1599_vm0, %v14001_v12, 0.0  ;;  %v5445_v44 = vmax.f32 %v5443_v15, %v5444_v1  ;;  %v5436_v56 = vmax.f32 %v5434_v59, %v5435_v5  ;;  %9708 = vrcp.f32 %v6102_v11  ;;  %v15610_v11 = vld [vmem:[#allocation24_spill] sm:$0xff]  ;;  %v15613_v19 = vld [vmem:[#allocation39_spill] sm:$0xff] }
 0x60e   :  { %v6125_v6 = vrot.slane %v6124_v10, 4  ;;  %v6925_v38 = vmul.f32 %v15608_v37, %v6340_v46  ;;  %v14018_v30 = vpop.eup %9700  ;;  %v6123_v63 = vadd.f32 %v6122_v26, %v6121_v31  ;;  %7107 = vrot.lane.b32.xlu0 %v6928_v45, %s9878_s19  ;;  %v6345_v39 = vmul.f32 %v13722_v9, %v15609_v47  ;;  %v14030_v31 = vpop.permute.xlu1 %3456  ;;  %v15611_v5 = vld [vmem:[#allocation36_spill] sm:$0xff] }
 0x60f   :  { %v5577_v18 = vsub.f32 %v13956_v34, %v5445_v44  ;;  %v5437_v24 = vrot.slane %v5436_v56, 1  ;;  %v6115_v15 = vrot.slane %v6114_v0, 1  ;;  %v6927_v61 = vmul.f32 %v15610_v11, %v6342_v32 }
 0x610   :  { %v6126_v59 = vadd.f32 %v6125_v6, %v6124_v10  ;;  %7101 = vrot.lane.b32.xlu1 %v6925_v38, %s9878_s19  ;;  %v6347_v41 = vmul.f32 %v13770_v60, %v13638_v28  ;;  %v14028_v1 = vpop.eup %9702  ;;  %v6930_v20 = vmul.f32 %v15611_v5, %v6345_v39  ;;  %v14035_v9 = vadd.f32 %v13703_v13, %v15612_v42  ;;  %v15614_v10 = vld [vmem:[#allocation129_spill] sm:$0xff] }
 0x611   :  { %v5710_v34 = vmul.f32 1.442695, %v5577_v18  ;;  %v5438_v26 = vmax.f32 %v5436_v56, %v5437_v24  ;;  %v14037_v29 = vpop.eup %9704  ;;  %v6134_v46 = vrot.slane %v6133_v51, 2  ;;  %v6344_v28 = vmul.f32 %v13726_v27, %v15614_v10  ;;  %v15615_v18 = vld [vmem:[#allocation140_spill] sm:$0xff]  ;;  %v15616_v24 = vld [vmem:[#allocation138_spill] sm:$0xff] }
 0x612   :  { %v6127_v22 = vrot.slane %v6126_v59, 2  ;;  %v6932_v32 = vmul.f32 %v15613_v19, %v6347_v41  ;;  %v6145_v60 = vsel %vm1599_vm0, %v14037_v29, 0.0  ;;  %7105 = vrot.lane.b32.xlu0 %v6927_v61, %s9878_s19  ;;  %v5453_v56 = vsel %vm1599_vm0, %v14035_v9, -inf  ;;  %v15620_v10 = vld [vmem:[#allocation46_spill] sm:$0xff] }
 0x613   :  { %9710 = vpow2.f32 %v5710_v34  ;;  %v5576_v44 = vsub.f32 %v13976_v21, %v5438_v26  ;;  %v6116_v16 = vadd.f32 %v6115_v15, %v6114_v0  ;;  %v6146_v6 = vrot.slane %v6145_v60, 4  ;;  %v15617_v21 = vld [vmem:[#allocation144_spill] sm:$0xff]  ;;  %v15618_v15 = vld [vmem:[#allocation29_spill] sm:$0xff]  ;;  %v14060_v34 = vpop.permute.xlu1 %3460 }
 0x614   :  { %v6128_v45 = vadd.f32 %v6127_v22, %v6126_v59  ;;  %7111 = vrot.lane.b32.xlu1 %v6930_v20, %s9878_s19  ;;  %v5454_v37 = vrot.slane %v5453_v56, 4  ;;  %v14051_v27 = vadd.f32 %v13703_v13, %v15615_v18  ;;  %v6346_v47 = vmul.f32 %v13780_v55, %v15616_v24 }
 0x615   :  { %v5708_v38 = vmul.f32 1.442695, %v5576_v44  ;;  %v6348_v39 = vmul.f32 %v13824_v57, %v15617_v21  ;;  %v6135_v61 = vadd.f32 %v6134_v46, %v6133_v51  ;;  %v6147_v0 = vadd.f32 %v6146_v6, %v6145_v60  ;;  %v15619_v46 = vld [vmem:[#allocation37_spill] sm:$0xff]  ;;  %v15621_v60 = vld [vmem:[#allocation135_spill] sm:$0xff] }
 0x616   :  { %v14057_v11 = vpop.eup %9706  ;;  %v6929_v59 = vmul.f32 %v15618_v15, %v6344_v28  ;;  %v5455_v41 = vmax.f32 %v5453_v56, %v5454_v37  ;;  %v6129_v26 = vrot.slane %v6128_v45, 1  ;;  %7115 = vrot.lane.b32.xlu0 %v6932_v32, %s9878_s19  ;;  %v5446_v55 = vsel %vm1599_vm0, %v14051_v27, -inf  ;;  %v15622_v21 = vld [vmem:[#allocation43_spill] sm:$0xff] }
 0x617   :  { %v6138_v5 = vsel %vm1599_vm0, %v14057_v11, 0.0  ;;  %9712 = vpow2.f32 %v5708_v38  ;;  %v14067_v57 = vpop.eup %9708  ;;  %v6148_v20 = vrot.slane %v6147_v0, 2  ;;  %v6931_v22 = vmul.f32 %v15619_v46, %v6346_v47 }
 0x618   :  { %v6139_v51 = vrot.slane %v6138_v5, 4  ;;  %7109 = vrot.lane.b32.xlu1 %v6929_v59, %s9878_s19  ;;  %v5456_v42 = vrot.slane %v5455_v41, 2  ;;  %v5447_v19 = vrot.slane %v5446_v55, 4  ;;  %v6933_v28 = vmul.f32 %v15620_v10, %v6348_v39  ;;  %v15623_v39 = vld [vmem:[#allocation133_spill] sm:$0xff] }
 0x619   :  { %v6349_v44 = vmul.f32 %v13797_v23, %v15621_v60  ;;  %v6350_v32 = vmul.f32 %v13864_v36, %v13741_v25  ;;  %9714 = vrcp.f32 %v6123_v63  ;;  %v6136_v56 = vrot.slane %v6135_v61, 1  ;;  %v9856_v63 = vld [vmem:[%s15178_s2 + $0x188] sm:$0xff] }
 0x61a   :  { %v6140_v6 = vadd.f32 %v6139_v51, %v6138_v5  ;;  %v5457_v37 = vmax.f32 %v5455_v41, %v5456_v42  ;;  %v6130_v38 = vadd.f32 %v6129_v26, %v6128_v45  ;;  %v6149_v18 = vadd.f32 %v6148_v20, %v6147_v0  ;;  %7113 = vrot.lane.b32.xlu0 %v6931_v22, %s9878_s19  ;;  %v14091_v0 = vpop.permute.xlu1 %3468  ;;  %v15624_v26 = vld [vmem:[#allocation42_spill] sm:$0xff] }
 0x61b   :  { %v5448_v24 = vmax.f32 %v5446_v55, %v5447_v19  ;;  %v6935_v47 = vmul.f32 %v15622_v21, %v6350_v32  ;;  %v6351_v23 = vmul.f32 %v13858_v50, %v15623_v39  ;;  %v6353_v25 = vmul.f32 %v13875_v3, %v13764_v52  ;;  %v15626_v22 = vld [vmem:[#allocation58_spill] sm:$0xff]  ;;  %v15627_v32 = vld [vmem:[#allocation4_spill] sm:$0xff] }
 0x61c   :  { %v6141_v15 = vrot.slane %v6140_v6, 2  ;;  %v5458_v59 = vrot.slane %v5457_v37, 1  ;;  %7117 = vrot.lane.b32.xlu1 %v6933_v28, %s9878_s19  ;;  %v14089_v45 = vadd.f32 %v9856_v63, %v13906_v40  ;;  %9716 = vrcp.f32 %v6116_v16 }
 0x61d   :  { %v14083_v36 = vpop.eup %9710  ;;  %v5449_v41 = vrot.slane %v5448_v24, 2  ;;  %v6934_v5 = vmul.f32 %v15624_v26, %v6349_v44  ;;  %v14094_v55 = vadd.f32 %v6136_v56, %v6135_v61  ;;  %9718 = vrcp.f32 %v6130_v38  ;;  %v15625_v61 = vld [vmem:[#allocation56_spill] sm:$0xff] }
 0x61e   :  { %v6142_v50 = vadd.f32 %v6141_v15, %v6140_v6  ;;  %v6159_v52 = vsel %vm1599_vm0, %v14083_v36, 0.0  ;;  %v5459_v3 = vmax.f32 %v5457_v37, %v5458_v59  ;;  %v6355_v40 = vmul.f32 %v13925_v14, %v13799_v35  ;;  %v15628_v6 = vld [vmem:[#allocation10_spill] sm:$0xff]  ;;  %v14117_v38 = vpop.permute.xlu1 %3478  ;;  %v15633_v26 = vld [vmem:[#allocation60_spill] sm:$0xff] }
 0x61f   :  { %v6160_v20 = vrot.slane %v6159_v52, 4  ;;  %v5450_v51 = vmax.f32 %v5448_v24, %v5449_v41  ;;  %7119 = vrot.lane.b32.xlu0 %v6934_v5, %s9878_s19  ;;  %v6150_v42 = vrot.slane %v6149_v18, 1  ;;  %v6936_v46 = vmul.f32 %v15625_v61, %v6351_v23  ;;  %15629 = vst [vmem:[#allocation26_spill] sm:$0xff] %v14117_v38 }
 0x620   :  { %v5579_v16 = vsub.f32 %v14035_v9, %v5459_v3  ;;  %7121 = vrot.lane.b32.xlu1 %v6935_v47, %s9878_s19  ;;  %v6938_v19 = vmul.f32 %v15626_v22, %v6353_v25  ;;  %v6143_v28 = vrot.slane %v6142_v50, 1  ;;  %v6352_v56 = vmul.f32 %v13917_v2, %v15627_v32  ;;  %v15630_v47 = vld [vmem:[#allocation62_spill] sm:$0xff] }
 0x621   :  { %v14105_v10 = vpop.eup %9712  ;;  %v6161_v60 = vadd.f32 %v6160_v20, %v6159_v52  ;;  %v5451_v44 = vrot.slane %v5450_v51, 1  ;;  %v6354_v9 = vmul.f32 %v13936_v48, %v13810_v49  ;;  %v14115_v37 = vadd.f32 %v13703_v13, %v15628_v6  ;;  %v14129_v49 = vld [vmem:[%s15182_s12] ss:$0 sm:$0xff]  ;;  %v15638_v6 = vld [vmem:[#allocation149_spill] sm:$0xff] }
 0x622   :  { %v6152_v35 = vsel %vm1599_vm0, %v14105_v10, 0.0  ;;  %v5714_v14 = vmul.f32 1.442695, %v5579_v16  ;;  %v6940_v15 = vmul.f32 %v15630_v47, %v6355_v40  ;;  %v6356_v2 = vmul.f32 %v13958_v53, %v13846_v4  ;;  %v15631_v48 = vld [vmem:[#allocation18_spill] sm:$0xff]  ;;  %v15632_v53 = vld [vmem:[#allocation47_spill] sm:$0xff] }
 0x623   :  { %v6153_v24 = vrot.slane %v6152_v35, 4  ;;  %v5452_v21 = vmax.f32 %v5450_v51, %v5451_v44  ;;  %7123 = vrot.lane.b32.xlu0 %v6936_v46, %s9878_s19  ;;  %v9715_v59 = vpop.eup %9714  ;;  %v6151_v39 = vadd.f32 %v6150_v42, %v6149_v18  ;;  %v6162_v23 = vrot.slane %v6161_v60, 2  ;;  %v15634_v42 = vld [vmem:[#allocation52_spill] sm:$0xff]  ;;  %v15635_v22 = vld [vmem:[#allocation150_spill] sm:$0xff]  ;;  %v14149_v44 = vpop.permute.xlu1 %3472 }
 0x624   :  { %7127 = vrot.lane.b32.xlu1 %v6938_v19, %s9878_s19  ;;  %v5467_v13 = vsel %vm1599_vm0, %v14115_v37, -inf  ;;  %v14133_v25 = vadd.f32 %v14129_v49, %v15631_v48  ;;  %9720 = vpow2.f32 %v5714_v14  ;;  %v6937_v18 = vmul.f32 %v15632_v53, %v6352_v56  ;;  %15636 = vst [vmem:[#allocation151_spill] sm:$0xff] %v14149_v44  ;;  %v15643_v53 = vld [vmem:[#allocation64_spill] sm:$0xff] }
 0x625   :  { %v6154_v63 = vadd.f32 %v6153_v24, %v6152_v35  ;;  %v5578_v4 = vsub.f32 %v14051_v27, %v5452_v21  ;;  %v6144_v41 = vadd.f32 %v6143_v28, %v6142_v50  ;;  %v6939_v5 = vmul.f32 %v15633_v26, %v6354_v9  ;;  %v15637_v35 = vld [vmem:[#allocation7_spill] sm:$0xff]  ;;  %v9858_v9 = vld [vmem:[%s15178_s2 + $0x170] sm:$0xff] }
 0x626   :  { %v5468_v52 = vrot.slane %v5467_v13, 4  ;;  %v5460_v3 = vsel %vm1599_vm0, %v14133_v25, -inf  ;;  %v9717_v20 = vpop.eup %9716  ;;  %v6941_v16 = vmul.f32 %v15634_v42, %v6356_v2  ;;  %v14142_v46 = vadd.f32 %v6162_v23, %v6161_v60  ;;  %v7040_v60 = vpop.permute.xlu0 %7039 }
 0x627   :  { %v6155_v51 = vrot.slane %v6154_v63, 2  ;;  %v5712_v40 = vmul.f32 1.442695, %v5578_v4  ;;  %7131 = vrot.lane.b32.xlu0 %v6940_v15, %s9878_s19  ;;  %v5461_v61 = vrot.slane %v5460_v3, 4  ;;  %v6357_v50 = vmul.f32 %v13950_v43, %v13832_v8  ;;  %v9719_v28 = vpop.eup %9718  ;;  %v15639_v43 = vld [vmem:[#allocation145_spill] sm:$0xff]  ;;  %v7038_v26 = vpop.permute.xlu1 %7037 }
 0x628   :  { %7125 = vrot.lane.b32.xlu1 %v6937_v18, %s9878_s19  ;;  %v5469_v27 = vmax.f32 %v5467_v13, %v5468_v52  ;;  %v6358_v19 = vmul.f32 %v14018_v30, %v15635_v22  ;;  %v6359_v14 = vmul.f32 %v14012_v54, %v15637_v35  ;;  %v14157_v24 = vadd.f32 %v9858_v9, %v15638_v6  ;;  %v15640_v54 = vld [vmem:[#allocation153_spill] sm:$0xff]  ;;  %v15641_v13 = vld [vmem:[#allocation51_spill] sm:$0xff]  ;;  %v15645_v52 = vld [vmem:[#allocation66_spill] sm:$0xff] }
 0x629   :  { %v6156_v32 = vadd.f32 %v6155_v51, %v6154_v63  ;;  %9722 = vpow2.f32 %v5712_v40  ;;  %v5462_v56 = vmax.f32 %v5460_v3, %v5461_v61  ;;  %v6361_v30 = vmul.f32 %v14028_v1, %v15639_v43  ;;  %v15642_v63 = vld [vmem:[#allocation48_spill] sm:$0xff]  ;;  %v15650_v43 = vld [vmem:[#allocation105_spill] sm:$0xff] }
 0x62a   :  { %9724 = vrcp.f32 %v14094_v55  ;;  %v5470_v8 = vrot.slane %v5469_v27, 2  ;;  %v6363_v15 = vmul.f32 %v9715_v59, %v15640_v54  ;;  %v6164_v2 = vrot.slane %v14142_v46, 1 }
 0x62b   :  { %9726 = vrcp.f32 %v6151_v39  ;;  %v6157_v21 = vrot.slane %v6156_v32, 1  ;;  %7129 = vrot.lane.b32.xlu0 %v6939_v5, %s9878_s19  ;;  %v5463_v47 = vrot.slane %v5462_v56, 2  ;;  %v6943_v48 = vmul.f32 %v15641_v13, %v6358_v19  ;;  %v15644_v39 = vld [vmem:[#allocation20_spill] sm:$0xff]  ;;  %v15651_v13 = vld [vmem:[#allocation53_spill] sm:$0xff] }
 0x62c   :  { %9728 = vrcp.f32 %v6144_v41  ;;  %7133 = vrot.lane.b32.xlu1 %v6941_v16, %s9878_s19  ;;  %v5471_v23 = vmax.f32 %v5469_v27, %v5470_v8  ;;  %v6942_v4 = vmul.f32 %v15642_v63, %v6357_v50  ;;  %v6944_v1 = vmul.f32 %v15643_v53, %v6359_v14  ;;  %v15646_v41 = vld [vmem:[#allocation79_spill] sm:$0xff]  ;;  %v15647_v16 = vld [vmem:[#allocation70_spill] sm:$0xff]  ;;  %v7044_v50 = vpop.permute.xlu0 %7043 }
 0x62d   :  { %v5464_v55 = vmax.f32 %v5462_v56, %v5463_v47  ;;  %v6360_v18 = vmul.f32 %v14067_v57, %v15644_v39  ;;  %v6946_v59 = vmul.f32 %v15645_v52, %v6361_v30  ;;  %v7254_v3 = vmul.f32 %v7040_v60, %v15646_v41  ;;  %v15648_v56 = vld [vmem:[#allocation80_spill] sm:$0xff] }
 0x62e   :  { %v5472_v5 = vrot.slane %v5471_v23, 1  ;;  %v14173_v51 = vpop.eup %9720  ;;  %v6158_v40 = vadd.f32 %v6157_v21, %v6156_v32  ;;  %v6948_v61 = vmul.f32 %v15647_v16, %v6363_v15  ;;  %v6362_v27 = vmul.f32 %v9717_v20, %v13964_v62  ;;  %v15649_v20 = vld [vmem:[#allocation146_spill] sm:$0xff] }
 0x62f   :  { %v5465_v42 = vrot.slane %v5464_v55, 1  ;;  %7135 = vrot.lane.b32.xlu0 %v6942_v4, %s9878_s19  ;;  %v6173_v57 = vsel %vm1599_vm0, %v14173_v51, 0.0  ;;  %v7333_v19 = vsel %vm7325_vm1, %v7254_v3, 0.0  ;;  %v7253_v35 = vmul.f32 %v7038_v26, %v15648_v56  ;;  %v15654_v56 = vld [vmem:[#allocation152_spill] sm:$0xff] }
 0x630   :  { %v5473_v22 = vmax.f32 %v5471_v23, %v5472_v5  ;;  %7137 = vrot.lane.b32.xlu1 %v6943_v48, %s9878_s19  ;;  %v6174_v14 = vrot.slane %v6173_v57, 4  ;;  %v6364_v60 = vmul.f32 %v9719_v28, %v14001_v12  ;;  %v7334_v9 = vrot.slane %v7333_v19, 4 }
 0x631   :  { %v5466_v32 = vmax.f32 %v5464_v55, %v5465_v42  ;;  %v7326_v62 = vsel %vm7325_vm1, %v7253_v35, 0.0  ;;  %v14188_v8 = vadd.f32 %v14129_v49, %v15649_v20  ;;  %v7256_v30 = vmul.f32 %v7044_v50, %v15650_v43 }
 0x632   :  { %v5581_v6 = vsub.f32 %v14115_v37, %v5473_v22  ;;  %v6175_v47 = vadd.f32 %v6174_v14, %v6173_v57  ;;  %v7335_v15 = vadd.f32 %v7334_v9, %v7333_v19  ;;  %v7327_v12 = vrot.slane %v7326_v62, 4  ;;  %v15653_v57 = vld [vmem:[#allocation6_spill] sm:$0xff] }
 0x633   :  { %v14191_v21 = vpop.eup %9722  ;;  %v5580_v54 = vsub.f32 %v14133_v25, %v5466_v32  ;;  %7139 = vrot.lane.b32.xlu0 %v6944_v1, %s9878_s19  ;;  %v6945_v48 = vmul.f32 %v15651_v13, %v6360_v18  ;;  %v5481_v55 = vsel %vm1599_vm0, %v14188_v8, -inf  ;;  %v15652_v25 = vld [vmem:[#allocation57_spill] sm:$0xff]  ;;  %v7347_v41 = vsel %vm7325_vm1, %v7256_v30, 0.0  ;;  %v9859_v19 = vld [vmem:[%s15178_s2 + $0x180] sm:$0xff]  ;;  %v15656_v32 = vld [vmem:[#allocation68_spill] sm:$0xff] }
 0x634   :  { %v9725_v28 = vpop.eup %9724  ;;  %v6166_v37 = vsel %vm1599_vm0, %v14191_v21, 0.0  ;;  %v5718_v23 = vmul.f32 1.442695, %v5581_v6  ;;  %7143 = vrot.lane.b32.xlu1 %v6946_v59, %s9878_s19  ;;  %v6949_v39 = vmul.f32 %v15652_v25, %v6364_v60  ;;  %v7336_v1 = vrot.slane %v7335_v15, 2  ;;  %v9862_v13 = vld [vmem:[%s15178_s2 + $0x1b0] sm:$0xff] }
 0x635   :  { %v9727_v63 = vpop.eup %9726  ;;  %v6167_v4 = vrot.slane %v6166_v37, 4  ;;  %v5716_v53 = vmul.f32 1.442695, %v5580_v54  ;;  %v7328_v5 = vadd.f32 %v7327_v12, %v7326_v62  ;;  %v5482_v52 = vrot.slane %v5481_v55, 4 }
 0x636   :  { %v9729_v26 = vpop.eup %9728  ;;  %9730 = vpow2.f32 %v5718_v23  ;;  %v6176_v3 = vrot.slane %v6175_v47, 2  ;;  %v7337_v18 = vadd.f32 %v7336_v1, %v7335_v15  ;;  %v7348_v50 = vrot.slane %v7347_v41, 4  ;;  %v7042_v23 = vpop.permute.xlu0 %7041 }
 0x637   :  { %v6168_v42 = vadd.f32 %v6167_v4, %v6166_v37  ;;  %9732 = vpow2.f32 %v5716_v53  ;;  %7147 = vrot.lane.b32.xlu0 %v6948_v61, %s9878_s19  ;;  %v7329_v59 = vrot.slane %v7328_v5, 2  ;;  %v5483_v16 = vmax.f32 %v5481_v55, %v5482_v52  ;;  %v9860_v61 = vld [vmem:[%s15178_s2 + $0x1a0] sm:$0xff]  ;;  %v7048_v1 = vpop.permute.xlu1 %7047 }
 0x638   :  { %7141 = vrot.lane.b32.xlu1 %v6945_v48, %s9878_s19  ;;  %v14207_v22 = vadd.f32 %v14129_v49, %v15653_v57  ;;  %v14213_v35 = vadd.f32 %v9859_v19, %v15654_v56  ;;  %v14219_v14 = vadd.f32 %v9860_v61, %v13978_v7  ;;  %v6947_v60 = vmul.f32 %v15656_v32, %v6362_v27  ;;  %v15663_v56 = vld [vmem:[#allocation55_spill] sm:$0xff]  ;;  %v9863_v32 = vld [vmem:[%s15178_s2 + $0x1c0] sm:$0xff] }
 0x639   :  { %v6365_v9 = vmul.f32 %v9725_v28, %v13986_v33  ;;  %v6165_v6 = vadd.f32 %v6164_v2, %v14142_v46  ;;  %v5484_v62 = vrot.slane %v5483_v16, 2  ;;  %v7349_v20 = vadd.f32 %v7348_v50, %v7347_v41  ;;  %v9861_v46 = vld [vmem:[%s15178_s2 + $0x1c8] sm:$0xff]  ;;  %v15658_v28 = vld [vmem:[#allocation54_spill] sm:$0xff] }
 0x63a   :  { %15655 = vst [vmem:[#allocation13_spill] sm:$0xff] %v14219_v14  ;;  %v5474_v43 = vsel %vm1599_vm0, %v14207_v22, -inf  ;;  %9734 = vrcp.f32 %v6158_v40  ;;  %v6177_v30 = vadd.f32 %v6176_v3, %v6175_v47  ;;  %v7338_v54 = vrot.slane %v7337_v18, 1  ;;  %v15660_v41 = vld [vmem:[#allocation38_spill] sm:$0xff] }
 0x63b   :  { %7145 = vrot.lane.b32.xlu0 %v6947_v60, %s9878_s19  ;;  %v5475_v7 = vrot.slane %v5474_v43, 4  ;;  %v6169_v15 = vrot.slane %v6168_v42, 2  ;;  %v7330_v27 = vadd.f32 %v7329_v59, %v7328_v5  ;;  %v5485_v33 = vmax.f32 %v5483_v16, %v5484_v62  ;;  %v15662_v16 = vld [vmem:[#allocation71_spill] sm:$0xff] }
 0x63c   :  { %7149 = vrot.lane.b32.xlu1 %v6949_v39, %s9878_s19  ;;  %v7350_v12 = vrot.slane %v7349_v20, 2  ;;  %v14234_v2 = vadd.f32 %v9861_v46, %v13995_v58  ;;  %v6950_v40 = vmul.f32 %v15658_v28, %v6365_v9  ;;  %v6367_v37 = vmul.f32 %v9727_v63, %v14037_v29 }
 0x63d   :  { %v5476_v47 = vmax.f32 %v5474_v43, %v5475_v7  ;;  %v14242_v48 = vadd.f32 %v9862_v13, %v14030_v31  ;;  %v5486_v55 = vrot.slane %v5485_v33, 1  ;;  %v6366_v53 = vmul.f32 %v9729_v26, %v14057_v11  ;;  %v15661_v31 = vld [vmem:[#allocation103_spill] sm:$0xff]  ;;  %v9864_v43 = vld [vmem:[%s15178_s2 + $0x1e0] sm:$0xff]  ;;  %v15667_v13 = vld [vmem:[#allocation108_spill] sm:$0xff] }
 0x63e   :  { %15657 = vst [vmem:[#allocation157_spill] sm:$0xff] %v14234_v2  ;;  %v7351_v4 = vadd.f32 %v7350_v12, %v7349_v20  ;;  %9736 = vrcp.f32 %v6165_v6  ;;  %v6178_v58 = vrot.slane %v6177_v30, 1  ;;  %v7339_v25 = vadd.f32 %v7338_v54, %v7337_v18  ;;  %v15665_v6 = vld [vmem:[#allocation78_spill] sm:$0xff] }
 0x63f   :  { %15659 = vst [vmem:[#allocation156_spill] sm:$0xff] %v14242_v48  ;;  %7151 = vrot.lane.b32.xlu0 %v6950_v40, %s9878_s19  ;;  %v5477_v39 = vrot.slane %v5476_v47, 2  ;;  %v6170_v63 = vadd.f32 %v6169_v15, %v6168_v42  ;;  %v7331_v5 = vrot.slane %v7330_v27, 1  ;;  %v5487_v52 = vmax.f32 %v5485_v33, %v5486_v55  ;;  %v7052_v15 = vpop.permute.xlu0 %7051 }
 0x640   :  { %v14246_v29 = vpop.eup %9730  ;;  %3476 = vrot.lane.b32.xlu1 %v15660_v41, %s9878_s19  ;;  %v7255_v3 = vmul.f32 %v7042_v23, %v15661_v31  ;;  %v7352_v26 = vrot.slane %v7351_v4, 1  ;;  %v6952_v50 = vmul.f32 %v15662_v16, %v6367_v37  ;;  %v6951_v61 = vmul.f32 %v15663_v56, %v6366_v53  ;;  %v15671_v16 = vld [vmem:[#allocation59_spill] sm:$0xff] }
 0x641   :  { %v14251_v59 = vpop.eup %9732  ;;  %v6187_v11 = vsel %vm1599_vm0, %v14246_v29, 0.0  ;;  %v5478_v18 = vmax.f32 %v5476_v47, %v5477_v39  ;;  %v5583_v19 = vsub.f32 %v14188_v8, %v5487_v52  ;;  %v14264_v60 = vadd.f32 %v9863_v32, %v14060_v34  ;;  %v7046_v47 = vpop.permute.xlu1 %7045 }
 0x642   :  { %v6188_v57 = vrot.slane %v6187_v11, 4  ;;  %v6180_v42 = vsel %vm1599_vm0, %v14251_v59, 0.0  ;;  %v7840_v62 = vmul.f32 %v15665_v6, %v7339_v25  ;;  %v14272_v8 = vadd.f32 %v9864_v43, %v14091_v0 }
 0x643   :  { %15664 = vst [vmem:[#allocation158_spill] sm:$0xff] %v14264_v60  ;;  %v6181_v9 = vrot.slane %v6180_v42, 4  ;;  %v5479_v20 = vrot.slane %v5478_v18, 1  ;;  %7155 = vrot.lane.b32.xlu0 %v6952_v50, %s9878_s19  ;;  %v7332_v54 = vadd.f32 %v7331_v5, %v7330_v27  ;;  %v5722_v7 = vmul.f32 1.442695, %v5583_v19  ;;  %v15668_v27 = vld [vmem:[#allocation161_spill] sm:$0xff] }
 0x644   :  { %15666 = vst [vmem:[#allocation14_spill] sm:$0xff] %v14272_v8  ;;  %7153 = vrot.lane.b32.xlu1 %v6951_v61, %s9878_s19  ;;  %v7340_v34 = vsel %vm7325_vm1, %v7255_v3, 0.0  ;;  %v9735_v33 = vpop.eup %9734  ;;  %v6171_v12 = vrot.slane %v6170_v63, 1  ;;  %v7353_v46 = vadd.f32 %v7352_v26, %v7351_v4  ;;  %v14276_v37 = vadd.f32 %v6178_v58, %v6177_v30  ;;  %v15669_v5 = vld [vmem:[#allocation41_spill] sm:$0xff]  ;;  %v15670_v58 = vld [vmem:[#allocation107_spill] sm:$0xff] }
 0x645   :  { %v5480_v28 = vmax.f32 %v5478_v18, %v5479_v20  ;;  %v7341_v40 = vrot.slane %v7340_v34, 4  ;;  %v6189_v23 = vadd.f32 %v6188_v57, %v6187_v11  ;;  %9738 = vpow2.f32 %v5722_v7  ;;  %v15672_v61 = vld [vmem:[#allocation35_spill] sm:$0xff] }
 0x646   :  { %v7258_v0 = vmul.f32 %v7048_v1, %v15667_v13  ;;  %v6182_v55 = vadd.f32 %v6181_v9, %v6180_v42  ;;  %v14280_v53 = vadd.f32 %v15668_v27, %v7840_v62  ;;  %v7839_v4 = vmul.f32 %v15665_v6, %v7332_v54  ;;  %v7050_v42 = vpop.permute.xlu0 %7049  ;;  %v15673_v62 = vld [vmem:[#allocation83_spill] sm:$0xff] }
 0x647   :  { %v5582_v25 = vsub.f32 %v14207_v22, %v5480_v28  ;;  %v7342_v39 = vadd.f32 %v7341_v40, %v7340_v34  ;;  %3480 = vrot.lane.b32.xlu0 %v15669_v5, %s9878_s19  ;;  %v6368_v30 = vmul.f32 %v9735_v33, %v14105_v10  ;;  %v7257_v41 = vmul.f32 %v7046_v47, %v15670_v58  ;;  %v15674_v34 = vld [vmem:[#allocation110_spill] sm:$0xff] }
 0x648   :  { %v7361_v52 = vsel %vm7325_vm1, %v7258_v0, 0.0  ;;  %v9737_v31 = vpop.eup %9736  ;;  %v14289_v1 = vadd.f32 %v6171_v12, %v6170_v63  ;;  %v7842_v3 = vmul.f32 %v15665_v6, %v7353_v46  ;;  %v6190_v22 = vrot.slane %v6189_v23, 2  ;;  %v7054_v12 = vpop.permute.xlu1 %7053 }
 0x649   :  { %v5720_v11 = vmul.f32 1.442695, %v5582_v25  ;;  %v7343_v26 = vrot.slane %v7342_v39, 2  ;;  %v7362_v18 = vrot.slane %v7361_v52, 4  ;;  %v6953_v50 = vmul.f32 %v15671_v16, %v6368_v30  ;;  %v15675_v25 = vld [vmem:[#allocation72_spill] sm:$0xff]  ;;  %v15677_v30 = vld [vmem:[#allocation111_spill] sm:$0xff] }
 0x64a   :  { %v7354_v57 = vsel %vm7325_vm1, %v7257_v41, 0.0  ;;  %v6183_v19 = vrot.slane %v6182_v55, 2  ;;  %v7993_v56 = vmax.f32 %v14280_v53, 0.0  ;;  %v14298_v63 = vadd.f32 %v15668_v27, %v7839_v4 }
 0x64b   :  { %9740 = vpow2.f32 %v5720_v11  ;;  %v7344_v10 = vadd.f32 %v7343_v26, %v7342_v39  ;;  %3474 = vrot.lane.b32.xlu0 %v15672_v61, %s9878_s19  ;;  %v7363_v32 = vadd.f32 %v7362_v18, %v7361_v52  ;;  %7157 = vrot.lane.b32.xlu1 %v6953_v50, %s9878_s19  ;;  %v7355_v9 = vrot.slane %v7354_v57, 4  ;;  %v7056_v18 = vpop.permute.xlu0 %7055 }
 0x64c   :  { %v7260_v20 = vmul.f32 %v7052_v15, %v15673_v62  ;;  %v14303_v43 = vadd.f32 %v15668_v27, %v7842_v3  ;;  %v6369_v7 = vmul.f32 %v9737_v31, %v14083_v36  ;;  %v7259_v33 = vmul.f32 %v7050_v42, %v15674_v34  ;;  %v15676_v15 = vld [vmem:[#allocation40_spill] sm:$0xff]  ;;  %v15679_v34 = vld [vmem:[#allocation81_spill] sm:$0xff] }
 0x64d   :  { %v7345_v54 = vrot.slane %v7344_v10, 1  ;;  %v6191_v46 = vadd.f32 %v6190_v22, %v6189_v23  ;;  %v7364_v28 = vrot.slane %v7363_v32, 2  ;;  %v7356_v40 = vadd.f32 %v7355_v9, %v7354_v57 }
 0x64e   :  { %v7375_v47 = vsel %vm7325_vm1, %v7260_v20, 0.0  ;;  %v6184_v13 = vadd.f32 %v6183_v19, %v6182_v55  ;;  %v6954_v39 = vmul.f32 %v15675_v25, %v6369_v7  ;;  %v7368_v52 = vsel %vm7325_vm1, %v7259_v33, 0.0  ;;  %v15678_v7 = vld [vmem:[#allocation45_spill] sm:$0xff] }
 0x64f   :  { %v7346_v0 = vadd.f32 %v7345_v54, %v7344_v10  ;;  %v7376_v53 = vrot.slane %v7375_v47, 4  ;;  %3482 = vrot.lane.b32.xlu0 %v15676_v15, %s9878_s19  ;;  %v14311_v5 = vpop.eup %9738  ;;  %v7365_v4 = vadd.f32 %v7364_v28, %v7363_v32  ;;  %v7357_v36 = vrot.slane %v7356_v40, 2 }
 0x650   :  { %v7261_v23 = vmul.f32 %v7054_v12, %v15677_v30  ;;  %v6201_v58 = vsel %vm1599_vm0, %v14311_v5, 0.0  ;;  %7159 = vrot.lane.b32.xlu1 %v6954_v39, %s9878_s19  ;;  %v7369_v31 = vrot.slane %v7368_v52, 4  ;;  %v6192_v16 = vrot.slane %v6191_v46, 1 }
 0x651   :  { %v7841_v55 = vmul.f32 %v15665_v6, %v7346_v0  ;;  %v7377_v41 = vadd.f32 %v7376_v53, %v7375_v47  ;;  %v6202_v3 = vrot.slane %v6201_v58, 4  ;;  %v7366_v11 = vrot.slane %v7365_v4, 1 }
 0x652   :  { %v7358_v26 = vadd.f32 %v7357_v36, %v7356_v40  ;;  %v7382_v22 = vsel %vm7325_vm1, %v7261_v23, 0.0  ;;  %v7370_v57 = vadd.f32 %v7369_v31, %v7368_v52  ;;  %v6185_v19 = vrot.slane %v6184_v13, 1 }
 0x653   :  { %v7378_v50 = vrot.slane %v7377_v41, 2  ;;  %v7383_v42 = vrot.slane %v7382_v22, 4  ;;  %v6203_v10 = vadd.f32 %v6202_v3, %v6201_v58  ;;  %v7922_v61 = vadd.f32 %v15668_v27, %v7841_v55  ;;  %v7060_v3 = vpop.permute.xlu0 %7059 }
 0x654   :  { %v7367_v32 = vadd.f32 %v7366_v11, %v7365_v4  ;;  %v8147_v62 = vrot.slane %v7993_v56, 7  ;;  %v7992_v20 = vmax.f32 %v14298_v63, 0.0  ;;  %v7359_v54 = vrot.slane %v7358_v26, 1  ;;  %3484 = vrot.lane.b32.xlu1 %v15678_v7, %s9878_s19  ;;  %v7058_v56 = vpop.permute.xlu1 %7057 }
 0x655   :  { %v14321_v9 = vpop.eup %9740  ;;  %v7262_v33 = vmul.f32 %v7056_v18, %v15679_v34  ;;  %v6204_v12 = vrot.slane %v6203_v10, 2  ;;  %v7379_v40 = vadd.f32 %v7378_v50, %v7377_v41  ;;  %v7371_v47 = vrot.slane %v7370_v57, 2  ;;  %v15683_v41 = vld [vmem:[#allocation82_spill] sm:$0xff]  ;;  %v15684_v18 = vld [vmem:[#allocation147_spill] sm:$0xff]  ;;  %v15685_v34 = vld [vmem:[#allocation148_spill] sm:$0xff] }
 0x656   :  { %v6194_v28 = vsel %vm1599_vm0, %v14321_v9, 0.0  ;;  %v6193_v0 = vadd.f32 %v6192_v16, %v6191_v46  ;;  %v7995_v53 = vmax.f32 %v14303_v43, 0.0  ;;  %v7384_v25 = vadd.f32 %v7383_v42, %v7382_v22 }
 0x657   :  { %9742 = vrcp.f32 %v14276_v37  ;;  %v6186_v63 = vadd.f32 %v6185_v19, %v6184_v13  ;;  %v7994_v39 = vmax.f32 %v7922_v61, 0.0  ;;  %v7844_v15 = vmul.f32 %v15665_v6, %v7367_v32 }
 0x658   :  { %9744 = vrcp.f32 %v14289_v1  ;;  %v6195_v4 = vrot.slane %v6194_v28, 4  ;;  %v7360_v36 = vadd.f32 %v7359_v54, %v7358_v26  ;;  %v7389_v52 = vsel %vm7325_vm1, %v7262_v33, 0.0  ;;  %v7064_v50 = vpop.permute.xlu1 %7063 }
 0x659   :  { %v14335_v30 = vsel %vm8148_vm2, %v8147_v62, %v7992_v20  ;;  %v14337_v46 = vadd.f32 %v6204_v12, %v6203_v10  ;;  %v7380_v43 = vrot.slane %v7379_v40, 1  ;;  %v7372_v23 = vadd.f32 %v7371_v47, %v7370_v57  ;;  %v15686_v12 = vld [vmem:[#allocation84_spill] sm:$0xff] }
 0x65a   :  { %9746 = vrcp.f32 %v6193_v0  ;;  %v14339_v58 = vrot.slane %v7995_v53, 5  ;;  %v7385_v37 = vrot.slane %v7384_v25, 2  ;;  %v7390_v13 = vrot.slane %v7389_v52, 4  ;;  %v15687_v53 = vld [vmem:[#allocation85_spill] sm:$0xff] }
 0x65b   :  { %9748 = vrcp.f32 %v6186_v63  ;;  %v14341_v55 = vrot.slane %v7994_v39, 6  ;;  %v14344_v1 = vadd.f32 %v15668_v27, %v7844_v15  ;;  %v7263_v31 = vmul.f32 %v7058_v56, %v15683_v41 }
 0x65c   :  { %15680 = vst [vmem:[#allocation155_spill] sm:$0xff] %v14339_v58  ;;  %v6196_v11 = vadd.f32 %v6195_v4, %v6194_v28  ;;  %v7843_v26 = vmul.f32 %v15665_v6, %v7360_v36  ;;  %v7391_v22 = vadd.f32 %v7390_v13, %v7389_v52  ;;  %v14350_v16 = vadd.f32 %v14129_v49, %v15684_v18  ;;  %v7068_v36 = vpop.permute.xlu0 %7067 }
 0x65d   :  { %15681 = vst [vmem:[#allocation9_spill] sm:$0xff] %v14341_v55  ;;  %15682 = vst [vmem:[#allocation159_spill] sm:$0xff] %v14344_v1  ;;  %v6206_v57 = vrot.slane %v14337_v46, 1  ;;  %v7381_v42 = vadd.f32 %v7380_v43, %v7379_v40  ;;  %v7373_v19 = vrot.slane %v7372_v23, 1  ;;  %v7396_v10 = vsel %vm7325_vm1, %v7263_v31, 0.0  ;;  %v7062_v31 = vpop.permute.xlu1 %7061 }
 0x65e   :  { %v7386_v61 = vadd.f32 %v7385_v37, %v7384_v25  ;;  %v7392_v32 = vrot.slane %v7391_v22, 2  ;;  %v7397_v62 = vrot.slane %v7396_v10, 4  ;;  %v5495_v20 = vsel %vm1599_vm0, %v14350_v16, -inf }
 0x65f   :  { %v5496_v7 = vrot.slane %v5495_v20, 4  ;;  %v14359_v33 = vadd.f32 %v14129_v49, %v15685_v34  ;;  %v7264_v28 = vmul.f32 %v7060_v3, %v15686_v12  ;;  %v14363_v40 = vadd.f32 %v15668_v27, %v7843_v26  ;;  %v15688_v12 = vld [vmem:[#allocation87_spill] sm:$0xff] }
 0x660   :  { %v7393_v47 = vadd.f32 %v7392_v32, %v7391_v22  ;;  %v7398_v0 = vadd.f32 %v7397_v62, %v7396_v10  ;;  %v7266_v25 = vmul.f32 %v7064_v50, %v15687_v53  ;;  %v6197_v63 = vrot.slane %v6196_v11, 2  ;;  %v15689_v53 = vld [vmem:[#allocation112_spill] sm:$0xff] }
 0x661   :  { %v14366_v56 = vpop.eup %9742  ;;  %v5497_v39 = vmax.f32 %v5495_v20, %v5496_v7  ;;  %v5488_v15 = vsel %vm1599_vm0, %v14359_v33, -inf  ;;  %v7403_v4 = vsel %vm7325_vm1, %v7264_v28, 0.0  ;;  %v14374_v43 = vmul.f32 %v15665_v6, %v7381_v42 }
 0x662   :  { %v14371_v52 = vpop.eup %9744  ;;  %v7387_v37 = vrot.slane %v7386_v61, 1  ;;  %v7399_v13 = vrot.slane %v7398_v0, 2  ;;  %v5489_v41 = vrot.slane %v5488_v15, 4  ;;  %v7374_v3 = vadd.f32 %v7373_v19, %v7372_v23 }
 0x663   :  { %v5498_v26 = vrot.slane %v5497_v39, 2  ;;  %v7404_v22 = vrot.slane %v7403_v4, 4  ;;  %v7417_v18 = vsel %vm7325_vm1, %v7266_v25, 0.0  ;;  %v7394_v10 = vrot.slane %v7393_v47, 1 }
 0x664   :  { %v14377_v50 = vpop.eup %9746  ;;  %v7400_v32 = vadd.f32 %v7399_v13, %v7398_v0  ;;  %v5490_v62 = vmax.f32 %v5488_v15, %v5489_v41  ;;  %v7418_v20 = vrot.slane %v7417_v18, 4  ;;  %v7268_v28 = vmul.f32 %v7068_v36, %v15688_v12  ;;  %v7066_v15 = vpop.permute.xlu0 %7065 }
 0x665   :  { %v14379_v7 = vpop.eup %9748  ;;  %v5499_v34 = vmax.f32 %v5497_v39, %v5498_v26  ;;  %v7405_v42 = vadd.f32 %v7404_v22, %v7403_v4  ;;  %v7265_v54 = vmul.f32 %v7062_v31, %v15689_v53  ;;  %v6198_v38 = vadd.f32 %v6197_v63, %v6196_v11 }
 0x666   :  { %v7388_v23 = vadd.f32 %v7387_v37, %v7386_v61  ;;  %v5491_v19 = vrot.slane %v5490_v62, 2  ;;  %v7419_v44 = vadd.f32 %v7418_v20, %v7417_v18  ;;  %v7431_v2 = vsel %vm7325_vm1, %v7268_v28, 0.0 }
 0x667   :  { %v5500_v8 = vrot.slane %v5499_v34, 1  ;;  %v7406_v25 = vrot.slane %v7405_v42, 2  ;;  %v7410_v0 = vsel %vm7325_vm1, %v7265_v54, 0.0  ;;  %v7395_v13 = vadd.f32 %v7394_v10, %v7393_v47  ;;  %v7070_v47 = vpop.permute.xlu1 %7069 }
 0x668   :  { %v7401_v41 = vrot.slane %v7400_v32, 1  ;;  %v5492_v60 = vmax.f32 %v5490_v62, %v5491_v19  ;;  %v7420_v39 = vrot.slane %v7419_v44, 2  ;;  %v7432_v36 = vrot.slane %v7431_v2, 4 }
 0x669   :  { %v5501_v4 = vmax.f32 %v5499_v34, %v5500_v8  ;;  %v7407_v26 = vadd.f32 %v7406_v25, %v7405_v42  ;;  %v7411_v22 = vrot.slane %v7410_v0, 4  ;;  %v6207_v11 = vadd.f32 %v6206_v57, %v14337_v46 }
 0x66a   :  { %v6199_v61 = vrot.slane %v6198_v38, 1  ;;  %v7996_v63 = vmax.f32 %v14363_v40, 0.0  ;;  %v5493_v37 = vrot.slane %v5492_v60, 1  ;;  %v7847_v31 = vmul.f32 %v15665_v6, %v7388_v23  ;;  %v7072_v40 = vpop.permute.xlu0 %7071 }
 0x66b   :  { %v5585_v18 = vsub.f32 %v14350_v16, %v5501_v4  ;;  %v7421_v54 = vadd.f32 %v7420_v39, %v7419_v44  ;;  %v7412_v20 = vadd.f32 %v7411_v22, %v7410_v0  ;;  %v14390_v10 = vmul.f32 %v15665_v6, %v7374_v3  ;;  %v15690_v16 = vld [vmem:[#allocation114_spill] sm:$0xff]  ;;  %v15692_v39 = vld [vmem:[#allocation115_spill] sm:$0xff] }
 0x66c   :  { %v7848_v8 = vmul.f32 %v15665_v6, %v7395_v13  ;;  %v5494_v62 = vmax.f32 %v5492_v60, %v5493_v37  ;;  %v7408_v34 = vrot.slane %v7407_v26, 1  ;;  %v7402_v42 = vadd.f32 %v7401_v41, %v7400_v32  ;;  %v7074_v41 = vpop.permute.xlu1 %7073 }
 0x66d   :  { %v5726_v46 = vmul.f32 1.442695, %v5585_v18  ;;  %v7433_v57 = vadd.f32 %v7432_v36, %v7431_v2  ;;  %v7413_v12 = vrot.slane %v7412_v20, 2  ;;  %9750 = vrcp.f32 %v6207_v11  ;;  %v15693_v36 = vld [vmem:[#allocation113_spill] sm:$0xff] }
 0x66e   :  { %v6200_v28 = vadd.f32 %v6199_v61, %v6198_v38  ;;  %v5584_v53 = vsub.f32 %v14359_v33, %v5494_v62  ;;  %v7267_v44 = vmul.f32 %v7066_v15, %v15690_v16  ;;  %v14396_v23 = vadd.f32 %v15668_v27, %v7847_v31  ;;  %v7076_v37 = vpop.permute.xlu0 %7075 }
 0x66f   :  { %9752 = vpow2.f32 %v5726_v46  ;;  %v7422_v3 = vrot.slane %v7421_v54, 1  ;;  %v7414_v19 = vadd.f32 %v7413_v12, %v7412_v20  ;;  %v14399_v60 = vadd.f32 %v15668_v27, %v7848_v8  ;;  %v15694_v8 = vld [vmem:[#allocation86_spill] sm:$0xff] }
 0x670   :  { %v5724_v32 = vmul.f32 1.442695, %v5584_v53  ;;  %v7409_v25 = vadd.f32 %v7408_v34, %v7407_v26  ;;  %v7424_v2 = vsel %vm7325_vm1, %v7267_v44, 0.0  ;;  %v7849_v0 = vmul.f32 %v15665_v6, %v7402_v42 }
 0x671   :  { %v7434_v38 = vrot.slane %v7433_v57, 2  ;;  %v7415_v13 = vrot.slane %v7414_v19, 1  ;;  %v7425_v33 = vrot.slane %v7424_v2, 4  ;;  %v14403_v15 = vrot.slane %v7996_v63, 4 }
 0x672   :  { %9754 = vpow2.f32 %v5724_v32  ;;  %v7269_v4 = vmul.f32 %v7070_v47, %v15692_v39  ;;  %v7270_v22 = vmul.f32 %v7072_v40, %v15693_v36  ;;  %v7423_v61 = vadd.f32 %v7422_v3, %v7421_v54  ;;  %v15695_v40 = vld [vmem:[#allocation88_spill] sm:$0xff]  ;;  %v15696_v3 = vld [vmem:[#allocation5_spill] sm:$0xff] }
 0x673   :  { %15691 = vst [vmem:[#allocation21_spill] sm:$0xff] %v14403_v15  ;;  %9756 = vrcp.f32 %v6200_v28  ;;  %v7426_v26 = vadd.f32 %v7425_v33, %v7424_v2  ;;  %v7850_v31 = vmul.f32 %v15665_v6, %v7409_v25  ;;  %v7271_v63 = vmul.f32 %v7074_v41, %v15694_v8  ;;  %v15697_v8 = vld [vmem:[#allocation89_spill] sm:$0xff] }
 0x674   :  { %v7438_v18 = vsel %vm7325_vm1, %v7269_v4, 0.0  ;;  %v7445_v20 = vsel %vm7325_vm1, %v7270_v22, 0.0  ;;  %v14414_v47 = vadd.f32 %v15668_v27, %v7849_v0  ;;  %v7435_v34 = vadd.f32 %v7434_v38, %v7433_v57  ;;  %v7080_v38 = vpop.permute.xlu1 %7079 }
 0x675   :  { %v7416_v42 = vadd.f32 %v7415_v13, %v7414_v19  ;;  %v7439_v46 = vrot.slane %v7438_v18, 4  ;;  %v7446_v12 = vrot.slane %v7445_v20, 4  ;;  %v7452_v54 = vsel %vm7325_vm1, %v7271_v63, 0.0 }
 0x676   :  { %v7272_v28 = vmul.f32 %v7076_v37, %v15695_v40  ;;  %v7852_v53 = vmul.f32 %v15665_v6, %v7423_v61  ;;  %v7427_v16 = vrot.slane %v7426_v26, 2  ;;  %v7453_v44 = vrot.slane %v7452_v54, 4 }
 0x677   :  { %v14421_v32 = vadd.f32 %v14129_v49, %v15696_v3  ;;  %v14423_v25 = vpop.eup %9750  ;;  %v14426_v2 = vadd.f32 %v15668_v27, %v7850_v31  ;;  %v7440_v57 = vadd.f32 %v7439_v46, %v7438_v18  ;;  %v7447_v19 = vadd.f32 %v7446_v12, %v7445_v20 }
 0x678   :  { %v7459_v0 = vsel %vm7325_vm1, %v7272_v28, 0.0  ;;  %v7436_v33 = vrot.slane %v7435_v34, 1  ;;  %v7851_v41 = vmul.f32 %v15665_v6, %v7416_v42  ;;  %v7454_v39 = vadd.f32 %v7453_v44, %v7452_v54 }
 0x679   :  { %v14429_v13 = vpop.eup %9752  ;;  %v7460_v4 = vrot.slane %v7459_v0, 4  ;;  %v7441_v22 = vrot.slane %v7440_v57, 2  ;;  %v7448_v61 = vrot.slane %v7447_v19, 2  ;;  %v5509_v37 = vsel %vm1599_vm0, %v14421_v32, -inf }
 0x67a   :  { %v6215_v36 = vsel %vm1599_vm0, %v14429_v13, 0.0  ;;  %v7428_v18 = vadd.f32 %v7427_v16, %v7426_v26  ;;  %v7455_v20 = vrot.slane %v7454_v39, 2  ;;  %v7274_v63 = vmul.f32 %v7080_v38, %v15697_v8 }
 0x67b   :  { %v6216_v31 = vrot.slane %v6215_v36, 4  ;;  %v7442_v12 = vadd.f32 %v7441_v22, %v7440_v57  ;;  %v7449_v40 = vadd.f32 %v7448_v61, %v7447_v19  ;;  %v7461_v42 = vadd.f32 %v7460_v4, %v7459_v0 }
 0x67c   :  { %v14437_v46 = vpop.eup %9754  ;;  %v5510_v54 = vrot.slane %v5509_v37, 4  ;;  %v7932_v11 = vadd.f32 %v15668_v27, %v7851_v41  ;;  %v7456_v62 = vadd.f32 %v7455_v20, %v7454_v39  ;;  %v7473_v57 = vsel %vm7325_vm1, %v7274_v63, 0.0  ;;  %v7084_v41 = vpop.permute.xlu0 %7083 }
 0x67d   :  { %v14439_v28 = vpop.eup %9756  ;;  %v6217_v44 = vadd.f32 %v6216_v31, %v6215_v36  ;;  %v6208_v3 = vsel %vm1599_vm0, %v14437_v46, 0.0  ;;  %v7443_v26 = vrot.slane %v7442_v12, 1  ;;  %v7450_v16 = vrot.slane %v7449_v40, 1  ;;  %v7078_v39 = vpop.permute.xlu1 %7077 }
 0x67e   :  { %v6209_v48 = vrot.slane %v6208_v3, 4  ;;  %v7462_v14 = vrot.slane %v7461_v42, 2  ;;  %v7457_v8 = vrot.slane %v7456_v62, 1  ;;  %v5511_v1 = vmax.f32 %v5509_v37, %v5510_v54 }
 0x67f   :  { %v6218_v38 = vrot.slane %v6217_v44, 2  ;;  %v7429_v0 = vrot.slane %v7428_v18, 1  ;;  %v7444_v4 = vadd.f32 %v7443_v26, %v7442_v12  ;;  %v7451_v22 = vadd.f32 %v7450_v16, %v7449_v40 }
 0x680   :  { %v6210_v19 = vadd.f32 %v6209_v48, %v6208_v3  ;;  %v8002_v36 = vmax.f32 %v14414_v47, 0.0  ;;  %v7463_v61 = vadd.f32 %v7462_v14, %v7461_v42  ;;  %v5512_v31 = vrot.slane %v5511_v1, 2 }
 0x681   :  { %v7474_v15 = vrot.slane %v7473_v57, 4  ;;  %v6219_v20 = vadd.f32 %v6218_v38, %v6217_v44  ;;  %v8003_v58 = vmax.f32 %v14426_v2, 0.0  ;;  %v14448_v55 = vadd.f32 %v15668_v27, %v7852_v53  ;;  %v7082_v38 = vpop.permute.xlu0 %7081 }
 0x682   :  { %v7458_v37 = vadd.f32 %v7457_v8, %v7456_v62  ;;  %v6211_v54 = vrot.slane %v6210_v19, 2  ;;  %v7437_v63 = vadd.f32 %v7436_v33, %v7435_v34  ;;  %v8004_v48 = vmax.f32 %v7932_v11, 0.0  ;;  %v7086_v8 = vpop.permute.xlu1 %7085 }
 0x683   :  { %v5513_v3 = vmax.f32 %v5511_v1, %v5512_v31  ;;  %v15698_v12 = vmax.f32 %v14399_v60, 0.0  ;;  %v7430_v14 = vadd.f32 %v7429_v0, %v7428_v18  ;;  %v7855_v47 = vmul.f32 %v15665_v6, %v7444_v4 }
 0x684   :  { %v7856_v42 = vmul.f32 %v15665_v6, %v7451_v22  ;;  %v14456_v44 = vrot.slane %v8002_v36, 6  ;;  %v7464_v2 = vrot.slane %v7463_v61, 1  ;;  %v7475_v53 = vadd.f32 %v7474_v15, %v7473_v57  ;;  %v15700_v57 = vld [vmem:[#allocation154_spill] sm:$0xff] }
 0x685   :  { %v14452_v40 = vrot.slane %v15698_v12, 7  ;;  %v5514_v26 = vrot.slane %v5513_v3, 1  ;;  %v6220_v16 = vrot.slane %v6219_v20, 1  ;;  %v14458_v62 = vrot.slane %v8003_v58, 5 }
 0x686   :  { %v7857_v1 = vmul.f32 %v15665_v6, %v7458_v37  ;;  %v14462_v60 = vadd.f32 %v6211_v54, %v6210_v19  ;;  %v14465_v34 = vmul.f32 %v15665_v6, %v7437_v63  ;;  %v14467_v33 = vrot.slane %v8004_v48, 4  ;;  %v15701_v48 = vld [vmem:[#allocation91_spill] sm:$0xff] }
 0x687   :  { %v5515_v18 = vmax.f32 %v5513_v3, %v5514_v26  ;;  %v14470_v0 = vmul.f32 %v15665_v6, %v7430_v14  ;;  %v14473_v58 = vadd.f32 %v15668_v27, %v7855_v47  ;;  %v14476_v15 = vadd.f32 %v15668_v27, %v7856_v42 }
 0x688   :  { %v14480_v19 = vadd.f32 %v14129_v49, %v15700_v57  ;;  %v7465_v4 = vadd.f32 %v7464_v2, %v7463_v61  ;;  %v7476_v36 = vrot.slane %v7475_v53, 2  ;;  %v6373_v31 = vmul.f32 %v14377_v50, %v14246_v29  ;;  %v15702_v61 = vld [vmem:[#allocation61_spill] sm:$0xff]  ;;  %v15703_v29 = vld [vmem:[#allocation116_spill] sm:$0xff] }
 0x689   :  { %15699 = vst [vmem:[#allocation12_spill] sm:$0xff] %v14473_v58  ;;  %v5587_v22 = vsub.f32 %v14421_v32, %v5515_v18  ;;  %v6221_v37 = vadd.f32 %v6220_v16, %v6219_v20  ;;  %v14486_v54 = vadd.f32 %v15668_v27, %v7857_v1  ;;  %v7276_v3 = vmul.f32 %v7084_v41, %v15701_v48  ;;  %v7088_v16 = vpop.permute.xlu0 %7087  ;;  %v7090_v1 = vpop.permute.xlu1 %7089  ;;  %v15705_v48 = vld [vmem:[#allocation119_spill] sm:$0xff] }
 0x68a   :  { %v5502_v63 = vsel %vm1599_vm0, %v14480_v19, -inf  ;;  %v6958_v47 = vmul.f32 %v15702_v61, %v6373_v31  ;;  %v7273_v50 = vmul.f32 %v7078_v39, %v15703_v29  ;;  %v6370_v20 = vmul.f32 %v14371_v52, %v14191_v21  ;;  %v15706_v21 = vld [vmem:[#allocation73_spill] sm:$0xff] }
 0x68b   :  { %v5730_v49 = vmul.f32 1.442695, %v5587_v22  ;;  %v5503_v14 = vrot.slane %v5502_v63, 4  ;;  %v7487_v42 = vsel %vm7325_vm1, %v7276_v3, 0.0  ;;  %v7477_v2 = vadd.f32 %v7476_v36, %v7475_v53  ;;  %v15704_v22 = vld [vmem:[#allocation118_spill] sm:$0xff] }
 0x68c   :  { %7167 = vrot.lane.b32.xlu0 %v6958_v47, %s9878_s19  ;;  %v7488_v41 = vrot.slane %v7487_v42, 4  ;;  %v7466_v57 = vsel %vm7325_vm1, %v7273_v50, 0.0  ;;  %v7275_v31 = vmul.f32 %v7082_v38, %v15704_v22  ;;  %v7277_v3 = vmul.f32 %v7086_v8, %v15705_v48 }
 0x68d   :  { %9758 = vpow2.f32 %v5730_v49  ;;  %v5504_v26 = vmax.f32 %v5502_v63, %v5503_v14  ;;  %v7467_v29 = vrot.slane %v7466_v57, 4  ;;  %v6955_v52 = vmul.f32 %v15706_v21, %v6370_v20  ;;  %v15707_v63 = vld [vmem:[#allocation117_spill] sm:$0xff]  ;;  %v15708_v14 = vld [vmem:[#allocation90_spill] sm:$0xff] }
 0x68e   :  { %v7489_v61 = vadd.f32 %v7488_v41, %v7487_v42  ;;  %v7480_v53 = vsel %vm7325_vm1, %v7275_v31, 0.0  ;;  %v7494_v36 = vsel %vm7325_vm1, %v7277_v3, 0.0  ;;  %v7278_v49 = vmul.f32 %v7088_v16, %v15707_v63  ;;  %v7092_v16 = vpop.permute.xlu0 %7091  ;;  %v7094_v63 = vpop.permute.xlu1 %7093 }
 0x68f   :  { %v5505_v39 = vrot.slane %v5504_v26, 2  ;;  %v7279_v47 = vmul.f32 %v7090_v1, %v15708_v14  ;;  %v7858_v32 = vmul.f32 %v15665_v6, %v7465_v4  ;;  %v7478_v50 = vrot.slane %v7477_v2, 1 }
 0x690   :  { %v7468_v38 = vadd.f32 %v7467_v29, %v7466_v57  ;;  %7161 = vrot.lane.b32.xlu0 %v6955_v52, %s9878_s19  ;;  %v7490_v8 = vrot.slane %v7489_v61, 2  ;;  %v7495_v42 = vrot.slane %v7494_v36, 4  ;;  %v7501_v41 = vsel %vm7325_vm1, %v7278_v49, 0.0  ;;  %v15709_v29 = vld [vmem:[#allocation44_spill] sm:$0xff] }
 0x691   :  { %v5506_v11 = vmax.f32 %v5504_v26, %v5505_v39  ;;  %v7508_v20 = vsel %vm7325_vm1, %v7279_v47, 0.0  ;;  %v7481_v48 = vrot.slane %v7480_v53, 4  ;;  %v7502_v3 = vrot.slane %v7501_v41, 4 }
 0x692   :  { %v7469_v31 = vrot.slane %v7468_v38, 2  ;;  %9760 = vrcp.f32 %v6221_v37  ;;  %v7496_v1 = vadd.f32 %v7495_v42, %v7494_v36  ;;  %v7509_v21 = vrot.slane %v7508_v20, 4 }
 0x693   :  { %v5507_v22 = vrot.slane %v5506_v11, 1  ;;  %v6372_v4 = vmul.f32 %v14379_v7, %v14251_v59  ;;  %v7479_v26 = vadd.f32 %v7478_v50, %v7477_v2  ;;  %v7503_v52 = vadd.f32 %v7502_v3, %v7501_v41  ;;  %v15710_v59 = vld [vmem:[#allocation65_spill] sm:$0xff] }
 0x694   :  { %v7470_v39 = vadd.f32 %v7469_v31, %v7468_v38  ;;  %3486 = vrot.lane.b32.xlu0 %v15709_v29, %s9878_s19  ;;  %v7939_v49 = vadd.f32 %v15668_v27, %v7858_v32  ;;  %v7491_v14 = vadd.f32 %v7490_v8, %v7489_v61  ;;  %v7497_v47 = vrot.slane %v7496_v1, 2 }
 0x695   :  { %v5508_v57 = vmax.f32 %v5506_v11, %v5507_v22  ;;  %v7510_v18 = vadd.f32 %v7509_v21, %v7508_v20  ;;  %v7482_v36 = vadd.f32 %v7481_v48, %v7480_v53  ;;  %v7504_v42 = vrot.slane %v7503_v52, 2  ;;  %v7096_v20 = vpop.permute.xlu0 %7095  ;;  %v15712_v21 = vld [vmem:[#allocation92_spill] sm:$0xff] }
 0x696   :  { %v6957_v7 = vmul.f32 %v15710_v59, %v6372_v4  ;;  %v7471_v2 = vrot.slane %v7470_v39, 1  ;;  %v7498_v50 = vadd.f32 %v7497_v47, %v7496_v1  ;;  %v8010_v41 = vmax.f32 %v14486_v54, 0.0  ;;  %v7098_v54 = vpop.permute.xlu1 %7097 }
 0x697   :  { %v14517_v12 = vpop.eup %9758  ;;  %v5586_v37 = vsub.f32 %v14480_v19, %v5508_v57  ;;  %v7511_v38 = vrot.slane %v7510_v18, 2  ;;  %v7860_v61 = vmul.f32 %v15665_v6, %v7479_v26  ;;  %v15711_v19 = vrot.slane %v14462_v60, 1 }
 0x698   :  { %v6229_v11 = vsel %vm1599_vm0, %v14517_v12, 0.0  ;;  %7165 = vrot.lane.b32.xlu0 %v6957_v7, %s9878_s19  ;;  %v7492_v22 = vrot.slane %v7491_v14, 1  ;;  %v7505_v31 = vadd.f32 %v7504_v42, %v7503_v52  ;;  %v7483_v1 = vrot.slane %v7482_v36, 2  ;;  %v15717_v7 = vld [vmem:[#allocation50_spill] sm:$0xff] }
 0x699   :  { %v6230_v32 = vrot.slane %v6229_v11, 4  ;;  %v5728_v8 = vmul.f32 1.442695, %v5586_v37  ;;  %v6214_v53 = vadd.f32 %v15711_v19, %v14462_v60  ;;  %v7512_v48 = vadd.f32 %v7511_v38, %v7510_v18  ;;  %v15716_v18 = vld [vmem:[#allocation120_spill] sm:$0xff] }
 0x69a   :  { %v7280_v4 = vmul.f32 %v7092_v16, %v15712_v21  ;;  %v15713_v57 = vmax.f32 %v14476_v15, 0.0  ;;  %v8011_v29 = vmax.f32 %v7939_v49, 0.0  ;;  %v7472_v47 = vadd.f32 %v7471_v2, %v7470_v39 }
 0x69b   :  { %v6231_v3 = vadd.f32 %v6230_v32, %v6229_v11  ;;  %9762 = vpow2.f32 %v5728_v8  ;;  %v7499_v37 = vrot.slane %v7498_v50, 1  ;;  %v14535_v59 = vadd.f32 %v15668_v27, %v7860_v61  ;;  %v7100_v61 = vpop.permute.xlu0 %7099 }
 0x69c   :  { %v14532_v26 = vrot.slane %v15713_v57, 7  ;;  %v7506_v60 = vrot.slane %v7505_v31, 1  ;;  %v7515_v52 = vsel %vm7325_vm1, %v7280_v4, 0.0  ;;  %v7281_v42 = vmul.f32 %v7094_v63, %v15716_v18  ;;  %3488 = vrot.lane.b32.xlu0 %v15717_v7, %s9878_s19  ;;  %v14541_v16 = vpop.eup %9760  ;;  %v15720_v18 = vld [vmem:[#allocation93_spill] sm:$0xff] }
 0x69d   :  { %15715 = vst [vmem:[#allocation15_spill] sm:$0xff] %v14535_v59  ;;  %v14543_v11 = vrot.slane %v8010_v41, 6  ;;  %v6232_v15 = vrot.slane %v6231_v3, 2  ;;  %v7493_v38 = vadd.f32 %v7492_v22, %v7491_v14  ;;  %v7513_v49 = vrot.slane %v7512_v48, 1  ;;  %v15721_v14 = vld [vmem:[#allocation49_spill] sm:$0xff] }
 0x69e   :  { %15714 = vst [vmem:[#allocation160_spill] sm:$0xff] %v14532_v26  ;;  %9764 = vrcp.f32 %v6214_v53  ;;  %v7484_v39 = vadd.f32 %v7483_v1, %v7482_v36  ;;  %v7516_v2 = vrot.slane %v7515_v52, 4  ;;  %v7522_v32 = vsel %vm7325_vm1, %v7281_v42, 0.0  ;;  %v7104_v36 = vpop.permute.xlu1 %7103 }
 0x69f   :  { %15718 = vst [vmem:[#allocation22_spill] sm:$0xff] %v14543_v11  ;;  %v14546_v8 = vrot.slane %v8011_v29, 5  ;;  %v7859_v63 = vmul.f32 %v15665_v6, %v7472_v47  ;;  %v7500_v19 = vadd.f32 %v7499_v37, %v7498_v50  ;;  %v7523_v21 = vrot.slane %v7522_v32, 4  ;;  %v15723_v37 = vld [vmem:[#allocation122_spill] sm:$0xff] }
 0x6a0   :  { %v7507_v57 = vadd.f32 %v7506_v60, %v7505_v31  ;;  %v7517_v41 = vadd.f32 %v7516_v2, %v7515_v52  ;;  %v7282_v7 = vmul.f32 %v7096_v20, %v15720_v18  ;;  %3490 = vrot.lane.b32.xlu0 %v15721_v14, %s9878_s19  ;;  %v6233_v53 = vadd.f32 %v6232_v15, %v6231_v3 }
 0x6a1   :  { %15719 = vst [vmem:[#allocation31_spill] sm:$0xff] %v14546_v8  ;;  %v14554_v22 = vmul.f32 %v15665_v6, %v7493_v38  ;;  %v7514_v1 = vadd.f32 %v7513_v49, %v7512_v48  ;;  %v7524_v29 = vadd.f32 %v7523_v21, %v7522_v32  ;;  %v7485_v42 = vrot.slane %v7484_v39, 1  ;;  %v7108_v49 = vpop.permute.xlu0 %7107  ;;  %v15726_v8 = vld [vmem:[#allocation121_spill] sm:$0xff] }
 0x6a2   :  { %v7518_v47 = vrot.slane %v7517_v41, 2  ;;  %v7529_v50 = vsel %vm7325_vm1, %v7282_v7, 0.0  ;;  %v7283_v4 = vmul.f32 %v7098_v54, %v15723_v37  ;;  %v7940_v31 = vadd.f32 %v15668_v27, %v7859_v63  ;;  %v7102_v37 = vpop.permute.xlu1 %7101 }
 0x6a3   :  { %15722 = vst [vmem:[#allocation16_spill] sm:$0xff] %v14554_v22  ;;  %v7863_v20 = vmul.f32 %v15665_v6, %v7500_v19  ;;  %v7525_v60 = vrot.slane %v7524_v29, 2  ;;  %v7530_v52 = vrot.slane %v7529_v50, 4  ;;  %v7864_v3 = vmul.f32 %v15665_v6, %v7507_v57 }
 0x6a4   :  { %v7519_v15 = vadd.f32 %v7518_v47, %v7517_v41  ;;  %v7536_v48 = vsel %vm7325_vm1, %v7283_v4, 0.0  ;;  %v6374_v38 = vmul.f32 %v14439_v28, %v14321_v9  ;;  %v6234_v32 = vrot.slane %v6233_v53, 1  ;;  %v15724_v41 = vld [vmem:[#allocation63_spill] sm:$0xff] }
 0x6a5   :  { %v14560_v2 = vpop.eup %9762  ;;  %v7865_v63 = vmul.f32 %v15665_v6, %v7514_v1  ;;  %v7526_v19 = vadd.f32 %v7525_v60, %v7524_v29  ;;  %v7531_v7 = vadd.f32 %v7530_v52, %v7529_v50  ;;  %v7537_v14 = vrot.slane %v7536_v48, 4  ;;  %v15725_v4 = vld [vmem:[#allocation123_spill] sm:$0xff] }
 0x6a6   :  { %v6222_v54 = vsel %vm1599_vm0, %v14560_v2, 0.0  ;;  %v7520_v18 = vrot.slane %v7519_v15, 1  ;;  %v6959_v47 = vmul.f32 %v15724_v41, %v6374_v38  ;;  %v7284_v59 = vmul.f32 %v7100_v61, %v15725_v4  ;;  %v15738_v4 = vld [vmem:[#allocation96_spill] sm:$0xff] }
 0x6a7   :  { %v6223_v21 = vrot.slane %v6222_v54, 4  ;;  %v7527_v57 = vrot.slane %v7526_v19, 1  ;;  %v7286_v9 = vmul.f32 %v7104_v36, %v15726_v8  ;;  %v7945_v26 = vadd.f32 %v15668_v27, %v7864_v3 }
 0x6a8   :  { %v14572_v28 = vpop.eup %9764  ;;  %v7521_v58 = vadd.f32 %v7520_v18, %v7519_v15  ;;  %v7532_v1 = vrot.slane %v7531_v7, 2  ;;  %v7486_v29 = vadd.f32 %v7485_v42, %v7484_v39  ;;  %v7538_v60 = vadd.f32 %v7537_v14, %v7536_v48  ;;  %7169 = vrot.lane.b32.xlu1 %v6959_v47, %s9878_s19  ;;  %v15727_v18 = vld [vmem:[#allocation74_spill] sm:$0xff] }
 0x6a9   :  { %v6224_v11 = vadd.f32 %v6223_v21, %v6222_v54  ;;  %v7557_v50 = vsel %vm7325_vm1, %v7286_v9, 0.0  ;;  %v6371_v52 = vmul.f32 %v14366_v56, %v14173_v51  ;;  %v7946_v61 = vadd.f32 %v15668_v27, %v7865_v63  ;;  %v7106_v54 = vpop.permute.xlu0 %7105  ;;  %v7112_v51 = vpop.permute.xlu1 %7111 }
 0x6aa   :  { %v7528_v8 = vadd.f32 %v7527_v57, %v7526_v19  ;;  %v7543_v36 = vsel %vm7325_vm1, %v7284_v59, 0.0  ;;  %v8012_v21 = vmax.f32 %v7940_v31, 0.0  ;;  %v7533_v3 = vadd.f32 %v7532_v1, %v7531_v7  ;;  %v15728_v59 = vld [vmem:[#allocation124_spill] sm:$0xff] }
 0x6ab   :  { %v6225_v38 = vrot.slane %v6224_v11, 2  ;;  %v7558_v15 = vrot.slane %v7557_v50, 4  ;;  %v6956_v39 = vmul.f32 %v15727_v18, %v6371_v52  ;;  %v6235_v42 = vadd.f32 %v6234_v32, %v6233_v53 }
 0x6ac   :  { %v14583_v48 = vadd.f32 %v15668_v27, %v7863_v20  ;;  %v8017_v14 = vmax.f32 %v7945_v26, 0.0  ;;  %v7866_v41 = vmul.f32 %v15665_v6, %v7521_v58  ;;  %v7539_v56 = vrot.slane %v7538_v60, 2 }
 0x6ad   :  { %v7544_v47 = vrot.slane %v7543_v36, 4  ;;  %v7559_v63 = vadd.f32 %v7558_v15, %v7557_v50  ;;  %7163 = vrot.lane.b32.xlu1 %v6956_v39, %s9878_s19  ;;  %v7288_v19 = vmul.f32 %v7108_v49, %v15728_v59  ;;  %v14588_v31 = vadd.f32 %v6225_v38, %v6224_v11  ;;  %v7116_v49 = vpop.permute.xlu0 %7115  ;;  %v7110_v18 = vpop.permute.xlu1 %7109 }
 0x6ae   :  { %v14591_v7 = vmul.f32 %v15665_v6, %v7486_v29  ;;  %v8018_v53 = vmax.f32 %v7946_v61, 0.0  ;;  %v7867_v20 = vmul.f32 %v15665_v6, %v7528_v8  ;;  %v14594_v32 = vrot.slane %v8012_v21, 4  ;;  %v15733_v21 = vld [vmem:[#allocation95_spill] sm:$0xff] }
 0x6af   :  { %v7534_v26 = vrot.slane %v7533_v3, 1  ;;  %v7560_v58 = vrot.slane %v7559_v63, 2  ;;  %v7571_v57 = vsel %vm7325_vm1, %v7288_v19, 0.0  ;;  %9766 = vrcp.f32 %v6235_v42 }
 0x6b0   :  { %15729 = vst [vmem:[#allocation30_spill] sm:$0xff] %v14591_v7  ;;  %15730 = vst [vmem:[#allocation17_spill] sm:$0xff] %v14594_v32  ;;  %v14598_v9 = vrot.slane %v8017_v14, 7  ;;  %v14601_v11 = vadd.f32 %v15668_v27, %v7866_v41  ;;  %v14603_v1 = vadd.f32 %v7539_v56, %v7538_v60  ;;  %v7545_v29 = vadd.f32 %v7544_v47, %v7543_v36  ;;  %v15734_v56 = vld [vmem:[#allocation94_spill] sm:$0xff] }
 0x6b1   :  { %v7561_v50 = vadd.f32 %v7560_v58, %v7559_v63  ;;  %v7572_v52 = vrot.slane %v7571_v57, 4  ;;  %v6227_v38 = vrot.slane %v14588_v31, 1  ;;  %v14606_v61 = vrot.slane %v8018_v53, 6  ;;  %v15735_v63 = vld [vmem:[#allocation97_spill] sm:$0xff]  ;;  %v15736_v58 = vld [vmem:[#allocation75_spill] sm:$0xff] }
 0x6b2   :  { %15731 = vst [vmem:[#allocation3_spill] sm:$0xff] %v14598_v9  ;;  %v14609_v8 = vadd.f32 %v15668_v27, %v7867_v20  ;;  %v7285_v15 = vmul.f32 %v7102_v37, %v15733_v21  ;;  %v7535_v39 = vadd.f32 %v7534_v26, %v7533_v3  ;;  %v6375_v60 = vmul.f32 %v14423_v25, %v14311_v5  ;;  %v15737_v5 = vld [vmem:[#allocation99_spill] sm:$0xff] }
 0x6b3   :  { %15732 = vst [vmem:[#allocation131_spill] sm:$0xff] %v14606_v61  ;;  %v7562_v42 = vrot.slane %v7561_v50, 1  ;;  %v7573_v14 = vadd.f32 %v7572_v52, %v7571_v57  ;;  %v8019_v36 = vmax.f32 %v14601_v11, 0.0  ;;  %v7287_v47 = vmul.f32 %v7106_v54, %v15734_v56  ;;  %v7114_v11 = vpop.permute.xlu0 %7113 }
 0x6b4   :  { %v7550_v41 = vsel %vm7325_vm1, %v7285_v15, 0.0  ;;  %v7290_v59 = vmul.f32 %v7112_v51, %v15735_v63  ;;  %v7541_v19 = vrot.slane %v14603_v1, 1  ;;  %v7546_v53 = vrot.slane %v7545_v29, 2 }
 0x6b5   :  { %v7574_v20 = vrot.slane %v7573_v14, 2  ;;  %v7551_v37 = vrot.slane %v7550_v41, 4  ;;  %v6960_v3 = vmul.f32 %v15736_v58, %v6375_v60  ;;  %v7564_v26 = vsel %vm7325_vm1, %v7287_v47, 0.0  ;;  %v7118_v58 = vpop.permute.xlu1 %7117 }
 0x6b6   :  { %v7585_v57 = vsel %vm7325_vm1, %v7290_v59, 0.0  ;;  %v7292_v25 = vmul.f32 %v7116_v49, %v15737_v5  ;;  %v7868_v52 = vmul.f32 %v15665_v6, %v7535_v39  ;;  %v7563_v21 = vadd.f32 %v7562_v42, %v7561_v50  ;;  %v15739_v42 = vld [vmem:[#allocation128_spill] sm:$0xff] }
 0x6b7   :  { %v7575_v54 = vadd.f32 %v7574_v20, %v7573_v14  ;;  %v7552_v15 = vadd.f32 %v7551_v37, %v7550_v41  ;;  %7171 = vrot.lane.b32.xlu1 %v6960_v3, %s9878_s19  ;;  %v7565_v51 = vrot.slane %v7564_v26, 4  ;;  %v7586_v56 = vrot.slane %v7585_v57, 4 }
 0x6b8   :  { %v7599_v63 = vsel %vm7325_vm1, %v7292_v25, 0.0  ;;  %v7289_v60 = vmul.f32 %v7110_v18, %v15738_v4  ;;  %v7547_v47 = vadd.f32 %v7546_v53, %v7545_v29  ;;  %v7291_v14 = vmul.f32 %v7114_v11, %v15739_v42  ;;  %v7120_v53 = vpop.permute.xlu0 %7119 }
 0x6b9   :  { %v7576_v32 = vrot.slane %v7575_v54, 1  ;;  %v7553_v59 = vrot.slane %v7552_v15, 2  ;;  %v7600_v22 = vrot.slane %v7599_v63, 4  ;;  %v14627_v49 = vpop.eup %9766  ;;  %v7566_v5 = vadd.f32 %v7565_v51, %v7564_v26  ;;  %v7122_v42 = vpop.permute.xlu1 %7121 }
 0x6ba   :  { %v7587_v39 = vadd.f32 %v7586_v56, %v7585_v57  ;;  %v7578_v50 = vsel %vm7325_vm1, %v7289_v60, 0.0  ;;  %v7872_v41 = vmul.f32 %v15665_v6, %v7563_v21  ;;  %v7592_v29 = vsel %vm7325_vm1, %v7291_v14, 0.0 }
 0x6bb   :  { %v7577_v20 = vadd.f32 %v7576_v32, %v7575_v54  ;;  %v7554_v37 = vadd.f32 %v7553_v59, %v7552_v15  ;;  %v7601_v3 = vadd.f32 %v7600_v22, %v7599_v63  ;;  %v7567_v25 = vrot.slane %v7566_v5, 2  ;;  %v15740_v54 = vld [vmem:[#allocation142_spill] sm:$0xff] }
 0x6bc   :  { %v7588_v4 = vrot.slane %v7587_v39, 2  ;;  %v7579_v18 = vrot.slane %v7578_v50, 4  ;;  %v7548_v7 = vrot.slane %v7547_v47, 1  ;;  %v7593_v11 = vrot.slane %v7592_v29, 4 }
 0x6bd   :  { %v7874_v61 = vmul.f32 %v15665_v6, %v7577_v20  ;;  %v7555_v26 = vrot.slane %v7554_v37, 1  ;;  %v7602_v57 = vrot.slane %v7601_v3, 2  ;;  %v7568_v51 = vadd.f32 %v7567_v25, %v7566_v5  ;;  %v7124_v25 = vpop.permute.xlu0 %7123 }
 0x6be   :  { %v7589_v56 = vadd.f32 %v7588_v4, %v7587_v39  ;;  %v7580_v60 = vadd.f32 %v7579_v18, %v7578_v50  ;;  %v6228_v32 = vadd.f32 %v6227_v38, %v14588_v31  ;;  %v8020_v22 = vmax.f32 %v14609_v8, 0.0 }
 0x6bf   :  { %v7953_v21 = vadd.f32 %v15668_v27, %v7872_v41  ;;  %v7293_v15 = vmul.f32 %v7118_v58, %v15740_v54  ;;  %v7955_v63 = vadd.f32 %v15668_v27, %v7874_v61  ;;  %v7556_v59 = vadd.f32 %v7555_v26, %v7554_v37  ;;  %v7128_v26 = vpop.permute.xlu1 %7127 }
 0x6c0   :  { %v7569_v14 = vrot.slane %v7568_v51, 1  ;;  %v7581_v20 = vrot.slane %v7580_v60, 2  ;;  %v14639_v9 = vrot.slane %v8019_v36, 5  ;;  %v14642_v5 = vadd.f32 %v15668_v27, %v7868_v52 }
 0x6c1   :  { %v7542_v39 = vadd.f32 %v7541_v19, %v14603_v1  ;;  %v7606_v31 = vsel %vm7325_vm1, %v7293_v15, 0.0  ;;  %v7549_v38 = vadd.f32 %v7548_v7, %v7547_v47  ;;  %v7590_v8 = vrot.slane %v7589_v56, 1 }
 0x6c2   :  { %v7603_v50 = vadd.f32 %v7602_v57, %v7601_v3  ;;  %v7594_v41 = vadd.f32 %v7593_v11, %v7592_v29  ;;  %9768 = vrcp.f32 %v6228_v32  ;;  %v14646_v58 = vrot.slane %v8020_v22, 4  ;;  %v15741_v22 = vld [vmem:[#allocation67_spill] sm:$0xff] }
 0x6c3   :  { %v7582_v61 = vadd.f32 %v7581_v20, %v7580_v60  ;;  %v7607_v37 = vrot.slane %v7606_v31, 4  ;;  %v8025_v4 = vmax.f32 %v7953_v21, 0.0  ;;  %v8027_v36 = vmax.f32 %v7955_v63, 0.0  ;;  %v15742_v21 = vld [vmem:[#allocation162_spill] sm:$0xff] }
 0x6c4   :  { %v7871_v18 = vmul.f32 %v15665_v6, %v7556_v59  ;;  %v7570_v52 = vadd.f32 %v7569_v14, %v7568_v51  ;;  %v14651_v19 = vmul.f32 %v15665_v6, %v7542_v39  ;;  %v6376_v47 = vmul.f32 %v14572_v28, %v14437_v46  ;;  %v7132_v28 = vpop.permute.xlu0 %7131  ;;  %v15743_v20 = vld [vmem:[#allocation98_spill] sm:$0xff] }
 0x6c5   :  { %v7608_v7 = vadd.f32 %v7607_v37, %v7606_v31  ;;  %v14656_v3 = vmul.f32 %v15665_v6, %v7549_v38  ;;  %v7591_v29 = vadd.f32 %v7590_v8, %v7589_v56  ;;  %v7604_v57 = vrot.slane %v7603_v50, 1 }
 0x6c6   :  { %v7595_v60 = vrot.slane %v7594_v41, 2  ;;  %v7583_v11 = vrot.slane %v7582_v61, 1  ;;  %v6961_v51 = vmul.f32 %v15741_v22, %v6376_v47  ;;  %v7294_v54 = vmul.f32 %v7120_v53, %v15742_v21  ;;  %v15745_v47 = vld [vmem:[#allocation100_spill] sm:$0xff] }
 0x6c7   :  { %v7609_v32 = vrot.slane %v7608_v7, 2  ;;  %v14660_v15 = vrot.slane %v8025_v4, 7  ;;  %v14662_v63 = vrot.slane %v8027_v36, 5  ;;  %v14665_v59 = vadd.f32 %v15668_v27, %v7871_v18  ;;  %v7126_v4 = vpop.permute.xlu1 %7125 }
 0x6c8   :  { %v7873_v46 = vmul.f32 %v15665_v6, %v7570_v52  ;;  %7173 = vrot.lane.b32.xlu1 %v6961_v51, %s9878_s19  ;;  %v7613_v56 = vsel %vm7325_vm1, %v7294_v54, 0.0  ;;  %v7295_v39 = vmul.f32 %v7122_v42, %v15743_v20  ;;  %v6377_v53 = vmul.f32 %v14541_v16, %v14429_v13  ;;  %v15744_v52 = vld [vmem:[#allocation76_spill] sm:$0xff]  ;;  %v15746_v16 = vld [vmem:[#allocation101_spill] sm:$0xff] }
 0x6c9   :  { %v7610_v14 = vadd.f32 %v7609_v32, %v7608_v7  ;;  %v7876_v31 = vmul.f32 %v15665_v6, %v7591_v29  ;;  %v14674_v38 = vadd.f32 %v7604_v57, %v7603_v50  ;;  %v14676_v8 = vadd.f32 %v7595_v60, %v7594_v41  ;;  %v15747_v57 = vld [vmem:[#allocation104_spill] sm:$0xff] }
 0x6ca   :  { %v7614_v37 = vrot.slane %v7613_v56, 4  ;;  %v7584_v36 = vadd.f32 %v7583_v11, %v7582_v61  ;;  %v7620_v18 = vsel %vm7325_vm1, %v7295_v39, 0.0  ;;  %v6962_v7 = vmul.f32 %v15744_v52, %v6377_v53 }
 0x6cb   :  { %v7296_v32 = vmul.f32 %v7124_v25, %v15745_v47  ;;  %v14682_v42 = vadd.f32 %v15668_v27, %v7873_v46  ;;  %v7621_v13 = vrot.slane %v7620_v18, 4  ;;  %v7298_v29 = vmul.f32 %v7128_v26, %v15746_v16  ;;  %v7130_v46 = vpop.permute.xlu0 %7129 }
 0x6cc   :  { %v7615_v22 = vadd.f32 %v7614_v37, %v7613_v56  ;;  %v14685_v50 = vpop.eup %9768  ;;  %v7611_v41 = vrot.slane %v7610_v14, 1  ;;  %7175 = vrot.lane.b32.xlu1 %v6962_v7, %s9878_s19  ;;  %v7300_v60 = vmul.f32 %v7132_v28, %v15747_v57  ;;  %v7297_v11 = vmul.f32 %v7126_v4, %v14007_v17 }
 0x6cd   :  { %v7627_v61 = vsel %vm7325_vm1, %v7296_v32, 0.0  ;;  %v7597_v25 = vrot.slane %v14676_v8, 1  ;;  %v7622_v21 = vadd.f32 %v7621_v13, %v7620_v18  ;;  %v7875_v56 = vmul.f32 %v15665_v6, %v7584_v36  ;;  %v7134_v36 = vpop.permute.xlu1 %7133 }
 0x6ce   :  { %v7616_v51 = vrot.slane %v7615_v22, 2  ;;  %v7628_v54 = vrot.slane %v7627_v61, 4  ;;  %v7641_v26 = vsel %vm7325_vm1, %v7298_v29, 0.0  ;;  %v7655_v20 = vsel %vm7325_vm1, %v7300_v60, 0.0 }
 0x6cf   :  { %v7634_v39 = vsel %vm7325_vm1, %v7297_v11, 0.0  ;;  %v7623_v37 = vrot.slane %v7622_v21, 2  ;;  %v7642_v28 = vrot.slane %v7641_v26, 4  ;;  %v7612_v7 = vadd.f32 %v7611_v41, %v7610_v14 }
 0x6d0   :  { %v7617_v53 = vadd.f32 %v7616_v51, %v7615_v22  ;;  %v7629_v52 = vadd.f32 %v7628_v54, %v7627_v61  ;;  %v7656_v17 = vrot.slane %v7655_v20, 4  ;;  %v7635_v4 = vrot.slane %v7634_v39, 4 }
 0x6d1   :  { %v7299_v47 = vmul.f32 %v7130_v46, %v14157_v24  ;;  %v7624_v32 = vadd.f32 %v7623_v37, %v7622_v21  ;;  %v7643_v16 = vadd.f32 %v7642_v28, %v7641_v26  ;;  %v7956_v29 = vadd.f32 %v15668_v27, %v7875_v56 }
 0x6d2   :  { %v7618_v18 = vrot.slane %v7617_v53, 1  ;;  %v7630_v13 = vrot.slane %v7629_v52, 2  ;;  %v7657_v57 = vadd.f32 %v7656_v17, %v7655_v20  ;;  %v7636_v60 = vadd.f32 %v7635_v4, %v7634_v39 }
 0x6d3   :  { %v7648_v11 = vsel %vm7325_vm1, %v7299_v47, 0.0  ;;  %v7625_v51 = vrot.slane %v7624_v32, 1  ;;  %v7644_v54 = vrot.slane %v7643_v16, 2  ;;  %v7301_v24 = vmul.f32 %v7134_v36, %v14213_v35 }
 0x6d4   :  { %v7619_v22 = vadd.f32 %v7618_v18, %v7617_v53  ;;  %v7631_v61 = vadd.f32 %v7630_v13, %v7629_v52  ;;  %v7658_v14 = vrot.slane %v7657_v57, 2  ;;  %v7637_v41 = vrot.slane %v7636_v60, 2 }
 0x6d5   :  { %v7649_v1 = vrot.slane %v7648_v11, 4  ;;  %v7879_v21 = vmul.f32 %v15665_v6, %v7612_v7  ;;  %v7626_v26 = vadd.f32 %v7625_v51, %v7624_v32  ;;  %v8024_v56 = vmax.f32 %v14665_v59, 0.0 }
 0x6d6   :  { %v7880_v46 = vmul.f32 %v15665_v6, %v7619_v22  ;;  %v7632_v37 = vrot.slane %v7631_v61, 1  ;;  %v7645_v20 = vadd.f32 %v7644_v54, %v7643_v16  ;;  %v7659_v39 = vadd.f32 %v7658_v14, %v7657_v57 }
 0x6d7   :  { %v7662_v53 = vsel %vm7325_vm1, %v7301_v24, 0.0  ;;  %v8026_v52 = vmax.f32 %v14682_v42, 0.0  ;;  %v14706_v28 = vadd.f32 %v15668_v27, %v7876_v31  ;;  %v7638_v17 = vadd.f32 %v7637_v41, %v7636_v60  ;;  %v7136_v60 = vpop.permute.xlu0 %7135 }
 0x6d8   :  { %v7650_v4 = vadd.f32 %v7649_v1, %v7648_v11  ;;  %v7598_v35 = vadd.f32 %v7597_v25, %v14676_v8  ;;  %v7881_v7 = vmul.f32 %v15665_v6, %v7626_v26  ;;  %v7633_v47 = vadd.f32 %v7632_v37, %v7631_v61 }
 0x6d9   :  { %v7663_v18 = vrot.slane %v7662_v53, 4  ;;  %v14712_v59 = vmul.f32 %v15665_v6, %v14674_v38  ;;  %v8028_v32 = vmax.f32 %v7956_v29, 0.0  ;;  %v14715_v13 = vadd.f32 %v15668_v27, %v7879_v21 }
 0x6da   :  { %v7961_v42 = vadd.f32 %v15668_v27, %v7880_v46  ;;  %v14720_v31 = vsel %vm8148_vm2, %v14660_v15, %v8024_v56  ;;  %v7646_v1 = vrot.slane %v7645_v20, 1  ;;  %v7660_v8 = vrot.slane %v7659_v39, 1  ;;  %v7138_v15 = vpop.permute.xlu1 %7137 }
 0x6db   :  { %v7664_v25 = vadd.f32 %v7663_v18, %v7662_v53  ;;  %v14722_v16 = vrot.slane %v8026_v52, 6  ;;  %v8029_v36 = vmax.f32 %v14706_v28, 0.0  ;;  %v7639_v57 = vrot.slane %v7638_v17, 1  ;;  %v15748_v53 = vld [vmem:[#allocation77_spill] sm:$0xff] }
 0x6dc   :  { %v7651_v38 = vrot.slane %v7650_v4, 2  ;;  %v14726_v29 = vmul.f32 %v15665_v6, %v7598_v35  ;;  %v7962_v11 = vadd.f32 %v15668_v27, %v7881_v7  ;;  %v7882_v22 = vmul.f32 %v15665_v6, %v7633_v47  ;;  %v15749_v35 = vld [vmem:[#allocation102_spill] sm:$0xff] }
 0x6dd   :  { %v7665_v51 = vrot.slane %v7664_v25, 2  ;;  %v14730_v61 = vrot.slane %v8028_v32, 4  ;;  %v8032_v54 = vmax.f32 %v14715_v13, 0.0  ;;  %v8033_v14 = vmax.f32 %v7961_v42, 0.0 }
 0x6de   :  { %v6379_v41 = vmul.f32 %v14627_v49, %v14517_v12  ;;  %v7647_v24 = vadd.f32 %v7646_v1, %v7645_v20  ;;  %v7661_v21 = vadd.f32 %v7660_v8, %v7659_v39  ;;  %v7302_v26 = vmul.f32 %v7136_v60, %v14089_v45 }
 0x6df   :  { %v7666_v46 = vadd.f32 %v7665_v51, %v7664_v25  ;;  %v7640_v37 = vadd.f32 %v7639_v57, %v7638_v17  ;;  %v14736_v56 = vadd.f32 %v7651_v38, %v7650_v4  ;;  %v7303_v7 = vmul.f32 %v7138_v15, %v15749_v35  ;;  %v15750_v57 = vld [vmem:[#allocation69_spill] sm:$0xff] }
 0x6e0   :  { %v6964_v52 = vmul.f32 %v15748_v53, %v6379_v41  ;;  %v8034_v47 = vmax.f32 %v7962_v11, 0.0  ;;  %v14741_v18 = vadd.f32 %v15668_v27, %v7882_v22  ;;  %v7669_v42 = vsel %vm7325_vm1, %v7302_v26, 0.0  ;;  %v7144_v26 = vpop.permute.xlu1 %7143 }
 0x6e1   :  { %v7667_v32 = vrot.slane %v7666_v46, 1  ;;  %v7670_v12 = vrot.slane %v7669_v42, 4  ;;  %v7676_v49 = vsel %vm7325_vm1, %v7303_v7, 0.0  ;;  %v6378_v45 = vmul.f32 %v14685_v50, %v14560_v2 }
 0x6e2   :  { %7179 = vrot.lane.b32.xlu1 %v6964_v52, %s9878_s19  ;;  %v7934_v20 = vadd.f32 %v15668_v27, %v14470_v0  ;;  %v14750_v39 = vrot.slane %v8033_v14, 7  ;;  %v7884_v17 = vmul.f32 %v15665_v6, %v7647_v24  ;;  %v7677_v4 = vrot.slane %v7676_v49, 4 }
 0x6e3   :  { %v7935_v1 = vadd.f32 %v15668_v27, %v14465_v34  ;;  %v14756_v8 = vmul.f32 %v15665_v6, %v7661_v21  ;;  %v7671_v25 = vadd.f32 %v7670_v12, %v7669_v42  ;;  %v6963_v38 = vmul.f32 %v15750_v57, %v6378_v45  ;;  %v7140_v21 = vpop.permute.xlu0 %7139 }
 0x6e4   :  { %v8006_v60 = vmax.f32 %v7934_v20, 0.0  ;;  %v14759_v11 = vrot.slane %v8034_v47, 6  ;;  %v7883_v2 = vmul.f32 %v15665_v6, %v7640_v37  ;;  %v7653_v0 = vrot.slane %v14736_v56, 1  ;;  %v15753_v47 = vld [vmem:[#allocation106_spill] sm:$0xff] }
 0x6e5   :  { %v7678_v50 = vadd.f32 %v7677_v4, %v7676_v49  ;;  %v8035_v22 = vmax.f32 %v14741_v18, 0.0  ;;  %v7668_v51 = vadd.f32 %v7667_v32, %v7666_v46  ;;  %v7672_v15 = vrot.slane %v7671_v25, 2  ;;  %7177 = vrot.lane.b32.xlu0 %v6963_v38, %s9878_s19  ;;  %v15754_v32 = vld [vmem:[#allocation109_spill] sm:$0xff]  ;;  %s9880_s19 = smov 96  }
 0x6e6   :  { %v8007_v14 = vmax.f32 %v7935_v1, 0.0  ;;  %v15751_v41 = vmax.f32 %v14396_v23, 0.0  ;;  %v8178_v46 = vrot.slane %v8006_v60, 2  ;;  %v15752_v35 = vmax.f32 %v14448_v55, 0.0  ;;  %v15755_v38 = vld [vmem:[#allocation9_spill] sm:$0xff] }
 0x6e7   :  { %v7679_v34 = vrot.slane %v7678_v50, 2  ;;  %v7673_v53 = vadd.f32 %v7672_v15, %v7671_v25  ;;  %v7304_v18 = vmul.f32 %v7140_v21, %v15753_v47  ;;  %v7306_v42 = vmul.f32 %v7144_v26, %v15754_v32  ;;  %v15757_v21 = vld [vmem:[#allocation21_spill] sm:$0xff] }
 0x6e8   :  { %v8169_v24 = vsel %vm8148_vm2, %v14452_v40, %v15751_v41  ;;  %v8176_v7 = vrot.slane %v15752_v35, 3  ;;  %v7926_v49 = vadd.f32 %v15668_v27, %v14390_v10  ;;  %v14789_v57 = vadd.f32 %v15668_v27, %v7884_v17  ;;  %v15756_v41 = vld [vmem:[#allocation155_spill] sm:$0xff] }
 0x6e9   :  { %v8171_v37 = vsel %vm8151_vm3, %v14456_v44, %v8169_v24  ;;  %v7680_v23 = vadd.f32 %v7679_v34, %v7678_v50  ;;  %v8180_v44 = vrot.slane %v8007_v14, 1  ;;  %v7683_v45 = vsel %vm7325_vm1, %v7304_v18, 0.0  ;;  %v7148_v50 = vpop.permute.xlu0 %7147 }
 0x6ea   :  { %v8173_v52 = vsel %vm8154_vm4, %v14458_v62, %v8171_v37  ;;  %v7927_v62 = vadd.f32 %v15668_v27, %v14374_v43  ;;  %v7674_v20 = vrot.slane %v7673_v53, 1  ;;  %v7684_v1 = vrot.slane %v7683_v45, 4  ;;  %v15758_v37 = vld [vmem:[#allocation159_spill] sm:$0xff] }
 0x6eb   :  { %v8175_v40 = vsel %vm8157_vm5, %v14467_v33, %v8173_v52  ;;  %v7697_v33 = vsel %vm7325_vm1, %v7306_v42, 0.0  ;;  %v7998_v10 = vmax.f32 %v7926_v49, 0.0  ;;  %v8152_v60 = vsel %vm8151_vm3, %v15755_v38, %v14335_v30 }
 0x6ec   :  { %v8177_v12 = vsel %vm8160_vm6, %v8176_v7, %v8175_v40  ;;  %v7698_v25 = vrot.slane %v7697_v33, 4  ;;  %v7999_v43 = vmax.f32 %v7927_v62, 0.0  ;;  %v7964_v15 = vadd.f32 %v15668_v27, %v7883_v2  ;;  %v7142_v62 = vpop.permute.xlu1 %7141 }
 0x6ed   :  { %v8179_v55 = vsel %vm8163_vm7, %v8178_v46, %v8177_v12  ;;  %v7654_v34 = vadd.f32 %v7653_v0, %v14736_v56  ;;  %v7681_v14 = vrot.slane %v7680_v23, 1  ;;  %v8155_v24 = vsel %vm8154_vm4, %v15756_v41, %v8152_v60 }
 0x6ee   :  { %v8181_v4 = vsel %vm8166_vm8, %v8180_v44, %v8179_v55  ;;  %v14799_v17 = vrot.slane %v8035_v22, 5  ;;  %v8158_v26 = vsel %vm8157_vm5, %v15757_v21, %v8155_v24  ;;  %v15759_v46 = vmax.f32 %v15758_v37, 0.0  ;;  %v7146_v55 = vpop.permute.xlu0 %7145  ;;  %v15765_v24 = vld [vmem:[#allocation13_spill] sm:$0xff] }
 0x6ef   :  { %8282 = vrot.lane.b32.xlu1 %v8181_v4, %s9880_s19  ;;  %v8162_v35 = vrot.slane %v7998_v10, 2  ;;  %v7887_v30 = vmul.f32 %v15665_v6, %v7668_v51  ;;  %v7675_v7 = vadd.f32 %v7674_v20, %v7673_v53  ;;  %v7685_v40 = vadd.f32 %v7684_v1, %v7683_v45  ;;  %v15762_v1 = vld [vmem:[#allocation131_spill] sm:$0xff] }
 0x6f0   :  { %v8159_v52 = vrot.slane %v15759_v46, 3  ;;  %v7699_v2 = vadd.f32 %v7698_v25, %v7697_v33  ;;  %v8165_v0 = vrot.slane %v7999_v43, 1  ;;  %v7950_v47 = vadd.f32 %v15668_v27, %v14651_v19  ;;  %v15761_v33 = vld [vmem:[#allocation3_spill] sm:$0xff]  ;;  %v15767_v46 = vld [vmem:[#allocation16_spill] sm:$0xff] }
 0x6f1   :  { %v7951_v22 = vadd.f32 %v15668_v27, %v14656_v3  ;;  %v8037_v18 = vmax.f32 %v14789_v57, 0.0  ;;  %v8036_v32 = vmax.f32 %v7964_v15, 0.0  ;;  %v7682_v42 = vadd.f32 %v7681_v14, %v7680_v23  ;;  %v15764_v14 = vld [vmem:[#allocation126_spill] sm:$0xff] }
 0x6f2   :  { %v8161_v56 = vsel %vm8160_vm6, %v8159_v52, %v8158_v26  ;;  %v14814_v51 = vmul.f32 %v15665_v6, %v7654_v34  ;;  %v8022_v44 = vmax.f32 %v7950_v47, 0.0  ;;  %v14818_v19 = vadd.f32 %v15668_v27, %v7887_v30  ;;  %v15766_v26 = vld [vmem:[#allocation30_spill] sm:$0xff]  ;;  %v7152_v47 = vpop.permute.xlu0 %7151 }
 0x6f3   :  { %v8164_v12 = vsel %vm8163_vm7, %v8162_v35, %v8161_v56  ;;  %v8023_v49 = vmax.f32 %v7951_v22, 0.0  ;;  %v7686_v45 = vrot.slane %v7685_v40, 2  ;;  %v7700_v3 = vrot.slane %v7699_v2, 2 }
 0x6f4   :  { %v8167_v53 = vsel %vm8166_vm8, %v8165_v0, %v8164_v12  ;;  %v15760_v23 = vmax.f32 %v14583_v48, 0.0  ;;  %v7888_v4 = vmul.f32 %v15665_v6, %v7675_v7  ;;  %v15763_v10 = vmax.f32 %v14642_v5, 0.0  ;;  %v7150_v0 = vpop.permute.xlu1 %7149 }
 0x6f5   :  { %8280 = vrot.lane.b32.xlu0 %v8167_v53, %s9880_s19  ;;  %v8206_v38 = vrot.slane %v8022_v44, 2  ;;  %v7889_v60 = vmul.f32 %v15665_v6, %v7682_v42  ;;  %v8208_v34 = vrot.slane %v8023_v49, 1  ;;  %v7308_v48 = vmul.f32 %v7148_v50, %v15764_v14  ;;  %v15768_v49 = vld [vmem:[#allocation12_spill] sm:$0xff] }
 0x6f6   :  { %v8197_v20 = vsel %vm8148_vm2, %v15761_v33, %v15760_v23  ;;  %v8204_v43 = vrot.slane %v15763_v10, 3  ;;  %v7305_v21 = vmul.f32 %v7142_v62, %v15765_v24  ;;  %v7942_v37 = vadd.f32 %v15668_v27, %v15766_v26 }
 0x6f7   :  { %v8199_v25 = vsel %vm8151_vm3, %v15762_v1, %v8197_v20  ;;  %v7943_v5 = vadd.f32 %v15668_v27, %v15767_v46  ;;  %v7687_v52 = vadd.f32 %v7686_v45, %v7685_v40  ;;  %v7701_v35 = vadd.f32 %v7700_v3, %v7699_v2  ;;  %v15770_v45 = vld [vmem:[#allocation160_spill] sm:$0xff]  ;;  %v15771_v20 = vld [vmem:[#allocation22_spill] sm:$0xff] }
 0x6f8   :  { %v8201_v15 = vsel %vm8154_vm4, %v14639_v9, %v8199_v25  ;;  %v7711_v9 = vsel %vm7325_vm1, %v7308_v48, 0.0  ;;  %v7690_v56 = vsel %vm7325_vm1, %v7305_v21, 0.0  ;;  %v14845_v22 = vrot.slane %v8036_v32, 4  ;;  %v15777_v46 = vld [vmem:[#allocation158_spill] sm:$0xff] }
 0x6f9   :  { %v8203_v41 = vsel %vm8157_vm5, %v14646_v58, %v8201_v15  ;;  %v7712_v50 = vrot.slane %v7711_v9, 4  ;;  %v8014_v58 = vmax.f32 %v7942_v37, 0.0  ;;  %v8040_v42 = vmax.f32 %v14818_v19, 0.0 }
 0x6fa   :  { %v8205_v30 = vsel %vm8160_vm6, %v8204_v43, %v8203_v41  ;;  %v7691_v40 = vrot.slane %v7690_v56, 4  ;;  %v14850_v2 = vadd.f32 %v15668_v27, %v7888_v4  ;;  %v8015_v44 = vmax.f32 %v7943_v5, 0.0  ;;  %v15772_v4 = vld [vmem:[#allocation31_spill] sm:$0xff]  ;;  %v15775_v41 = vld [vmem:[#allocation17_spill] sm:$0xff] }
 0x6fb   :  { %v8207_v7 = vsel %vm8163_vm7, %v8206_v38, %v8205_v30  ;;  %v7713_v53 = vadd.f32 %v7712_v50, %v7711_v9  ;;  %v15769_v62 = vmax.f32 %v15768_v49, 0.0  ;;  %v14858_v32 = vadd.f32 %v15668_v27, %v7889_v60  ;;  %v15773_v43 = vld [vmem:[#allocation15_spill] sm:$0xff]  ;;  %v15776_v60 = vld [vmem:[#allocation156_spill] sm:$0xff]  ;;  %v14873_v9 = vpop.permute.xlu1 %3476 }
 0x6fc   :  { %v8209_v12 = vsel %vm8166_vm8, %v8208_v34, %v8207_v7  ;;  %v7688_v23 = vrot.slane %v7687_v52, 1  ;;  %v7692_v33 = vadd.f32 %v7691_v40, %v7690_v56  ;;  %v7702_v25 = vrot.slane %v7701_v35, 1  ;;  %v7156_v7 = vpop.permute.xlu0 %7155 }
 0x6fd   :  { %8286 = vrot.lane.b32.xlu1 %v8209_v12, %s9880_s19  ;;  %v8183_v3 = vsel %vm8148_vm2, %v15770_v45, %v15769_v62  ;;  %v15774_v38 = vmax.f32 %v15773_v43, 0.0  ;;  %v8192_v34 = vrot.slane %v8014_v58, 2  ;;  %v7714_v14 = vrot.slane %v7713_v53, 2 }
 0x6fe   :  { %v8185_v1 = vsel %vm8151_vm3, %v15771_v20, %v8183_v3  ;;  %v7693_v48 = vrot.slane %v7692_v33, 2  ;;  %v7307_v21 = vmul.f32 %v7146_v55, %v15776_v60  ;;  %v8194_v37 = vrot.slane %v8015_v44, 1 }
 0x6ff   :  { %v8187_v10 = vsel %vm8154_vm4, %v15772_v4, %v8185_v1  ;;  %v8190_v15 = vrot.slane %v15774_v38, 3  ;;  %v7309_v5 = vmul.f32 %v7150_v0, %v15777_v46  ;;  %v7958_v30 = vadd.f32 %v15668_v27, %v14726_v29 }
 0x700   :  { %v8189_v24 = vsel %vm8157_vm5, %v15775_v41, %v8187_v10  ;;  %v7694_v50 = vadd.f32 %v7693_v48, %v7692_v33  ;;  %v7704_v58 = vsel %vm7325_vm1, %v7307_v21, 0.0  ;;  %v7959_v12 = vadd.f32 %v15668_v27, %v14712_v59 }
 0x701   :  { %v8191_v26 = vsel %vm8160_vm6, %v8190_v15, %v8189_v24  ;;  %v8041_v55 = vmax.f32 %v14850_v2, 0.0  ;;  %v7705_v44 = vrot.slane %v7704_v58, 4  ;;  %v7718_v0 = vsel %vm7325_vm1, %v7309_v5, 0.0 }
 0x702   :  { %v8193_v56 = vsel %vm8163_vm7, %v8192_v34, %v8191_v26  ;;  %v7689_v49 = vadd.f32 %v7688_v23, %v7687_v52  ;;  %v7695_v29 = vrot.slane %v7694_v50, 1  ;;  %v8030_v62 = vmax.f32 %v7958_v30, 0.0 }
 0x703   :  { %v8195_v40 = vsel %vm8166_vm8, %v8194_v37, %v8193_v56  ;;  %v8031_v45 = vmax.f32 %v7959_v12, 0.0  ;;  %v7703_v3 = vadd.f32 %v7702_v25, %v7701_v35  ;;  %v7715_v33 = vadd.f32 %v7714_v14, %v7713_v53  ;;  %v7154_v53 = vpop.permute.xlu1 %7153  ;;  %v14893_v25 = vpop.permute.xlu0 %3480  ;;  %v15779_v14 = vld [vmem:[#allocation163_spill] sm:$0xff]  ;;  %v15780_v37 = vld [vmem:[#allocation125_spill] sm:$0xff] }
 0x704   :  { %8284 = vrot.lane.b32.xlu0 %v8195_v40, %s9880_s19  ;;  %v7706_v20 = vadd.f32 %v7705_v44, %v7704_v58  ;;  %v8213_v59 = vsel %vm8151_vm3, %v14722_v16, %v14720_v31  ;;  %v7719_v1 = vrot.slane %v7718_v0, 4  ;;  %v8218_v4 = vrot.slane %v8029_v36, 3 }
 0x705   :  { %v8215_v2 = vsel %vm8154_vm4, %v14662_v63, %v8213_v59  ;;  %v8220_v52 = vrot.slane %v8030_v62, 2  ;;  %v8042_v23 = vmax.f32 %v14858_v32, 0.0  ;;  %v7696_v10 = vadd.f32 %v7695_v29, %v7694_v50  ;;  %v15778_v63 = vld [vmem:[#allocation157_spill] sm:$0xff] }
 0x706   :  { %v7707_v43 = vrot.slane %v7706_v20, 2  ;;  %v8217_v35 = vsel %vm8157_vm5, %v14730_v61, %v8215_v2  ;;  %v7890_v31 = vmul.f32 %v15665_v6, %v7689_v49  ;;  %v8222_v38 = vrot.slane %v8031_v45, 1 }
 0x707   :  { %v8219_v16 = vsel %vm8160_vm6, %v8218_v4, %v8217_v35  ;;  %v7310_v15 = vmul.f32 %v7152_v47, %v15778_v63  ;;  %v7892_v28 = vmul.f32 %v15665_v6, %v7703_v3  ;;  %v7312_v48 = vmul.f32 %v7156_v7, %v15779_v14  ;;  %v7158_v44 = vpop.permute.xlu1 %7157 }
 0x708   :  { %v7708_v36 = vadd.f32 %v7707_v43, %v7706_v20  ;;  %v8221_v34 = vsel %vm8163_vm7, %v8220_v52, %v8219_v16  ;;  %v7716_v41 = vrot.slane %v7715_v33, 1  ;;  %v7720_v24 = vadd.f32 %v7719_v1, %v7718_v0  ;;  %v14915_v0 = vpop.permute.xlu0 %3474 }
 0x709   :  { %v8223_v61 = vsel %vm8166_vm8, %v8222_v38, %v8221_v34  ;;  %v7725_v60 = vsel %vm7325_vm1, %v7310_v15, 0.0  ;;  %v7891_v21 = vmul.f32 %v15665_v6, %v7696_v10  ;;  %v7739_v47 = vsel %vm7325_vm1, %v7312_v48, 0.0 }
 0x70a   :  { %8288 = vrot.lane.b32.xlu0 %v8223_v61, %s9880_s19  ;;  %v7726_v26 = vrot.slane %v7725_v60, 4  ;;  %v7311_v46 = vmul.f32 %v7154_v53, %v15780_v37  ;;  %v14907_v5 = vrot.slane %v8041_v55, 7  ;;  %v7971_v30 = vadd.f32 %v15668_v27, %v7890_v31 }
 0x70b   :  { %v7740_v7 = vrot.slane %v7739_v47, 4  ;;  %v7966_v50 = vadd.f32 %v15668_v27, %v14814_v51  ;;  %v7709_v56 = vrot.slane %v7708_v36, 1  ;;  %v7967_v40 = vadd.f32 %v15668_v27, %v14756_v8 }
 0x70c   :  { %v7727_v58 = vadd.f32 %v7726_v26, %v7725_v60  ;;  %v7732_v12 = vsel %vm7325_vm1, %v7311_v46, 0.0  ;;  %v14918_v49 = vadd.f32 %v15668_v27, %v7892_v28  ;;  %v7717_v55 = vadd.f32 %v7716_v41, %v7715_v33  ;;  %v14933_v63 = vpop.permute.xlu0 %3482 }
 0x70d   :  { %v7741_v29 = vadd.f32 %v7740_v7, %v7739_v47  ;;  %v7733_v62 = vrot.slane %v7732_v12, 4  ;;  %v7972_v45 = vadd.f32 %v15668_v27, %v7891_v21  ;;  %v7721_v3 = vrot.slane %v7720_v24, 2 }
 0x70e   :  { %v7728_v51 = vrot.slane %v7727_v58, 2  ;;  %v8038_v20 = vmax.f32 %v7966_v50, 0.0  ;;  %v8039_v2 = vmax.f32 %v7967_v40, 0.0  ;;  %v8225_v8 = vsel %vm8148_vm2, %v14750_v39, %v8032_v54  ;;  %v7160_v39 = vpop.permute.xlu1 %7159 }
 0x70f   :  { %v7742_v59 = vrot.slane %v7741_v29, 2  ;;  %v7734_v1 = vadd.f32 %v7733_v62, %v7732_v12  ;;  %v7710_v4 = vadd.f32 %v7709_v56, %v7708_v36  ;;  %v8227_v33 = vsel %vm8151_vm3, %v14759_v11, %v8225_v8 }
 0x710   :  { %v7729_v52 = vadd.f32 %v7728_v51, %v7727_v58  ;;  %v8234_v10 = vrot.slane %v8038_v20, 2  ;;  %v8043_v43 = vmax.f32 %v7971_v30, 0.0  ;;  %v8229_v53 = vsel %vm8154_vm4, %v14799_v17, %v8227_v33  ;;  %v14946_v37 = vpop.permute.xlu0 %7167 }
 0x711   :  { %v7735_v35 = vrot.slane %v7734_v1, 2  ;;  %v8232_v31 = vrot.slane %v8037_v18, 3  ;;  %v7722_v16 = vadd.f32 %v7721_v3, %v7720_v24  ;;  %v7743_v13 = vadd.f32 %v7742_v59, %v7741_v29  ;;  %v15781_v18 = vld [vmem:[#allocation14_spill] sm:$0xff]  ;;  %v15782_v24 = vld [vmem:[#allocation141_spill] sm:$0xff] }
 0x712   :  { %v7730_v38 = vrot.slane %v7729_v52, 1  ;;  %v8231_v54 = vsel %vm8157_vm5, %v14845_v22, %v8229_v53  ;;  %v7894_v11 = vmul.f32 %v15665_v6, %v7717_v55  ;;  %v8236_v36 = vrot.slane %v8039_v2, 1 }
 0x713   :  { %v7736_v15 = vadd.f32 %v7735_v35, %v7734_v1  ;;  %v8233_v28 = vsel %vm8160_vm6, %v8232_v31, %v8231_v54  ;;  %v8044_v34 = vmax.f32 %v7972_v45, 0.0  ;;  %v7893_v17 = vmul.f32 %v15665_v6, %v7710_v4  ;;  %v14957_v45 = vpop.permute.xlu1 %3484 }
 0x714   :  { %v8235_v57 = vsel %vm8163_vm7, %v8234_v10, %v8233_v28  ;;  %v7313_v14 = vmul.f32 %v7158_v44, %v15781_v18  ;;  %v7731_v48 = vadd.f32 %v7730_v38, %v7729_v52  ;;  %v7314_v61 = vmul.f32 %v7160_v39, %v15782_v24  ;;  %v7162_v19 = vpop.permute.xlu0 %7161 }
 0x715   :  { %v7737_v41 = vrot.slane %v7736_v15, 1  ;;  %v8237_v22 = vsel %vm8166_vm8, %v8236_v36, %v8235_v57  ;;  %v8240_v60 = vrot.slane %v8042_v23, 6  ;;  %v7723_v21 = vrot.slane %v7722_v16, 1 }
 0x716   :  { %v7744_v26 = vrot.slane %v7743_v13, 1  ;;  %8290 = vrot.lane.b32.xlu1 %v8237_v22, %s9880_s19  ;;  %v7746_v47 = vsel %vm7325_vm1, %v7313_v14, 0.0  ;;  %v8045_v46 = vmax.f32 %v14918_v49, 0.0  ;;  %v7753_v50 = vsel %vm7325_vm1, %v7314_v61, 0.0 }
 0x717   :  { %v7738_v30 = vadd.f32 %v7737_v41, %v7736_v15  ;;  %v7747_v7 = vrot.slane %v7746_v47, 4  ;;  %v8242_v56 = vrot.slane %v8043_v43, 5  ;;  %v7754_v58 = vrot.slane %v7753_v50, 4 }
 0x718   :  { %v7974_v12 = vadd.f32 %v15668_v27, %v7893_v17  ;;  %v7975_v32 = vadd.f32 %v15668_v27, %v7894_v11  ;;  %v8244_v23 = vrot.slane %v8044_v34, 4  ;;  %v7896_v40 = vmul.f32 %v15665_v6, %v7731_v48 }
 0x719   :  { %v7748_v44 = vadd.f32 %v7747_v7, %v7746_v47  ;;  %v8239_v55 = vsel %vm8148_vm2, %v14907_v5, %v8040_v42  ;;  %v7724_v49 = vadd.f32 %v7723_v21, %v7722_v16  ;;  %v7745_v29 = vadd.f32 %v7744_v26, %v7743_v13  ;;  %v9865_v42 = vld [vmem:[%s15178_s2 + $0x1f0] sm:$0xff]  ;;  %v15783_v5 = vld [vmem:[#allocation151_spill] sm:$0xff] }
 0x71a   :  { %v7755_v62 = vadd.f32 %v7754_v58, %v7753_v50  ;;  %v8046_v3 = vmax.f32 %v7974_v12, 0.0  ;;  %v7897_v51 = vmul.f32 %v15665_v6, %v7738_v30  ;;  %v8047_v59 = vmax.f32 %v7975_v32, 0.0  ;;  %v14971_v38 = vpop.permute.xlu1 %7169  ;;  %v8065_v21 = vld [vmem:[%s15183_s15 + $0x8] sm:$0xff]  ;;  %v9866_v30 = vld [vmem:[%s15178_s2 + $0x1f8] sm:$0xff] }
 0x71b   :  { %v7749_v20 = vrot.slane %v7748_v44, 2  ;;  %v8241_v1 = vsel %vm8151_vm3, %v8240_v60, %v8239_v55  ;;  %v8246_v4 = vrot.slane %v8045_v46, 3  ;;  %v3626_v52 = vadd.f32 %v9865_v42, %v15783_v5  ;;  %v8064_v60 = vld [vmem:[%s15183_s15] sm:$0xff] }
 0x71c   :  { %v7756_v2 = vrot.slane %v7755_v62, 2  ;;  %v8243_v8 = vsel %vm8154_vm4, %v8242_v56, %v8241_v1  ;;  %v7977_v33 = vadd.f32 %v15668_v27, %v7896_v40  ;;  %v7895_v35 = vmul.f32 %v15665_v6, %v7724_v49 }
 0x71d   :  { %v7750_v10 = vadd.f32 %v7749_v20, %v7748_v44  ;;  %v8245_v43 = vsel %vm8157_vm5, %v8244_v23, %v8243_v8  ;;  %v7898_v53 = vmul.f32 %v15665_v6, %v7745_v29  ;;  %v8248_v16 = vrot.slane %v8046_v3, 2  ;;  %v8067_v20 = vld [vmem:[%s15183_s15 + $0x18] sm:$0xff] }
 0x71e   :  { %v8247_v31 = vsel %vm8160_vm6, %v8246_v4, %v8245_v43  ;;  %v7978_v13 = vadd.f32 %v15668_v27, %v7897_v51  ;;  %v8250_v39 = vrot.slane %v8047_v59, 1  ;;  %v7315_v11 = vmul.f32 %v7162_v19, %v3626_v52 }
 0x71f   :  { %v7751_v54 = vrot.slane %v7750_v10, 1  ;;  %v7757_v15 = vadd.f32 %v7756_v2, %v7755_v62  ;;  %v8249_v28 = vsel %vm8163_vm7, %v8248_v16, %v8247_v31  ;;  %v8049_v36 = vmax.f32 %v7977_v33, 0.0  ;;  %v7164_v26 = vpop.permute.xlu1 %7163 }
 0x720   :  { %v8251_v17 = vsel %vm8166_vm8, %v8250_v39, %v8249_v28  ;;  %v7760_v57 = vsel %vm7325_vm1, %v7315_v11, 0.0  ;;  %v7976_v18 = vadd.f32 %v15668_v27, %v7895_v35  ;;  %v7979_v14 = vadd.f32 %v15668_v27, %v7898_v53 }
 0x721   :  { %v7752_v34 = vadd.f32 %v7751_v54, %v7750_v10  ;;  %8292 = vrot.lane.b32.xlu0 %v8251_v17, %s9880_s19  ;;  %v7761_v48 = vrot.slane %v7760_v57, 4  ;;  %v8050_v41 = vmax.f32 %v7978_v13, 0.0  ;;  %v7758_v24 = vrot.slane %v7757_v15, 1 }
 0x722   :  { %v8252_v47 = vrot.slane %v8049_v36, 7  ;;  %v3627_v7 = vadd.f32 %v9866_v30, %v14915_v0  ;;  %v8048_v50 = vmax.f32 %v7976_v18, 0.0  ;;  %v8051_v56 = vmax.f32 %v7979_v14, 0.0  ;;  %v8066_v0 = vld [vmem:[%s15183_s15 + $0x10] sm:$0xff] }
 0x723   :  { %v7899_v22 = vmul.f32 %v15665_v6, %v7752_v34  ;;  %v7762_v61 = vadd.f32 %v7761_v48, %v7760_v57  ;;  %v9881_v12 = vmov 0.0|0.0   ;;  %v8254_v32 = vrot.slane %v8050_v41, 6  ;;  %v9867_v18 = vld [vmem:[%s15178_s2 + $0x210] sm:$0xff]  ;;  %v9868_v41 = vld [vmem:[%s15178_s2 + $0x208] sm:$0xff] }
 0x724   :  { %9346 = vmatprep.subr.bf16.mxu1 %v9881_v12  ;;  %v9347_v40 = vpack.c.bf16 %v8065_v21, %v8064_v60  ;;  %v7316_v44 = vmul.f32 %v7164_v26, %v3627_v7  ;;  %v7759_v55 = vadd.f32 %v7758_v24, %v7757_v15  ;;  %v8253_v62 = vsel %vm8148_vm2, %v8252_v47, %v8048_v50  ;;  %v3487_v15 = vpop.permute.xlu0 %3486 }
 0x725   :  { %v7980_v46 = vadd.f32 %v15668_v27, %v7899_v22  ;;  %v7763_v58 = vrot.slane %v7762_v61, 2  ;;  %v8256_v59 = vrot.slane %v8051_v56, 5  ;;  %v8255_v2 = vsel %vm8151_vm3, %v8254_v32, %v8253_v62  ;;  %v15784_v22 = vld [vmem:[#allocation26_spill] sm:$0xff] }
 0x726   :  { %9348 = vmatpush3.bf16.msra.mxu1 %v9347_v40  ;;  %v7767_v29 = vsel %vm7325_vm1, %v7316_v44, 0.0  ;;  %v7900_v8 = vmul.f32 %v15665_v6, %v7759_v55  ;;  %v9350_v5 = vpack.c.bf16 %v8067_v20, %v8066_v0  ;;  %v9883_v16 = vmov 0.0  }
 0x727   :  { %v8052_v23 = vmax.f32 %v7980_v46, 0.0  ;;  %v7764_v49 = vadd.f32 %v7763_v58, %v7762_v61  ;;  %v7768_v51 = vrot.slane %v7767_v29, 4  ;;  %9349 = vmatprep.subr.bf16.mxu1 %v9881_v12  ;;  %v8257_v42 = vsel %vm8154_vm4, %v8256_v59, %v8255_v2  ;;  %9295 = vmatprep.mubr.msk.f32.mxu1 %vm9882_vm9, %v9883_v16  ;;  %v9869_v61 = vld [vmem:[%s15178_s2 + $0x218] sm:$0xff]  ;;  %v9871_v46 = vld [vmem:[%s15178_s2 + $0x220] sm:$0xff]  ;;  %v9872_v58 = vld [vmem:[%s15178_s2 + $0x228] sm:$0xff] }
 0x728   :  { %v7981_v43 = vadd.f32 %v15668_v27, %v7900_v8  ;;  %v3630_v14 = vadd.f32 %v9867_v18, %v14893_v25  ;;  %v3629_v24 = vadd.f32 %v9868_v41, %v15784_v22  ;;  %v3631_v60 = vadd.f32 %v9869_v61, %v14933_v63  ;;  %v9870_v25 = vld [vmem:[%s15178_s2 + $0x200] sm:$0xff]  ;;  %v7166_v7 = vpop.permute.xlu0 %7165  ;;  %v9874_v61 = vld [vmem:[%s15178_s2 + $0x230] sm:$0xff] }
 0x729   :  { %v7765_v3 = vrot.slane %v7764_v49, 1  ;;  %v8258_v1 = vrot.slane %v8052_v23, 4  ;;  %v7769_v19 = vadd.f32 %v7768_v51, %v7767_v29  ;;  %v7172_v28 = vpop.permute.xlu1 %7171  ;;  %v3628_v47 = vadd.f32 %v9870_v25, %v14873_v9 }
 0x72a   :  { %9351 = vmatpush3.bf16.msra.mxu1 %v9350_v5  ;;  %v8053_v13 = vmax.f32 %v7981_v43, 0.0  ;;  %v3632_v30 = vadd.f32 %v9871_v46, %v14957_v45  ;;  %v7319_v50 = vmul.f32 %v14971_v38, %v3630_v14  ;;  %v7318_v56 = vmul.f32 %v14946_v37, %v3629_v24 }
 0x72b   :  { %v7766_v4 = vadd.f32 %v7765_v3, %v7764_v49  ;;  %v7770_v33 = vrot.slane %v7769_v19, 2  ;;  %v8259_v10 = vsel %vm8157_vm5, %v8258_v1, %v8257_v42  ;;  %v3633_v12 = vadd.f32 %v9872_v58, %v3487_v15 }
 0x72c   :  { %v8260_v34 = vrot.slane %v8053_v13, 3  ;;  %v7320_v32 = vmul.f32 %v7172_v28, %v3631_v60  ;;  %v7317_v45 = vmul.f32 %v7166_v7, %v3628_v47  ;;  %v7788_v38 = vsel %vm7325_vm1, %v7319_v50, 0.0 }
 0x72d   :  { %v7901_v52 = vmul.f32 %v15665_v6, %v7766_v4  ;;  %v7771_v35 = vadd.f32 %v7770_v33, %v7769_v19  ;;  %v7781_v55 = vsel %vm7325_vm1, %v7318_v56, 0.0  ;;  %v7789_v62 = vrot.slane %v7788_v38, 4  ;;  %v3489_v19 = vpop.permute.xlu0 %3488 }
 0x72e   :  { %v8261_v21 = vsel %vm8160_vm6, %v8260_v34, %v8259_v10  ;;  %v7795_v37 = vsel %vm7325_vm1, %v7320_v32, 0.0  ;;  %v7774_v29 = vsel %vm7325_vm1, %v7317_v45, 0.0  ;;  %v7782_v51 = vrot.slane %v7781_v55, 4 }
 0x72f   :  { %v7982_v53 = vadd.f32 %v15668_v27, %v7901_v52  ;;  %v7772_v31 = vrot.slane %v7771_v35, 1  ;;  %v7796_v0 = vrot.slane %v7795_v37, 4  ;;  %v7775_v59 = vrot.slane %v7774_v29, 4 }
 0x730   :  { %v7790_v2 = vadd.f32 %v7789_v62, %v7788_v38  ;;  %v7783_v8 = vadd.f32 %v7782_v51, %v7781_v55  ;;  %v3634_v60 = vadd.f32 %v9874_v61, %v3489_v19 }
 0x731   :  { %v7773_v54 = vadd.f32 %v7772_v31, %v7771_v35  ;;  %v8054_v39 = vmax.f32 %v7982_v53, 0.0  ;;  %v7797_v4 = vadd.f32 %v7796_v0, %v7795_v37  ;;  %v7776_v5 = vadd.f32 %v7775_v59, %v7774_v29 }
 0x732   :  { %v7791_v33 = vrot.slane %v7790_v2, 2  ;;  %v7784_v10 = vrot.slane %v7783_v8, 2 }
 0x733   :  { %v7902_v11 = vmul.f32 %v15665_v6, %v7773_v54  ;;  %v8262_v17 = vrot.slane %v8054_v39, 2  ;;  %v7798_v43 = vrot.slane %v7797_v4, 2  ;;  %v7777_v53 = vrot.slane %v7776_v5, 2  ;;  %v3491_v54 = vpop.permute.xlu0 %3490 }
 0x734   :  { %v7792_v13 = vadd.f32 %v7791_v33, %v7790_v2  ;;  %v7785_v39 = vadd.f32 %v7784_v10, %v7783_v8 }
 0x735   :  { %v7983_v36 = vadd.f32 %v15668_v27, %v7902_v11  ;;  %v8263_v63 = vsel %vm8163_vm7, %v8262_v17, %v8261_v21  ;;  %v7799_v11 = vadd.f32 %v7798_v43, %v7797_v4  ;;  %v7778_v28 = vadd.f32 %v7777_v53, %v7776_v5 }
 0x736   :  { %v7786_v14 = vrot.slane %v7785_v39, 1 }
 0x737   :  { %v8055_v57 = vmax.f32 %v7983_v36, 0.0  ;;  %v9873_v36 = vld [vmem:[%s15178_s2 + $0x238] sm:$0xff]  ;;  %v7779_v24 = vrot.slane %v7778_v28, 1 }
 0x738   :  { %v3635_v34 = vadd.f32 %v9873_v36, %v3491_v54 }
 0x739   :  { %v8264_v26 = vrot.slane %v8055_v57, 1  ;;  %v7793_v57 = vrot.slane %v7792_v13, 1  ;;  %v7780_v58 = vadd.f32 %v7779_v24, %v7778_v28 }
 0x73a   :  { %v7174_v48 = vpop.permute.xlu1 %7173 }
 0x73b   :  { %v8265_v9 = vsel %vm8166_vm8, %v8264_v26, %v8263_v63  ;;  %v7321_v23 = vmul.f32 %v7174_v48, %v3632_v30  ;;  %v7800_v48 = vrot.slane %v7799_v11, 1  ;;  %v7794_v25 = vadd.f32 %v7793_v57, %v7792_v13 }
 0x73c   :  { %8294 = vrot.lane.b32.xlu1 %v8265_v9, %s9880_s19  ;;  %v7787_v30 = vadd.f32 %v7786_v14, %v7785_v39 }
 0x73d   :  { %v7802_v49 = vsel %vm7325_vm1, %v7321_v23, 0.0  ;;  %v7801_v7 = vadd.f32 %v7800_v48, %v7799_v11  ;;  %v7905_v9 = vmul.f32 %v15665_v6, %v7794_v25 }
 0x73e   :  { %v7176_v40 = vpop.permute.xlu1 %7175  ;;  %v7803_v20 = vrot.slane %v7802_v49, 4  ;;  %v7904_v45 = vmul.f32 %v15665_v6, %v7787_v30 }
 0x73f   :  { %v7322_v44 = vmul.f32 %v7176_v40, %v3633_v12  ;;  %v7986_v62 = vadd.f32 %v15668_v27, %v7905_v9 }
 0x740   :  { %v7804_v42 = vadd.f32 %v7803_v20, %v7802_v49  ;;  %v7903_v49 = vmul.f32 %v15665_v6, %v7780_v58  ;;  %v7985_v0 = vadd.f32 %v15668_v27, %v7904_v45 }
 0x741   :  { %v7809_v3 = vsel %vm7325_vm1, %v7322_v44, 0.0  ;;  %v7906_v44 = vmul.f32 %v15665_v6, %v7801_v7  ;;  %v8058_v19 = vmax.f32 %v7986_v62, 0.0 }
 0x742   :  { %v7810_v1 = vrot.slane %v7809_v3, 4  ;;  %v7805_v35 = vrot.slane %v7804_v42, 2  ;;  %v7984_v8 = vadd.f32 %v15668_v27, %v7903_v49 }
 0x743   :  { %v7987_v20 = vadd.f32 %v15668_v27, %v7906_v44  ;;  %v8268_v54 = vrot.slane %v8058_v19, 6 }
 0x744   :  { %v7811_v52 = vadd.f32 %v7810_v1, %v7809_v3  ;;  %v7806_v15 = vadd.f32 %v7805_v35, %v7804_v42  ;;  %v8056_v35 = vmax.f32 %v7984_v8, 0.0  ;;  %v8430_v8 = vld [vmem:[%s15185_s0 + $0x20] sm:$0xff] }
 0x745   :  { %v8059_v33 = vmax.f32 %v7987_v20, 0.0 }
 0x746   :  { %v7812_v31 = vrot.slane %v7811_v52, 2  ;;  %v7807_v22 = vrot.slane %v7806_v15, 1 }
 0x748   :  { %v7813_v17 = vadd.f32 %v7812_v31, %v7811_v52  ;;  %v7808_v63 = vadd.f32 %v7807_v22, %v7806_v15  ;;  %v8057_v52 = vmax.f32 %v7985_v0, 0.0  ;;  %v8270_v15 = vrot.slane %v8059_v33, 5 }
 0x74a   :  { %v7814_v21 = vrot.slane %v7813_v17, 1  ;;  %v7907_v38 = vmul.f32 %v15665_v6, %v7808_v63  ;;  %v8266_v11 = vrot.slane %v8057_v52, 7 }
 0x74c   :  { %v7815_v12 = vadd.f32 %v7814_v21, %v7813_v17  ;;  %v7988_v59 = vadd.f32 %v15668_v27, %v7907_v38 }
 0x74e   :  { %v7908_v29 = vmul.f32 %v15665_v6, %v7815_v12  ;;  %v8060_v10 = vmax.f32 %v7988_v59, 0.0 }
 0x750   :  { %v7989_v4 = vadd.f32 %v15668_v27, %v7908_v29  ;;  %v8272_v28 = vrot.slane %v8060_v10, 4  ;;  %v8431_v10 = vld [vmem:[%s15185_s0 + $0x28] sm:$0xff] }
 0x752   :  { %v8061_v53 = vmax.f32 %v7989_v4, 0.0 }
 0x754   :  { %v7180_v18 = vpop.permute.xlu1 %7179 }
 0x755   :  { %v7324_v41 = vmul.f32 %v7180_v18, %v3635_v34  ;;  %v8267_v34 = vsel %vm8148_vm2, %v8266_v11, %v8056_v35  ;;  %v8274_v18 = vrot.slane %v8061_v53, 3 }
 0x757   :  { %v7823_v26 = vsel %vm7325_vm1, %v7324_v41, 0.0  ;;  %v7178_v46 = vpop.permute.xlu0 %7177 }
 0x758   :  { %v7824_v47 = vrot.slane %v7823_v26, 4  ;;  %v7323_v50 = vmul.f32 %v7178_v46, %v3634_v60 }
 0x75a   :  { %v7825_v56 = vadd.f32 %v7824_v47, %v7823_v26  ;;  %v7816_v32 = vsel %vm7325_vm1, %v7323_v50, 0.0  ;;  %v8688_v50 = vld [vmem:[%s15184_s16] ss:$0 sm:$0xff] }
 0x75b   :  { %v7817_v40 = vrot.slane %v7816_v32, 4 }
 0x75c   :  { %v7826_v23 = vrot.slane %v7825_v56, 2 }
 0x75d   :  { %v7818_v37 = vadd.f32 %v7817_v40, %v7816_v32 }
 0x75e   :  { %v7827_v55 = vadd.f32 %v7826_v23, %v7825_v56  ;;  %v8426_v56 = vld [vmem:[%s15185_s0] sm:$0xff] }
 0x75f   :  { %v7819_v51 = vrot.slane %v7818_v37, 2 }
 0x760   :  { %v7828_v3 = vrot.slane %v7827_v55, 1 }
 0x761   :  { %v7820_v2 = vadd.f32 %v7819_v51, %v7818_v37  ;;  %v8283_v17 = vpop.permute.xlu1 %8282  ;;  %v8428_v37 = vld [vmem:[%s15185_s0 + $0x10] sm:$0xff]  ;;  %v8429_v51 = vld [vmem:[%s15185_s0 + $0x18] sm:$0xff] }
 0x762   :  { %v7829_v1 = vadd.f32 %v7828_v3, %v7827_v55 }
 0x763   :  { %v7821_v5 = vrot.slane %v7820_v2, 1 }
 0x764   :  { %v7910_v42 = vmul.f32 %v15665_v6, %v7829_v1 }
 0x765   :  { %v7822_v43 = vadd.f32 %v7821_v5, %v7820_v2 }
 0x766   :  { %v7991_v13 = vadd.f32 %v15668_v27, %v7910_v42 }
 0x767   :  { %v8281_v31 = vpop.permute.xlu0 %8280  ;;  %v7909_v39 = vmul.f32 %v15665_v6, %v7822_v43  ;;  %v8269_v6 = vsel %vm8151_vm3, %v8268_v54, %v8267_v34  ;;  %v8432_v54 = vld [vmem:[%s15185_s0 + $0x30] sm:$0xff]  ;;  %v8433_v34 = vld [vmem:[%s15185_s0 + $0x38] sm:$0xff] }
 0x768   :  { %9296 = vmatmul.mubr.msk.f32.vlgmr.msra.gmra.mrb[98].mxu1 %vm1599_vm0, %v8281_v31  ;;  %v8063_v57 = vmax.f32 %v7991_v13, 0.0  ;;  %v8271_v48 = vsel %vm8154_vm4, %v8270_v15, %v8269_v6 }
 0x769   :  { %9298 = vmatprep.mubr.msk.f32.mxu1 %vm9882_vm9, %v9883_v16  ;;  %v7990_v36 = vadd.f32 %v15668_v27, %v7909_v39  ;;  %v8273_v41 = vsel %vm8157_vm5, %v8272_v28, %v8271_v48  ;;  %v8434_v48 = vld [vmem:[%s15185_s0 + $0x40] sm:$0xff] }
 0x76a   :  { %v8275_v27 = vsel %vm8160_vm6, %v8274_v18, %v8273_v41  ;;  %v8278_v24 = vrot.slane %v8063_v57, 1 }
 0x76b   :  { %v8062_v14 = vmax.f32 %v7990_v36, 0.0 }
 0x76c   :  { %9299 = vmatmul.mubr.msk.f32.gmra.mrb[100].mxu1 %vm1599_vm0, %v8283_v17 }
 0x76d   :  { %9301 = vmatprep.mubr.msk.f32.mxu1 %vm9882_vm9, %v9883_v16  ;;  %v8276_v22 = vrot.slane %v8062_v14, 2 }
 0x76f   :  { %v8277_v61 = vsel %vm8163_vm7, %v8276_v22, %v8275_v27  ;;  %v8287_v26 = vpop.permute.xlu1 %8286 }
 0x770   :  { %v8279_v60 = vsel %vm8166_vm8, %v8278_v24, %v8277_v61 }
 0x771   :  { %8296 = vrot.lane.b32.xlu0 %v8279_v60, %s9880_s19 }
 0x776   :  { %v8285_v21 = vpop.permute.xlu0 %8284 }
 0x777   :  { %9302 = vmatmul.mubr.msk.f32.gmra.mrb[102].mxu1 %vm1599_vm0, %v8285_v21 }
 0x778   :  { %9304 = vmatprep.mubr.msk.f32.mxu1 %vm9882_vm9, %v9883_v16 }
 0x77b   :  { %9305 = vmatmul.mubr.msk.f32.gmra.mrb[104].mxu1 %vm1599_vm0, %v8287_v26 }
 0x77c   :  { %9307 = vmatprep.mubr.msk.f32.mxu1 %vm9882_vm9, %v9883_v16  ;;  %v8289_v25 = vpop.permute.xlu0 %8288 }
 0x77f   :  { %9308 = vmatmul.mubr.msk.f32.gmra.mrb[106].mxu1 %vm1599_vm0, %v8289_v25 }
 0x780   :  { %9310 = vmatprep.mubr.msk.f32.mxu1 %vm9882_vm9, %v9883_v16 }
 0x788   :  { %v8291_v47 = vpop.permute.xlu1 %8290 }
 0x789   :  { %9311 = vmatmul.mubr.msk.f32.gmra.mrb[108].mxu1 %vm1599_vm0, %v8291_v47 }
 0x78a   :  { %9313 = vmatprep.mubr.msk.f32.mxu1 %vm9882_vm9, %v9883_v16 }
 0x793   :  { %v8293_v46 = vpop.permute.xlu0 %8292 }
 0x794   :  { %9314 = vmatmul.mubr.msk.f32.gmra.mrb[110].mxu1 %vm1599_vm0, %v8293_v46 }
 0x795   :  { %9316 = vmatprep.mubr.msk.f32.mxu1 %vm9882_vm9, %v9883_v16 }
 0x7ae   :  { %v8295_v30 = vpop.permute.xlu1 %8294 }
 0x7af   :  { %9317 = vmatmul.mubr.msk.f32.gmra.mrb[112].mxu1 %vm1599_vm0, %v8295_v30 }
 0x7b0   :  { %9319 = vmatprep.mubr.msk.f32.mxu1 %vm9882_vm9, %v9883_v16  ;;  %v8427_v16 = vld [vmem:[%s15185_s0 + $0x8] sm:$0xff] }
 0x7e3   :  { %v8297_v7 = vpop.permute.xlu0 %8296 }
 0x7e4   :  { %9320 = vmatmul.mubr.msk.f32.gmra.mrb[114].mxu1 %vm1599_vm0, %v8297_v7 }
 0x83b   :  { %v8382_v63 = vpop.f32.mrb[98].mxu1 }
 0x83c   :  { %v8383_v58 = vadd.f32 %v8688_v50, %v8382_v63  ;;  %v9297_v12 = vpop.f32.mrb[99].mxu1 }
 0x83e   :  { %v8435_v32 = vadd.f32 %v8426_v56, %v8383_v58 }
 0x83f   :  { %v8387_v9 = vpop.f32.mrb[100].mxu1 }
 0x840   :  { %v8444_v23 = vmax.f32 %v8435_v32, 0.0  ;;  %v8388_v40 = vadd.f32 %v8688_v50, %v8387_v9  ;;  %v9300_v45 = vpop.f32.mrb[101].mxu1 }
 0x842   :  { %8453 = vst.msk [vmem:[%s15186_s17] sm:$0xff] %vm1599_vm0, %v8444_v23  ;;  %v8436_v44 = vadd.f32 %v8427_v16, %v8388_v40 }
 0x844   :  { %v8445_v38 = vmax.f32 %v8436_v44, 0.0 }
 0x846   :  { %8454 = vst.msk [vmem:[%s15186_s17 + $0x8] sm:$0xff] %vm1599_vm0, %v8445_v38 }
 0x84a   :  { %v8392_v55 = vpop.f32.mrb[102].mxu1 }
 0x84b   :  { %v8393_v49 = vadd.f32 %v8688_v50, %v8392_v55  ;;  %v9303_v29 = vpop.f32.mrb[103].mxu1 }
 0x84d   :  { %v8437_v62 = vadd.f32 %v8428_v37, %v8393_v49 }
 0x84e   :  { %v8397_v3 = vpop.f32.mrb[104].mxu1 }
 0x84f   :  { %v8446_v0 = vmax.f32 %v8437_v62, 0.0  ;;  %v8398_v20 = vadd.f32 %v8688_v50, %v8397_v3  ;;  %v9306_v59 = vpop.f32.mrb[105].mxu1 }
 0x851   :  { %8455 = vst.msk [vmem:[%s15186_s17 + $0x10] sm:$0xff] %vm1599_vm0, %v8446_v0  ;;  %v8438_v1 = vadd.f32 %v8429_v51, %v8398_v20 }
 0x852   :  { %v8402_v2 = vpop.f32.mrb[106].mxu1 }
 0x853   :  { %v8447_v4 = vmax.f32 %v8438_v1, 0.0  ;;  %v8403_v19 = vadd.f32 %v8688_v50, %v8402_v2  ;;  %v9309_v42 = vpop.f32.mrb[107].mxu1 }
 0x855   :  { %8456 = vst.msk [vmem:[%s15186_s17 + $0x18] sm:$0xff] %vm1599_vm0, %v8447_v4  ;;  %v8439_v5 = vadd.f32 %v8430_v8, %v8403_v19 }
 0x857   :  { %v8448_v52 = vmax.f32 %v8439_v5, 0.0 }
 0x859   :  { %8457 = vst.msk [vmem:[%s15186_s17 + $0x20] sm:$0xff] %vm1599_vm0, %v8448_v52 }
 0x85c   :  { %v8407_v33 = vpop.f32.mrb[108].mxu1 }
 0x85d   :  { %v8408_v43 = vadd.f32 %v8688_v50, %v8407_v33  ;;  %v9312_v35 = vpop.f32.mrb[109].mxu1 }
 0x85f   :  { %v8440_v53 = vadd.f32 %v8431_v10, %v8408_v43 }
 0x861   :  { %v8449_v31 = vmax.f32 %v8440_v53, 0.0 }
 0x863   :  { %8458 = vst.msk [vmem:[%s15186_s17 + $0x28] sm:$0xff] %vm1599_vm0, %v8449_v31 }
 0x867   :  { %v8412_v13 = vpop.f32.mrb[110].mxu1 }
 0x868   :  { %v8413_v39 = vadd.f32 %v8688_v50, %v8412_v13  ;;  %v9315_v11 = vpop.f32.mrb[111].mxu1 }
 0x86a   :  { %v8441_v15 = vadd.f32 %v8432_v54, %v8413_v39 }
 0x86c   :  { %v8450_v28 = vmax.f32 %v8441_v15, 0.0 }
 0x86e   :  { %8459 = vst.msk [vmem:[%s15186_s17 + $0x30] sm:$0xff] %vm1599_vm0, %v8450_v28 }
 0x882   :  { %v8417_v36 = vpop.f32.mrb[112].mxu1 }
 0x883   :  { %v8418_v17 = vadd.f32 %v8688_v50, %v8417_v36  ;;  %v9318_v57 = vpop.f32.mrb[113].mxu1 }
 0x885   :  { %v8442_v18 = vadd.f32 %v8433_v34, %v8418_v17 }
 0x887   :  { %v8451_v14 = vmax.f32 %v8442_v18, 0.0 }
 0x889   :  { %8460 = vst.msk [vmem:[%s15186_s17 + $0x38] sm:$0xff] %vm1599_vm0, %v8451_v14 }
 0x8b7   :  { %v8422_v6 = vpop.f32.mrb[114].mxu1 }
 0x8b8   :  { %v8423_v41 = vadd.f32 %v8688_v50, %v8422_v6  ;;  %v9321_v22 = vpop.f32.mrb[115].mxu1 }
 0x8ba   :  { %v8443_v27 = vadd.f32 %v8434_v48, %v8423_v41 }
 0x8bc   :  { %v8452_v24 = vmax.f32 %v8443_v27, 0.0 }
 0x8be   :  { %8461 = vst.msk [vmem:[%s15186_s17 + $0x40] sm:$0xff] %vm1599_vm0, %v8452_v24 }

</bundles_post_ra>
